<compile_context>
chip_gen: v7x
topology: tpu7x:2x2x1
jax: 0.10.0
libtpu: 0.0.40
codegen_flags: <defaults>
</compile_context>

<pallas_src>
import functools

import jax
import jax.numpy as jnp
from jax.experimental import pallas as pl
from jax.experimental.pallas import tpu as pltpu

LRELU_SLOPE = 0.1
BN_EPS = 1e-5
CC_DIM = 1
DC_DIM = 10
OUT_DIM = 1 + CC_DIM + DC_DIM

_VMEM = pl.BlockSpec(memory_space=pltpu.MemorySpace.VMEM)


def _lrelu(v):
    return jnp.where(v >= 0.0, v, LRELU_SLOPE * v)


def _round_up(n, m):
    return ((n + m - 1) // m) * m


# ------------------------------ fused kernel --------------------------------

def _discriminator_kernel(p_ref, w1_ref, w2_ref, w3_ref, w4_ref, vecs_ref,
                          o_ref, lhs3_ref, *, batch, bpad, cc_dim, dc_dim):
    f32 = jnp.float32
    bf16 = jnp.bfloat16
    rows = 49 * bpad                       # (7*7 conv2 positions) x padded batch
    n2 = jnp.float32(batch * 49)           # real BatchNorm2d sample count
    nb = jnp.float32(batch)                # real BatchNorm1d sample count

    vecs = vecs_ref[...]                   # (8,128) packed small vectors
    b2, g2, be2 = vecs[0:1, :], vecs[1:2, :], vecs[2:3, :]
    b3, g3, be3 = vecs[3:4, :], vecs[4:5, :], vecs[5:6, :]
    b4 = vecs[6:7, :]

    # conv1 for all 16 conv2 taps in ONE GEMM (block-diagonal conv1 weight;
    # conv1 bias is carried by per-tap indicator columns so that conv2-pad and
    # batch-pad rows stay exactly zero), then LeakyReLU.
    pre1 = jnp.dot(p_ref[...], w1_ref[...], preferred_element_type=f32)   # (rows,1024)
    y1 = _lrelu(pre1).astype(bf16)

    # conv2: single K=1024 GEMM -> all 16-tap accumulation stays inside the MXU.
    x2 = jnp.dot(y1, w2_ref[...], preferred_element_type=f32) + b2        # (rows,128)

    # BatchNorm2d(128) with batch statistics over (batch,7,7) + LeakyReLU.
    # Valid-row mask generated in-kernel (rows ordered (spatial, batch)).
    ridx = jax.lax.broadcasted_iota(jnp.int32, (rows, 128), 0)
    if bpad & (bpad - 1) == 0:
        within = jnp.bitwise_and(ridx, bpad - 1)
    else:
        within = ridx % bpad
    vmask = (within < batch).astype(f32)
    mean2 = jnp.sum(x2 * vmask, axis=0, keepdims=True) / n2
    xc2 = x2 - mean2
    var2 = jnp.sum(xc2 * xc2 * vmask, axis=0, keepdims=True) / n2          # biased
    y2 = _lrelu(xc2 * jax.lax.rsqrt(var2 + BN_EPS) * g2 + be2)             # (rows,128)

    # fc1 lhs assembly: 49 aligned (bpad,128) tile moves -> (bpad, 6272) scratch.
    for s in range(49):
        lhs3_ref[:, s * 128:(s + 1) * 128] = y2[s * bpad:(s + 1) * bpad, :]
    lhs3 = lhs3_ref[...].astype(bf16)                                      # (bpad,6272)

    # fc1: ONE K=6272 GEMM (w3 pre-permuted so lane order (spatial, channel)
    # matches PyTorch's NCHW flatten), then BatchNorm1d + LeakyReLU.
    x3 = jnp.dot(lhs3, w3_ref[...], preferred_element_type=f32) + b3       # (bpad,128)
    rmask = (jax.lax.broadcasted_iota(jnp.int32, (bpad, 128), 0)
             < batch).astype(f32)
    mean3 = jnp.sum(x3 * rmask, axis=0, keepdims=True) / nb
    xc3 = x3 - mean3
    var3 = jnp.sum(xc3 * xc3 * rmask, axis=0, keepdims=True) / nb          # biased
    y3 = _lrelu(xc3 * jax.lax.rsqrt(var3 + BN_EPS) * g3 + be3).astype(bf16)

    # fc2 (weights padded to 128 lanes) + head, assembled with lane masks and
    # written with a single lane-dense full-tile store.
    out = jnp.dot(y3, w4_ref[...], preferred_element_type=f32) + b4        # (bpad,128)
    lane = jax.lax.broadcasted_iota(jnp.int32, (bpad, 128), 1)
    lo = 1 + cc_dim
    hi = lo + dc_dim
    is_soft = (lane >= lo) & (lane < hi)

    e0 = jnp.exp(-jnp.abs(out))                     # numerically stable sigmoid
    sig = jnp.where(out >= 0.0, 1.0 / (1.0 + e0), e0 / (1.0 + e0))

    m = jnp.max(jnp.where(is_soft, out, -jnp.inf), axis=-1, keepdims=True)
    e = jnp.exp(jnp.where(is_soft, out - m, -jnp.inf))
    soft = e / jnp.sum(e, axis=-1, keepdims=True)

    o_ref[...] = jnp.where(lane == 0, sig, jnp.where(is_soft, soft, out))


# ------------------------------- glue (JAX) ---------------------------------

def build_conv2_tap_patches(x, bpad):
    """For every (conv2 output position, batch) row, lane-concatenate the 16
    conv2 taps' 4x4 conv1 input patches, each followed by an indicator column
    (carries conv1's bias only on valid positions).  Output (49*bpad, 272) bf16
    with row index (oh2*7 + ow2)*bpad + b.  Rows/blocks for conv2 zero padding
    and batch padding are all-zero.  Only the raw input is touched here."""
    b = x.shape[0]
    # conv1 patches at its 14x14 output positions: k=4, stride=2, pad=1.
    xpad = jnp.pad(x, ((0, 0), (0, 0), (1, 1), (1, 1)))            # (B,1,30,30)
    cols = [xpad[:, 0, kh:kh + 28:2, kw:kw + 28:2]                 # (B,14,14)
            for kh in range(4) for kw in range(4)]
    patches = jnp.stack(cols, axis=-1)                             # (B,14,14,16)
    ones = jnp.ones(patches.shape[:-1] + (1,), patches.dtype)
    patches = jnp.concatenate([patches, ones], axis=-1)            # (B,14,14,17)
    # conv2's pad=1 ring on the 14x14 conv1 grid (indicator is 0 there).
    pp = jnp.pad(patches, ((0, 0), (1, 1), (1, 1), (0, 0)))        # (B,16,16,17)
    ppt = pp.transpose(1, 2, 0, 3)                                 # (16,16,B,17)
    # one strided gather per conv2 tap, lane-concatenated in tap order.
    taps = [ppt[kh:kh + 14:2, kw:kw + 14:2]                        # (7,7,B,17)
            for kh in range(4) for kw in range(4)]
    cat = jnp.concatenate(taps, axis=-1)                           # (7,7,B,272)
    cat = jnp.pad(cat, ((0, 0), (0, 0), (0, bpad - b), (0, 0)))    # (7,7,bpad,272)
    return cat.reshape(49 * bpad, 16 * 17).astype(jnp.bfloat16)


def init_params(key):
    ks = jax.random.split(key, 8)

    def nrm(k_, shape, scale=0.05):
        return (scale * jax.random.normal(k_, shape)).astype(jnp.float32)

    # PyTorch-shaped parameters, deterministically initialized.
    w1 = nrm(ks[0], (64, 1, 4, 4))                 # Conv2d(1, 64, 4, 2, 1)
    b1 = nrm(ks[1], (64,))
    w2 = nrm(ks[2], (128, 64, 4, 4))               # Conv2d(64, 128, 4, 2, 1)
    b2 = nrm(ks[3], (128,))
    w3 = nrm(ks[4], (128, 128 * 7 * 7), 0.02)      # Linear(6272, 128)  (out,in)
    b3 = nrm(ks[5], (128,))
    w4 = nrm(ks[6], (OUT_DIM, 128))                # Linear(128, 12)
    b4 = nrm(ks[7], (OUT_DIM,))

    # Weight permutations / packing done ONCE here.
    w1_aug = jnp.concatenate([w1.reshape(64, 16).T, b1[None, :]], axis=0)   # (17,64)
    w1blk = jnp.zeros((16 * 17, 16 * 64), jnp.float32)                      # block-diag
    for t in range(16):
        w1blk = w1blk.at[t * 17:(t + 1) * 17, t * 64:(t + 1) * 64].set(w1_aug)
    w2cat = w2.transpose(2, 3, 1, 0).reshape(16 * 64, 128)                  # (1024,128)
    w3r = w3.reshape(128, 128, 7, 7).transpose(2, 3, 1, 0).reshape(49 * 128, 128)
    w4p = jnp.zeros((128, 128), jnp.float32).at[:, :OUT_DIM].set(w4.T)
    b4p = jnp.zeros((128,), jnp.float32).at[:OUT_DIM].set(b4)

    zeros = jnp.zeros((128,), jnp.float32)
    ones = jnp.ones((128,), jnp.float32)
    vecs = jnp.stack([b2, ones, zeros,        # conv2 bias, BN2d gamma, BN2d beta
                      b3, ones, zeros,        # fc1 bias,  BN1d gamma, BN1d beta
                      b4p, zeros], axis=0)    # fc2 bias (lane-padded), unused

    return {
        "w1blk": w1blk.astype(jnp.bfloat16),   # (272, 1024) block-diag conv1 w+b
        "w2cat": w2cat.astype(jnp.bfloat16),   # (1024, 128)
        "w3r": w3r.astype(jnp.bfloat16),       # (6272, 128)
        "w4p": w4p.astype(jnp.bfloat16),       # (128, 128)
        "vecs": vecs,                          # (8, 128) f32 packed vectors
    }


def discriminator_forward(x, params):
    b = x.shape[0]
    bpad = max(8, _round_up(b, 8))          # keep all in-kernel row slices 8-aligned
    patches = build_conv2_tap_patches(x, bpad)                     # (49*bpad, 272)

    kernel = functools.partial(_discriminator_kernel, batch=b, bpad=bpad,
                               cc_dim=CC_DIM, dc_dim=DC_DIM)
    out_full = pl.pallas_call(
        kernel,
        out_shape=jax.ShapeDtypeStruct((bpad, 128), jnp.float32),
        in_specs=[_VMEM] * 6,
        out_specs=_VMEM,
        scratch_shapes=[pltpu.VMEM((bpad, 49 * 128), jnp.float32)],
        compiler_params=pltpu.CompilerParams(vmem_limit_bytes=32 * 1024 * 1024),
    )(patches, params["w1blk"], params["w2cat"], params["w3r"], params["w4p"],
      params["vecs"])
    return out_full[:b, :OUT_DIM]


if __name__ == "__main__":
    key = jax.random.PRNGKey(0)
    kx, kp = jax.random.split(key)
    x = jax.random.normal(kx, (2, 1, 28, 28), dtype=jnp.float32)   # MNIST NCHW
    params = init_params(kp)

    out = jax.jit(discriminator_forward)(x, params)
    out = jax.block_until_ready(out)

    assert out.shape == (2, OUT_DIM)
    assert bool(jnp.all(jnp.isfinite(out)))
    print("KERNEL_OK")
</pallas_src>

<mosaic_0001>
module attributes {stable_mosaic.version = 11 : i64} {
  func.func @_discriminator_kernel(%arg0: memref<392x272xbf16, #tpu.memory_space<vmem>>, %arg1: memref<272x1024xbf16, #tpu.memory_space<vmem>>, %arg2: memref<1024x128xbf16, #tpu.memory_space<vmem>>, %arg3: memref<6272x128xbf16, #tpu.memory_space<vmem>>, %arg4: memref<128x128xbf16, #tpu.memory_space<vmem>>, %arg5: memref<8x128xf32, #tpu.memory_space<vmem>>, %arg6: memref<8x128xf32, #tpu.memory_space<vmem>>, %arg7: memref<8x6272xf32, #tpu.memory_space<vmem>>) attributes {dimension_semantics = [], scalar_prefetch = 0 : i64, scratch_operands = 1 : i64, tpu.core_type = #tpu.core_type<tc>} {
    %c0 = arith.constant 0 : index
    %c0_0 = arith.constant 0 : index
    %0 = vector.load %arg5[%c0, %c0_0] : memref<8x128xf32, #tpu.memory_space<vmem>>, vector<8x128xf32>
    %1 = vector.extract_strided_slice %0 {offsets = [0, 0], sizes = [1, 128], strides = [1, 1]} : vector<8x128xf32> to vector<1x128xf32>
    %2 = vector.extract_strided_slice %0 {offsets = [1, 0], sizes = [1, 128], strides = [1, 1]} : vector<8x128xf32> to vector<1x128xf32>
    %3 = vector.extract_strided_slice %0 {offsets = [2, 0], sizes = [1, 128], strides = [1, 1]} : vector<8x128xf32> to vector<1x128xf32>
    %4 = vector.extract_strided_slice %0 {offsets = [3, 0], sizes = [1, 128], strides = [1, 1]} : vector<8x128xf32> to vector<1x128xf32>
    %5 = vector.extract_strided_slice %0 {offsets = [4, 0], sizes = [1, 128], strides = [1, 1]} : vector<8x128xf32> to vector<1x128xf32>
    %6 = vector.extract_strided_slice %0 {offsets = [5, 0], sizes = [1, 128], strides = [1, 1]} : vector<8x128xf32> to vector<1x128xf32>
    %7 = vector.extract_strided_slice %0 {offsets = [6, 0], sizes = [1, 128], strides = [1, 1]} : vector<8x128xf32> to vector<1x128xf32>
    %c0_1 = arith.constant 0 : index
    %c0_2 = arith.constant 0 : index
    %8 = vector.load %arg0[%c0_1, %c0_2] : memref<392x272xbf16, #tpu.memory_space<vmem>>, vector<392x272xbf16>
    %c0_3 = arith.constant 0 : index
    %c0_4 = arith.constant 0 : index
    %9 = vector.load %arg1[%c0_3, %c0_4] : memref<272x1024xbf16, #tpu.memory_space<vmem>>, vector<272x1024xbf16>
    %cst = arith.constant dense<0.000000e+00> : vector<392x1024xf32>
    %10 = tpu.matmul %8, %9, %cst {dimension_numbers = #tpu.dot_dimension_numbers<[1], [0], [0], [1], [0, 0, 1, 1], [], []>} : vector<392x272xbf16>, vector<272x1024xbf16>, vector<392x1024xf32> -> vector<392x1024xf32>
    %cst_5 = arith.constant 0.000000e+00 : f32
    %11 = vector.broadcast %cst_5 : f32 to vector<392x1024xf32>
    %12 = arith.cmpf oge, %10, %11 : vector<392x1024xf32>
    %cst_6 = arith.constant 1.000000e-01 : f32
    %13 = vector.broadcast %cst_6 : f32 to vector<392x1024xf32>
    %14 = arith.mulf %13, %10 : vector<392x1024xf32>
    %15 = arith.select %12, %10, %14 : vector<392x1024xi1>, vector<392x1024xf32>
    %16 = arith.truncf %15 : vector<392x1024xf32> to vector<392x1024xbf16>
    %c0_7 = arith.constant 0 : index
    %c0_8 = arith.constant 0 : index
    %17 = vector.load %arg2[%c0_7, %c0_8] : memref<1024x128xbf16, #tpu.memory_space<vmem>>, vector<1024x128xbf16>
    %cst_9 = arith.constant dense<0.000000e+00> : vector<392x128xf32>
    %18 = tpu.matmul %16, %17, %cst_9 {dimension_numbers = #tpu.dot_dimension_numbers<[1], [0], [0], [1], [0, 0, 1, 1], [], []>} : vector<392x1024xbf16>, vector<1024x128xbf16>, vector<392x128xf32> -> vector<392x128xf32>
    %19 = vector.broadcast %1 : vector<1x128xf32> to vector<392x128xf32>
    %20 = arith.addf %18, %19 : vector<392x128xf32>
    %21 = tpu.iota {dimensions = array<i32: 0>} : vector<392x128xi32>
    %c7_i32 = arith.constant 7 : i32
    %22 = vector.broadcast %c7_i32 : i32 to vector<392x128xi32>
    %23 = arith.andi %21, %22 : vector<392x128xi32>
    %c2_i32 = arith.constant 2 : i32
    %24 = vector.broadcast %c2_i32 : i32 to vector<392x128xi32>
    %25 = arith.cmpi slt, %23, %24 : vector<392x128xi32>
    %26 = arith.extui %25 : vector<392x128xi1> to vector<392x128xi32>
    %27 = arith.sitofp %26 : vector<392x128xi32> to vector<392x128xf32>
    %28 = arith.mulf %20, %27 : vector<392x128xf32>
    %cst_10 = arith.constant dense<0.000000e+00> : vector<128xf32>
    %29 = vector.multi_reduction <add>, %28, %cst_10 [0] : vector<392x128xf32> to vector<128xf32>
    %30 = vector.shape_cast %29 : vector<128xf32> to vector<1x128xf32>
    %cst_11 = arith.constant 9.800000e+01 : f32
    %31 = vector.broadcast %cst_11 : f32 to vector<1x128xf32>
    %32 = arith.divf %30, %31 : vector<1x128xf32>
    %33 = vector.broadcast %32 : vector<1x128xf32> to vector<392x128xf32>
    %34 = arith.subf %20, %33 : vector<392x128xf32>
    %35 = arith.mulf %34, %34 : vector<392x128xf32>
    %36 = arith.mulf %35, %27 : vector<392x128xf32>
    %cst_12 = arith.constant dense<0.000000e+00> : vector<128xf32>
    %37 = vector.multi_reduction <add>, %36, %cst_12 [0] : vector<392x128xf32> to vector<128xf32>
    %38 = vector.shape_cast %37 : vector<128xf32> to vector<1x128xf32>
    %cst_13 = arith.constant 9.800000e+01 : f32
    %39 = vector.broadcast %cst_13 : f32 to vector<1x128xf32>
    %40 = arith.divf %38, %39 : vector<1x128xf32>
    %cst_14 = arith.constant 9.99999974E-6 : f32
    %41 = vector.broadcast %cst_14 : f32 to vector<1x128xf32>
    %42 = arith.addf %40, %41 : vector<1x128xf32>
    %43 = math.rsqrt %42 : vector<1x128xf32>
    %44 = vector.broadcast %43 : vector<1x128xf32> to vector<392x128xf32>
    %45 = arith.mulf %34, %44 : vector<392x128xf32>
    %46 = vector.broadcast %2 : vector<1x128xf32> to vector<392x128xf32>
    %47 = arith.mulf %45, %46 : vector<392x128xf32>
    %48 = vector.broadcast %3 : vector<1x128xf32> to vector<392x128xf32>
    %49 = arith.addf %47, %48 : vector<392x128xf32>
    %cst_15 = arith.constant 0.000000e+00 : f32
    %50 = vector.broadcast %cst_15 : f32 to vector<392x128xf32>
    %51 = arith.cmpf oge, %49, %50 : vector<392x128xf32>
    %cst_16 = arith.constant 1.000000e-01 : f32
    %52 = vector.broadcast %cst_16 : f32 to vector<392x128xf32>
    %53 = arith.mulf %52, %49 : vector<392x128xf32>
    %54 = arith.select %51, %49, %53 : vector<392x128xi1>, vector<392x128xf32>
    %55 = vector.extract_strided_slice %54 {offsets = [0, 0], sizes = [8, 128], strides = [1, 1]} : vector<392x128xf32> to vector<8x128xf32>
    %c0_17 = arith.constant 0 : index
    %c0_18 = arith.constant 0 : index
    %56 = vector.load %arg7[%c0_17, %c0_18] : memref<8x6272xf32, #tpu.memory_space<vmem>>, vector<8x128xf32>
    tpu.vector_store %arg7[%c0_17, %c0_18], %55 {strides = array<i32>} : memref<8x6272xf32, #tpu.memory_space<vmem>>, vector<8x128xf32>,
    %57 = vector.extract_strided_slice %54 {offsets = [8, 0], sizes = [8, 128], strides = [1, 1]} : vector<392x128xf32> to vector<8x128xf32>
    %c0_19 = arith.constant 0 : index
    %c128 = arith.constant 128 : index
    %58 = vector.load %arg7[%c0_19, %c128] : memref<8x6272xf32, #tpu.memory_space<vmem>>, vector<8x128xf32>
    tpu.vector_store %arg7[%c0_19, %c128], %57 {strides = array<i32>} : memref<8x6272xf32, #tpu.memory_space<vmem>>, vector<8x128xf32>,
    %59 = vector.extract_strided_slice %54 {offsets = [16, 0], sizes = [8, 128], strides = [1, 1]} : vector<392x128xf32> to vector<8x128xf32>
    %c0_20 = arith.constant 0 : index
    %c256 = arith.constant 256 : index
    %60 = vector.load %arg7[%c0_20, %c256] : memref<8x6272xf32, #tpu.memory_space<vmem>>, vector<8x128xf32>
    tpu.vector_store %arg7[%c0_20, %c256], %59 {strides = array<i32>} : memref<8x6272xf32, #tpu.memory_space<vmem>>, vector<8x128xf32>,
    %61 = vector.extract_strided_slice %54 {offsets = [24, 0], sizes = [8, 128], strides = [1, 1]} : vector<392x128xf32> to vector<8x128xf32>
    %c0_21 = arith.constant 0 : index
    %c384 = arith.constant 384 : index
    %62 = vector.load %arg7[%c0_21, %c384] : memref<8x6272xf32, #tpu.memory_space<vmem>>, vector<8x128xf32>
    tpu.vector_store %arg7[%c0_21, %c384], %61 {strides = array<i32>} : memref<8x6272xf32, #tpu.memory_space<vmem>>, vector<8x128xf32>,
    %63 = vector.extract_strided_slice %54 {offsets = [32, 0], sizes = [8, 128], strides = [1, 1]} : vector<392x128xf32> to vector<8x128xf32>
    %c0_22 = arith.constant 0 : index
    %c512 = arith.constant 512 : index
    %64 = vector.load %arg7[%c0_22, %c512] : memref<8x6272xf32, #tpu.memory_space<vmem>>, vector<8x128xf32>
    tpu.vector_store %arg7[%c0_22, %c512], %63 {strides = array<i32>} : memref<8x6272xf32, #tpu.memory_space<vmem>>, vector<8x128xf32>,
    %65 = vector.extract_strided_slice %54 {offsets = [40, 0], sizes = [8, 128], strides = [1, 1]} : vector<392x128xf32> to vector<8x128xf32>
    %c0_23 = arith.constant 0 : index
    %c640 = arith.constant 640 : index
    %66 = vector.load %arg7[%c0_23, %c640] : memref<8x6272xf32, #tpu.memory_space<vmem>>, vector<8x128xf32>
    tpu.vector_store %arg7[%c0_23, %c640], %65 {strides = array<i32>} : memref<8x6272xf32, #tpu.memory_space<vmem>>, vector<8x128xf32>,
    %67 = vector.extract_strided_slice %54 {offsets = [48, 0], sizes = [8, 128], strides = [1, 1]} : vector<392x128xf32> to vector<8x128xf32>
    %c0_24 = arith.constant 0 : index
    %c768 = arith.constant 768 : index
    %68 = vector.load %arg7[%c0_24, %c768] : memref<8x6272xf32, #tpu.memory_space<vmem>>, vector<8x128xf32>
    tpu.vector_store %arg7[%c0_24, %c768], %67 {strides = array<i32>} : memref<8x6272xf32, #tpu.memory_space<vmem>>, vector<8x128xf32>,
    %69 = vector.extract_strided_slice %54 {offsets = [56, 0], sizes = [8, 128], strides = [1, 1]} : vector<392x128xf32> to vector<8x128xf32>
    %c0_25 = arith.constant 0 : index
    %c896 = arith.constant 896 : index
    %70 = vector.load %arg7[%c0_25, %c896] : memref<8x6272xf32, #tpu.memory_space<vmem>>, vector<8x128xf32>
    tpu.vector_store %arg7[%c0_25, %c896], %69 {strides = array<i32>} : memref<8x6272xf32, #tpu.memory_space<vmem>>, vector<8x128xf32>,
    %71 = vector.extract_strided_slice %54 {offsets = [64, 0], sizes = [8, 128], strides = [1, 1]} : vector<392x128xf32> to vector<8x128xf32>
    %c0_26 = arith.constant 0 : index
    %c1024 = arith.constant 1024 : index
    %72 = vector.load %arg7[%c0_26, %c1024] : memref<8x6272xf32, #tpu.memory_space<vmem>>, vector<8x128xf32>
    tpu.vector_store %arg7[%c0_26, %c1024], %71 {strides = array<i32>} : memref<8x6272xf32, #tpu.memory_space<vmem>>, vector<8x128xf32>,
    %73 = vector.extract_strided_slice %54 {offsets = [72, 0], sizes = [8, 128], strides = [1, 1]} : vector<392x128xf32> to vector<8x128xf32>
    %c0_27 = arith.constant 0 : index
    %c1152 = arith.constant 1152 : index
    %74 = vector.load %arg7[%c0_27, %c1152] : memref<8x6272xf32, #tpu.memory_space<vmem>>, vector<8x128xf32>
    tpu.vector_store %arg7[%c0_27, %c1152], %73 {strides = array<i32>} : memref<8x6272xf32, #tpu.memory_space<vmem>>, vector<8x128xf32>,
    %75 = vector.extract_strided_slice %54 {offsets = [80, 0], sizes = [8, 128], strides = [1, 1]} : vector<392x128xf32> to vector<8x128xf32>
    %c0_28 = arith.constant 0 : index
    %c1280 = arith.constant 1280 : index
    %76 = vector.load %arg7[%c0_28, %c1280] : memref<8x6272xf32, #tpu.memory_space<vmem>>, vector<8x128xf32>
    tpu.vector_store %arg7[%c0_28, %c1280], %75 {strides = array<i32>} : memref<8x6272xf32, #tpu.memory_space<vmem>>, vector<8x128xf32>,
    %77 = vector.extract_strided_slice %54 {offsets = [88, 0], sizes = [8, 128], strides = [1, 1]} : vector<392x128xf32> to vector<8x128xf32>
    %c0_29 = arith.constant 0 : index
    %c1408 = arith.constant 1408 : index
    %78 = vector.load %arg7[%c0_29, %c1408] : memref<8x6272xf32, #tpu.memory_space<vmem>>, vector<8x128xf32>
    tpu.vector_store %arg7[%c0_29, %c1408], %77 {strides = array<i32>} : memref<8x6272xf32, #tpu.memory_space<vmem>>, vector<8x128xf32>,
    %79 = vector.extract_strided_slice %54 {offsets = [96, 0], sizes = [8, 128], strides = [1, 1]} : vector<392x128xf32> to vector<8x128xf32>
    %c0_30 = arith.constant 0 : index
    %c1536 = arith.constant 1536 : index
    %80 = vector.load %arg7[%c0_30, %c1536] : memref<8x6272xf32, #tpu.memory_space<vmem>>, vector<8x128xf32>
    tpu.vector_store %arg7[%c0_30, %c1536], %79 {strides = array<i32>} : memref<8x6272xf32, #tpu.memory_space<vmem>>, vector<8x128xf32>,
    %81 = vector.extract_strided_slice %54 {offsets = [104, 0], sizes = [8, 128], strides = [1, 1]} : vector<392x128xf32> to vector<8x128xf32>
    %c0_31 = arith.constant 0 : index
    %c1664 = arith.constant 1664 : index
    %82 = vector.load %arg7[%c0_31, %c1664] : memref<8x6272xf32, #tpu.memory_space<vmem>>, vector<8x128xf32>
    tpu.vector_store %arg7[%c0_31, %c1664], %81 {strides = array<i32>} : memref<8x6272xf32, #tpu.memory_space<vmem>>, vector<8x128xf32>,
    %83 = vector.extract_strided_slice %54 {offsets = [112, 0], sizes = [8, 128], strides = [1, 1]} : vector<392x128xf32> to vector<8x128xf32>
    %c0_32 = arith.constant 0 : index
    %c1792 = arith.constant 1792 : index
    %84 = vector.load %arg7[%c0_32, %c1792] : memref<8x6272xf32, #tpu.memory_space<vmem>>, vector<8x128xf32>
    tpu.vector_store %arg7[%c0_32, %c1792], %83 {strides = array<i32>} : memref<8x6272xf32, #tpu.memory_space<vmem>>, vector<8x128xf32>,
    %85 = vector.extract_strided_slice %54 {offsets = [120, 0], sizes = [8, 128], strides = [1, 1]} : vector<392x128xf32> to vector<8x128xf32>
    %c0_33 = arith.constant 0 : index
    %c1920 = arith.constant 1920 : index
    %86 = vector.load %arg7[%c0_33, %c1920] : memref<8x6272xf32, #tpu.memory_space<vmem>>, vector<8x128xf32>
    tpu.vector_store %arg7[%c0_33, %c1920], %85 {strides = array<i32>} : memref<8x6272xf32, #tpu.memory_space<vmem>>, vector<8x128xf32>,
    %87 = vector.extract_strided_slice %54 {offsets = [128, 0], sizes = [8, 128], strides = [1, 1]} : vector<392x128xf32> to vector<8x128xf32>
    %c0_34 = arith.constant 0 : index
    %c2048 = arith.constant 2048 : index
    %88 = vector.load %arg7[%c0_34, %c2048] : memref<8x6272xf32, #tpu.memory_space<vmem>>, vector<8x128xf32>
    tpu.vector_store %arg7[%c0_34, %c2048], %87 {strides = array<i32>} : memref<8x6272xf32, #tpu.memory_space<vmem>>, vector<8x128xf32>,
    %89 = vector.extract_strided_slice %54 {offsets = [136, 0], sizes = [8, 128], strides = [1, 1]} : vector<392x128xf32> to vector<8x128xf32>
    %c0_35 = arith.constant 0 : index
    %c2176 = arith.constant 2176 : index
    %90 = vector.load %arg7[%c0_35, %c2176] : memref<8x6272xf32, #tpu.memory_space<vmem>>, vector<8x128xf32>
    tpu.vector_store %arg7[%c0_35, %c2176], %89 {strides = array<i32>} : memref<8x6272xf32, #tpu.memory_space<vmem>>, vector<8x128xf32>,
    %91 = vector.extract_strided_slice %54 {offsets = [144, 0], sizes = [8, 128], strides = [1, 1]} : vector<392x128xf32> to vector<8x128xf32>
    %c0_36 = arith.constant 0 : index
    %c2304 = arith.constant 2304 : index
    %92 = vector.load %arg7[%c0_36, %c2304] : memref<8x6272xf32, #tpu.memory_space<vmem>>, vector<8x128xf32>
    tpu.vector_store %arg7[%c0_36, %c2304], %91 {strides = array<i32>} : memref<8x6272xf32, #tpu.memory_space<vmem>>, vector<8x128xf32>,
    %93 = vector.extract_strided_slice %54 {offsets = [152, 0], sizes = [8, 128], strides = [1, 1]} : vector<392x128xf32> to vector<8x128xf32>
    %c0_37 = arith.constant 0 : index
    %c2432 = arith.constant 2432 : index
    %94 = vector.load %arg7[%c0_37, %c2432] : memref<8x6272xf32, #tpu.memory_space<vmem>>, vector<8x128xf32>
    tpu.vector_store %arg7[%c0_37, %c2432], %93 {strides = array<i32>} : memref<8x6272xf32, #tpu.memory_space<vmem>>, vector<8x128xf32>,
    %95 = vector.extract_strided_slice %54 {offsets = [160, 0], sizes = [8, 128], strides = [1, 1]} : vector<392x128xf32> to vector<8x128xf32>
    %c0_38 = arith.constant 0 : index
    %c2560 = arith.constant 2560 : index
    %96 = vector.load %arg7[%c0_38, %c2560] : memref<8x6272xf32, #tpu.memory_space<vmem>>, vector<8x128xf32>
    tpu.vector_store %arg7[%c0_38, %c2560], %95 {strides = array<i32>} : memref<8x6272xf32, #tpu.memory_space<vmem>>, vector<8x128xf32>,
    %97 = vector.extract_strided_slice %54 {offsets = [168, 0], sizes = [8, 128], strides = [1, 1]} : vector<392x128xf32> to vector<8x128xf32>
    %c0_39 = arith.constant 0 : index
    %c2688 = arith.constant 2688 : index
    %98 = vector.load %arg7[%c0_39, %c2688] : memref<8x6272xf32, #tpu.memory_space<vmem>>, vector<8x128xf32>
    tpu.vector_store %arg7[%c0_39, %c2688], %97 {strides = array<i32>} : memref<8x6272xf32, #tpu.memory_space<vmem>>, vector<8x128xf32>,
    %99 = vector.extract_strided_slice %54 {offsets = [176, 0], sizes = [8, 128], strides = [1, 1]} : vector<392x128xf32> to vector<8x128xf32>
    %c0_40 = arith.constant 0 : index
    %c2816 = arith.constant 2816 : index
    %100 = vector.load %arg7[%c0_40, %c2816] : memref<8x6272xf32, #tpu.memory_space<vmem>>, vector<8x128xf32>
    tpu.vector_store %arg7[%c0_40, %c2816], %99 {strides = array<i32>} : memref<8x6272xf32, #tpu.memory_space<vmem>>, vector<8x128xf32>,
    %101 = vector.extract_strided_slice %54 {offsets = [184, 0], sizes = [8, 128], strides = [1, 1]} : vector<392x128xf32> to vector<8x128xf32>
    %c0_41 = arith.constant 0 : index
    %c2944 = arith.constant 2944 : index
    %102 = vector.load %arg7[%c0_41, %c2944] : memref<8x6272xf32, #tpu.memory_space<vmem>>, vector<8x128xf32>
    tpu.vector_store %arg7[%c0_41, %c2944], %101 {strides = array<i32>} : memref<8x6272xf32, #tpu.memory_space<vmem>>, vector<8x128xf32>,
    %103 = vector.extract_strided_slice %54 {offsets = [192, 0], sizes = [8, 128], strides = [1, 1]} : vector<392x128xf32> to vector<8x128xf32>
    %c0_42 = arith.constant 0 : index
    %c3072 = arith.constant 3072 : index
    %104 = vector.load %arg7[%c0_42, %c3072] : memref<8x6272xf32, #tpu.memory_space<vmem>>, vector<8x128xf32>
    tpu.vector_store %arg7[%c0_42, %c3072], %103 {strides = array<i32>} : memref<8x6272xf32, #tpu.memory_space<vmem>>, vector<8x128xf32>,
    %105 = vector.extract_strided_slice %54 {offsets = [200, 0], sizes = [8, 128], strides = [1, 1]} : vector<392x128xf32> to vector<8x128xf32>
    %c0_43 = arith.constant 0 : index
    %c3200 = arith.constant 3200 : index
    %106 = vector.load %arg7[%c0_43, %c3200] : memref<8x6272xf32, #tpu.memory_space<vmem>>, vector<8x128xf32>
    tpu.vector_store %arg7[%c0_43, %c3200], %105 {strides = array<i32>} : memref<8x6272xf32, #tpu.memory_space<vmem>>, vector<8x128xf32>,
    %107 = vector.extract_strided_slice %54 {offsets = [208, 0], sizes = [8, 128], strides = [1, 1]} : vector<392x128xf32> to vector<8x128xf32>
    %c0_44 = arith.constant 0 : index
    %c3328 = arith.constant 3328 : index
    %108 = vector.load %arg7[%c0_44, %c3328] : memref<8x6272xf32, #tpu.memory_space<vmem>>, vector<8x128xf32>
    tpu.vector_store %arg7[%c0_44, %c3328], %107 {strides = array<i32>} : memref<8x6272xf32, #tpu.memory_space<vmem>>, vector<8x128xf32>,
    %109 = vector.extract_strided_slice %54 {offsets = [216, 0], sizes = [8, 128], strides = [1, 1]} : vector<392x128xf32> to vector<8x128xf32>
    %c0_45 = arith.constant 0 : index
    %c3456 = arith.constant 3456 : index
    %110 = vector.load %arg7[%c0_45, %c3456] : memref<8x6272xf32, #tpu.memory_space<vmem>>, vector<8x128xf32>
    tpu.vector_store %arg7[%c0_45, %c3456], %109 {strides = array<i32>} : memref<8x6272xf32, #tpu.memory_space<vmem>>, vector<8x128xf32>,
    %111 = vector.extract_strided_slice %54 {offsets = [224, 0], sizes = [8, 128], strides = [1, 1]} : vector<392x128xf32> to vector<8x128xf32>
    %c0_46 = arith.constant 0 : index
    %c3584 = arith.constant 3584 : index
    %112 = vector.load %arg7[%c0_46, %c3584] : memref<8x6272xf32, #tpu.memory_space<vmem>>, vector<8x128xf32>
    tpu.vector_store %arg7[%c0_46, %c3584], %111 {strides = array<i32>} : memref<8x6272xf32, #tpu.memory_space<vmem>>, vector<8x128xf32>,
    %113 = vector.extract_strided_slice %54 {offsets = [232, 0], sizes = [8, 128], strides = [1, 1]} : vector<392x128xf32> to vector<8x128xf32>
    %c0_47 = arith.constant 0 : index
    %c3712 = arith.constant 3712 : index
    %114 = vector.load %arg7[%c0_47, %c3712] : memref<8x6272xf32, #tpu.memory_space<vmem>>, vector<8x128xf32>
    tpu.vector_store %arg7[%c0_47, %c3712], %113 {strides = array<i32>} : memref<8x6272xf32, #tpu.memory_space<vmem>>, vector<8x128xf32>,
    %115 = vector.extract_strided_slice %54 {offsets = [240, 0], sizes = [8, 128], strides = [1, 1]} : vector<392x128xf32> to vector<8x128xf32>
    %c0_48 = arith.constant 0 : index
    %c3840 = arith.constant 3840 : index
    %116 = vector.load %arg7[%c0_48, %c3840] : memref<8x6272xf32, #tpu.memory_space<vmem>>, vector<8x128xf32>
    tpu.vector_store %arg7[%c0_48, %c3840], %115 {strides = array<i32>} : memref<8x6272xf32, #tpu.memory_space<vmem>>, vector<8x128xf32>,
    %117 = vector.extract_strided_slice %54 {offsets = [248, 0], sizes = [8, 128], strides = [1, 1]} : vector<392x128xf32> to vector<8x128xf32>
    %c0_49 = arith.constant 0 : index
    %c3968 = arith.constant 3968 : index
    %118 = vector.load %arg7[%c0_49, %c3968] : memref<8x6272xf32, #tpu.memory_space<vmem>>, vector<8x128xf32>
    tpu.vector_store %arg7[%c0_49, %c3968], %117 {strides = array<i32>} : memref<8x6272xf32, #tpu.memory_space<vmem>>, vector<8x128xf32>,
    %119 = vector.extract_strided_slice %54 {offsets = [256, 0], sizes = [8, 128], strides = [1, 1]} : vector<392x128xf32> to vector<8x128xf32>
    %c0_50 = arith.constant 0 : index
    %c4096 = arith.constant 4096 : index
    %120 = vector.load %arg7[%c0_50, %c4096] : memref<8x6272xf32, #tpu.memory_space<vmem>>, vector<8x128xf32>
    tpu.vector_store %arg7[%c0_50, %c4096], %119 {strides = array<i32>} : memref<8x6272xf32, #tpu.memory_space<vmem>>, vector<8x128xf32>,
    %121 = vector.extract_strided_slice %54 {offsets = [264, 0], sizes = [8, 128], strides = [1, 1]} : vector<392x128xf32> to vector<8x128xf32>
    %c0_51 = arith.constant 0 : index
    %c4224 = arith.constant 4224 : index
    %122 = vector.load %arg7[%c0_51, %c4224] : memref<8x6272xf32, #tpu.memory_space<vmem>>, vector<8x128xf32>
    tpu.vector_store %arg7[%c0_51, %c4224], %121 {strides = array<i32>} : memref<8x6272xf32, #tpu.memory_space<vmem>>, vector<8x128xf32>,
    %123 = vector.extract_strided_slice %54 {offsets = [272, 0], sizes = [8, 128], strides = [1, 1]} : vector<392x128xf32> to vector<8x128xf32>
    %c0_52 = arith.constant 0 : index
    %c4352 = arith.constant 4352 : index
    %124 = vector.load %arg7[%c0_52, %c4352] : memref<8x6272xf32, #tpu.memory_space<vmem>>, vector<8x128xf32>
    tpu.vector_store %arg7[%c0_52, %c4352], %123 {strides = array<i32>} : memref<8x6272xf32, #tpu.memory_space<vmem>>, vector<8x128xf32>,
    %125 = vector.extract_strided_slice %54 {offsets = [280, 0], sizes = [8, 128], strides = [1, 1]} : vector<392x128xf32> to vector<8x128xf32>
    %c0_53 = arith.constant 0 : index
    %c4480 = arith.constant 4480 : index
    %126 = vector.load %arg7[%c0_53, %c4480] : memref<8x6272xf32, #tpu.memory_space<vmem>>, vector<8x128xf32>
    tpu.vector_store %arg7[%c0_53, %c4480], %125 {strides = array<i32>} : memref<8x6272xf32, #tpu.memory_space<vmem>>, vector<8x128xf32>,
    %127 = vector.extract_strided_slice %54 {offsets = [288, 0], sizes = [8, 128], strides = [1, 1]} : vector<392x128xf32> to vector<8x128xf32>
    %c0_54 = arith.constant 0 : index
    %c4608 = arith.constant 4608 : index
    %128 = vector.load %arg7[%c0_54, %c4608] : memref<8x6272xf32, #tpu.memory_space<vmem>>, vector<8x128xf32>
    tpu.vector_store %arg7[%c0_54, %c4608], %127 {strides = array<i32>} : memref<8x6272xf32, #tpu.memory_space<vmem>>, vector<8x128xf32>,
    %129 = vector.extract_strided_slice %54 {offsets = [296, 0], sizes = [8, 128], strides = [1, 1]} : vector<392x128xf32> to vector<8x128xf32>
    %c0_55 = arith.constant 0 : index
    %c4736 = arith.constant 4736 : index
    %130 = vector.load %arg7[%c0_55, %c4736] : memref<8x6272xf32, #tpu.memory_space<vmem>>, vector<8x128xf32>
    tpu.vector_store %arg7[%c0_55, %c4736], %129 {strides = array<i32>} : memref<8x6272xf32, #tpu.memory_space<vmem>>, vector<8x128xf32>,
    %131 = vector.extract_strided_slice %54 {offsets = [304, 0], sizes = [8, 128], strides = [1, 1]} : vector<392x128xf32> to vector<8x128xf32>
    %c0_56 = arith.constant 0 : index
    %c4864 = arith.constant 4864 : index
    %132 = vector.load %arg7[%c0_56, %c4864] : memref<8x6272xf32, #tpu.memory_space<vmem>>, vector<8x128xf32>
    tpu.vector_store %arg7[%c0_56, %c4864], %131 {strides = array<i32>} : memref<8x6272xf32, #tpu.memory_space<vmem>>, vector<8x128xf32>,
    %133 = vector.extract_strided_slice %54 {offsets = [312, 0], sizes = [8, 128], strides = [1, 1]} : vector<392x128xf32> to vector<8x128xf32>
    %c0_57 = arith.constant 0 : index
    %c4992 = arith.constant 4992 : index
    %134 = vector.load %arg7[%c0_57, %c4992] : memref<8x6272xf32, #tpu.memory_space<vmem>>, vector<8x128xf32>
    tpu.vector_store %arg7[%c0_57, %c4992], %133 {strides = array<i32>} : memref<8x6272xf32, #tpu.memory_space<vmem>>, vector<8x128xf32>,
    %135 = vector.extract_strided_slice %54 {offsets = [320, 0], sizes = [8, 128], strides = [1, 1]} : vector<392x128xf32> to vector<8x128xf32>
    %c0_58 = arith.constant 0 : index
    %c5120 = arith.constant 5120 : index
    %136 = vector.load %arg7[%c0_58, %c5120] : memref<8x6272xf32, #tpu.memory_space<vmem>>, vector<8x128xf32>
    tpu.vector_store %arg7[%c0_58, %c5120], %135 {strides = array<i32>} : memref<8x6272xf32, #tpu.memory_space<vmem>>, vector<8x128xf32>,
    %137 = vector.extract_strided_slice %54 {offsets = [328, 0], sizes = [8, 128], strides = [1, 1]} : vector<392x128xf32> to vector<8x128xf32>
    %c0_59 = arith.constant 0 : index
    %c5248 = arith.constant 5248 : index
    %138 = vector.load %arg7[%c0_59, %c5248] : memref<8x6272xf32, #tpu.memory_space<vmem>>, vector<8x128xf32>
    tpu.vector_store %arg7[%c0_59, %c5248], %137 {strides = array<i32>} : memref<8x6272xf32, #tpu.memory_space<vmem>>, vector<8x128xf32>,
    %139 = vector.extract_strided_slice %54 {offsets = [336, 0], sizes = [8, 128], strides = [1, 1]} : vector<392x128xf32> to vector<8x128xf32>
    %c0_60 = arith.constant 0 : index
    %c5376 = arith.constant 5376 : index
    %140 = vector.load %arg7[%c0_60, %c5376] : memref<8x6272xf32, #tpu.memory_space<vmem>>, vector<8x128xf32>
    tpu.vector_store %arg7[%c0_60, %c5376], %139 {strides = array<i32>} : memref<8x6272xf32, #tpu.memory_space<vmem>>, vector<8x128xf32>,
    %141 = vector.extract_strided_slice %54 {offsets = [344, 0], sizes = [8, 128], strides = [1, 1]} : vector<392x128xf32> to vector<8x128xf32>
    %c0_61 = arith.constant 0 : index
    %c5504 = arith.constant 5504 : index
    %142 = vector.load %arg7[%c0_61, %c5504] : memref<8x6272xf32, #tpu.memory_space<vmem>>, vector<8x128xf32>
    tpu.vector_store %arg7[%c0_61, %c5504], %141 {strides = array<i32>} : memref<8x6272xf32, #tpu.memory_space<vmem>>, vector<8x128xf32>,
    %143 = vector.extract_strided_slice %54 {offsets = [352, 0], sizes = [8, 128], strides = [1, 1]} : vector<392x128xf32> to vector<8x128xf32>
    %c0_62 = arith.constant 0 : index
    %c5632 = arith.constant 5632 : index
    %144 = vector.load %arg7[%c0_62, %c5632] : memref<8x6272xf32, #tpu.memory_space<vmem>>, vector<8x128xf32>
    tpu.vector_store %arg7[%c0_62, %c5632], %143 {strides = array<i32>} : memref<8x6272xf32, #tpu.memory_space<vmem>>, vector<8x128xf32>,
    %145 = vector.extract_strided_slice %54 {offsets = [360, 0], sizes = [8, 128], strides = [1, 1]} : vector<392x128xf32> to vector<8x128xf32>
    %c0_63 = arith.constant 0 : index
    %c5760 = arith.constant 5760 : index
    %146 = vector.load %arg7[%c0_63, %c5760] : memref<8x6272xf32, #tpu.memory_space<vmem>>, vector<8x128xf32>
    tpu.vector_store %arg7[%c0_63, %c5760], %145 {strides = array<i32>} : memref<8x6272xf32, #tpu.memory_space<vmem>>, vector<8x128xf32>,
    %147 = vector.extract_strided_slice %54 {offsets = [368, 0], sizes = [8, 128], strides = [1, 1]} : vector<392x128xf32> to vector<8x128xf32>
    %c0_64 = arith.constant 0 : index
    %c5888 = arith.constant 5888 : index
    %148 = vector.load %arg7[%c0_64, %c5888] : memref<8x6272xf32, #tpu.memory_space<vmem>>, vector<8x128xf32>
    tpu.vector_store %arg7[%c0_64, %c5888], %147 {strides = array<i32>} : memref<8x6272xf32, #tpu.memory_space<vmem>>, vector<8x128xf32>,
    %149 = vector.extract_strided_slice %54 {offsets = [376, 0], sizes = [8, 128], strides = [1, 1]} : vector<392x128xf32> to vector<8x128xf32>
    %c0_65 = arith.constant 0 : index
    %c6016 = arith.constant 6016 : index
    %150 = vector.load %arg7[%c0_65, %c6016] : memref<8x6272xf32, #tpu.memory_space<vmem>>, vector<8x128xf32>
    tpu.vector_store %arg7[%c0_65, %c6016], %149 {strides = array<i32>} : memref<8x6272xf32, #tpu.memory_space<vmem>>, vector<8x128xf32>,
    %151 = vector.extract_strided_slice %54 {offsets = [384, 0], sizes = [8, 128], strides = [1, 1]} : vector<392x128xf32> to vector<8x128xf32>
    %c0_66 = arith.constant 0 : index
    %c6144 = arith.constant 6144 : index
    %152 = vector.load %arg7[%c0_66, %c6144] : memref<8x6272xf32, #tpu.memory_space<vmem>>, vector<8x128xf32>
    tpu.vector_store %arg7[%c0_66, %c6144], %151 {strides = array<i32>} : memref<8x6272xf32, #tpu.memory_space<vmem>>, vector<8x128xf32>,
    %c0_67 = arith.constant 0 : index
    %c0_68 = arith.constant 0 : index
    %153 = vector.load %arg7[%c0_67, %c0_68] : memref<8x6272xf32, #tpu.memory_space<vmem>>, vector<8x6272xf32>
    %154 = arith.truncf %153 : vector<8x6272xf32> to vector<8x6272xbf16>
    %c0_69 = arith.constant 0 : index
    %c0_70 = arith.constant 0 : index
    %155 = vector.load %arg3[%c0_69, %c0_70] : memref<6272x128xbf16, #tpu.memory_space<vmem>>, vector<6272x128xbf16>
    %cst_71 = arith.constant dense<0.000000e+00> : vector<8x128xf32>
    %156 = tpu.matmul %154, %155, %cst_71 {dimension_numbers = #tpu.dot_dimension_numbers<[1], [0], [0], [1], [0, 0, 1, 1], [], []>} : vector<8x6272xbf16>, vector<6272x128xbf16>, vector<8x128xf32> -> vector<8x128xf32>
    %157 = vector.broadcast %4 : vector<1x128xf32> to vector<8x128xf32>
    %158 = arith.addf %156, %157 : vector<8x128xf32>
    %159 = tpu.iota {dimensions = array<i32: 0>} : vector<8x128xi32>
    %c2_i32_72 = arith.constant 2 : i32
    %160 = vector.broadcast %c2_i32_72 : i32 to vector<8x128xi32>
    %161 = arith.cmpi slt, %159, %160 : vector<8x128xi32>
    %162 = arith.extui %161 : vector<8x128xi1> to vector<8x128xi32>
    %163 = arith.sitofp %162 : vector<8x128xi32> to vector<8x128xf32>
    %164 = arith.mulf %158, %163 : vector<8x128xf32>
    %cst_73 = arith.constant dense<0.000000e+00> : vector<128xf32>
    %165 = vector.multi_reduction <add>, %164, %cst_73 [0] : vector<8x128xf32> to vector<128xf32>
    %166 = vector.shape_cast %165 : vector<128xf32> to vector<1x128xf32>
    %cst_74 = arith.constant 2.000000e+00 : f32
    %167 = vector.broadcast %cst_74 : f32 to vector<1x128xf32>
    %168 = arith.divf %166, %167 : vector<1x128xf32>
    %169 = vector.broadcast %168 : vector<1x128xf32> to vector<8x128xf32>
    %170 = arith.subf %158, %169 : vector<8x128xf32>
    %171 = arith.mulf %170, %170 : vector<8x128xf32>
    %172 = arith.mulf %171, %163 : vector<8x128xf32>
    %cst_75 = arith.constant dense<0.000000e+00> : vector<128xf32>
    %173 = vector.multi_reduction <add>, %172, %cst_75 [0] : vector<8x128xf32> to vector<128xf32>
    %174 = vector.shape_cast %173 : vector<128xf32> to vector<1x128xf32>
    %cst_76 = arith.constant 2.000000e+00 : f32
    %175 = vector.broadcast %cst_76 : f32 to vector<1x128xf32>
    %176 = arith.divf %174, %175 : vector<1x128xf32>
    %cst_77 = arith.constant 9.99999974E-6 : f32
    %177 = vector.broadcast %cst_77 : f32 to vector<1x128xf32>
    %178 = arith.addf %176, %177 : vector<1x128xf32>
    %179 = math.rsqrt %178 : vector<1x128xf32>
    %180 = vector.broadcast %179 : vector<1x128xf32> to vector<8x128xf32>
    %181 = arith.mulf %170, %180 : vector<8x128xf32>
    %182 = vector.broadcast %5 : vector<1x128xf32> to vector<8x128xf32>
    %183 = arith.mulf %181, %182 : vector<8x128xf32>
    %184 = vector.broadcast %6 : vector<1x128xf32> to vector<8x128xf32>
    %185 = arith.addf %183, %184 : vector<8x128xf32>
    %cst_78 = arith.constant 0.000000e+00 : f32
    %186 = vector.broadcast %cst_78 : f32 to vector<8x128xf32>
    %187 = arith.cmpf oge, %185, %186 : vector<8x128xf32>
    %cst_79 = arith.constant 1.000000e-01 : f32
    %188 = vector.broadcast %cst_79 : f32 to vector<8x128xf32>
    %189 = arith.mulf %188, %185 : vector<8x128xf32>
    %190 = arith.select %187, %185, %189 : vector<8x128xi1>, vector<8x128xf32>
    %191 = arith.truncf %190 : vector<8x128xf32> to vector<8x128xbf16>
    %c0_80 = arith.constant 0 : index
    %c0_81 = arith.constant 0 : index
    %192 = vector.load %arg4[%c0_80, %c0_81] : memref<128x128xbf16, #tpu.memory_space<vmem>>, vector<128x128xbf16>
    %cst_82 = arith.constant dense<0.000000e+00> : vector<8x128xf32>
    %193 = tpu.matmul %191, %192, %cst_82 {dimension_numbers = #tpu.dot_dimension_numbers<[1], [0], [0], [1], [0, 0, 1, 1], [], []>} : vector<8x128xbf16>, vector<128x128xbf16>, vector<8x128xf32> -> vector<8x128xf32>
    %194 = vector.broadcast %7 : vector<1x128xf32> to vector<8x128xf32>
    %195 = arith.addf %193, %194 : vector<8x128xf32>
    %196 = tpu.iota {dimensions = array<i32: 1>} : vector<8x128xi32>
    %c2_i32_83 = arith.constant 2 : i32
    %197 = vector.broadcast %c2_i32_83 : i32 to vector<8x128xi32>
    %198 = arith.cmpi sge, %196, %197 : vector<8x128xi32>
    %c12_i32 = arith.constant 12 : i32
    %199 = vector.broadcast %c12_i32 : i32 to vector<8x128xi32>
    %200 = arith.cmpi slt, %196, %199 : vector<8x128xi32>
    %201 = arith.andi %198, %200 : vector<8x128xi1>
    %202 = math.absf %195 : vector<8x128xf32>
    %cst_84 = arith.constant 0.000000e+00 : f32
    %203 = vector.broadcast %cst_84 : f32 to vector<8x128xf32>
    %204 = arith.subf %203, %202 : vector<8x128xf32>
    %205 = math.exp %204 : vector<8x128xf32>
    %cst_85 = arith.constant 0.000000e+00 : f32
    %206 = vector.broadcast %cst_85 : f32 to vector<8x128xf32>
    %207 = arith.cmpf oge, %195, %206 : vector<8x128xf32>
    %cst_86 = arith.constant 1.000000e+00 : f32
    %208 = vector.broadcast %cst_86 : f32 to vector<8x128xf32>
    %209 = arith.addf %208, %205 : vector<8x128xf32>
    %cst_87 = arith.constant 1.000000e+00 : f32
    %210 = vector.broadcast %cst_87 : f32 to vector<8x128xf32>
    %211 = arith.divf %210, %209 : vector<8x128xf32>
    %cst_88 = arith.constant 1.000000e+00 : f32
    %212 = vector.broadcast %cst_88 : f32 to vector<8x128xf32>
    %213 = arith.addf %212, %205 : vector<8x128xf32>
    %214 = arith.divf %205, %213 : vector<8x128xf32>
    %215 = arith.select %207, %211, %214 : vector<8x128xi1>, vector<8x128xf32>
    %cst_89 = arith.constant 0xFF800000 : f32
    %216 = vector.broadcast %cst_89 : f32 to vector<8x128xf32>
    %217 = arith.select %201, %195, %216 : vector<8x128xi1>, vector<8x128xf32>
    %cst_90 = arith.constant dense<0xFF800000> : vector<8xf32>
    %218 = vector.multi_reduction <maximumf>, %217, %cst_90 [1] : vector<8x128xf32> to vector<8xf32>
    %219 = vector.shape_cast %218 : vector<8xf32> to vector<8x1xf32>
    %220 = vector.broadcast %219 : vector<8x1xf32> to vector<8x128xf32>
    %221 = arith.subf %195, %220 : vector<8x128xf32>
    %cst_91 = arith.constant 0xFF800000 : f32
    %222 = vector.broadcast %cst_91 : f32 to vector<8x128xf32>
    %223 = arith.select %201, %221, %222 : vector<8x128xi1>, vector<8x128xf32>
    %224 = math.exp %223 : vector<8x128xf32>
    %cst_92 = arith.constant dense<0.000000e+00> : vector<8xf32>
    %225 = vector.multi_reduction <add>, %224, %cst_92 [1] : vector<8x128xf32> to vector<8xf32>
    %226 = vector.shape_cast %225 : vector<8xf32> to vector<8x1xf32>
    %227 = vector.broadcast %226 : vector<8x1xf32> to vector<8x128xf32>
    %228 = arith.divf %224, %227 : vector<8x128xf32>
    %c0_i32 = arith.constant 0 : i32
    %229 = vector.broadcast %c0_i32 : i32 to vector<8x128xi32>
    %230 = arith.cmpi eq, %196, %229 : vector<8x128xi32>
    %231 = arith.select %201, %228, %195 : vector<8x128xi1>, vector<8x128xf32>
    %232 = arith.select %230, %215, %231 : vector<8x128xi1>, vector<8x128xf32>
    %c0_93 = arith.constant 0 : index
    %c0_94 = arith.constant 0 : index
    %233 = vector.load %arg6[%c0_93, %c0_94] : memref<8x128xf32, #tpu.memory_space<vmem>>, vector<8x128xf32>
    tpu.vector_store %arg6[%c0_93, %c0_94], %232 {strides = array<i32>} : memref<8x128xf32, #tpu.memory_space<vmem>>, vector<8x128xf32>,
    return
  }
}

</mosaic_0001>

<bundles_post_ra>
// kernel: discriminator_forward.1
= control target key start
LH: loop header
LB: loop body
LE: loop exit
PB: predicated region body
PF: predicated region fallthrough
CT: control target
= control target key end

     0   :  { %vm1309_vm0 = vcmask 130048   ;;  %s21082_s1 = inlined_call_operand.vmem [shape: bf16[272,1024], index: 1, kind: input, shape index: {}]   ;;  %s21083_s0 = inlined_call_operand.vmem [shape: bf16[392,272], index: 0, kind: input, shape index: {}]   ;;  %s21084_s2 = inlined_call_operand.vmem [shape: bf16[1024,128], index: 2, kind: input, shape index: {}]   ;;  %s21085_s5 = inlined_call_operand.vmem [shape: f32[8,128], index: 5, kind: input, shape index: {}]   ;;  %s21086_s3 = inlined_call_operand.vmem [shape: bf16[6272,128], index: 3, kind: input, shape index: {}]   ;;  %s21087_s4 = inlined_call_operand.vmem [shape: bf16[128,128], index: 4, kind: input, shape index: {}]   ;;  %s21088_s6 = inlined_call_operand.vmem [shape: f32[8,128], index: 6, kind: output, shape index: {}]  }
   0x1   :  { %v123_v0 = vld [vmem:[%s21082_s1] sm:$0xff] }
   0x2   :  { %v127_v1 = vld [vmem:[%s21082_s1 + $0x20] sm:$0xff] }
   0x3   :  { %v131_v2 = vld [vmem:[%s21082_s1 + $0x40] sm:$0xff]  ;;  %v11854_v3 = vcombine.high %v123_v0, %v127_v1  ;;  %v11853_v4 = vcombine.low %v123_v0, %v127_v1 }
   0x4   :  { %v135_v5 = vld [vmem:[%s21082_s1 + $0x60] sm:$0xff] }
   0x5   :  { %v11862_v6 = vcombine.high %v131_v2, %v135_v5  ;;  %v139_v7 = vld [vmem:[%s21082_s1 + $0x80] sm:$0xff]  ;;  %1385 = vmatprep.subr.bf16.mxu0 %v11854_v3  ;;  %v11861_v9 = vcombine.low %v131_v2, %v135_v5 }
   0x6   :  { %v143_v8 = vld [vmem:[%s21082_s1 + $0xa0] sm:$0xff]  ;;  %1386 = vmatpush1.bf16.msra.mxu0 %v11853_v4 }
   0x7   :  { %1387 = vmatprep.subr.bf16.mxu0 %v11862_v6  ;;  %v11870_v10 = vcombine.high %v139_v7, %v143_v8  ;;  %v147_v11 = vld [vmem:[%s21082_s1 + $0xc0] sm:$0xff]  ;;  %v11869_v13 = vcombine.low %v139_v7, %v143_v8  ;;  %v14801_v6 = vld [vmem:[%s21083_s0 + $0x1c] ss:$12 sps:$4 sm:$0xff]  }
   0x8   :  { %v151_v12 = vld [vmem:[%s21082_s1 + $0xe0] sm:$0xff] }
   0x9   :  { %v11878_v14 = vcombine.high %v147_v11, %v151_v12  ;;  %v155_v15 = vld [vmem:[%s21082_s1 + $0x100] sm:$0xff]  ;;  %v11877_v18 = vcombine.low %v147_v11, %v151_v12  ;;  %v14832_v11 = vld [vmem:[%s21083_s0 + $0x48] ss:$12 sps:$4 sm:$0xff]  }
   0xa   :  { %1388 = vmatpush1.bf16.msra.mxu0 %v11861_v9  ;;  %v159_v16 = vld [vmem:[%s21082_s1 + $0x120] sm:$0xff]  ;;  %v14820_v9 = vld [vmem:[%s21083_s0 + $0x30] ss:$12 sps:$4 sm:$0xff]  }
   0xb   :  { %1389 = vmatprep.subr.bf16.mxu0 %v11870_v10  ;;  %v13941_v17 = vld [vmem:[%s21083_s0 + $0x4] ss:$12 sps:$4 sm:$0xff]   ;;  %v11886_v19 = vcombine.high %v155_v15, %v159_v16  ;;  %v11885_v22 = vcombine.low %v155_v15, %v159_v16  ;;  %v14796_v4 = vld [vmem:[%s21083_s0] ss:$12 sps:$4 sm:$0xff]  }
   0xc   :  { %v163_v20 = vld [vmem:[%s21082_s1 + $0x140] sm:$0xff]  ;;  %1417 = vmatprep.mubr.bf16.mxu0 %v13941_v17  ;;  %1979 = vmatprep.mubr.bf16.mxu1 %v13941_v17  ;;  %v14825_v10 = vld [vmem:[%s21083_s0 + $0x4c] ss:$12 sps:$4 sm:$0xff]   ;;  %v14868_v17 = vld [vmem:[%s21083_s0 + $0x90] ss:$12 sps:$4 sm:$0xff]  }
   0xd   :  { %v167_v21 = vld [vmem:[%s21082_s1 + $0x160] sm:$0xff] }
   0xe   :  { %1390 = vmatpush1.bf16.msra.mxu0 %v11869_v13  ;;  %v11894_v23 = vcombine.high %v163_v20, %v167_v21  ;;  %v171_v24 = vld [vmem:[%s21082_s1 + $0x180] sm:$0xff]  ;;  %v11893_v26 = vcombine.low %v163_v20, %v167_v21 }
   0xf   :  { %1391 = vmatprep.subr.bf16.mxu0 %v11878_v14  ;;  %v175_v25 = vld [vmem:[%s21082_s1 + $0x1a0] sm:$0xff]  ;;  %v14849_v14 = vld [vmem:[%s21083_s0 + $0x7c] ss:$12 sps:$4 sm:$0xff]  }
  0x10   :  { %v11902_v27 = vcombine.high %v171_v24, %v175_v25  ;;  %v179_v28 = vld [vmem:[%s21082_s1 + $0x1c0] sm:$0xff]  ;;  %v11901_v30 = vcombine.low %v171_v24, %v175_v25  ;;  %v14915_v25 = vld [vmem:[%s21082_s1 + $0x10] sm:$0xff] }
  0x11   :  { %v183_v29 = vld [vmem:[%s21082_s1 + $0x1e0] sm:$0xff] }
  0x12   :  { %1392 = vmatpush1.bf16.msra.mxu0 %v11877_v18  ;;  %v11910_v31 = vcombine.high %v179_v28, %v183_v29  ;;  %v187_v32 = vld [vmem:[%s21082_s1 + $0x200] sm:$0xff]  ;;  %v11909_v34 = vcombine.low %v179_v28, %v183_v29  ;;  %v14873_v18 = vld [vmem:[%s21083_s0 + $0xac] ss:$12 sps:$4 sm:$0xff]   ;;  %v14930_v29 = vld [vmem:[%s21083_s0 + $0xf0] ss:$12 sps:$4 sm:$0xff]  }
  0x13   :  { %1393 = vmatprep.subr.bf16.mxu0 %v11886_v19  ;;  %v191_v33 = vld [vmem:[%s21082_s1 + $0x220] sm:$0xff]  ;;  %v14880_v19 = vld [vmem:[%s21083_s0 + $0xa8] ss:$12 sps:$4 sm:$0xff]  }
  0x14   :  { %v195_v35 = vld [vmem:[%s21082_s1 + $0x240] sm:$0xff]  ;;  %v11918_v37 = vcombine.high %v187_v32, %v191_v33  ;;  %v11917_v38 = vcombine.low %v187_v32, %v191_v33 }
  0x15   :  { %v199_v36 = vld [vmem:[%s21082_s1 + $0x260] sm:$0xff] }
  0x16   :  { %1394 = vmatpush1.bf16.msra.mxu0 %v11885_v22  ;;  %v203_v39 = vld [vmem:[%s21082_s1 + $0x280] sm:$0xff]  ;;  %v11926_v41 = vcombine.high %v195_v35, %v199_v36  ;;  %v11925_v42 = vcombine.low %v195_v35, %v199_v36  ;;  %v14897_v22 = vld [vmem:[%s21083_s0 + $0xdc] ss:$12 sps:$4 sm:$0xff]  }
  0x17   :  { %1395 = vmatprep.subr.bf16.mxu0 %v11894_v23  ;;  %v207_v40 = vld [vmem:[%s21082_s1 + $0x2a0] sm:$0xff] }
  0x18   :  { %v211_v43 = vld [vmem:[%s21082_s1 + $0x2c0] sm:$0xff]  ;;  %v11934_v45 = vcombine.high %v203_v39, %v207_v40  ;;  %v11933_v46 = vcombine.low %v203_v39, %v207_v40  ;;  %v14990_v39 = vld [vmem:[%s21083_s0 + $0x168] ss:$12 sps:$4 sm:$0xff]  }
  0x19   :  { %v215_v44 = vld [vmem:[%s21082_s1 + $0x2e0] sm:$0xff] }
  0x1a   :  { %1396 = vmatpush1.bf16.msra.mxu0 %v11893_v26  ;;  %v219_v47 = vld [vmem:[%s21082_s1 + $0x300] sm:$0xff]  ;;  %v11942_v49 = vcombine.high %v211_v43, %v215_v44  ;;  %v11941_v50 = vcombine.low %v211_v43, %v215_v44  ;;  %v14920_v26 = vld [vmem:[%s21082_s1 + $0x30] sm:$0xff] }
  0x1b   :  { %1397 = vmatprep.subr.bf16.mxu0 %v11902_v27  ;;  %v223_v48 = vld [vmem:[%s21082_s1 + $0x320] sm:$0xff]  ;;  %v11857_v27 = vcombine.low %v14915_v25, %v14920_v26  ;;  %v11858_v28 = vcombine.high %v14915_v25, %v14920_v26  ;;  %v149_v25 = vld [vmem:[%s21082_s1 + $0xd0] sm:$0xff] }
  0x1c   :  { %v227_v51 = vld [vmem:[%s21082_s1 + $0x340] sm:$0xff]  ;;  %v11950_v53 = vcombine.high %v219_v47, %v223_v48  ;;  %v11949_v54 = vcombine.low %v219_v47, %v223_v48  ;;  %v15038_v47 = vld [vmem:[%s21083_s0 + $0x1c8] ss:$12 sps:$4 sm:$0xff]  }
  0x1d   :  { %v231_v52 = vld [vmem:[%s21082_s1 + $0x360] sm:$0xff]  ;;  %v153_v26 = vld [vmem:[%s21082_s1 + $0xf0] sm:$0xff] }
  0x1e   :  { %1398 = vmatpush1.bf16.msra.mxu0 %v11901_v30  ;;  %v235_v55 = vld [vmem:[%s21082_s1 + $0x380] sm:$0xff]  ;;  %v11958_v57 = vcombine.high %v227_v51, %v231_v52  ;;  %v11957_v58 = vcombine.low %v227_v51, %v231_v52  ;;  %v14935_v30 = vld [vmem:[%s21083_s0 + $0x10c] ss:$12 sps:$4 sm:$0xff]  }
  0x1f   :  { %1399 = vmatprep.subr.bf16.mxu0 %v11910_v31  ;;  %v239_v56 = vld [vmem:[%s21082_s1 + $0x3a0] sm:$0xff]  ;;  %v14942_v31 = vld [vmem:[%s21083_s0 + $0x108] ss:$12 sps:$4 sm:$0xff]  }
  0x20   :  { %v11966_v59 = vcombine.high %v235_v55, %v239_v56  ;;  %v243_v60 = vld [vmem:[%s21082_s1 + $0x3c0] sm:$0xff]  ;;  %v11965_v62 = vcombine.low %v235_v55, %v239_v56  ;;  %v124_v55 = vld [vmem:[%s21082_s1 + $0x8] sm:$0xff] }
  0x21   :  { %v247_v61 = vld [vmem:[%s21082_s1 + $0x3e0] sm:$0xff]  ;;  %v128_v56 = vld [vmem:[%s21082_s1 + $0x28] sm:$0xff] }
  0x22   :  { %1400 = vmatpush1.bf16.msra.mxu0 %v11909_v34  ;;  %v11974_v63 = vcombine.high %v243_v60, %v247_v61  ;;  %v251_v0 = vld [vmem:[%s21082_s1 + $0x400] sm:$0xff]  ;;  %v11973_v2 = vcombine.low %v243_v60, %v247_v61  ;;  %v14959_v34 = vld [vmem:[%s21083_s0 + $0x13c] ss:$12 sps:$4 sm:$0xff]   ;;  %v11855_v61 = vcombine.low %v124_v55, %v128_v56 }
  0x23   :  { %1401 = vmatprep.subr.bf16.mxu0 %v11918_v37  ;;  %v255_v1 = vld [vmem:[%s21082_s1 + $0x420] sm:$0xff]  ;;  %v14978_v37 = vld [vmem:[%s21083_s0 + $0x150] ss:$12 sps:$4 sm:$0xff]  }
  0x24   :  { %v11982_v3 = vcombine.high %v251_v0, %v255_v1  ;;  %v11981_v5 = vcombine.low %v251_v0, %v255_v1  ;;  %v14808_v7 = vld [vmem:[%s21083_s0 + $0x18] ss:$12 sps:$4 sm:$0xff]   ;;  %v14813_v8 = vld [vmem:[%s21083_s0 + $0x34] ss:$12 sps:$4 sm:$0xff]  }
  0x25   :  { %v14837_v12 = vld [vmem:[%s21083_s0 + $0x64] ss:$12 sps:$4 sm:$0xff]   ;;  %v14844_v13 = vld [vmem:[%s21083_s0 + $0x60] ss:$12 sps:$4 sm:$0xff]  }
  0x26   :  { %1402 = vmatpush1.bf16.msra.mxu0 %v11917_v38  ;;  %v14856_v15 = vld [vmem:[%s21083_s0 + $0x78] ss:$12 sps:$4 sm:$0xff]   ;;  %v14861_v16 = vld [vmem:[%s21083_s0 + $0x94] ss:$12 sps:$4 sm:$0xff]  }
  0x27   :  { %1403 = vmatprep.subr.bf16.mxu0 %v11926_v41  ;;  %v14885_v20 = vld [vmem:[%s21083_s0 + $0xc4] ss:$12 sps:$4 sm:$0xff]   ;;  %v14892_v21 = vld [vmem:[%s21083_s0 + $0xc0] ss:$12 sps:$4 sm:$0xff]  }
  0x28   :  { %v14904_v23 = vld [vmem:[%s21083_s0 + $0xd8] ss:$12 sps:$4 sm:$0xff]   ;;  %v14909_v24 = vld [vmem:[%s21083_s0 + $0xf4] ss:$12 sps:$4 sm:$0xff]  }
  0x29   :  { %v14947_v32 = vld [vmem:[%s21083_s0 + $0x124] ss:$12 sps:$4 sm:$0xff]   ;;  %v14954_v33 = vld [vmem:[%s21083_s0 + $0x120] ss:$12 sps:$4 sm:$0xff]  }
  0x2a   :  { %1404 = vmatpush1.bf16.msra.mxu0 %v11925_v42  ;;  %v14966_v35 = vld [vmem:[%s21083_s0 + $0x138] ss:$12 sps:$4 sm:$0xff]   ;;  %v14971_v36 = vld [vmem:[%s21083_s0 + $0x154] ss:$12 sps:$4 sm:$0xff]   ;;  %v15007_v42 = vld [vmem:[%s21083_s0 + $0x19c] ss:$12 sps:$4 sm:$0xff]  }
  0x2b   :  { %1405 = vmatprep.subr.bf16.mxu0 %v11934_v45  ;;  %v14983_v38 = vld [vmem:[%s21083_s0 + $0x16c] ss:$12 sps:$4 sm:$0xff]   ;;  %v14995_v40 = vld [vmem:[%s21083_s0 + $0x184] ss:$12 sps:$4 sm:$0xff]   ;;  %v15019_v44 = vld [vmem:[%s21083_s0 + $0x1b4] ss:$12 sps:$4 sm:$0xff]  }
  0x2c   :  { %v15002_v41 = vld [vmem:[%s21083_s0 + $0x180] ss:$12 sps:$4 sm:$0xff]   ;;  %v15014_v43 = vld [vmem:[%s21083_s0 + $0x198] ss:$12 sps:$4 sm:$0xff]   ;;  %v15026_v45 = vld [vmem:[%s21083_s0 + $0x1b0] ss:$12 sps:$4 sm:$0xff]  }
  0x2d   :  { %v15043_v48 = vld [vmem:[%s21083_s0 + $0x1e4] ss:$12 sps:$4 sm:$0xff]   ;;  %v15067_v52 = vld [vmem:[%s21083_s0 + $0x214] ss:$12 sps:$4 sm:$0xff]  }
  0x2e   :  { %1406 = vmatpush1.bf16.msra.mxu0 %v11933_v46  ;;  %v15031_v46 = vld [vmem:[%s21083_s0 + $0x1cc] ss:$12 sps:$4 sm:$0xff]  }
  0x2f   :  { %1407 = vmatprep.subr.bf16.mxu0 %v11942_v49  ;;  %v15050_v49 = vld [vmem:[%s21083_s0 + $0x1e0] ss:$12 sps:$4 sm:$0xff]   ;;  %v15062_v51 = vld [vmem:[%s21083_s0 + $0x1f8] ss:$12 sps:$4 sm:$0xff]  }
  0x32   :  { %1408 = vmatpush1.bf16.msra.mxu0 %v11941_v50  ;;  %v15055_v50 = vld [vmem:[%s21083_s0 + $0x1fc] ss:$12 sps:$4 sm:$0xff]  }
  0x33   :  { %1409 = vmatprep.subr.bf16.mxu0 %v11950_v53  ;;  %v15074_v53 = vld [vmem:[%s21083_s0 + $0x210] ss:$12 sps:$4 sm:$0xff]  }
  0x36   :  { %1410 = vmatpush1.bf16.msra.mxu0 %v11949_v54  ;;  %v15079_v54 = vld [vmem:[%s21083_s0 + $0x22c] ss:$12 sps:$4 sm:$0xff]  }
  0x37   :  { %1411 = vmatprep.subr.bf16.mxu0 %v11958_v57  ;;  %v121_v57 = vld [vmem:[%s21083_s0 + $0x240] sm:$0xff] }
  0x38   :  { %v15097_v60 = vcombine.high %v121_v57, %v121_v57 }
  0x3a   :  { %1412 = vmatpush1.bf16.msra.mxu0 %v11957_v58  ;;  %v11856_v58 = vcombine.high %v124_v55, %v128_v56  ;;  %21448 = vst [vmem:[#allocation4_spill] sm:$0xff] %v15097_v60  ;;  %v148_v56 = vld [vmem:[%s21082_s1 + $0xc8] sm:$0xff] }
  0x3b   :  { %1413 = vmatprep.subr.bf16.mxu0 %v11966_v59  ;;  %v15095_v59 = vld [vmem:[%s21083_s0 + $0x228] ss:$12 sps:$4 sm:$0xff]  }
  0x3c   :  { %21447 = vst [vmem:[#allocation3_spill] sm:$0xff] %v15095_v59  ;;  %1947 = vmatprep.subr.bf16.mxu1 %v11856_v58  ;;  %v152_v58 = vld [vmem:[%s21082_s1 + $0xe8] sm:$0xff] }
  0x3d   :  { %1948 = vmatpush1.bf16.msra.mxu1 %v11855_v61  ;;  %v11880_v61 = vcombine.high %v148_v56, %v152_v58 }
  0x3e   :  { %1414 = vmatpush1.bf16.msra.mxu0 %v11965_v62  ;;  %v132_v62 = vld [vmem:[%s21082_s1 + $0x48] sm:$0xff] }
  0x3f   :  { %1415 = vmatprep.subr.bf16.mxu0 %v11974_v63  ;;  %v136_v63 = vld [vmem:[%s21082_s1 + $0x68] sm:$0xff] }
  0x40   :  { %v11864_v0 = vcombine.high %v132_v62, %v136_v63  ;;  %v11863_v1 = vcombine.low %v132_v62, %v136_v63  ;;  %v11879_v62 = vcombine.low %v148_v56, %v152_v58  ;;  %v21095_v63 = vmov 0   ;;  %v141_v58 = vld [vmem:[%s21082_s1 + $0x90] sm:$0xff] }
  0x42   :  { %1416 = vmatpush1.bf16.msra.mxu0 %v11973_v2  ;;  %v140_v2 = vld [vmem:[%s21082_s1 + $0x88] sm:$0xff]  ;;  %1949 = vmatprep.subr.bf16.mxu1 %v11864_v0 }
  0x43   :  { %1666 = vmatprep.subr.bf16.mxu0 %v11982_v3  ;;  %v144_v3 = vld [vmem:[%s21082_s1 + $0xa8] sm:$0xff]  ;;  %1950 = vmatpush1.bf16.msra.mxu1 %v11863_v1 }
  0x44   :  { %v11871_v55 = vcombine.low %v140_v2, %v144_v3  ;;  %v160_v0 = vld [vmem:[%s21082_s1 + $0x128] sm:$0xff] }
  0x45   :  { %1418 = vmatmul.mubr.bf16.vlgmr.msra.gmra.mrb[0].mxu0 %v14796_v4 }
  0x46   :  { %1667 = vmatpush1.bf16.msra.mxu0 %v11981_v5  ;;  %1427 = vmatprep.mubr.bf16.mxu0 %v14801_v6  ;;  %v11872_v5 = vcombine.high %v140_v2, %v144_v3  ;;  %v133_v2 = vld [vmem:[%s21082_s1 + $0x50] sm:$0xff] }
  0x47   :  { %2509 = vmatprep.subr.bf16.mxu0 %v11858_v28  ;;  %v15113_v28 = vcombine.low %v121_v57, %v121_v57  ;;  %v156_v57 = vld [vmem:[%s21082_s1 + $0x108] sm:$0xff]  ;;  %v137_v3 = vld [vmem:[%s21082_s1 + $0x70] sm:$0xff] }
  0x48   :  { %1951 = vmatprep.subr.bf16.mxu1 %v11872_v5  ;;  %v11888_v1 = vcombine.high %v156_v57, %v160_v0  ;;  %v15138_v5 = vld [vmem:[%s21083_s0 + $0x8] ss:$12 sps:$4 sm:$0xff]   ;;  %v11866_v56 = vcombine.high %v133_v2, %v137_v3 }
  0x49   :  { %21449 = vst [vmem:[#allocation5_spill] sm:$0xff] %v15113_v28  ;;  %1952 = vmatpush1.bf16.msra.mxu1 %v11871_v55  ;;  %21450 = vst [vmem:[#allocation6_spill] sm:$0xff] %v15138_v5  ;;  %v11887_v55 = vcombine.low %v156_v57, %v160_v0 }
  0x4a   :  { %1953 = vmatprep.subr.bf16.mxu1 %v11880_v61  ;;  %v145_v61 = vld [vmem:[%s21082_s1 + $0xb0] sm:$0xff] }
  0x4d   :  { %1428 = vmatmul.mubr.bf16.gmra.mrb[4].mxu0 %v14808_v7  ;;  %1954 = vmatpush1.bf16.msra.mxu1 %v11879_v62  ;;  %v164_v62 = vld [vmem:[%s21082_s1 + $0x148] sm:$0xff] }
  0x4e   :  { %1437 = vmatprep.mubr.bf16.mxu0 %v14813_v8  ;;  %1955 = vmatprep.subr.bf16.mxu1 %v11888_v1  ;;  %v168_v1 = vld [vmem:[%s21082_s1 + $0x168] sm:$0xff] }
  0x4f   :  { %v11896_v57 = vcombine.high %v164_v62, %v168_v1  ;;  %v11895_v0 = vcombine.low %v164_v62, %v168_v1  ;;  %v157_v62 = vld [vmem:[%s21082_s1 + $0x110] sm:$0xff] }
  0x50   :  { %v161_v1 = vld [vmem:[%s21082_s1 + $0x130] sm:$0xff] }
  0x51   :  { %1956 = vmatpush1.bf16.msra.mxu1 %v11887_v55  ;;  %v11865_v55 = vcombine.low %v133_v2, %v137_v3  ;;  %v11873_v2 = vcombine.low %v141_v58, %v145_v61 }
  0x52   :  { %1957 = vmatprep.subr.bf16.mxu1 %v11896_v57  ;;  %v180_v57 = vld [vmem:[%s21082_s1 + $0x1c8] sm:$0xff] }
  0x55   :  { %1438 = vmatmul.mubr.bf16.gmra.mrb[8].mxu0 %v14820_v9  ;;  %1958 = vmatpush1.bf16.msra.mxu1 %v11895_v0  ;;  %v11890_v0 = vcombine.high %v157_v62, %v161_v1 }
  0x56   :  { %1447 = vmatprep.mubr.bf16.mxu0 %v14825_v10 }
  0x5d   :  { %1448 = vmatmul.mubr.bf16.gmra.mrb[12].mxu0 %v14832_v11 }
  0x5e   :  { %1457 = vmatprep.mubr.bf16.mxu0 %v14837_v12 }
  0x65   :  { %1458 = vmatmul.mubr.bf16.gmra.mrb[16].mxu0 %v14844_v13 }
  0x66   :  { %1467 = vmatprep.mubr.bf16.mxu0 %v14849_v14 }
  0x6d   :  { %1468 = vmatmul.mubr.bf16.gmra.mrb[20].mxu0 %v14856_v15 }
  0x6e   :  { %1477 = vmatprep.mubr.bf16.mxu0 %v14861_v16 }
  0x75   :  { %1478 = vmatmul.mubr.bf16.gmra.mrb[24].mxu0 %v14868_v17 }
  0x76   :  { %1487 = vmatprep.mubr.bf16.mxu0 %v14873_v18 }
  0x7d   :  { %1488 = vmatmul.mubr.bf16.gmra.mrb[28].mxu0 %v14880_v19 }
  0x7e   :  { %1497 = vmatprep.mubr.bf16.mxu0 %v14885_v20 }
  0x85   :  { %1498 = vmatmul.mubr.bf16.gmra.mrb[32].mxu0 %v14892_v21 }
  0x86   :  { %1507 = vmatprep.mubr.bf16.mxu0 %v14897_v22 }
  0x8d   :  { %1508 = vmatmul.mubr.bf16.gmra.mrb[36].mxu0 %v14904_v23 }
  0x8e   :  { %1517 = vmatprep.mubr.bf16.mxu0 %v14909_v24 }
  0x95   :  { %1518 = vmatmul.mubr.bf16.gmra.mrb[40].mxu0 %v14930_v29 }
  0x96   :  { %1527 = vmatprep.mubr.bf16.mxu0 %v14935_v30 }
  0x9d   :  { %1528 = vmatmul.mubr.bf16.gmra.mrb[44].mxu0 %v14942_v31 }
  0x9e   :  { %1537 = vmatprep.mubr.bf16.mxu0 %v14947_v32 }
  0xa5   :  { %1538 = vmatmul.mubr.bf16.gmra.mrb[48].mxu0 %v14954_v33 }
  0xa6   :  { %1547 = vmatprep.mubr.bf16.mxu0 %v14959_v34 }
  0xad   :  { %1548 = vmatmul.mubr.bf16.gmra.mrb[52].mxu0 %v14966_v35 }
  0xae   :  { %1557 = vmatprep.mubr.bf16.mxu0 %v14971_v36 }
  0xb5   :  { %1558 = vmatmul.mubr.bf16.gmra.mrb[56].mxu0 %v14978_v37 }
  0xb6   :  { %1567 = vmatprep.mubr.bf16.mxu0 %v14983_v38 }
  0xbd   :  { %1568 = vmatmul.mubr.bf16.gmra.mrb[60].mxu0 %v14990_v39 }
  0xbe   :  { %1577 = vmatprep.mubr.bf16.mxu0 %v14995_v40 }
  0xc5   :  { %1578 = vmatmul.mubr.bf16.gmra.mrb[64].mxu0 %v15002_v41 }
  0xc6   :  { %1587 = vmatprep.mubr.bf16.mxu0 %v15007_v42 }
  0xcd   :  { %1588 = vmatmul.mubr.bf16.gmra.mrb[68].mxu0 %v15014_v43 }
  0xce   :  { %1597 = vmatprep.mubr.bf16.mxu0 %v15019_v44 }
  0xd5   :  { %1598 = vmatmul.mubr.bf16.gmra.mrb[72].mxu0 %v15026_v45 }
  0xd6   :  { %1607 = vmatprep.mubr.bf16.mxu0 %v15031_v46 }
  0xdd   :  { %1608 = vmatmul.mubr.bf16.gmra.mrb[76].mxu0 %v15038_v47 }
  0xde   :  { %1617 = vmatprep.mubr.bf16.mxu0 %v15043_v48 }
  0xe5   :  { %1618 = vmatmul.mubr.bf16.gmra.mrb[80].mxu0 %v15050_v49 }
  0xe6   :  { %1627 = vmatprep.mubr.bf16.mxu0 %v15055_v50 }
  0xed   :  { %1628 = vmatmul.mubr.bf16.gmra.mrb[84].mxu0 %v15062_v51 }
  0xee   :  { %1637 = vmatprep.mubr.bf16.mxu0 %v15067_v52 }
  0xf5   :  { %1638 = vmatmul.mubr.bf16.gmra.mrb[88].mxu0 %v15074_v53 }
  0xf6   :  { %1647 = vmatprep.mubr.bf16.mxu0 %v15079_v54 }
  0xfd   :  { %1648 = vmatmul.mubr.bf16.gmra.mrb[92].mxu0 %v15095_v59  ;;  %v11874_v59 = vcombine.high %v141_v58, %v145_v61  ;;  %v188_v58 = vld [vmem:[%s21082_s1 + $0x208] sm:$0xff] }
  0xfe   :  { %1657 = vmatprep.mubr.bf16.mxu0 %v15097_v60  ;;  %v176_v60 = vld [vmem:[%s21082_s1 + $0x1a8] sm:$0xff] }
  0xff   :  { %v192_v61 = vld [vmem:[%s21082_s1 + $0x228] sm:$0xff] }
 0x105   :  { %1658 = vmatmul.mubr.bf16.gmra.mrb[96].mxu0 %v15113_v28  ;;  %v172_v28 = vld [vmem:[%s21082_s1 + $0x188] sm:$0xff] }
 0x106   :  { %1698 = vmatprep.mubr.bf16.mxu0 %v21095_v63  ;;  %v11903_v3 = vcombine.low %v172_v28, %v176_v60 }
 0x10d   :  { %11989 = vmatmul.mubr.msk.bf16.vlgmr.msra.gmra.mrb[0].mxu0 %vm1309_vm0, %v15138_v5  ;;  %v11904_v5 = vcombine.high %v172_v28, %v176_v60  ;;  %v11881_v28 = vcombine.low %v149_v25, %v153_v26 }
 0x10e   :  { %2510 = vmatpush1.bf16.msra.mxu0 %v11857_v27  ;;  %1708 = vmatprep.mubr.bf16.mxu0 %v21095_v63  ;;  %v15173_v27 = vld [vmem:[%s21083_s0 + $0x20] ss:$12 sps:$4 sm:$0xff]  }
 0x10f   :  { %2511 = vmatprep.subr.bf16.mxu0 %v11866_v56  ;;  %1959 = vmatprep.subr.bf16.mxu1 %v11904_v5  ;;  %v11882_v56 = vcombine.high %v149_v25, %v153_v26  ;;  %v184_v5 = vld [vmem:[%s21082_s1 + $0x1e8] sm:$0xff]  ;;  %v169_v25 = vld [vmem:[%s21082_s1 + $0x170] sm:$0xff]  ;;  %v15205_v26 = vld [vmem:[%s21083_s0 + $0x38] ss:$12 sps:$4 sm:$0xff]  }
 0x110   :  { %1960 = vmatpush1.bf16.msra.mxu1 %v11903_v3  ;;  %v11911_v60 = vcombine.low %v180_v57, %v184_v5  ;;  %v165_v3 = vld [vmem:[%s21082_s1 + $0x150] sm:$0xff]  ;;  %21451 = vst [vmem:[#allocation7_spill] sm:$0xff] %v15205_v26 }
 0x112   :  { %2512 = vmatpush1.bf16.msra.mxu0 %v11865_v55  ;;  %v11920_v55 = vcombine.high %v188_v58, %v192_v61 }
 0x113   :  { %2513 = vmatprep.subr.bf16.mxu0 %v11874_v59  ;;  %v11912_v59 = vcombine.high %v180_v57, %v184_v5  ;;  %v11898_v57 = vcombine.high %v165_v3, %v169_v25  ;;  %v173_v5 = vld [vmem:[%s21082_s1 + $0x190] sm:$0xff] }
 0x115   :  { %11990 = vmatmul.mubr.msk.bf16.gmra.mrb[4].mxu0 %vm1309_vm0, %v15173_v27  ;;  %1961 = vmatprep.subr.bf16.mxu1 %v11912_v59  ;;  %v177_v59 = vld [vmem:[%s21082_s1 + $0x1b0] sm:$0xff] }
 0x116   :  { %1718 = vmatprep.mubr.bf16.mxu0 %v21095_v63  ;;  %2514 = vmatpush1.bf16.msra.mxu0 %v11873_v2  ;;  %v11889_v2 = vcombine.low %v157_v62, %v161_v1  ;;  %v200_v62 = vld [vmem:[%s21082_s1 + $0x268] sm:$0xff] }
 0x117   :  { %2515 = vmatprep.subr.bf16.mxu0 %v11882_v56  ;;  %1962 = vmatpush1.bf16.msra.mxu1 %v11911_v60  ;;  %v11919_v56 = vcombine.low %v188_v58, %v192_v61  ;;  %v196_v60 = vld [vmem:[%s21082_s1 + $0x248] sm:$0xff]  ;;  %v11897_v58 = vcombine.low %v165_v3, %v169_v25  ;;  %v185_v3 = vld [vmem:[%s21082_s1 + $0x1f0] sm:$0xff] }
 0x118   :  { %1963 = vmatprep.subr.bf16.mxu1 %v11920_v55  ;;  %v11928_v1 = vcombine.high %v196_v60, %v200_v62  ;;  %v204_v61 = vld [vmem:[%s21082_s1 + $0x288] sm:$0xff]  ;;  %v11906_v55 = vcombine.high %v173_v5, %v177_v59  ;;  %v15237_v25 = vld [vmem:[%s21083_s0 + $0x50] ss:$12 sps:$4 sm:$0xff]  }
 0x119   :  { %21452 = vst [vmem:[#allocation8_spill] sm:$0xff] %v15237_v25 }
 0x11a   :  { %2516 = vmatpush1.bf16.msra.mxu0 %v11881_v28  ;;  %v11927_v28 = vcombine.low %v196_v60, %v200_v62  ;;  %v181_v60 = vld [vmem:[%s21082_s1 + $0x1d0] sm:$0xff] }
 0x11b   :  { %2517 = vmatprep.subr.bf16.mxu0 %v11890_v0  ;;  %1964 = vmatpush1.bf16.msra.mxu1 %v11919_v56  ;;  %v208_v0 = vld [vmem:[%s21082_s1 + $0x2a8] sm:$0xff]  ;;  %v11914_v62 = vcombine.high %v181_v60, %v185_v3 }
 0x11c   :  { %1965 = vmatprep.subr.bf16.mxu1 %v11928_v1  ;;  %v11936_v56 = vcombine.high %v204_v61, %v208_v0  ;;  %v189_v1 = vld [vmem:[%s21082_s1 + $0x210] sm:$0xff] }
 0x11d   :  { %11991 = vmatmul.mubr.msk.bf16.gmra.mrb[8].mxu0 %vm1309_vm0, %v15205_v26 }
 0x11e   :  { %1728 = vmatprep.mubr.bf16.mxu0 %v21095_v63  ;;  %2518 = vmatpush1.bf16.msra.mxu0 %v11889_v2  ;;  %v11905_v2 = vcombine.low %v173_v5, %v177_v59  ;;  %v193_v63 = vld [vmem:[%s21082_s1 + $0x230] sm:$0xff]  ;;  %v216_v5 = vld [vmem:[%s21082_s1 + $0x2e8] sm:$0xff] }
 0x11f   :  { %2519 = vmatprep.subr.bf16.mxu0 %v11898_v57  ;;  %1966 = vmatpush1.bf16.msra.mxu1 %v11927_v28  ;;  %v11935_v57 = vcombine.low %v204_v61, %v208_v0  ;;  %v212_v28 = vld [vmem:[%s21082_s1 + $0x2c8] sm:$0xff]  ;;  %v21453_v61 = vmov 0   ;;  %v11913_v0 = vcombine.low %v181_v60, %v185_v3  ;;  %v201_v60 = vld [vmem:[%s21082_s1 + $0x270] sm:$0xff] }
 0x120   :  { %1967 = vmatprep.subr.bf16.mxu1 %v11936_v56  ;;  %v11944_v59 = vcombine.high %v212_v28, %v216_v5  ;;  %v224_v56 = vld [vmem:[%s21082_s1 + $0x328] sm:$0xff] }
 0x121   :  { %v15269_v3 = vld [vmem:[%s21083_s0 + $0x68] ss:$12 sps:$4 sm:$0xff]  }
 0x122   :  { %2520 = vmatpush1.bf16.msra.mxu0 %v11897_v58  ;;  %v11943_v58 = vcombine.low %v212_v28, %v216_v5  ;;  %v197_v28 = vld [vmem:[%s21082_s1 + $0x250] sm:$0xff]  ;;  %21454 = vst [vmem:[#allocation9_spill] sm:$0xff] %v15269_v3 }
 0x123   :  { %2521 = vmatprep.subr.bf16.mxu0 %v11906_v55  ;;  %1968 = vmatpush1.bf16.msra.mxu1 %v11935_v57  ;;  %v220_v55 = vld [vmem:[%s21082_s1 + $0x308] sm:$0xff]  ;;  %v11922_v57 = vcombine.high %v189_v1, %v193_v63  ;;  %v11930_v5 = vcombine.high %v197_v28, %v201_v60 }
 0x124   :  { %1969 = vmatprep.subr.bf16.mxu1 %v11944_v59  ;;  %v11952_v26 = vcombine.high %v220_v55, %v224_v56  ;;  %v205_v59 = vld [vmem:[%s21082_s1 + $0x290] sm:$0xff] }
 0x125   :  { %11992 = vmatmul.mubr.msk.bf16.gmra.mrb[12].mxu0 %vm1309_vm0, %v15237_v25  ;;  %v209_v25 = vld [vmem:[%s21082_s1 + $0x2b0] sm:$0xff] }
 0x126   :  { %1738 = vmatprep.mubr.bf16.mxu0 %v21453_v61  ;;  %2522 = vmatpush1.bf16.msra.mxu0 %v11905_v2  ;;  %v11921_v2 = vcombine.low %v189_v1, %v193_v63  ;;  %v232_v63 = vld [vmem:[%s21082_s1 + $0x368] sm:$0xff] }
 0x127   :  { %2523 = vmatprep.subr.bf16.mxu0 %v11914_v62  ;;  %1970 = vmatpush1.bf16.msra.mxu1 %v11943_v58  ;;  %v11951_v62 = vcombine.low %v220_v55, %v224_v56  ;;  %v228_v58 = vld [vmem:[%s21082_s1 + $0x348] sm:$0xff] }
 0x128   :  { %1971 = vmatprep.subr.bf16.mxu1 %v11952_v26  ;;  %v11960_v26 = vcombine.high %v228_v58, %v232_v63  ;;  %v11959_v1 = vcombine.low %v228_v58, %v232_v63  ;;  %v236_v55 = vld [vmem:[%s21082_s1 + $0x388] sm:$0xff]  ;;  %v213_v58 = vld [vmem:[%s21082_s1 + $0x2d0] sm:$0xff] }
 0x129   :  { %v240_v56 = vld [vmem:[%s21082_s1 + $0x3a8] sm:$0xff] }
 0x12a   :  { %2524 = vmatpush1.bf16.msra.mxu0 %v11913_v0  ;;  %v11929_v0 = vcombine.low %v197_v28, %v201_v60  ;;  %v217_v28 = vld [vmem:[%s21082_s1 + $0x2f0] sm:$0xff]  ;;  %v15301_v60 = vld [vmem:[%s21083_s0 + $0x80] ss:$12 sps:$4 sm:$0xff]  }
 0x12b   :  { %2525 = vmatprep.subr.bf16.mxu0 %v11922_v57  ;;  %1972 = vmatpush1.bf16.msra.mxu1 %v11951_v62  ;;  %v11938_v57 = vcombine.high %v205_v59, %v209_v25  ;;  %v11968_v62 = vcombine.high %v236_v55, %v240_v56  ;;  %v11946_v63 = vcombine.high %v213_v58, %v217_v28 }
 0x12c   :  { %1973 = vmatprep.subr.bf16.mxu1 %v11960_v26  ;;  %v221_v26 = vld [vmem:[%s21082_s1 + $0x310] sm:$0xff] }
 0x12d   :  { %11993 = vmatmul.mubr.msk.bf16.gmra.mrb[16].mxu0 %vm1309_vm0, %v15269_v3  ;;  %v225_v3 = vld [vmem:[%s21082_s1 + $0x330] sm:$0xff] }
 0x12e   :  { %1748 = vmatprep.mubr.bf16.mxu0 %v21453_v61  ;;  %2526 = vmatpush1.bf16.msra.mxu0 %v11921_v2  ;;  %v11937_v2 = vcombine.low %v205_v59, %v209_v25  ;;  %v248_v25 = vld [vmem:[%s21082_s1 + $0x3e8] sm:$0xff] }
 0x12f   :  { %2527 = vmatprep.subr.bf16.mxu0 %v11930_v5  ;;  %1974 = vmatpush1.bf16.msra.mxu1 %v11959_v1  ;;  %v11967_v5 = vcombine.low %v236_v55, %v240_v56  ;;  %v244_v1 = vld [vmem:[%s21082_s1 + $0x3c8] sm:$0xff]  ;;  %v11945_v55 = vcombine.low %v213_v58, %v217_v28  ;;  %v11954_v56 = vcombine.high %v221_v26, %v225_v3  ;;  %v237_v28 = vld [vmem:[%s21082_s1 + $0x390] sm:$0xff] }
 0x130   :  { %1975 = vmatprep.subr.bf16.mxu1 %v11968_v62  ;;  %v11976_v59 = vcombine.high %v244_v1, %v248_v25  ;;  %v233_v62 = vld [vmem:[%s21082_s1 + $0x370] sm:$0xff] }
 0x132   :  { %2528 = vmatpush1.bf16.msra.mxu0 %v11929_v0  ;;  %v11975_v0 = vcombine.low %v244_v1, %v248_v25  ;;  %v15343_v1 = vld [vmem:[%s21083_s0 + $0xb0] ss:$12 sps:$4 sm:$0xff]  }
 0x133   :  { %2529 = vmatprep.subr.bf16.mxu0 %v11938_v57  ;;  %1976 = vmatpush1.bf16.msra.mxu1 %v11967_v5  ;;  %v229_v57 = vld [vmem:[%s21082_s1 + $0x350] sm:$0xff]  ;;  %v15327_v5 = vld [vmem:[%s21083_s0 + $0x98] ss:$12 sps:$4 sm:$0xff]  }
 0x134   :  { %1977 = vmatprep.subr.bf16.mxu1 %v11976_v59  ;;  %v11962_v58 = vcombine.high %v229_v57, %v233_v62  ;;  %v245_v59 = vld [vmem:[%s21082_s1 + $0x3d0] sm:$0xff] }
 0x135   :  { %11994 = vmatmul.mubr.msk.bf16.gmra.mrb[20].mxu0 %vm1309_vm0, %v15301_v60 }
 0x136   :  { %1758 = vmatprep.mubr.bf16.mxu0 %v21453_v61  ;;  %2530 = vmatpush1.bf16.msra.mxu0 %v11937_v2  ;;  %v11953_v2 = vcombine.low %v221_v26, %v225_v3  ;;  %v11961_v3 = vcombine.low %v229_v57, %v233_v62  ;;  %v15359_v57 = vld [vmem:[%s21083_s0 + $0xc8] ss:$12 sps:$4 sm:$0xff]   ;;  %v15369_v62 = vld [vmem:[%s21083_s0 + $0xe0] ss:$12 sps:$4 sm:$0xff]  }
 0x137   :  { %2531 = vmatprep.subr.bf16.mxu0 %v11946_v63  ;;  %1978 = vmatpush1.bf16.msra.mxu1 %v11975_v0  ;;  %v241_v63 = vld [vmem:[%s21082_s1 + $0x3b0] sm:$0xff] }
 0x138   :  { %v11970_v26 = vcombine.high %v237_v28, %v241_v63  ;;  %v11969_v25 = vcombine.low %v237_v28, %v241_v63  ;;  %v249_v0 = vld [vmem:[%s21082_s1 + $0x3f0] sm:$0xff] }
 0x13a   :  { %2532 = vmatpush1.bf16.msra.mxu0 %v11945_v55  ;;  %1980 = vmatmul.mubr.bf16.vlgmr.msra.gmra.mrb[0].mxu1 %v14796_v4  ;;  %v11977_v55 = vcombine.low %v245_v59, %v249_v0 }
 0x13b   :  { %2533 = vmatprep.subr.bf16.mxu0 %v11954_v56  ;;  %1989 = vmatprep.mubr.bf16.mxu1 %v14801_v6  ;;  %v11978_v56 = vcombine.high %v245_v59, %v249_v0  ;;  %v14028_v59 = vld [vmem:[%s21083_s0 + $0x140] ss:$12 sps:$4 sm:$0xff]   ;;  %v14029_v0 = vld [vmem:[%s21083_s0 + $0x158] ss:$12 sps:$4 sm:$0xff]  }
 0x13d   :  { %11995 = vmatmul.mubr.msk.bf16.gmra.mrb[24].mxu0 %vm1309_vm0, %v15327_v5 }
 0x13e   :  { %1768 = vmatprep.mubr.bf16.mxu0 %v21453_v61  ;;  %2534 = vmatpush1.bf16.msra.mxu0 %v11953_v2  ;;  %v15378_v2 = vld [vmem:[%s21082_s1 + $0x410] sm:$0xff] }
 0x13f   :  { %2535 = vmatprep.subr.bf16.mxu0 %v11962_v58  ;;  %v15383_v58 = vld [vmem:[%s21082_s1 + $0x430] sm:$0xff] }
 0x140   :  { %v11985_v28 = vcombine.low %v15378_v2, %v15383_v58  ;;  %v11986_v63 = vcombine.high %v15378_v2, %v15383_v58 }
 0x142   :  { %2536 = vmatpush1.bf16.msra.mxu0 %v11961_v3  ;;  %1990 = vmatmul.mubr.bf16.gmra.mrb[4].mxu1 %v14808_v7  ;;  %v15393_v3 = vld [vmem:[%s21083_s0 + $0xf8] ss:$12 sps:$4 sm:$0xff]  }
 0x143   :  { %2537 = vmatprep.subr.bf16.mxu0 %v11970_v26  ;;  %1999 = vmatprep.mubr.bf16.mxu1 %v14813_v8  ;;  %v14026_v26 = vld [vmem:[%s21083_s0 + $0x110] ss:$12 sps:$4 sm:$0xff]  }
 0x145   :  { %11996 = vmatmul.mubr.msk.bf16.gmra.mrb[28].mxu0 %vm1309_vm0, %v15343_v1 }
 0x146   :  { %1778 = vmatprep.mubr.bf16.mxu0 %v21453_v61  ;;  %2538 = vmatpush1.bf16.msra.mxu0 %v11969_v25  ;;  %v14027_v25 = vld [vmem:[%s21083_s0 + $0x128] ss:$12 sps:$4 sm:$0xff]  }
 0x147   :  { %2539 = vmatprep.subr.bf16.mxu0 %v11978_v56 }
 0x14a   :  { %2540 = vmatpush1.bf16.msra.mxu0 %v11977_v55  ;;  %2000 = vmatmul.mubr.bf16.gmra.mrb[8].mxu1 %v14820_v9 }
 0x14b   :  { %2009 = vmatprep.mubr.bf16.mxu1 %v14825_v10  ;;  %2790 = vmatprep.subr.bf16.mxu0 %v11986_v63 }
 0x14d   :  { %11997 = vmatmul.mubr.msk.bf16.gmra.mrb[32].mxu0 %vm1309_vm0, %v15359_v57 }
 0x14e   :  { %1788 = vmatprep.mubr.bf16.mxu0 %v21453_v61 }
 0x152   :  { %2010 = vmatmul.mubr.bf16.gmra.mrb[12].mxu1 %v14832_v11 }
 0x153   :  { %2019 = vmatprep.mubr.bf16.mxu1 %v14837_v12 }
 0x155   :  { %11998 = vmatmul.mubr.msk.bf16.gmra.mrb[36].mxu0 %vm1309_vm0, %v15369_v62 }
 0x156   :  { %1798 = vmatprep.mubr.bf16.mxu0 %v21453_v61 }
 0x15a   :  { %2020 = vmatmul.mubr.bf16.gmra.mrb[16].mxu1 %v14844_v13 }
 0x15b   :  { %2029 = vmatprep.mubr.bf16.mxu1 %v14849_v14 }
 0x15d   :  { %11999 = vmatmul.mubr.msk.bf16.gmra.mrb[40].mxu0 %vm1309_vm0, %v15393_v3 }
 0x15e   :  { %1808 = vmatprep.mubr.bf16.mxu0 %v21453_v61 }
 0x162   :  { %2030 = vmatmul.mubr.bf16.gmra.mrb[20].mxu1 %v14856_v15 }
 0x163   :  { %2039 = vmatprep.mubr.bf16.mxu1 %v14861_v16 }
 0x165   :  { %12000 = vmatmul.mubr.msk.bf16.gmra.mrb[44].mxu0 %vm1309_vm0, %v14026_v26  ;;  %v21455_v26 = vld [vmem:[#allocation3_spill] sm:$0xff] }
 0x166   :  { %1818 = vmatprep.mubr.bf16.mxu0 %v21453_v61 }
 0x16a   :  { %2040 = vmatmul.mubr.bf16.gmra.mrb[24].mxu1 %v14868_v17 }
 0x16b   :  { %2049 = vmatprep.mubr.bf16.mxu1 %v14873_v18 }
 0x16d   :  { %12001 = vmatmul.mubr.msk.bf16.gmra.mrb[48].mxu0 %vm1309_vm0, %v14027_v25  ;;  %v21456_v25 = vld [vmem:[#allocation4_spill] sm:$0xff] }
 0x16e   :  { %1828 = vmatprep.mubr.bf16.mxu0 %v21453_v61 }
 0x172   :  { %2050 = vmatmul.mubr.bf16.gmra.mrb[28].mxu1 %v14880_v19  ;;  %v14030_v19 = vld [vmem:[%s21083_s0 + $0x170] ss:$12 sps:$4 sm:$0xff]  }
 0x173   :  { %2059 = vmatprep.mubr.bf16.mxu1 %v14885_v20  ;;  %v14031_v20 = vld [vmem:[%s21083_s0 + $0x188] ss:$12 sps:$4 sm:$0xff]  }
 0x175   :  { %12002 = vmatmul.mubr.msk.bf16.gmra.mrb[52].mxu0 %vm1309_vm0, %v14028_v59 }
 0x176   :  { %1838 = vmatprep.mubr.bf16.mxu0 %v21453_v61 }
 0x17a   :  { %2060 = vmatmul.mubr.bf16.gmra.mrb[32].mxu1 %v14892_v21  ;;  %v14032_v21 = vld [vmem:[%s21083_s0 + $0x1a0] ss:$12 sps:$4 sm:$0xff]  }
 0x17b   :  { %2069 = vmatprep.mubr.bf16.mxu1 %v14897_v22  ;;  %v14033_v22 = vld [vmem:[%s21083_s0 + $0x1b8] ss:$12 sps:$4 sm:$0xff]  }
 0x17d   :  { %12003 = vmatmul.mubr.msk.bf16.gmra.mrb[56].mxu0 %vm1309_vm0, %v14029_v0 }
 0x17e   :  { %1848 = vmatprep.mubr.bf16.mxu0 %v21453_v61 }
 0x182   :  { %2070 = vmatmul.mubr.bf16.gmra.mrb[36].mxu1 %v14904_v23  ;;  %v14034_v23 = vld [vmem:[%s21083_s0 + $0x1d0] ss:$12 sps:$4 sm:$0xff]  }
 0x183   :  { %2079 = vmatprep.mubr.bf16.mxu1 %v14909_v24  ;;  %v14035_v24 = vld [vmem:[%s21083_s0 + $0x1e8] ss:$12 sps:$4 sm:$0xff]  }
 0x185   :  { %12004 = vmatmul.mubr.msk.bf16.gmra.mrb[60].mxu0 %vm1309_vm0, %v14030_v19 }
 0x186   :  { %1858 = vmatprep.mubr.bf16.mxu0 %v21453_v61 }
 0x18a   :  { %2080 = vmatmul.mubr.bf16.gmra.mrb[40].mxu1 %v14930_v29  ;;  %v14036_v29 = vld [vmem:[%s21083_s0 + $0x200] ss:$12 sps:$4 sm:$0xff]  }
 0x18b   :  { %2089 = vmatprep.mubr.bf16.mxu1 %v14935_v30  ;;  %v14037_v30 = vld [vmem:[%s21083_s0 + $0x218] ss:$12 sps:$4 sm:$0xff]  }
 0x18d   :  { %12005 = vmatmul.mubr.msk.bf16.gmra.mrb[64].mxu0 %vm1309_vm0, %v14031_v20 }
 0x18e   :  { %1868 = vmatprep.mubr.bf16.mxu0 %v21453_v61 }
 0x192   :  { %2090 = vmatmul.mubr.bf16.gmra.mrb[44].mxu1 %v14942_v31  ;;  %v14038_v31 = vld [vmem:[%s21083_s0 + $0x230] ss:$12 sps:$4 sm:$0xff]  }
 0x193   :  { %2099 = vmatprep.mubr.bf16.mxu1 %v14947_v32  ;;  %v14039_v32 = vld [vmem:[%s21083_s0 + $0x248] ss:$0 sps:$4 sm:$0xff]  }
 0x195   :  { %12006 = vmatmul.mubr.msk.bf16.gmra.mrb[68].mxu0 %vm1309_vm0, %v14032_v21 }
 0x196   :  { %1878 = vmatprep.mubr.bf16.mxu0 %v21453_v61 }
 0x19a   :  { %2100 = vmatmul.mubr.bf16.gmra.mrb[48].mxu1 %v14954_v33  ;;  %v14516_v33 = vld [vmem:[%s21083_s0 + $0x4] ss:$12 sps:$4 sm:$0xff]  }
 0x19b   :  { %2109 = vmatprep.mubr.bf16.mxu1 %v14959_v34 }
 0x19d   :  { %12007 = vmatmul.mubr.msk.bf16.gmra.mrb[72].mxu0 %vm1309_vm0, %v14033_v22 }
 0x19e   :  { %1888 = vmatprep.mubr.bf16.mxu0 %v21453_v61 }
 0x1a2   :  { %2110 = vmatmul.mubr.bf16.gmra.mrb[52].mxu1 %v14966_v35 }
 0x1a3   :  { %2119 = vmatprep.mubr.bf16.mxu1 %v14971_v36 }
 0x1a5   :  { %12008 = vmatmul.mubr.msk.bf16.gmra.mrb[76].mxu0 %vm1309_vm0, %v14034_v23 }
 0x1a6   :  { %1898 = vmatprep.mubr.bf16.mxu0 %v21453_v61 }
 0x1aa   :  { %2120 = vmatmul.mubr.bf16.gmra.mrb[56].mxu1 %v14978_v37 }
 0x1ab   :  { %2129 = vmatprep.mubr.bf16.mxu1 %v14983_v38 }
 0x1ad   :  { %12009 = vmatmul.mubr.msk.bf16.gmra.mrb[80].mxu0 %vm1309_vm0, %v14035_v24 }
 0x1ae   :  { %1908 = vmatprep.mubr.bf16.mxu0 %v21453_v61 }
 0x1b2   :  { %2130 = vmatmul.mubr.bf16.gmra.mrb[60].mxu1 %v14990_v39 }
 0x1b3   :  { %2139 = vmatprep.mubr.bf16.mxu1 %v14995_v40 }
 0x1b5   :  { %12010 = vmatmul.mubr.msk.bf16.gmra.mrb[84].mxu0 %vm1309_vm0, %v14036_v29 }
 0x1b6   :  { %1918 = vmatprep.mubr.bf16.mxu0 %v21453_v61 }
 0x1ba   :  { %2140 = vmatmul.mubr.bf16.gmra.mrb[64].mxu1 %v15002_v41 }
 0x1bb   :  { %2149 = vmatprep.mubr.bf16.mxu1 %v15007_v42 }
 0x1bd   :  { %12011 = vmatmul.mubr.msk.bf16.gmra.mrb[88].mxu0 %vm1309_vm0, %v14037_v30 }
 0x1be   :  { %1928 = vmatprep.mubr.bf16.mxu0 %v21453_v61 }
 0x1c2   :  { %2150 = vmatmul.mubr.bf16.gmra.mrb[68].mxu1 %v15014_v43 }
 0x1c3   :  { %2159 = vmatprep.mubr.bf16.mxu1 %v15019_v44 }
 0x1c5   :  { %12012 = vmatmul.mubr.msk.bf16.gmra.mrb[92].mxu0 %vm1309_vm0, %v14038_v31 }
 0x1c6   :  { %1938 = vmatprep.mubr.bf16.mxu0 %v21453_v61 }
 0x1ca   :  { %2160 = vmatmul.mubr.bf16.gmra.mrb[72].mxu1 %v15026_v45 }
 0x1cb   :  { %2169 = vmatprep.mubr.bf16.mxu1 %v15031_v46 }
 0x1cd   :  { %12013 = vmatmul.mubr.msk.bf16.gmra.mrb[96].mxu0 %vm1309_vm0, %v14039_v32 }
 0x1ce   :  { %2541 = vmatprep.mubr.bf16.mxu0 %v14516_v33  ;;  %v21457_v33 = vld [vmem:[#allocation5_spill] sm:$0xff] }
 0x1d2   :  { %2170 = vmatmul.mubr.bf16.gmra.mrb[76].mxu1 %v15038_v47 }
 0x1d3   :  { %2179 = vmatprep.mubr.bf16.mxu1 %v15043_v48 }
 0x1d5   :  { %2542 = vmatmul.mubr.bf16.vlgmr.msra.gmra.mrb[100].mxu0 %v14796_v4 }
 0x1d6   :  { %2791 = vmatpush1.bf16.msra.mxu0 %v11985_v28  ;;  %2551 = vmatprep.mubr.bf16.mxu0 %v14801_v6 }
 0x1d7   :  { %5525 = vmatprep.subr.bf16.mxu0 %v21453_v61 }
 0x1da   :  { %2180 = vmatmul.mubr.bf16.gmra.mrb[80].mxu1 %v15050_v49 }
 0x1db   :  { %2189 = vmatprep.mubr.bf16.mxu1 %v15055_v50 }
 0x1dd   :  { %2552 = vmatmul.mubr.bf16.gmra.mrb[104].mxu0 %v14808_v7 }
 0x1de   :  { %2561 = vmatprep.mubr.bf16.mxu0 %v14813_v8 }
 0x1e0   :  { %v1700_v34 = vpop.f32.mrb[0].mxu0 }
 0x1e1   :  { %v1702_v35 = vpop.f32.mrb[1].mxu0  ;;  %v4025_v36 = vmul.f32 0.1, %v1700_v34  ;;  %vm3633_vm1 = vcmp.ge.f32.partialorder %v1700_v34, 0.0 }
 0x1e2   :  { %v1704_v4 = vpop.f32.mrb[2].mxu0  ;;  %v4026_v37 = vmul.f32 0.1, %v1702_v35  ;;  %2190 = vmatmul.mubr.bf16.gmra.mrb[84].mxu1 %v15062_v51  ;;  %vm3634_vm2 = vcmp.ge.f32.partialorder %v1702_v35, 0.0 }
 0x1e3   :  { %v1706_v38 = vpop.f32.mrb[3].mxu0  ;;  %vm3641_vm3 = vcmp.ge.f32.partialorder %v1704_v4, 0.0  ;;  %v4033_v6 = vmul.f32 0.1, %v1704_v4  ;;  %2199 = vmatprep.mubr.bf16.mxu1 %v15067_v52  ;;  %v15515_v7 = vsel %vm3633_vm1, %v1700_v34, %v4025_v36  ;;  %v252_v34 = vld [vmem:[%s21082_s1 + $0x408] sm:$0xff] }
 0x1e4   :  { %vm3642_vm4 = vcmp.ge.f32.partialorder %v1706_v38, 0.0  ;;  %v4034_v39 = vmul.f32 0.1, %v1706_v38  ;;  %v15520_v40 = vsel %vm3634_vm2, %v1702_v35, %v4026_v37  ;;  %v256_v35 = vld [vmem:[%s21082_s1 + $0x428] sm:$0xff] }
 0x1e5   :  { %2562 = vmatmul.mubr.bf16.gmra.mrb[108].mxu0 %v14820_v9  ;;  %v15517_v8 = vsel %vm3641_vm3, %v1704_v4, %v4033_v6  ;;  %v11984_v4 = vcombine.high %v252_v34, %v256_v35  ;;  %v11983_v6 = vcombine.low %v252_v34, %v256_v35 }
 0x1e6   :  { %2571 = vmatprep.mubr.bf16.mxu0 %v14825_v10  ;;  %v15522_v41 = vsel %vm3642_vm4, %v1706_v38, %v4034_v39 }
 0x1e7   :  { %2228 = vmatprep.subr.bf16.mxu1 %v11984_v4 }
 0x1e8   :  { %v1710_v44 = vpop.f32.mrb[4].mxu0  ;;  %2229 = vmatpush1.bf16.msra.mxu1 %v11983_v6 }
 0x1e9   :  { %v1712_v45 = vpop.f32.mrb[5].mxu0  ;;  %v4041_v46 = vmul.f32 0.1, %v1710_v44  ;;  %vm3649_vm5 = vcmp.ge.f32.partialorder %v1710_v44, 0.0 }
 0x1ea   :  { %v1714_v9 = vpop.f32.mrb[6].mxu0  ;;  %v4042_v47 = vmul.f32 0.1, %v1712_v45  ;;  %2200 = vmatmul.mubr.bf16.gmra.mrb[88].mxu1 %v15074_v53  ;;  %vm3650_vm6 = vcmp.ge.f32.partialorder %v1712_v45, 0.0 }
 0x1eb   :  { %v1716_v48 = vpop.f32.mrb[7].mxu0  ;;  %vm3657_vm7 = vcmp.ge.f32.partialorder %v1714_v9, 0.0  ;;  %v4049_v10 = vmul.f32 0.1, %v1714_v9  ;;  %2209 = vmatprep.mubr.bf16.mxu1 %v15079_v54  ;;  %v15531_v50 = vsel %vm3649_vm5, %v1710_v44, %v4041_v46 }
 0x1ec   :  { %vm3658_vm8 = vcmp.ge.f32.partialorder %v1716_v48, 0.0  ;;  %v4050_v49 = vmul.f32 0.1, %v1716_v48  ;;  %v15536_v52 = vsel %vm3650_vm6, %v1712_v45, %v4042_v47 }
 0x1ed   :  { %2572 = vmatmul.mubr.bf16.gmra.mrb[112].mxu0 %v14832_v11  ;;  %v15533_v51 = vsel %vm3657_vm7, %v1714_v9, %v4049_v10 }
 0x1ee   :  { %2581 = vmatprep.mubr.bf16.mxu0 %v14837_v12  ;;  %v15538_v55 = vsel %vm3658_vm8, %v1716_v48, %v4050_v49  ;;  %v21458_v49 = vld [vmem:[#allocation6_spill] sm:$0xff] }
 0x1f0   :  { %v1720_v56 = vpop.f32.mrb[8].mxu0 }
 0x1f1   :  { %v1722_v2 = vpop.f32.mrb[9].mxu0  ;;  %v4057_v58 = vmul.f32 0.1, %v1720_v56  ;;  %vm3665_vm9 = vcmp.ge.f32.partialorder %v1720_v56, 0.0 }
 0x1f2   :  { %v1724_v11 = vpop.f32.mrb[10].mxu0  ;;  %v4058_v28 = vmul.f32 0.1, %v1722_v2  ;;  %2210 = vmatmul.mubr.bf16.gmra.mrb[92].mxu1 %v21455_v26  ;;  %vm3666_vm10 = vcmp.ge.f32.partialorder %v1722_v2, 0.0 }
 0x1f3   :  { %v1726_v63 = vpop.f32.mrb[11].mxu0  ;;  %vm3673_vm11 = vcmp.ge.f32.partialorder %v1724_v11, 0.0  ;;  %v4065_v12 = vmul.f32 0.1, %v1724_v11  ;;  %2219 = vmatprep.mubr.bf16.mxu1 %v21456_v25  ;;  %v15547_v0 = vsel %vm3665_vm9, %v1720_v56, %v4057_v58 }
 0x1f4   :  { %vm3674_vm12 = vcmp.ge.f32.partialorder %v1726_v63, 0.0  ;;  %v4066_v59 = vmul.f32 0.1, %v1726_v63  ;;  %v15552_v20 = vsel %vm3666_vm10, %v1722_v2, %v4058_v28 }
 0x1f5   :  { %2582 = vmatmul.mubr.bf16.gmra.mrb[116].mxu0 %v14844_v13  ;;  %v15549_v19 = vsel %vm3673_vm11, %v1724_v11, %v4065_v12 }
 0x1f6   :  { %2591 = vmatprep.mubr.bf16.mxu0 %v14849_v14  ;;  %v15554_v21 = vsel %vm3674_vm12, %v1726_v63, %v4066_v59 }
 0x1f8   :  { %v1730_v24 = vpop.f32.mrb[12].mxu0 }
 0x1f9   :  { %v1732_v29 = vpop.f32.mrb[13].mxu0  ;;  %v4073_v30 = vmul.f32 0.1, %v1730_v24  ;;  %vm3681_vm13 = vcmp.ge.f32.partialorder %v1730_v24, 0.0 }
 0x1fa   :  { %v1734_v13 = vpop.f32.mrb[14].mxu0  ;;  %v4074_v31 = vmul.f32 0.1, %v1732_v29  ;;  %2220 = vmatmul.mubr.bf16.gmra.mrb[96].mxu1 %v21457_v33  ;;  %vm3682_vm14 = vcmp.ge.f32.partialorder %v1732_v29, 0.0 }
 0x1fb   :  { %v1736_v32 = vpop.f32.mrb[15].mxu0  ;;  %vm3689_vm15 = vcmp.ge.f32.partialorder %v1734_v13, 0.0  ;;  %v4081_v14 = vmul.f32 0.1, %v1734_v13  ;;  %2260 = vmatprep.mubr.bf16.mxu1 %v21453_v61  ;;  %v15569_v37 = vsel %vm3681_vm13, %v1730_v24, %v4073_v30 }
 0x1fc   :  { %vm3690_vm1 = vcmp.ge.f32.partialorder %v1736_v32, 0.0  ;;  %v4082_v36 = vmul.f32 0.1, %v1736_v32  ;;  %v15574_v39 = vsel %vm3682_vm14, %v1732_v29, %v4074_v31 }
 0x1fd   :  { %2592 = vmatmul.mubr.bf16.gmra.mrb[120].mxu0 %v14856_v15  ;;  %v15571_v38 = vsel %vm3689_vm15, %v1734_v13, %v4081_v14 }
 0x1fe   :  { %2601 = vmatprep.mubr.bf16.mxu0 %v14861_v16  ;;  %v15576_v44 = vsel %vm3690_vm1, %v1736_v32, %v4082_v36  ;;  %v14517_v32 = vld [vmem:[%s21083_s0 + $0xa8] ss:$12 sps:$4 sm:$0xff]  }
 0x200   :  { %v1740_v15 = vpop.f32.mrb[16].mxu0 }
 0x201   :  { %v1742_v9 = vpop.f32.mrb[17].mxu0  ;;  %v4089_v47 = vmul.f32 0.1, %v1740_v15  ;;  %vm3697_vm2 = vcmp.ge.f32.partialorder %v1740_v15, 0.0 }
 0x202   :  { %v1744_v48 = vpop.f32.mrb[18].mxu0  ;;  %v4090_v10 = vmul.f32 0.1, %v1742_v9  ;;  %12014 = vmatmul.mubr.msk.bf16.vlgmr.msra.gmra.mrb[0].mxu1 %vm1309_vm0, %v21458_v49  ;;  %vm3698_vm3 = vcmp.ge.f32.partialorder %v1742_v9, 0.0  ;;  %v21459_v49 = vld [vmem:[#allocation7_spill] sm:$0xff] }
 0x203   :  { %v1746_v16 = vpop.f32.mrb[19].mxu0  ;;  %vm3705_vm4 = vcmp.ge.f32.partialorder %v1744_v48, 0.0  ;;  %v4097_v56 = vmul.f32 0.1, %v1744_v48  ;;  %2270 = vmatprep.mubr.bf16.mxu1 %v21453_v61  ;;  %v15586_v58 = vsel %vm3697_vm2, %v1740_v15, %v4089_v47 }
 0x204   :  { %vm3706_vm5 = vcmp.ge.f32.partialorder %v1746_v16, 0.0  ;;  %v4098_v2 = vmul.f32 0.1, %v1746_v16  ;;  %v15591_v28 = vsel %vm3698_vm3, %v1742_v9, %v4090_v10 }
 0x205   :  { %2602 = vmatmul.mubr.bf16.gmra.mrb[124].mxu0 %v14868_v17  ;;  %v15588_v11 = vsel %vm3705_vm4, %v1744_v48, %v4097_v56 }
 0x206   :  { %2611 = vmatprep.mubr.bf16.mxu0 %v14873_v18  ;;  %v15593_v63 = vsel %vm3706_vm5, %v1746_v16, %v4098_v2 }
 0x208   :  { %v1750_v59 = vpop.f32.mrb[20].mxu0 }
 0x209   :  { %v1752_v24 = vpop.f32.mrb[21].mxu0  ;;  %v4105_v29 = vmul.f32 0.1, %v1750_v59  ;;  %vm3713_vm6 = vcmp.ge.f32.partialorder %v1750_v59, 0.0 }
 0x20a   :  { %v1754_v17 = vpop.f32.mrb[22].mxu0  ;;  %v4106_v30 = vmul.f32 0.1, %v1752_v24  ;;  %12015 = vmatmul.mubr.msk.bf16.gmra.mrb[4].mxu1 %vm1309_vm0, %v15173_v27  ;;  %vm3714_vm7 = vcmp.ge.f32.partialorder %v1752_v24, 0.0  ;;  %v14518_v27 = vld [vmem:[%s21083_s0 + $0xc4] ss:$12 sps:$4 sm:$0xff]  }
 0x20b   :  { %v1756_v13 = vpop.f32.mrb[23].mxu0  ;;  %vm3721_vm8 = vcmp.ge.f32.partialorder %v1754_v17, 0.0  ;;  %v4113_v18 = vmul.f32 0.1, %v1754_v17  ;;  %2280 = vmatprep.mubr.bf16.mxu1 %v21453_v61  ;;  %v15605_v14 = vsel %vm3713_vm6, %v1750_v59, %v4105_v29  ;;  %v14519_v59 = vld [vmem:[%s21083_s0 + $0xc0] ss:$12 sps:$4 sm:$0xff]  }
 0x20c   :  { %vm3722_vm9 = vcmp.ge.f32.partialorder %v1756_v13, 0.0  ;;  %v4114_v31 = vmul.f32 0.1, %v1756_v13  ;;  %v15612_v35 = vsel %vm3714_vm7, %v1752_v24, %v4106_v30 }
 0x20d   :  { %2612 = vmatmul.mubr.bf16.gmra.mrb[128].mxu0 %v14517_v32  ;;  %v15607_v34 = vsel %vm3721_vm8, %v1754_v17, %v4113_v18  ;;  %v14520_v17 = vld [vmem:[%s21083_s0 + $0xdc] ss:$12 sps:$4 sm:$0xff]  }
 0x20e   :  { %2621 = vmatprep.mubr.bf16.mxu0 %v14518_v27  ;;  %v15614_v36 = vsel %vm3722_vm9, %v1756_v13, %v4114_v31 }
 0x210   :  { %v1760_v15 = vpop.f32.mrb[24].mxu0 }
 0x211   :  { %v1762_v9 = vpop.f32.mrb[25].mxu0  ;;  %v4121_v47 = vmul.f32 0.1, %v1760_v15  ;;  %vm3729_vm10 = vcmp.ge.f32.partialorder %v1760_v15, 0.0 }
 0x212   :  { %v1764_v48 = vpop.f32.mrb[26].mxu0  ;;  %v4122_v10 = vmul.f32 0.1, %v1762_v9  ;;  %12016 = vmatmul.mubr.msk.bf16.gmra.mrb[8].mxu1 %vm1309_vm0, %v21459_v49  ;;  %vm3730_vm11 = vcmp.ge.f32.partialorder %v1762_v9, 0.0 }
 0x213   :  { %v1766_v16 = vpop.f32.mrb[27].mxu0  ;;  %vm3737_vm12 = vcmp.ge.f32.partialorder %v1764_v48, 0.0  ;;  %v4129_v56 = vmul.f32 0.1, %v1764_v48  ;;  %2290 = vmatprep.mubr.bf16.mxu1 %v21453_v61  ;;  %v15626_v24 = vsel %vm3729_vm10, %v1760_v15, %v4121_v47 }
 0x214   :  { %vm3738_vm13 = vcmp.ge.f32.partialorder %v1766_v16, 0.0  ;;  %v4130_v2 = vmul.f32 0.1, %v1766_v16  ;;  %21460 = vst [vmem:[#allocation3_spill] sm:$0xff] %v15626_v24  ;;  %v15633_v30 = vsel %vm3730_vm11, %v1762_v9, %v4122_v10 }
 0x215   :  { %2622 = vmatmul.mubr.bf16.gmra.mrb[132].mxu0 %v14519_v59  ;;  %v15628_v29 = vsel %vm3737_vm12, %v1764_v48, %v4129_v56  ;;  %21462 = vst [vmem:[#allocation5_spill] sm:$0xff] %v15633_v30  ;;  %v21464_v56 = vld [vmem:[#allocation8_spill] sm:$0xff] }
 0x216   :  { %21461 = vst [vmem:[#allocation4_spill] sm:$0xff] %v15628_v29  ;;  %2631 = vmatprep.mubr.bf16.mxu0 %v14520_v17  ;;  %v15635_v13 = vsel %vm3738_vm13, %v1766_v16, %v4130_v2  ;;  %v14521_v16 = vld [vmem:[%s21083_s0 + $0xd8] ss:$12 sps:$4 sm:$0xff]   ;;  %v14522_v17 = vld [vmem:[%s21083_s0 + $0xf4] ss:$12 sps:$4 sm:$0xff]  }
 0x217   :  { %21463 = vst [vmem:[#allocation6_spill] sm:$0xff] %v15635_v13  ;;  %v14586_v29 = vld [vmem:[%s21083_s0 + $0x78] ss:$12 sps:$4 sm:$0xff]  }
 0x218   :  { %v1770_v32 = vpop.f32.mrb[28].mxu0 }
 0x219   :  { %v1772_v27 = vpop.f32.mrb[29].mxu0  ;;  %v4137_v15 = vmul.f32 0.1, %v1770_v32  ;;  %vm3745_vm14 = vcmp.ge.f32.partialorder %v1770_v32, 0.0 }
 0x21a   :  { %v1774_v47 = vpop.f32.mrb[30].mxu0  ;;  %v4138_v48 = vmul.f32 0.1, %v1772_v27  ;;  %12017 = vmatmul.mubr.msk.bf16.gmra.mrb[12].mxu1 %vm1309_vm0, %v21464_v56  ;;  %vm3746_vm15 = vcmp.ge.f32.partialorder %v1772_v27, 0.0 }
 0x21b   :  { %v1776_v49 = vpop.f32.mrb[31].mxu0  ;;  %vm3753_vm1 = vcmp.ge.f32.partialorder %v1774_v47, 0.0  ;;  %v4145_v9 = vmul.f32 0.1, %v1774_v47  ;;  %2300 = vmatprep.mubr.bf16.mxu1 %v21453_v61  ;;  %v15647_v2 = vsel %vm3745_vm14, %v1770_v32, %v4137_v15 }
 0x21c   :  { %vm3754_vm2 = vcmp.ge.f32.partialorder %v1776_v49, 0.0  ;;  %v4146_v10 = vmul.f32 0.1, %v1776_v49  ;;  %21465 = vst [vmem:[#allocation7_spill] sm:$0xff] %v15647_v2  ;;  %v15654_v56 = vsel %vm3746_vm15, %v1772_v27, %v4138_v48  ;;  %v14523_v27 = vld [vmem:[%s21083_s0 + $0xf0] ss:$12 sps:$4 sm:$0xff]  }
 0x21d   :  { %2632 = vmatmul.mubr.bf16.gmra.mrb[136].mxu0 %v14521_v16  ;;  %v15649_v59 = vsel %vm3753_vm1, %v1774_v47, %v4145_v9  ;;  %21467 = vst [vmem:[#allocation10_spill] sm:$0xff] %v15654_v56  ;;  %v21469_v9 = vld [vmem:[#allocation9_spill] sm:$0xff]  ;;  %v14524_v48 = vld [vmem:[%s21083_s0 + $0x10c] ss:$12 sps:$4 sm:$0xff]  }
 0x21e   :  { %21466 = vst [vmem:[#allocation8_spill] sm:$0xff] %v15649_v59  ;;  %2641 = vmatprep.mubr.bf16.mxu0 %v14522_v17  ;;  %v15656_v18 = vsel %vm3754_vm2, %v1776_v49, %v4146_v10  ;;  %v14585_v59 = vld [vmem:[%s21083_s0 + $0xf8] ss:$12 sps:$4 sm:$0xff]  }
 0x21f   :  { %21468 = vst [vmem:[#allocation11_spill] sm:$0xff] %v15656_v18 }
 0x220   :  { %v1780_v16 = vpop.f32.mrb[32].mxu0 }
 0x221   :  { %v1782_v32 = vpop.f32.mrb[33].mxu0  ;;  %vm3761_vm4 = vcmp.ge.f32.partialorder %v1780_v16, 0.0  ;;  %v4153_v26 = vmul.f32 0.1, %v1780_v16 }
 0x222   :  { %v1784_v15 = vpop.f32.mrb[34].mxu0  ;;  %12018 = vmatmul.mubr.msk.bf16.gmra.mrb[16].mxu1 %vm1309_vm0, %v21469_v9  ;;  %vm3762_vm3 = vcmp.ge.f32.partialorder %v1782_v32, 0.0  ;;  %v4154_v4 = vmul.f32 0.1, %v1782_v32 }
 0x223   :  { %v1786_v47 = vpop.f32.mrb[35].mxu0  ;;  %2310 = vmatprep.mubr.bf16.mxu1 %v21453_v61  ;;  %vm3769_vm5 = vcmp.ge.f32.partialorder %v1784_v15, 0.0  ;;  %v4161_v46 = vmul.f32 0.1, %v1784_v15 }
 0x224   :  { %vm3770_vm6 = vcmp.ge.f32.partialorder %v1786_v47, 0.0  ;;  %v15681_v45 = vsel %vm3762_vm3, %v1782_v32, %v4154_v4 }
 0x225   :  { %2642 = vmatmul.mubr.bf16.gmra.mrb[140].mxu0 %v14523_v27  ;;  %v14525_v27 = vld [vmem:[%s21083_s0 + $0x108] ss:$12 sps:$4 sm:$0xff]   ;;  %21470 = vst [vmem:[#allocation9_spill] sm:$0xff] %v15681_v45  ;;  %v15695_v32 = vsel %vm3769_vm5, %v1784_v15, %v4161_v46 }
 0x226   :  { %2651 = vmatprep.mubr.bf16.mxu0 %v14524_v48  ;;  %v14526_v48 = vld [vmem:[%s21083_s0 + $0x124] ss:$12 sps:$4 sm:$0xff]   ;;  %21473 = vst [vmem:[#allocation14_spill] sm:$0xff] %v15695_v32  ;;  %v14528_v46 = vld [vmem:[%s21083_s0 + $0x13c] ss:$12 sps:$4 sm:$0xff]  }
 0x227   :  { %v226_v32 = vld [vmem:[%s21082_s1 + $0x338] sm:$0xff] }
 0x228   :  { %v1790_v49 = vpop.f32.mrb[36].mxu0 }
 0x229   :  { %v1792_v10 = vpop.f32.mrb[37].mxu0  ;;  %vm3777_vm8 = vcmp.ge.f32.partialorder %v1790_v49, 0.0  ;;  %v4169_v54 = vmul.f32 0.1, %v1790_v49 }
 0x22a   :  { %v1794_v17 = vpop.f32.mrb[38].mxu0  ;;  %12019 = vmatmul.mubr.msk.bf16.gmra.mrb[20].mxu1 %vm1309_vm0, %v15301_v60  ;;  %vm3778_vm7 = vcmp.ge.f32.partialorder %v1792_v10, 0.0  ;;  %v4162_v60 = vmul.f32 0.1, %v1786_v47  ;;  %v4170_v23 = vmul.f32 0.1, %v1792_v10 }
 0x22b   :  { %v1796_v9 = vpop.f32.mrb[39].mxu0  ;;  %2320 = vmatprep.mubr.bf16.mxu1 %v21453_v61  ;;  %vm3785_vm9 = vcmp.ge.f32.partialorder %v1794_v17, 0.0 }
 0x22c   :  { %vm3786_vm10 = vcmp.ge.f32.partialorder %v1796_v9, 0.0  ;;  %v4178_v53 = vmul.f32 0.1, %v1796_v9 }
 0x22d   :  { %2652 = vmatmul.mubr.bf16.gmra.mrb[144].mxu0 %v14525_v27  ;;  %v15686_v27 = vsel %vm3770_vm6, %v1786_v47, %v4162_v60  ;;  %v4177_v47 = vmul.f32 0.1, %v1794_v17  ;;  %v15712_v60 = vsel %vm3777_vm8, %v1790_v49, %v4169_v54 }
 0x22e   :  { %2661 = vmatprep.mubr.bf16.mxu0 %v14526_v48  ;;  %21471 = vst [vmem:[#allocation12_spill] sm:$0xff] %v15686_v27  ;;  %v15689_v48 = vsel %vm3761_vm4, %v1780_v16, %v4153_v26  ;;  %v15703_v16 = vsel %vm3778_vm7, %v1792_v10, %v4170_v23  ;;  %v15709_v15 = vsel %vm3786_vm10, %v1796_v9, %v4178_v53  ;;  %21476 = vst [vmem:[#allocation17_spill] sm:$0xff] %v15712_v60 }
 0x22f   :  { %21472 = vst [vmem:[#allocation13_spill] sm:$0xff] %v15689_v48  ;;  %21474 = vst [vmem:[#allocation15_spill] sm:$0xff] %v15703_v16  ;;  %v15717_v23 = vsel %vm3785_vm9, %v1794_v17, %v4177_v47 }
 0x230   :  { %v1800_v31 = vpop.f32.mrb[40].mxu0  ;;  %21475 = vst [vmem:[#allocation16_spill] sm:$0xff] %v15709_v15  ;;  %21477 = vst [vmem:[#allocation18_spill] sm:$0xff] %v15717_v23 }
 0x231   :  { %v1802_v6 = vpop.f32.mrb[41].mxu0  ;;  %vm3793_vm11 = vcmp.ge.f32.partialorder %v1800_v31, 0.0  ;;  %v4185_v10 = vmul.f32 0.1, %v1800_v31 }
 0x232   :  { %v1804_v12 = vpop.f32.mrb[42].mxu0  ;;  %vm3794_vm12 = vcmp.ge.f32.partialorder %v1802_v6, 0.0  ;;  %12020 = vmatmul.mubr.msk.bf16.gmra.mrb[24].mxu1 %vm1309_vm0, %v15327_v5  ;;  %v14527_v5 = vld [vmem:[%s21083_s0 + $0x120] ss:$12 sps:$4 sm:$0xff]  }
 0x233   :  { %v1806_v22 = vpop.f32.mrb[43].mxu0  ;;  %vm3801_vm13 = vcmp.ge.f32.partialorder %v1804_v12, 0.0  ;;  %2330 = vmatprep.mubr.bf16.mxu1 %v21453_v61  ;;  %v4193_v42 = vmul.f32 0.1, %v1804_v12  ;;  %v15729_v26 = vsel %vm3793_vm11, %v1800_v31, %v4185_v10 }
 0x234   :  { %vm3802_vm14 = vcmp.ge.f32.partialorder %v1806_v22, 0.0  ;;  %v4194_v4 = vmul.f32 0.1, %v1806_v22  ;;  %21480 = vst [vmem:[#allocation21_spill] sm:$0xff] %v15729_v26 }
 0x235   :  { %2662 = vmatmul.mubr.bf16.gmra.mrb[148].mxu0 %v14527_v5  ;;  %v4186_v5 = vmul.f32 0.1, %v1802_v6  ;;  %v15732_v17 = vsel %vm3801_vm13, %v1804_v12, %v4193_v42  ;;  %v14529_v42 = vld [vmem:[%s21083_s0 + $0x138] ss:$12 sps:$4 sm:$0xff]  }
 0x236   :  { %2671 = vmatprep.mubr.bf16.mxu0 %v14528_v46  ;;  %v15724_v9 = vsel %vm3802_vm14, %v1806_v22, %v4194_v4  ;;  %21481 = vst [vmem:[#allocation22_spill] sm:$0xff] %v15732_v17  ;;  %v14554_v17 = vld [vmem:[%s21083_s0 + $0x22c] ss:$12 sps:$4 sm:$0xff]  }
 0x237   :  { %v15722_v53 = vsel %vm3794_vm12, %v1802_v6, %v4186_v5  ;;  %21479 = vst [vmem:[#allocation20_spill] sm:$0xff] %v15724_v9  ;;  %v14530_v5 = vld [vmem:[%s21083_s0 + $0x154] ss:$12 sps:$4 sm:$0xff]  }
 0x238   :  { %v1810_v43 = vpop.f32.mrb[44].mxu0  ;;  %21478 = vst [vmem:[#allocation19_spill] sm:$0xff] %v15722_v53 }
 0x239   :  { %v4201_v54 = vmul.f32 0.1, %v1810_v43  ;;  %v1812_v49 = vpop.f32.mrb[45].mxu0  ;;  %vm3809_vm1 = vcmp.ge.f32.partialorder %v1810_v43, 0.0 }
 0x23a   :  { %v4202_v47 = vmul.f32 0.1, %v1812_v49  ;;  %v1814_v16 = vpop.f32.mrb[46].mxu0  ;;  %vm3810_vm15 = vcmp.ge.f32.partialorder %v1812_v49, 0.0  ;;  %12021 = vmatmul.mubr.msk.bf16.gmra.mrb[28].mxu1 %vm1309_vm0, %v15343_v1 }
 0x23b   :  { %v4209_v22 = vmul.f32 0.1, %v1814_v16  ;;  %v1816_v6 = vpop.f32.mrb[47].mxu0  ;;  %vm3817_vm2 = vcmp.ge.f32.partialorder %v1814_v16, 0.0  ;;  %2340 = vmatprep.mubr.bf16.mxu1 %v21453_v61  ;;  %v15742_v12 = vsel %vm3809_vm1, %v1810_v43, %v4201_v54 }
 0x23c   :  { %v4210_v4 = vmul.f32 0.1, %v1816_v6  ;;  %vm3818_vm3 = vcmp.ge.f32.partialorder %v1816_v6, 0.0  ;;  %21482 = vst [vmem:[#allocation23_spill] sm:$0xff] %v15742_v12  ;;  %v15749_v1 = vsel %vm3810_vm15, %v1812_v49, %v4202_v47 }
 0x23d   :  { %2672 = vmatmul.mubr.bf16.gmra.mrb[152].mxu0 %v14529_v42  ;;  %v15744_v31 = vsel %vm3817_vm2, %v1814_v16, %v4209_v22  ;;  %21484 = vst [vmem:[#allocation25_spill] sm:$0xff] %v15749_v1  ;;  %v14548_v1 = vld [vmem:[%s21083_s0 + $0x1fc] ss:$12 sps:$4 sm:$0xff]  }
 0x23e   :  { %21483 = vst [vmem:[#allocation24_spill] sm:$0xff] %v15744_v31  ;;  %2681 = vmatprep.mubr.bf16.mxu0 %v14530_v5  ;;  %v15751_v10 = vsel %vm3818_vm3, %v1816_v6, %v4210_v4  ;;  %v14531_v4 = vld [vmem:[%s21083_s0 + $0x150] ss:$12 sps:$4 sm:$0xff]  }
 0x23f   :  { %21485 = vst [vmem:[#allocation26_spill] sm:$0xff] %v15751_v10  ;;  %v14545_v31 = vld [vmem:[%s21083_s0 + $0x1e4] ss:$12 sps:$4 sm:$0xff]   ;;  %v14551_v10 = vld [vmem:[%s21083_s0 + $0x214] ss:$12 sps:$4 sm:$0xff]  }
 0x240   :  { %v1820_v42 = vpop.f32.mrb[48].mxu0 }
 0x241   :  { %vm3825_vm4 = vcmp.ge.f32.partialorder %v1820_v42, 0.0  ;;  %v4217_v43 = vmul.f32 0.1, %v1820_v42  ;;  %v1822_v16 = vpop.f32.mrb[49].mxu0 }
 0x242   :  { %vm3826_vm5 = vcmp.ge.f32.partialorder %v1822_v16, 0.0  ;;  %v4218_v54 = vmul.f32 0.1, %v1822_v16  ;;  %v1824_v22 = vpop.f32.mrb[50].mxu0  ;;  %12022 = vmatmul.mubr.msk.bf16.gmra.mrb[32].mxu1 %vm1309_vm0, %v15359_v57  ;;  %v14532_v57 = vld [vmem:[%s21083_s0 + $0x16c] ss:$12 sps:$4 sm:$0xff]  }
 0x243   :  { %vm3833_vm6 = vcmp.ge.f32.partialorder %v1824_v22, 0.0  ;;  %v4225_v26 = vmul.f32 0.1, %v1824_v22  ;;  %v1826_v5 = vpop.f32.mrb[51].mxu0  ;;  %2350 = vmatprep.mubr.bf16.mxu1 %v21453_v61  ;;  %v15760_v47 = vsel %vm3825_vm4, %v1820_v42, %v4217_v43 }
 0x244   :  { %vm3834_vm7 = vcmp.ge.f32.partialorder %v1826_v5, 0.0  ;;  %v4226_v49 = vmul.f32 0.1, %v1826_v5  ;;  %21486 = vst [vmem:[#allocation27_spill] sm:$0xff] %v15760_v47  ;;  %v15767_v46 = vsel %vm3826_vm5, %v1822_v16, %v4218_v54 }
 0x245   :  { %v15762_v6 = vsel %vm3833_vm6, %v1824_v22, %v4225_v26  ;;  %2682 = vmatmul.mubr.bf16.gmra.mrb[156].mxu0 %v14531_v4  ;;  %21488 = vst [vmem:[#allocation29_spill] sm:$0xff] %v15767_v46  ;;  %v14533_v26 = vld [vmem:[%s21083_s0 + $0x168] ss:$12 sps:$4 sm:$0xff]  }
 0x246   :  { %21487 = vst [vmem:[#allocation28_spill] sm:$0xff] %v15762_v6  ;;  %v15769_v48 = vsel %vm3834_vm7, %v1826_v5, %v4226_v49  ;;  %2691 = vmatprep.mubr.bf16.mxu0 %v14532_v57 }
 0x247   :  { %21489 = vst [vmem:[#allocation30_spill] sm:$0xff] %v15769_v48  ;;  %v14542_v48 = vld [vmem:[%s21083_s0 + $0x1cc] ss:$12 sps:$4 sm:$0xff]  }
 0x248   :  { %v1830_v43 = vpop.f32.mrb[52].mxu0 }
 0x249   :  { %vm3841_vm8 = vcmp.ge.f32.partialorder %v1830_v43, 0.0  ;;  %v4233_v22 = vmul.f32 0.1, %v1830_v43  ;;  %v1832_v12 = vpop.f32.mrb[53].mxu0 }
 0x24a   :  { %vm3842_vm9 = vcmp.ge.f32.partialorder %v1832_v12, 0.0  ;;  %v4234_v16 = vmul.f32 0.1, %v1832_v12  ;;  %v1834_v54 = vpop.f32.mrb[54].mxu0  ;;  %12023 = vmatmul.mubr.msk.bf16.gmra.mrb[36].mxu1 %vm1309_vm0, %v15369_v62  ;;  %v14534_v62 = vld [vmem:[%s21083_s0 + $0x184] ss:$12 sps:$4 sm:$0xff]  }
 0x24b   :  { %vm3849_vm10 = vcmp.ge.f32.partialorder %v1834_v54, 0.0  ;;  %v4241_v5 = vmul.f32 0.1, %v1834_v54  ;;  %v1836_v49 = vpop.f32.mrb[55].mxu0  ;;  %2360 = vmatprep.mubr.bf16.mxu1 %v21453_v61  ;;  %v15781_v57 = vsel %vm3841_vm8, %v1830_v43, %v4233_v22  ;;  %v14535_v22 = vld [vmem:[%s21083_s0 + $0x180] ss:$12 sps:$4 sm:$0xff]  }
 0x24c   :  { %vm3850_vm11 = vcmp.ge.f32.partialorder %v1836_v49, 0.0  ;;  %v4242_v4 = vmul.f32 0.1, %v1836_v49  ;;  %21490 = vst [vmem:[#allocation31_spill] sm:$0xff] %v15781_v57  ;;  %v15788_v47 = vsel %vm3842_vm9, %v1832_v12, %v4234_v16 }
 0x24d   :  { %v15783_v42 = vsel %vm3849_vm10, %v1834_v54, %v4241_v5  ;;  %2692 = vmatmul.mubr.bf16.gmra.mrb[160].mxu0 %v14533_v26  ;;  %21492 = vst [vmem:[#allocation33_spill] sm:$0xff] %v15788_v47 }
 0x24e   :  { %21491 = vst [vmem:[#allocation32_spill] sm:$0xff] %v15783_v42  ;;  %v15790_v6 = vsel %vm3850_vm11, %v1836_v49, %v4242_v4  ;;  %2701 = vmatprep.mubr.bf16.mxu0 %v14534_v62 }
 0x24f   :  { %21493 = vst [vmem:[#allocation34_spill] sm:$0xff] %v15790_v6  ;;  %v14539_v6 = vld [vmem:[%s21083_s0 + $0x1b4] ss:$12 sps:$4 sm:$0xff]  }
 0x250   :  { %v1840_v54 = vpop.f32.mrb[56].mxu0 }
 0x251   :  { %vm3857_vm12 = vcmp.ge.f32.partialorder %v1840_v54, 0.0  ;;  %v4249_v5 = vmul.f32 0.1, %v1840_v54  ;;  %v1842_v46 = vpop.f32.mrb[57].mxu0 }
 0x252   :  { %vm3858_vm13 = vcmp.ge.f32.partialorder %v1842_v46, 0.0  ;;  %v4250_v12 = vmul.f32 0.1, %v1842_v46  ;;  %v1844_v26 = vpop.f32.mrb[58].mxu0  ;;  %12024 = vmatmul.mubr.msk.bf16.gmra.mrb[40].mxu1 %vm1309_vm0, %v15393_v3  ;;  %v14536_v3 = vld [vmem:[%s21083_s0 + $0x19c] ss:$12 sps:$4 sm:$0xff]  }
 0x253   :  { %vm3865_vm14 = vcmp.ge.f32.partialorder %v1844_v26, 0.0  ;;  %v4257_v16 = vmul.f32 0.1, %v1844_v26  ;;  %v1846_v49 = vpop.f32.mrb[59].mxu0  ;;  %2370 = vmatprep.mubr.bf16.mxu1 %v21453_v61  ;;  %v15802_v62 = vsel %vm3857_vm12, %v1840_v54, %v4249_v5 }
 0x254   :  { %vm3866_vm15 = vcmp.ge.f32.partialorder %v1846_v49, 0.0  ;;  %v4258_v4 = vmul.f32 0.1, %v1846_v49  ;;  %21494 = vst [vmem:[#allocation35_spill] sm:$0xff] %v15802_v62  ;;  %v15809_v57 = vsel %vm3858_vm13, %v1842_v46, %v4250_v12  ;;  %v14538_v62 = vld [vmem:[%s21083_s0 + $0x198] ss:$12 sps:$4 sm:$0xff]  }
 0x255   :  { %v15804_v43 = vsel %vm3865_vm14, %v1844_v26, %v4257_v16  ;;  %2702 = vmatmul.mubr.bf16.gmra.mrb[164].mxu0 %v14535_v22  ;;  %21496 = vst [vmem:[#allocation37_spill] sm:$0xff] %v15809_v57 }
 0x256   :  { %21495 = vst [vmem:[#allocation36_spill] sm:$0xff] %v15804_v43  ;;  %v15813_v47 = vsel %vm3866_vm15, %v1846_v49, %v4258_v4  ;;  %2711 = vmatprep.mubr.bf16.mxu0 %v14536_v3  ;;  %v15823_v49 = vld [vmem:[%s21083_s0 + $0x110] ss:$12 sps:$4 sm:$0xff]  }
 0x257   :  { %21497 = vst [vmem:[#allocation38_spill] sm:$0xff] %v15813_v47 }
 0x258   :  { %v1850_v5 = vpop.f32.mrb[60].mxu0 }
 0x259   :  { %vm3873_vm1 = vcmp.ge.f32.partialorder %v1850_v5, 0.0  ;;  %v4265_v26 = vmul.f32 0.1, %v1850_v5  ;;  %v1852_v16 = vpop.f32.mrb[61].mxu0 }
 0x25a   :  { %vm3874_vm2 = vcmp.ge.f32.partialorder %v1852_v16, 0.0  ;;  %v4266_v46 = vmul.f32 0.1, %v1852_v16  ;;  %v1854_v22 = vpop.f32.mrb[62].mxu0  ;;  %12025 = vmatmul.mubr.msk.bf16.gmra.mrb[44].mxu1 %vm1309_vm0, %v15823_v49 }
 0x25b   :  { %vm3881_vm3 = vcmp.ge.f32.partialorder %v1854_v22, 0.0  ;;  %v4273_v12 = vmul.f32 0.1, %v1854_v22  ;;  %v1856_v42 = vpop.f32.mrb[63].mxu0  ;;  %2380 = vmatprep.mubr.bf16.mxu1 %v21453_v61  ;;  %v15828_v3 = vsel %vm3873_vm1, %v1850_v5, %v4265_v26 }
 0x25c   :  { %vm3882_vm4 = vcmp.ge.f32.partialorder %v1856_v42, 0.0  ;;  %v4274_v4 = vmul.f32 0.1, %v1856_v42  ;;  %21498 = vst [vmem:[#allocation39_spill] sm:$0xff] %v15828_v3  ;;  %v15835_v43 = vsel %vm3874_vm2, %v1852_v16, %v4266_v46  ;;  %v14541_v3 = vld [vmem:[%s21083_s0 + $0x1b0] ss:$12 sps:$4 sm:$0xff]  }
 0x25d   :  { %v15830_v54 = vsel %vm3881_vm3, %v1854_v22, %v4273_v12  ;;  %2712 = vmatmul.mubr.bf16.gmra.mrb[168].mxu0 %v14538_v62  ;;  %21500 = vst [vmem:[#allocation41_spill] sm:$0xff] %v15835_v43 }
 0x25e   :  { %21499 = vst [vmem:[#allocation40_spill] sm:$0xff] %v15830_v54  ;;  %v15839_v47 = vsel %vm3882_vm4, %v1856_v42, %v4274_v4  ;;  %2721 = vmatprep.mubr.bf16.mxu0 %v14539_v6  ;;  %v15849_v42 = vld [vmem:[%s21083_s0 + $0x128] ss:$12 sps:$4 sm:$0xff]  }
 0x25f   :  { %21501 = vst [vmem:[#allocation42_spill] sm:$0xff] %v15839_v47 }
 0x260   :  { %v1860_v26 = vpop.f32.mrb[64].mxu0 }
 0x261   :  { %vm3889_vm5 = vcmp.ge.f32.partialorder %v1860_v26, 0.0  ;;  %v4281_v22 = vmul.f32 0.1, %v1860_v26  ;;  %v1862_v12 = vpop.f32.mrb[65].mxu0 }
 0x262   :  { %vm3890_vm6 = vcmp.ge.f32.partialorder %v1862_v12, 0.0  ;;  %v4282_v62 = vmul.f32 0.1, %v1862_v12  ;;  %v1864_v16 = vpop.f32.mrb[66].mxu0  ;;  %12026 = vmatmul.mubr.msk.bf16.gmra.mrb[48].mxu1 %vm1309_vm0, %v15849_v42 }
 0x263   :  { %vm3897_vm7 = vcmp.ge.f32.partialorder %v1864_v16, 0.0  ;;  %v4289_v46 = vmul.f32 0.1, %v1864_v16  ;;  %v1866_v57 = vpop.f32.mrb[67].mxu0  ;;  %2390 = vmatprep.mubr.bf16.mxu1 %v21453_v61  ;;  %v15854_v4 = vsel %vm3889_vm5, %v1860_v26, %v4281_v22 }
 0x264   :  { %vm3898_vm8 = vcmp.ge.f32.partialorder %v1866_v57, 0.0  ;;  %v4290_v6 = vmul.f32 0.1, %v1866_v57  ;;  %21502 = vst [vmem:[#allocation43_spill] sm:$0xff] %v15854_v4  ;;  %v15861_v54 = vsel %vm3890_vm6, %v1862_v12, %v4282_v62  ;;  %v14544_v4 = vld [vmem:[%s21083_s0 + $0x1c8] ss:$12 sps:$4 sm:$0xff]  }
 0x265   :  { %v15856_v5 = vsel %vm3897_vm7, %v1864_v16, %v4289_v46  ;;  %2722 = vmatmul.mubr.bf16.gmra.mrb[172].mxu0 %v14541_v3  ;;  %21504 = vst [vmem:[#allocation45_spill] sm:$0xff] %v15861_v54 }
 0x266   :  { %21503 = vst [vmem:[#allocation44_spill] sm:$0xff] %v15856_v5  ;;  %v15865_v47 = vsel %vm3898_vm8, %v1866_v57, %v4290_v6  ;;  %2731 = vmatprep.mubr.bf16.mxu0 %v14542_v48  ;;  %v15875_v57 = vld [vmem:[%s21083_s0 + $0x140] ss:$12 sps:$4 sm:$0xff]  }
 0x267   :  { %21505 = vst [vmem:[#allocation46_spill] sm:$0xff] %v15865_v47 }
 0x268   :  { %v1870_v22 = vpop.f32.mrb[68].mxu0 }
 0x269   :  { %v4297_v16 = vmul.f32 0.1, %v1870_v22  ;;  %v1872_v46 = vpop.f32.mrb[69].mxu0  ;;  %vm3905_vm9 = vcmp.ge.f32.partialorder %v1870_v22, 0.0 }
 0x26a   :  { %v4298_v3 = vmul.f32 0.1, %v1872_v46  ;;  %v1874_v12 = vpop.f32.mrb[70].mxu0  ;;  %vm3906_vm10 = vcmp.ge.f32.partialorder %v1872_v46, 0.0  ;;  %12027 = vmatmul.mubr.msk.bf16.gmra.mrb[52].mxu1 %vm1309_vm0, %v15875_v57 }
 0x26b   :  { %vm3913_vm11 = vcmp.ge.f32.partialorder %v1874_v12, 0.0  ;;  %v4305_v62 = vmul.f32 0.1, %v1874_v12  ;;  %v1876_v43 = vpop.f32.mrb[71].mxu0  ;;  %2400 = vmatprep.mubr.bf16.mxu1 %v21453_v61  ;;  %v15880_v6 = vsel %vm3905_vm9, %v1870_v22, %v4297_v16 }
 0x26c   :  { %vm3914_vm12 = vcmp.ge.f32.partialorder %v1876_v43, 0.0  ;;  %v4306_v48 = vmul.f32 0.1, %v1876_v43  ;;  %21506 = vst [vmem:[#allocation47_spill] sm:$0xff] %v15880_v6  ;;  %v15887_v5 = vsel %vm3906_vm10, %v1872_v46, %v4298_v3  ;;  %v14547_v6 = vld [vmem:[%s21083_s0 + $0x1e0] ss:$12 sps:$4 sm:$0xff]  }
 0x26d   :  { %v15882_v26 = vsel %vm3913_vm11, %v1874_v12, %v4305_v62  ;;  %2732 = vmatmul.mubr.bf16.gmra.mrb[176].mxu0 %v14544_v4  ;;  %21508 = vst [vmem:[#allocation49_spill] sm:$0xff] %v15887_v5 }
 0x26e   :  { %21507 = vst [vmem:[#allocation48_spill] sm:$0xff] %v15882_v26  ;;  %v15891_v47 = vsel %vm3914_vm12, %v1876_v43, %v4306_v48  ;;  %2741 = vmatprep.mubr.bf16.mxu0 %v14545_v31  ;;  %v15901_v43 = vld [vmem:[%s21083_s0 + $0x158] ss:$12 sps:$4 sm:$0xff]  }
 0x26f   :  { %21509 = vst [vmem:[#allocation50_spill] sm:$0xff] %v15891_v47 }
 0x270   :  { %v1880_v16 = vpop.f32.mrb[72].mxu0 }
 0x271   :  { %v4313_v12 = vmul.f32 0.1, %v1880_v16  ;;  %v1882_v62 = vpop.f32.mrb[73].mxu0  ;;  %vm3921_vm13 = vcmp.ge.f32.partialorder %v1880_v16, 0.0 }
 0x272   :  { %v4314_v4 = vmul.f32 0.1, %v1882_v62  ;;  %v1884_v46 = vpop.f32.mrb[74].mxu0  ;;  %vm3922_vm14 = vcmp.ge.f32.partialorder %v1882_v62, 0.0  ;;  %12028 = vmatmul.mubr.msk.bf16.gmra.mrb[56].mxu1 %vm1309_vm0, %v15901_v43 }
 0x273   :  { %vm3929_vm15 = vcmp.ge.f32.partialorder %v1884_v46, 0.0  ;;  %v4321_v3 = vmul.f32 0.1, %v1884_v46  ;;  %v1886_v54 = vpop.f32.mrb[75].mxu0  ;;  %2410 = vmatprep.mubr.bf16.mxu1 %v21453_v61  ;;  %v15906_v48 = vsel %vm3921_vm13, %v1880_v16, %v4313_v12 }
 0x274   :  { %vm3930_vm1 = vcmp.ge.f32.partialorder %v1886_v54, 0.0  ;;  %v4322_v31 = vmul.f32 0.1, %v1886_v54  ;;  %21510 = vst [vmem:[#allocation51_spill] sm:$0xff] %v15906_v48  ;;  %v15913_v26 = vsel %vm3922_vm14, %v1882_v62, %v4314_v4  ;;  %v14550_v48 = vld [vmem:[%s21083_s0 + $0x1f8] ss:$12 sps:$4 sm:$0xff]  }
 0x275   :  { %v15908_v22 = vsel %vm3929_vm15, %v1884_v46, %v4321_v3  ;;  %2742 = vmatmul.mubr.bf16.gmra.mrb[180].mxu0 %v14547_v6  ;;  %21512 = vst [vmem:[#allocation53_spill] sm:$0xff] %v15913_v26 }
 0x276   :  { %21511 = vst [vmem:[#allocation52_spill] sm:$0xff] %v15908_v22  ;;  %v15917_v47 = vsel %vm3930_vm1, %v1886_v54, %v4322_v31  ;;  %2751 = vmatprep.mubr.bf16.mxu0 %v14548_v1  ;;  %v15927_v54 = vld [vmem:[%s21083_s0 + $0x170] ss:$12 sps:$4 sm:$0xff]  }
 0x277   :  { %21513 = vst [vmem:[#allocation54_spill] sm:$0xff] %v15917_v47 }
 0x278   :  { %v1890_v12 = vpop.f32.mrb[76].mxu0 }
 0x279   :  { %v4329_v46 = vmul.f32 0.1, %v1890_v12  ;;  %v1892_v3 = vpop.f32.mrb[77].mxu0  ;;  %vm3937_vm2 = vcmp.ge.f32.partialorder %v1890_v12, 0.0 }
 0x27a   :  { %v4330_v6 = vmul.f32 0.1, %v1892_v3  ;;  %v1894_v62 = vpop.f32.mrb[78].mxu0  ;;  %vm3938_vm3 = vcmp.ge.f32.partialorder %v1892_v3, 0.0  ;;  %12029 = vmatmul.mubr.msk.bf16.gmra.mrb[60].mxu1 %vm1309_vm0, %v15927_v54 }
 0x27b   :  { %vm3945_vm4 = vcmp.ge.f32.partialorder %v1894_v62, 0.0  ;;  %v4337_v4 = vmul.f32 0.1, %v1894_v62  ;;  %v1896_v5 = vpop.f32.mrb[79].mxu0  ;;  %2420 = vmatprep.mubr.bf16.mxu1 %v21453_v61  ;;  %v15932_v31 = vsel %vm3937_vm2, %v1890_v12, %v4329_v46 }
 0x27c   :  { %vm3946_vm5 = vcmp.ge.f32.partialorder %v1896_v5, 0.0  ;;  %v4338_v1 = vmul.f32 0.1, %v1896_v5  ;;  %21514 = vst [vmem:[#allocation55_spill] sm:$0xff] %v15932_v31  ;;  %v15939_v22 = vsel %vm3938_vm3, %v1892_v3, %v4330_v6  ;;  %v14553_v31 = vld [vmem:[%s21083_s0 + $0x210] ss:$12 sps:$4 sm:$0xff]  }
 0x27d   :  { %v15934_v16 = vsel %vm3945_vm4, %v1894_v62, %v4337_v4  ;;  %2752 = vmatmul.mubr.bf16.gmra.mrb[184].mxu0 %v14550_v48  ;;  %21516 = vst [vmem:[#allocation57_spill] sm:$0xff] %v15939_v22 }
 0x27e   :  { %21515 = vst [vmem:[#allocation56_spill] sm:$0xff] %v15934_v16  ;;  %v15943_v47 = vsel %vm3946_vm5, %v1896_v5, %v4338_v1  ;;  %2761 = vmatprep.mubr.bf16.mxu0 %v14551_v10  ;;  %v15953_v5 = vld [vmem:[%s21083_s0 + $0x188] ss:$12 sps:$4 sm:$0xff]  }
 0x27f   :  { %21517 = vst [vmem:[#allocation58_spill] sm:$0xff] %v15943_v47 }
 0x280   :  { %v1900_v46 = vpop.f32.mrb[80].mxu0 }
 0x281   :  { %v4345_v62 = vmul.f32 0.1, %v1900_v46  ;;  %v1902_v4 = vpop.f32.mrb[81].mxu0  ;;  %vm3953_vm6 = vcmp.ge.f32.partialorder %v1900_v46, 0.0 }
 0x282   :  { %v4346_v48 = vmul.f32 0.1, %v1902_v4  ;;  %v1904_v3 = vpop.f32.mrb[82].mxu0  ;;  %vm3954_vm7 = vcmp.ge.f32.partialorder %v1902_v4, 0.0  ;;  %12030 = vmatmul.mubr.msk.bf16.gmra.mrb[64].mxu1 %vm1309_vm0, %v15953_v5 }
 0x283   :  { %vm3961_vm8 = vcmp.ge.f32.partialorder %v1904_v3, 0.0  ;;  %v4353_v6 = vmul.f32 0.1, %v1904_v3  ;;  %v1906_v26 = vpop.f32.mrb[83].mxu0  ;;  %2430 = vmatprep.mubr.bf16.mxu1 %v21453_v61  ;;  %v15958_v1 = vsel %vm3953_vm6, %v1900_v46, %v4345_v62  ;;  %v126_v46 = vld [vmem:[%s21082_s1 + $0x18] sm:$0xff] }
 0x284   :  { %vm3962_vm9 = vcmp.ge.f32.partialorder %v1906_v26, 0.0  ;;  %v4354_v10 = vmul.f32 0.1, %v1906_v26  ;;  %21518 = vst [vmem:[#allocation59_spill] sm:$0xff] %v15958_v1  ;;  %v15965_v16 = vsel %vm3954_vm7, %v1902_v4, %v4346_v48 }
 0x285   :  { %v15960_v12 = vsel %vm3961_vm8, %v1904_v3, %v4353_v6  ;;  %2762 = vmatmul.mubr.bf16.gmra.mrb[188].mxu0 %v14553_v31  ;;  %21520 = vst [vmem:[#allocation61_spill] sm:$0xff] %v15965_v16  ;;  %v130_v31 = vld [vmem:[%s21082_s1 + $0x38] sm:$0xff]  ;;  %v14556_v16 = vld [vmem:[%s21083_s0 + $0x228] ss:$12 sps:$4 sm:$0xff]  }
 0x286   :  { %21519 = vst [vmem:[#allocation60_spill] sm:$0xff] %v15960_v12  ;;  %v15969_v47 = vsel %vm3962_vm9, %v1906_v26, %v4354_v10  ;;  %2771 = vmatprep.mubr.bf16.mxu0 %v14554_v17  ;;  %v11859_v62 = vcombine.low %v126_v46, %v130_v31  ;;  %v11860_v4 = vcombine.high %v126_v46, %v130_v31  ;;  %v15985_v12 = vld [vmem:[%s21083_s0 + $0x1a0] ss:$12 sps:$4 sm:$0xff]   ;;  %v134_v31 = vld [vmem:[%s21082_s1 + $0x58] sm:$0xff] }
 0x287   :  { %21521 = vst [vmem:[#allocation62_spill] sm:$0xff] %v15969_v47 }
 0x288   :  { %v1910_v26 = vpop.f32.mrb[84].mxu0  ;;  %3071 = vmatprep.subr.bf16.mxu1 %v11860_v4 }
 0x289   :  { %v4361_v3 = vmul.f32 0.1, %v1910_v26  ;;  %v1912_v6 = vpop.f32.mrb[85].mxu0  ;;  %vm3969_vm10 = vcmp.ge.f32.partialorder %v1910_v26, 0.0  ;;  %3072 = vmatpush1.bf16.msra.mxu1 %v11859_v62  ;;  %v138_v62 = vld [vmem:[%s21082_s1 + $0x78] sm:$0xff] }
 0x28a   :  { %v4362_v10 = vmul.f32 0.1, %v1912_v6  ;;  %v1914_v17 = vpop.f32.mrb[86].mxu0  ;;  %vm3970_vm11 = vcmp.ge.f32.partialorder %v1912_v6, 0.0  ;;  %12031 = vmatmul.mubr.msk.bf16.gmra.mrb[68].mxu1 %vm1309_vm0, %v15985_v12  ;;  %v11867_v47 = vcombine.low %v134_v31, %v138_v62  ;;  %v11868_v53 = vcombine.high %v134_v31, %v138_v62 }
 0x28b   :  { %vm3977_vm12 = vcmp.ge.f32.partialorder %v1914_v17, 0.0  ;;  %v4369_v22 = vmul.f32 0.1, %v1914_v17  ;;  %v1916_v1 = vpop.f32.mrb[87].mxu0  ;;  %2440 = vmatprep.mubr.bf16.mxu1 %v21453_v61  ;;  %v15996_v4 = vsel %vm3969_vm10, %v1910_v26, %v4361_v3 }
 0x28c   :  { %vm3978_vm13 = vcmp.ge.f32.partialorder %v1916_v1, 0.0  ;;  %v4370_v46 = vmul.f32 0.1, %v1916_v1  ;;  %21522 = vst [vmem:[#allocation63_spill] sm:$0xff] %v15996_v4  ;;  %v16004_v9 = vsel %vm3970_vm11, %v1912_v6, %v4362_v10  ;;  %3073 = vmatprep.subr.bf16.mxu1 %v11868_v53  ;;  %v16022_v53 = vld [vmem:[%s21083_s0 + $0x1b8] ss:$12 sps:$4 sm:$0xff]  }
 0x28d   :  { %v15998_v48 = vsel %vm3977_vm12, %v1914_v17, %v4369_v22  ;;  %2772 = vmatmul.mubr.bf16.gmra.mrb[192].mxu0 %v14556_v16  ;;  %21524 = vst [vmem:[#allocation65_spill] sm:$0xff] %v16004_v9  ;;  %v142_v22 = vld [vmem:[%s21082_s1 + $0x98] sm:$0xff]  ;;  %3074 = vmatpush1.bf16.msra.mxu1 %v11867_v47  ;;  %v14040_v9 = vld [vmem:[%s21084_s2] sm:$0xff]  }
 0x28e   :  { %21523 = vst [vmem:[#allocation64_spill] sm:$0xff] %v15998_v48  ;;  %v16008_v23 = vsel %vm3978_vm13, %v1916_v1, %v4370_v46  ;;  %2781 = vmatprep.mubr.bf16.mxu0 %v21456_v25  ;;  %v146_v16 = vld [vmem:[%s21082_s1 + $0xb8] sm:$0xff] }
 0x28f   :  { %21525 = vst [vmem:[#allocation66_spill] sm:$0xff] %v16008_v23  ;;  %v11876_v26 = vcombine.high %v142_v22, %v146_v16  ;;  %v11875_v10 = vcombine.low %v142_v22, %v146_v16  ;;  %v150_v22 = vld [vmem:[%s21082_s1 + $0xd8] sm:$0xff] }
 0x290   :  { %v1920_v6 = vpop.f32.mrb[88].mxu0  ;;  %v154_v16 = vld [vmem:[%s21082_s1 + $0xf8] sm:$0xff] }
 0x291   :  { %v4377_v1 = vmul.f32 0.1, %v1920_v6  ;;  %v1922_v17 = vpop.f32.mrb[89].mxu0  ;;  %3075 = vmatprep.subr.bf16.mxu1 %v11876_v26  ;;  %vm3985_vm14 = vcmp.ge.f32.partialorder %v1920_v6, 0.0  ;;  %v11883_v4 = vcombine.low %v150_v22, %v154_v16  ;;  %v11884_v48 = vcombine.high %v150_v22, %v154_v16 }
 0x292   :  { %v4378_v46 = vmul.f32 0.1, %v1922_v17  ;;  %v1924_v31 = vpop.f32.mrb[90].mxu0  ;;  %vm3986_vm15 = vcmp.ge.f32.partialorder %v1922_v17, 0.0  ;;  %12032 = vmatmul.mubr.msk.bf16.gmra.mrb[72].mxu1 %vm1309_vm0, %v16022_v53 }
 0x293   :  { %vm3993_vm1 = vcmp.ge.f32.partialorder %v1924_v31, 0.0  ;;  %v4385_v62 = vmul.f32 0.1, %v1924_v31  ;;  %v1926_v60 = vpop.f32.mrb[91].mxu0  ;;  %3076 = vmatpush1.bf16.msra.mxu1 %v11875_v10  ;;  %2450 = vmatprep.mubr.bf16.mxu1 %v21453_v61  ;;  %v16033_v26 = vsel %vm3985_vm14, %v1920_v6, %v4377_v1  ;;  %v158_v6 = vld [vmem:[%s21082_s1 + $0x118] sm:$0xff] }
 0x294   :  { %vm3994_vm2 = vcmp.ge.f32.partialorder %v1926_v60, 0.0  ;;  %v4386_v47 = vmul.f32 0.1, %v1926_v60  ;;  %21526 = vst [vmem:[#allocation67_spill] sm:$0xff] %v16033_v26  ;;  %v16039_v10 = vsel %vm3986_vm15, %v1922_v17, %v4378_v46  ;;  %v162_v1 = vld [vmem:[%s21082_s1 + $0x138] sm:$0xff]  ;;  %3077 = vmatprep.subr.bf16.mxu1 %v11884_v48 }
 0x295   :  { %v16035_v3 = vsel %vm3993_vm1, %v1924_v31, %v4385_v62  ;;  %2782 = vmatmul.mubr.bf16.gmra.mrb[196].mxu0 %v21457_v33  ;;  %21528 = vst [vmem:[#allocation69_spill] sm:$0xff] %v16039_v10  ;;  %v11892_v31 = vcombine.high %v158_v6, %v162_v1  ;;  %v11891_v62 = vcombine.low %v158_v6, %v162_v1  ;;  %v16060_v17 = vld [vmem:[%s21083_s0 + $0x1d0] ss:$12 sps:$4 sm:$0xff]   ;;  %v14559_v10 = vld [vmem:[%s21083_s0 + $0x8] ss:$12 sps:$4 sm:$0xff]  }
 0x296   :  { %21527 = vst [vmem:[#allocation68_spill] sm:$0xff] %v16035_v3  ;;  %v16043_v23 = vsel %vm3994_vm2, %v1926_v60, %v4386_v47  ;;  %2822 = vmatprep.mubr.bf16.mxu0 %v21453_v61  ;;  %v166_v6 = vld [vmem:[%s21082_s1 + $0x158] sm:$0xff] }
 0x297   :  { %21529 = vst [vmem:[#allocation70_spill] sm:$0xff] %v16043_v23  ;;  %3078 = vmatpush1.bf16.msra.mxu1 %v11883_v4  ;;  %v170_v1 = vld [vmem:[%s21082_s1 + $0x178] sm:$0xff] }
 0x298   :  { %v1930_v46 = vpop.f32.mrb[92].mxu0  ;;  %3079 = vmatprep.subr.bf16.mxu1 %v11892_v31  ;;  %v11900_v23 = vcombine.high %v166_v6, %v170_v1 }
 0x299   :  { %v4393_v60 = vmul.f32 0.1, %v1930_v46  ;;  %v1932_v47 = vpop.f32.mrb[93].mxu0  ;;  %vm4001_vm3 = vcmp.ge.f32.partialorder %v1930_v46, 0.0 }
 0x29a   :  { %v4394_v22 = vmul.f32 0.1, %v1932_v47  ;;  %v1934_v16 = vpop.f32.mrb[94].mxu0  ;;  %vm4002_vm4 = vcmp.ge.f32.partialorder %v1932_v47, 0.0  ;;  %12033 = vmatmul.mubr.msk.bf16.gmra.mrb[76].mxu1 %vm1309_vm0, %v16060_v17 }
 0x29b   :  { %vm4009_vm5 = vcmp.ge.f32.partialorder %v1934_v16, 0.0  ;;  %v4401_v48 = vmul.f32 0.1, %v1934_v16  ;;  %v1936_v26 = vpop.f32.mrb[95].mxu0  ;;  %3080 = vmatpush1.bf16.msra.mxu1 %v11891_v62  ;;  %2460 = vmatprep.mubr.bf16.mxu1 %v21453_v61  ;;  %v16072_v31 = vsel %vm4001_vm3, %v1930_v46, %v4393_v60  ;;  %v11899_v62 = vcombine.low %v166_v6, %v170_v1  ;;  %v14041_v46 = vld [vmem:[%s21084_s2 + $0x8] sm:$0xff]   ;;  %v178_v60 = vld [vmem:[%s21082_s1 + $0x1b8] sm:$0xff] }
 0x29c   :  { %vm4010_vm6 = vcmp.ge.f32.partialorder %v1936_v26, 0.0  ;;  %v4402_v4 = vmul.f32 0.1, %v1936_v26  ;;  %21530 = vst [vmem:[#allocation71_spill] sm:$0xff] %v16072_v31  ;;  %v16081_v15 = vsel %vm4002_vm4, %v1932_v47, %v4394_v22  ;;  %3081 = vmatprep.subr.bf16.mxu1 %v11900_v23  ;;  %v16111_v23 = vld [vmem:[%s21083_s0 + $0x1e8] ss:$12 sps:$4 sm:$0xff]  }
 0x29d   :  { %v16074_v3 = vsel %vm4009_vm5, %v1934_v16, %v4401_v48  ;;  %12039 = vmatmul.mubr.msk.bf16.vlgmr.msra.gmra.mrb[100].mxu0 %vm1309_vm0, %v14559_v10  ;;  %21532 = vst [vmem:[#allocation73_spill] sm:$0xff] %v16081_v15  ;;  %v174_v10 = vld [vmem:[%s21082_s1 + $0x198] sm:$0xff] }
 0x29e   :  { %21531 = vst [vmem:[#allocation72_spill] sm:$0xff] %v16074_v3  ;;  %v16085_v45 = vsel %vm4010_vm6, %v1936_v26, %v4402_v4  ;;  %5526 = vmatpush1.bf16.msra.mxu0 %v14040_v9  ;;  %2832 = vmatprep.mubr.bf16.mxu0 %v21453_v61  ;;  %v11908_v26 = vcombine.high %v174_v10, %v178_v60  ;;  %v14042_v4 = vld [vmem:[%s21084_s2 + $0x10] sm:$0xff]   ;;  %v182_v1 = vld [vmem:[%s21082_s1 + $0x1d8] sm:$0xff] }
 0x29f   :  { %21533 = vst [vmem:[#allocation74_spill] sm:$0xff] %v16085_v45  ;;  %5527 = vmatprep.subr.bf16.mxu0 %v21453_v61  ;;  %3082 = vmatpush1.bf16.msra.mxu1 %v11899_v62  ;;  %v11907_v22 = vcombine.low %v174_v10, %v178_v60  ;;  %v186_v62 = vld [vmem:[%s21082_s1 + $0x1f8] sm:$0xff] }
 0x2a0   :  { %v16100_v47 = vpop.f32.mrb[96].mxu0  ;;  %3083 = vmatprep.subr.bf16.mxu1 %v11908_v26  ;;  %v11915_v10 = vcombine.low %v182_v1, %v186_v62  ;;  %v11916_v60 = vcombine.high %v182_v1, %v186_v62  ;;  %v14043_v26 = vld [vmem:[%s21084_s2 + $0x18] sm:$0xff]   ;;  %v16144_v62 = vld [vmem:[%s21083_s0 + $0x200] ss:$12 sps:$4 sm:$0xff]  }
 0x2a1   :  { %21534 = vst [vmem:[#allocation75_spill] sm:$0xff] %v16100_v47  ;;  %v16102_v16 = vpop.f32.mrb[97].mxu0  ;;  %v242_v9 = vld [vmem:[%s21082_s1 + $0x3b8] sm:$0xff]  ;;  %v14580_v47 = vld [vmem:[%s21083_s0 + $0x48] ss:$12 sps:$4 sm:$0xff]  }
 0x2a2   :  { %21535 = vst [vmem:[#allocation76_spill] sm:$0xff] %v16102_v16  ;;  %v1944_v48 = vpop.f32.mrb[98].mxu0  ;;  %5528 = vmatpush1.bf16.msra.mxu0 %v14041_v46  ;;  %12034 = vmatmul.mubr.msk.bf16.gmra.mrb[80].mxu1 %vm1309_vm0, %v16111_v23  ;;  %v14561_v46 = vld [vmem:[%s21083_s0 + $0x20] ss:$12 sps:$4 sm:$0xff]  }
 0x2a3   :  { %v1945_v6 = vpop.f32.mrb[99].mxu0  ;;  %5529 = vmatprep.subr.bf16.mxu0 %v21453_v61  ;;  %3084 = vmatpush1.bf16.msra.mxu1 %v11907_v22  ;;  %v190_v22 = vld [vmem:[%s21082_s1 + $0x218] sm:$0xff] }
 0x2a4   :  { %2470 = vmatprep.mubr.bf16.mxu1 %v21453_v61  ;;  %v194_v48 = vld [vmem:[%s21082_s1 + $0x238] sm:$0xff]  ;;  %3085 = vmatprep.subr.bf16.mxu1 %v11916_v60 }
 0x2a5   :  { %12040 = vmatmul.mubr.msk.bf16.gmra.mrb[104].mxu0 %vm1309_vm0, %v14561_v46  ;;  %v11924_v6 = vcombine.high %v190_v22, %v194_v48  ;;  %v11923_v1 = vcombine.low %v190_v22, %v194_v48  ;;  %v198_v46 = vld [vmem:[%s21082_s1 + $0x258] sm:$0xff]  ;;  %v14045_v48 = vld [vmem:[%s21084_s2 + $0x28] sm:$0xff]  }
 0x2a6   :  { %2842 = vmatprep.mubr.bf16.mxu0 %v21453_v61  ;;  %5530 = vmatpush1.bf16.msra.mxu0 %v14042_v4  ;;  %v14044_v4 = vld [vmem:[%s21084_s2 + $0x20] sm:$0xff]  }
 0x2a7   :  { %5531 = vmatprep.subr.bf16.mxu0 %v21453_v61  ;;  %3086 = vmatpush1.bf16.msra.mxu1 %v11915_v10  ;;  %v202_v10 = vld [vmem:[%s21082_s1 + $0x278] sm:$0xff] }
 0x2a8   :  { %3087 = vmatprep.subr.bf16.mxu1 %v11924_v6  ;;  %v14563_v60 = vld [vmem:[%s21083_s0 + $0x38] ss:$12 sps:$4 sm:$0xff]   ;;  %v11932_v22 = vcombine.high %v198_v46, %v202_v10 }
 0x2a9   :  { %v206_v6 = vld [vmem:[%s21082_s1 + $0x298] sm:$0xff] }
 0x2aa   :  { %5532 = vmatpush1.bf16.msra.mxu0 %v14043_v26  ;;  %12035 = vmatmul.mubr.msk.bf16.gmra.mrb[84].mxu1 %vm1309_vm0, %v16144_v62  ;;  %v11931_v26 = vcombine.low %v198_v46, %v202_v10  ;;  %v16177_v10 = vld [vmem:[%s21083_s0 + $0x218] ss:$12 sps:$4 sm:$0xff]  }
 0x2ab   :  { %5533 = vmatprep.subr.bf16.mxu0 %v21453_v61  ;;  %3088 = vmatpush1.bf16.msra.mxu1 %v11923_v1  ;;  %v210_v1 = vld [vmem:[%s21082_s1 + $0x2b8] sm:$0xff] }
 0x2ac   :  { %2480 = vmatprep.mubr.bf16.mxu1 %v21453_v61  ;;  %3089 = vmatprep.subr.bf16.mxu1 %v11932_v22  ;;  %v11939_v46 = vcombine.low %v206_v6, %v210_v1  ;;  %v218_v22 = vld [vmem:[%s21082_s1 + $0x2f8] sm:$0xff] }
 0x2ad   :  { %12041 = vmatmul.mubr.msk.bf16.gmra.mrb[108].mxu0 %vm1309_vm0, %v14563_v60  ;;  %v11940_v60 = vcombine.high %v206_v6, %v210_v1 }
 0x2ae   :  { %2852 = vmatprep.mubr.bf16.mxu0 %v21453_v61  ;;  %5534 = vmatpush1.bf16.msra.mxu0 %v14044_v4  ;;  %v14046_v4 = vld [vmem:[%s21084_s2 + $0x30] sm:$0xff]  }
 0x2af   :  { %5535 = vmatprep.subr.bf16.mxu0 %v21453_v61  ;;  %3090 = vmatpush1.bf16.msra.mxu1 %v11931_v26  ;;  %v214_v26 = vld [vmem:[%s21082_s1 + $0x2d8] sm:$0xff] }
 0x2b0   :  { %3091 = vmatprep.subr.bf16.mxu1 %v11940_v60  ;;  %v11947_v6 = vcombine.low %v214_v26, %v218_v22  ;;  %v11948_v1 = vcombine.high %v214_v26, %v218_v22  ;;  %v14047_v60 = vld [vmem:[%s21084_s2 + $0x38] sm:$0xff]  }
 0x2b1   :  { %v16210_v22 = vld [vmem:[%s21083_s0 + $0x230] ss:$12 sps:$4 sm:$0xff]  }
 0x2b2   :  { %5536 = vmatpush1.bf16.msra.mxu0 %v14045_v48  ;;  %12036 = vmatmul.mubr.msk.bf16.gmra.mrb[88].mxu1 %vm1309_vm0, %v16177_v10  ;;  %v14565_v48 = vld [vmem:[%s21083_s0 + $0x50] ss:$12 sps:$4 sm:$0xff]  }
 0x2b3   :  { %5537 = vmatprep.subr.bf16.mxu0 %v21453_v61  ;;  %3092 = vmatpush1.bf16.msra.mxu1 %v11939_v46  ;;  %v222_v46 = vld [vmem:[%s21082_s1 + $0x318] sm:$0xff] }
 0x2b4   :  { %2490 = vmatprep.mubr.bf16.mxu1 %v21453_v61  ;;  %3093 = vmatprep.subr.bf16.mxu1 %v11948_v1  ;;  %v11955_v26 = vcombine.low %v222_v46, %v226_v32  ;;  %v14567_v1 = vld [vmem:[%s21083_s0 + $0x68] ss:$12 sps:$4 sm:$0xff]  }
 0x2b5   :  { %12042 = vmatmul.mubr.msk.bf16.gmra.mrb[112].mxu0 %vm1309_vm0, %v14565_v48  ;;  %v11956_v48 = vcombine.high %v222_v46, %v226_v32  ;;  %v230_v32 = vld [vmem:[%s21082_s1 + $0x358] sm:$0xff] }
 0x2b6   :  { %2862 = vmatprep.mubr.bf16.mxu0 %v21453_v61  ;;  %5538 = vmatpush1.bf16.msra.mxu0 %v14046_v4  ;;  %v14048_v4 = vld [vmem:[%s21084_s2 + $0x40] sm:$0xff]  }
 0x2b7   :  { %5539 = vmatprep.subr.bf16.mxu0 %v21453_v61  ;;  %3094 = vmatpush1.bf16.msra.mxu1 %v11947_v6  ;;  %v234_v6 = vld [vmem:[%s21082_s1 + $0x378] sm:$0xff] }
 0x2b8   :  { %3095 = vmatprep.subr.bf16.mxu1 %v11956_v48  ;;  %v11964_v46 = vcombine.high %v230_v32, %v234_v6  ;;  %v14049_v48 = vld [vmem:[%s21084_s2 + $0x48] sm:$0xff]  }
 0x2ba   :  { %5540 = vmatpush1.bf16.msra.mxu0 %v14047_v60  ;;  %12037 = vmatmul.mubr.msk.bf16.gmra.mrb[92].mxu1 %vm1309_vm0, %v16210_v22  ;;  %v11963_v60 = vcombine.low %v230_v32, %v234_v6  ;;  %v16243_v6 = vld [vmem:[%s21083_s0 + $0x248] ss:$0 sps:$4 sm:$0xff]  }
 0x2bb   :  { %5541 = vmatprep.subr.bf16.mxu0 %v21453_v61  ;;  %3096 = vmatpush1.bf16.msra.mxu1 %v11955_v26  ;;  %v238_v26 = vld [vmem:[%s21082_s1 + $0x398] sm:$0xff] }
 0x2bc   :  { %2500 = vmatprep.mubr.bf16.mxu1 %v21453_v61  ;;  %3097 = vmatprep.subr.bf16.mxu1 %v11964_v46  ;;  %v11971_v32 = vcombine.low %v238_v26, %v242_v9  ;;  %v14569_v46 = vld [vmem:[%s21083_s0 + $0x4] ss:$12 sps:$4 sm:$0xff]  }
 0x2bd   :  { %12043 = vmatmul.mubr.msk.bf16.gmra.mrb[116].mxu0 %vm1309_vm0, %v14567_v1  ;;  %v11972_v1 = vcombine.high %v238_v26, %v242_v9  ;;  %v246_v9 = vld [vmem:[%s21082_s1 + $0x3d8] sm:$0xff] }
 0x2be   :  { %2872 = vmatprep.mubr.bf16.mxu0 %v21453_v61  ;;  %5542 = vmatpush1.bf16.msra.mxu0 %v14048_v4  ;;  %v14050_v4 = vld [vmem:[%s21084_s2 + $0x50] sm:$0xff]  }
 0x2bf   :  { %5543 = vmatprep.subr.bf16.mxu0 %v21453_v61  ;;  %3098 = vmatpush1.bf16.msra.mxu1 %v11963_v60  ;;  %v250_v60 = vld [vmem:[%s21082_s1 + $0x3f8] sm:$0xff] }
 0x2c0   :  { %3099 = vmatprep.subr.bf16.mxu1 %v11972_v1  ;;  %v11979_v26 = vcombine.low %v246_v9, %v250_v60  ;;  %v11980_v1 = vcombine.high %v246_v9, %v250_v60  ;;  %v14571_v9 = vld [vmem:[%s21083_s0] ss:$12 sps:$4 sm:$0xff]   ;;  %v14573_v60 = vld [vmem:[%s21083_s0 + $0x98] ss:$12 sps:$4 sm:$0xff]  }
 0x2c2   :  { %5544 = vmatpush1.bf16.msra.mxu0 %v14049_v48  ;;  %12038 = vmatmul.mubr.msk.bf16.gmra.mrb[96].mxu1 %vm1309_vm0, %v16243_v6  ;;  %v14570_v48 = vld [vmem:[%s21083_s0 + $0x80] ss:$12 sps:$4 sm:$0xff]  }
 0x2c3   :  { %5545 = vmatprep.subr.bf16.mxu0 %v21453_v61  ;;  %3100 = vmatpush1.bf16.msra.mxu1 %v11971_v32  ;;  %v14051_v32 = vld [vmem:[%s21084_s2 + $0x58] sm:$0xff]  }
 0x2c4   :  { %3103 = vmatprep.mubr.bf16.mxu1 %v14569_v46  ;;  %3101 = vmatprep.subr.bf16.mxu1 %v11980_v1  ;;  %v14052_v46 = vld [vmem:[%s21084_s2 + $0x60] sm:$0xff]  }
 0x2c5   :  { %12044 = vmatmul.mubr.msk.bf16.gmra.mrb[120].mxu0 %vm1309_vm0, %v14570_v48  ;;  %v14053_v48 = vld [vmem:[%s21084_s2 + $0x68] sm:$0xff]   ;;  %v14574_v1 = vld [vmem:[%s21083_s0 + $0x18] ss:$12 sps:$4 sm:$0xff]  }
 0x2c6   :  { %2882 = vmatprep.mubr.bf16.mxu0 %v21453_v61  ;;  %5546 = vmatpush1.bf16.msra.mxu0 %v14050_v4  ;;  %v14572_v4 = vld [vmem:[%s21083_s0 + $0x1c] ss:$12 sps:$4 sm:$0xff]  }
 0x2c7   :  { %5547 = vmatprep.subr.bf16.mxu0 %v21453_v61  ;;  %3102 = vmatpush1.bf16.msra.mxu1 %v11979_v26  ;;  %v14054_v26 = vld [vmem:[%s21084_s2 + $0x70] sm:$0xff]  }
 0x2ca   :  { %5548 = vmatpush1.bf16.msra.mxu0 %v14051_v32  ;;  %3104 = vmatmul.mubr.bf16.vlgmr.msra.gmra.mrb[100].mxu1 %v14571_v9  ;;  %v14575_v32 = vld [vmem:[%s21083_s0 + $0x34] ss:$12 sps:$4 sm:$0xff]  }
 0x2cb   :  { %5549 = vmatprep.subr.bf16.mxu0 %v21453_v61  ;;  %3113 = vmatprep.mubr.bf16.mxu1 %v14572_v4  ;;  %v14055_v4 = vld [vmem:[%s21084_s2 + $0x78] sm:$0xff]  }
 0x2cd   :  { %12045 = vmatmul.mubr.msk.bf16.gmra.mrb[124].mxu0 %vm1309_vm0, %v14573_v60 }
 0x2ce   :  { %2892 = vmatprep.mubr.bf16.mxu0 %v21453_v61  ;;  %5550 = vmatpush1.bf16.msra.mxu0 %v14052_v46  ;;  %v14576_v46 = vld [vmem:[%s21083_s0 + $0xb0] ss:$12 sps:$4 sm:$0xff]  }
 0x2cf   :  { %5551 = vmatprep.subr.bf16.mxu0 %v21453_v61 }
 0x2d2   :  { %5552 = vmatpush1.bf16.msra.mxu0 %v14053_v48  ;;  %3114 = vmatmul.mubr.bf16.gmra.mrb[104].mxu1 %v14574_v1 }
 0x2d3   :  { %5553 = vmatprep.subr.bf16.mxu0 %v21453_v61  ;;  %3123 = vmatprep.mubr.bf16.mxu1 %v14575_v32 }
 0x2d5   :  { %12046 = vmatmul.mubr.msk.bf16.gmra.mrb[128].mxu0 %vm1309_vm0, %v14576_v46  ;;  %v2262_v9 = vpop.f32.mrb[0].mxu1 }
 0x2d6   :  { %2902 = vmatprep.mubr.bf16.mxu0 %v21453_v61  ;;  %5554 = vmatpush1.bf16.msra.mxu0 %v14054_v26  ;;  %vm3635_vm7 = vcmp.ge.f32.partialorder %v2262_v9, 0.0  ;;  %v4027_v60 = vmul.f32 0.1, %v2262_v9  ;;  %v2264_v48 = vpop.f32.mrb[1].mxu1  ;;  %v14577_v26 = vld [vmem:[%s21083_s0 + $0x30] ss:$12 sps:$4 sm:$0xff]  }
 0x2d7   :  { %5555 = vmatprep.subr.bf16.mxu0 %v21453_v61  ;;  %v2266_v1 = vpop.f32.mrb[2].mxu1  ;;  %v4028_v15 = vmul.f32 0.1, %v2264_v48  ;;  %vm3636_vm9 = vcmp.ge.f32.partialorder %v2264_v48, 0.0 }
 0x2d8   :  { %v16303_v32 = vsel %vm3635_vm7, %v2262_v9, %v4027_v60  ;;  %vm3643_vm8 = vcmp.ge.f32.partialorder %v2266_v1, 0.0  ;;  %v4035_v31 = vmul.f32 0.1, %v2266_v1  ;;  %v2268_v3 = vpop.f32.mrb[3].mxu1  ;;  %v14578_v9 = vld [vmem:[%s21083_s0 + $0x4c] ss:$12 sps:$4 sm:$0xff]  }
 0x2d9   :  { %21536 = vst [vmem:[#allocation77_spill] sm:$0xff] %v16303_v32  ;;  %v4036_v45 = vmul.f32 0.1, %v2268_v3  ;;  %vm3644_vm10 = vcmp.ge.f32.partialorder %v2268_v3, 0.0 }
 0x2da   :  { %5556 = vmatpush1.bf16.msra.mxu0 %v14055_v4  ;;  %v16305_v46 = vsel %vm3643_vm8, %v2266_v1, %v4035_v31  ;;  %3124 = vmatmul.mubr.bf16.gmra.mrb[108].mxu1 %v14577_v26  ;;  %v14579_v31 = vld [vmem:[%s21083_s0 + $0xc8] ss:$12 sps:$4 sm:$0xff]  }
 0x2db   :  { %21537 = vst [vmem:[#allocation78_spill] sm:$0xff] %v16305_v46  ;;  %5757 = vmatprep.subr.bf16.mxu0 %v21453_v61  ;;  %3133 = vmatprep.mubr.bf16.mxu1 %v14578_v9  ;;  %v14581_v9 = vld [vmem:[%s21083_s0 + $0x64] ss:$12 sps:$4 sm:$0xff]   ;;  %v16340_v2 = vsel %vm3644_vm10, %v2268_v3, %v4036_v45 }
 0x2dc   :  { %21539 = vst [vmem:[#allocation80_spill] sm:$0xff] %v16340_v2 }
 0x2dd   :  { %12047 = vmatmul.mubr.msk.bf16.gmra.mrb[132].mxu0 %vm1309_vm0, %v14579_v31  ;;  %v2272_v4 = vpop.f32.mrb[4].mxu1  ;;  %v14582_v31 = vld [vmem:[%s21083_s0 + $0xe0] ss:$12 sps:$4 sm:$0xff]  }
 0x2de   :  { %2912 = vmatprep.mubr.bf16.mxu0 %v21453_v61  ;;  %v2274_v60 = vpop.f32.mrb[5].mxu1  ;;  %v4043_v18 = vmul.f32 0.1, %v2272_v4  ;;  %vm3651_vm13 = vcmp.ge.f32.partialorder %v2272_v4, 0.0 }
 0x2df   :  { %v2276_v1 = vpop.f32.mrb[6].mxu1  ;;  %v4044_v24 = vmul.f32 0.1, %v2274_v60  ;;  %vm3652_vm11 = vcmp.ge.f32.partialorder %v2274_v60, 0.0 }
 0x2e0   :  { %v2278_v26 = vpop.f32.mrb[7].mxu1  ;;  %vm3659_vm14 = vcmp.ge.f32.partialorder %v2276_v1, 0.0  ;;  %v16361_v2 = vsel %vm3651_vm13, %v2272_v4, %v4043_v18 }
 0x2e1   :  { %vm3660_vm12 = vcmp.ge.f32.partialorder %v2278_v26, 0.0  ;;  %21541 = vst [vmem:[#allocation82_spill] sm:$0xff] %v16361_v2 }
 0x2e2   :  { %3134 = vmatmul.mubr.bf16.gmra.mrb[112].mxu1 %v14580_v47  ;;  %v14583_v47 = vld [vmem:[%s21083_s0 + $0x60] ss:$12 sps:$4 sm:$0xff]  }
 0x2e3   :  { %3143 = vmatprep.mubr.bf16.mxu1 %v14581_v9  ;;  %v14584_v9 = vld [vmem:[%s21083_s0 + $0x7c] ss:$12 sps:$4 sm:$0xff]  }
 0x2e5   :  { %12048 = vmatmul.mubr.msk.bf16.gmra.mrb[136].mxu0 %vm1309_vm0, %v14582_v31  ;;  %v2282_v32 = vpop.f32.mrb[8].mxu1  ;;  %v16338_v31 = vsel %vm3636_vm9, %v2264_v48, %v4028_v15  ;;  %v4051_v15 = vmul.f32 0.1, %v2276_v1  ;;  %v4052_v48 = vmul.f32 0.1, %v2278_v26 }
 0x2e6   :  { %2922 = vmatprep.mubr.bf16.mxu0 %v21453_v61  ;;  %v2284_v46 = vpop.f32.mrb[9].mxu1  ;;  %21538 = vst [vmem:[#allocation79_spill] sm:$0xff] %v16338_v31  ;;  %vm3667_vm2 = vcmp.ge.f32.partialorder %v2282_v32, 0.0 }
 0x2e7   :  { %v2286_v16 = vpop.f32.mrb[10].mxu1  ;;  %v16359_v31 = vsel %vm3660_vm12, %v2278_v26, %v4052_v48  ;;  %v16363_v30 = vsel %vm3659_vm14, %v2276_v1, %v4051_v15  ;;  %vm3668_vm15 = vcmp.ge.f32.partialorder %v2284_v46, 0.0  ;;  %v14589_v48 = vld [vmem:[%s21083_s0 + $0xac] ss:$12 sps:$4 sm:$0xff]  }
 0x2e8   :  { %v2288_v27 = vpop.f32.mrb[11].mxu1  ;;  %21542 = vst [vmem:[#allocation83_spill] sm:$0xff] %v16363_v30  ;;  %v4067_v18 = vmul.f32 0.1, %v2286_v16  ;;  %vm3675_vm3 = vcmp.ge.f32.partialorder %v2286_v16, 0.0 }
 0x2e9   :  { %v4068_v4 = vmul.f32 0.1, %v2288_v27  ;;  %vm3676_vm1 = vcmp.ge.f32.partialorder %v2288_v27, 0.0 }
 0x2ea   :  { %3144 = vmatmul.mubr.bf16.gmra.mrb[116].mxu1 %v14583_v47  ;;  %v16357_v47 = vsel %vm3652_vm11, %v2274_v60, %v4044_v24  ;;  %v4059_v24 = vmul.f32 0.1, %v2282_v32  ;;  %v4060_v60 = vmul.f32 0.1, %v2284_v46  ;;  %v16386_v30 = vsel %vm3675_vm3, %v2286_v16, %v4067_v18 }
 0x2eb   :  { %3153 = vmatprep.mubr.bf16.mxu1 %v14584_v9  ;;  %21540 = vst [vmem:[#allocation81_spill] sm:$0xff] %v16357_v47  ;;  %21545 = vst [vmem:[#allocation86_spill] sm:$0xff] %v16386_v30 }
 0x2ec   :  { %v16380_v13 = vsel %vm3668_vm15, %v2284_v46, %v4060_v60  ;;  %v16384_v2 = vsel %vm3667_vm2, %v2282_v32, %v4059_v24 }
 0x2ed   :  { %12049 = vmatmul.mubr.msk.bf16.gmra.mrb[140].mxu0 %vm1309_vm0, %v14585_v59  ;;  %v16349_v56 = vpop.f32.mrb[12].mxu1  ;;  %v14587_v59 = vld [vmem:[%s21083_s0 + $0x94] ss:$12 sps:$4 sm:$0xff]   ;;  %21543 = vst [vmem:[#allocation84_spill] sm:$0xff] %v16380_v13  ;;  %21544 = vst [vmem:[#allocation85_spill] sm:$0xff] %v16384_v2 }
 0x2ee   :  { %2932 = vmatprep.mubr.bf16.mxu0 %v21453_v61  ;;  %v2294_v9 = vpop.f32.mrb[13].mxu1  ;;  %vm3683_vm6 = vcmp.ge.f32.partialorder %v16349_v56, 0.0 }
 0x2ef   :  { %v2296_v45 = vpop.f32.mrb[14].mxu1  ;;  %v4076_v46 = vmul.f32 0.1, %v2294_v9  ;;  %vm3684_vm4 = vcmp.ge.f32.partialorder %v2294_v9, 0.0 }
 0x2f0   :  { %v2298_v3 = vpop.f32.mrb[15].mxu1  ;;  %v4083_v24 = vmul.f32 0.1, %v2296_v45  ;;  %vm3691_vm7 = vcmp.ge.f32.partialorder %v2296_v45, 0.0 }
 0x2f1   :  { %v4084_v16 = vmul.f32 0.1, %v2298_v3  ;;  %vm3692_vm5 = vcmp.ge.f32.partialorder %v2298_v3, 0.0  ;;  %v16405_v47 = vsel %vm3684_vm4, %v2294_v9, %v4076_v46 }
 0x2f2   :  { %3154 = vmatmul.mubr.bf16.gmra.mrb[120].mxu1 %v14586_v29  ;;  %v16382_v29 = vsel %vm3676_vm1, %v2288_v27, %v4068_v4  ;;  %v4075_v27 = vmul.f32 0.1, %v16349_v56  ;;  %v14591_v4 = vld [vmem:[%s21083_s0 + $0xc4] ss:$12 sps:$4 sm:$0xff]   ;;  %21546 = vst [vmem:[#allocation87_spill] sm:$0xff] %v16405_v47  ;;  %v16412_v30 = vsel %vm3691_vm7, %v2296_v45, %v4083_v24 }
 0x2f3   :  { %3163 = vmatprep.mubr.bf16.mxu1 %v14587_v59  ;;  %21548 = vst [vmem:[#allocation89_spill] sm:$0xff] %v16412_v30 }
 0x2f4   :  { %v16410_v2 = vsel %vm3683_vm6, %v16349_v56, %v4075_v27 }
 0x2f5   :  { %12050 = vmatmul.mubr.msk.bf16.gmra.mrb[144].mxu0 %vm1309_vm0, %v15823_v49  ;;  %v16372_v59 = vpop.f32.mrb[16].mxu1  ;;  %v14588_v49 = vld [vmem:[%s21083_s0 + $0x90] ss:$12 sps:$4 sm:$0xff]   ;;  %21547 = vst [vmem:[#allocation88_spill] sm:$0xff] %v16410_v2 }
 0x2f6   :  { %2942 = vmatprep.mubr.bf16.mxu0 %v21453_v61  ;;  %v2304_v26 = vpop.f32.mrb[17].mxu1  ;;  %vm3699_vm10 = vcmp.ge.f32.partialorder %v16372_v59, 0.0 }
 0x2f7   :  { %v2306_v1 = vpop.f32.mrb[18].mxu1  ;;  %v4092_v46 = vmul.f32 0.1, %v2304_v26  ;;  %vm3700_vm8 = vcmp.ge.f32.partialorder %v2304_v26, 0.0 }
 0x2f8   :  { %v2308_v15 = vpop.f32.mrb[19].mxu1  ;;  %v4099_v27 = vmul.f32 0.1, %v2306_v1  ;;  %vm3707_vm11 = vcmp.ge.f32.partialorder %v2306_v1, 0.0 }
 0x2f9   :  { %v4100_v45 = vmul.f32 0.1, %v2308_v15  ;;  %vm3708_vm9 = vcmp.ge.f32.partialorder %v2308_v15, 0.0  ;;  %v16431_v13 = vsel %vm3700_vm8, %v2304_v26, %v4092_v46 }
 0x2fa   :  { %3164 = vmatmul.mubr.bf16.gmra.mrb[124].mxu1 %v14588_v49  ;;  %v16407_v49 = vsel %vm3692_vm5, %v2298_v3, %v4084_v16  ;;  %v4091_v3 = vmul.f32 0.1, %v16372_v59  ;;  %21549 = vst [vmem:[#allocation90_spill] sm:$0xff] %v16431_v13  ;;  %v16438_v30 = vsel %vm3707_vm11, %v2306_v1, %v4099_v27 }
 0x2fb   :  { %3173 = vmatprep.mubr.bf16.mxu1 %v14589_v48  ;;  %21551 = vst [vmem:[#allocation92_spill] sm:$0xff] %v16438_v30 }
 0x2fc   :  { %v16436_v2 = vsel %vm3699_vm10, %v16372_v59, %v4091_v3 }
 0x2fd   :  { %12051 = vmatmul.mubr.msk.bf16.gmra.mrb[148].mxu0 %vm1309_vm0, %v15849_v42  ;;  %v16395_v48 = vpop.f32.mrb[20].mxu1  ;;  %v14590_v42 = vld [vmem:[%s21083_s0 + $0xa8] ss:$12 sps:$4 sm:$0xff]   ;;  %21550 = vst [vmem:[#allocation91_spill] sm:$0xff] %v16436_v2 }
 0x2fe   :  { %2952 = vmatprep.mubr.bf16.mxu0 %v21453_v61  ;;  %v2314_v32 = vpop.f32.mrb[21].mxu1  ;;  %vm3715_vm14 = vcmp.ge.f32.partialorder %v16395_v48, 0.0 }
 0x2ff   :  { %v2316_v60 = vpop.f32.mrb[22].mxu1  ;;  %v4108_v46 = vmul.f32 0.1, %v2314_v32  ;;  %vm3716_vm12 = vcmp.ge.f32.partialorder %v2314_v32, 0.0 }
 0x300   :  { %v2318_v18 = vpop.f32.mrb[23].mxu1  ;;  %v4115_v3 = vmul.f32 0.1, %v2316_v60  ;;  %vm3723_vm15 = vcmp.ge.f32.partialorder %v2316_v60, 0.0 }
 0x301   :  { %v4116_v1 = vmul.f32 0.1, %v2318_v18  ;;  %vm3724_vm13 = vcmp.ge.f32.partialorder %v2318_v18, 0.0  ;;  %v16459_v47 = vsel %vm3716_vm12, %v2314_v32, %v4108_v46 }
 0x302   :  { %3174 = vmatmul.mubr.bf16.gmra.mrb[128].mxu1 %v14590_v42  ;;  %v16433_v42 = vsel %vm3708_vm9, %v2308_v15, %v4100_v45  ;;  %v4107_v15 = vmul.f32 0.1, %v16395_v48  ;;  %21552 = vst [vmem:[#allocation93_spill] sm:$0xff] %v16459_v47  ;;  %v16466_v30 = vsel %vm3723_vm15, %v2316_v60, %v4115_v3 }
 0x303   :  { %3183 = vmatprep.mubr.bf16.mxu1 %v14591_v4  ;;  %v14593_v4 = vld [vmem:[%s21083_s0 + $0xdc] ss:$12 sps:$4 sm:$0xff]   ;;  %21554 = vst [vmem:[#allocation95_spill] sm:$0xff] %v16466_v30 }
 0x304   :  { %v16464_v2 = vsel %vm3715_vm14, %v16395_v48, %v4107_v15 }
 0x305   :  { %12052 = vmatmul.mubr.msk.bf16.gmra.mrb[152].mxu0 %vm1309_vm0, %v15875_v57  ;;  %v16421_v9 = vpop.f32.mrb[24].mxu1  ;;  %v14592_v57 = vld [vmem:[%s21083_s0 + $0xc0] ss:$12 sps:$4 sm:$0xff]   ;;  %21553 = vst [vmem:[#allocation94_spill] sm:$0xff] %v16464_v2 }
 0x306   :  { %2962 = vmatprep.mubr.bf16.mxu0 %v21453_v61  ;;  %v2324_v56 = vpop.f32.mrb[25].mxu1  ;;  %vm3731_vm3 = vcmp.ge.f32.partialorder %v16421_v9, 0.0 }
 0x307   :  { %v2326_v24 = vpop.f32.mrb[26].mxu1  ;;  %v4124_v46 = vmul.f32 0.1, %v2324_v56  ;;  %vm3732_vm1 = vcmp.ge.f32.partialorder %v2324_v56, 0.0 }
 0x308   :  { %v2328_v16 = vpop.f32.mrb[27].mxu1  ;;  %v4131_v15 = vmul.f32 0.1, %v2326_v24  ;;  %vm3739_vm4 = vcmp.ge.f32.partialorder %v2326_v24, 0.0 }
 0x309   :  { %v4132_v60 = vmul.f32 0.1, %v2328_v16  ;;  %vm3740_vm2 = vcmp.ge.f32.partialorder %v2328_v16, 0.0  ;;  %v16487_v13 = vsel %vm3732_vm1, %v2324_v56, %v4124_v46 }
 0x30a   :  { %3184 = vmatmul.mubr.bf16.gmra.mrb[132].mxu1 %v14592_v57  ;;  %v16461_v57 = vsel %vm3724_vm13, %v2318_v18, %v4116_v1  ;;  %v4123_v18 = vmul.f32 0.1, %v16421_v9  ;;  %21555 = vst [vmem:[#allocation96_spill] sm:$0xff] %v16487_v13  ;;  %v16494_v30 = vsel %vm3739_vm4, %v2326_v24, %v4131_v15 }
 0x30b   :  { %3193 = vmatprep.mubr.bf16.mxu1 %v14593_v4  ;;  %v14595_v4 = vld [vmem:[%s21083_s0 + $0xf4] ss:$12 sps:$4 sm:$0xff]   ;;  %21557 = vst [vmem:[#allocation98_spill] sm:$0xff] %v16494_v30 }
 0x30c   :  { %v16492_v2 = vsel %vm3731_vm3, %v16421_v9, %v4123_v18 }
 0x30d   :  { %12053 = vmatmul.mubr.msk.bf16.gmra.mrb[156].mxu0 %vm1309_vm0, %v15901_v43  ;;  %v16447_v26 = vpop.f32.mrb[28].mxu1  ;;  %v14594_v43 = vld [vmem:[%s21083_s0 + $0xd8] ss:$12 sps:$4 sm:$0xff]   ;;  %21556 = vst [vmem:[#allocation97_spill] sm:$0xff] %v16492_v2 }
 0x30e   :  { %2972 = vmatprep.mubr.bf16.mxu0 %v21453_v61  ;;  %v2334_v59 = vpop.f32.mrb[29].mxu1  ;;  %v4139_v9 = vmul.f32 0.1, %v16447_v26  ;;  %vm3747_vm7 = vcmp.ge.f32.partialorder %v16447_v26, 0.0 }
 0x30f   :  { %v16450_v27 = vpop.f32.mrb[30].mxu1  ;;  %v4140_v18 = vmul.f32 0.1, %v2334_v59  ;;  %vm3748_vm5 = vcmp.ge.f32.partialorder %v2334_v59, 0.0 }
 0x310   :  { %v2338_v45 = vpop.f32.mrb[31].mxu1  ;;  %v4147_v46 = vmul.f32 0.1, %v16450_v27  ;;  %vm3755_vm8 = vcmp.ge.f32.partialorder %v16450_v27, 0.0  ;;  %v16524_v2 = vsel %vm3747_vm7, %v16447_v26, %v4139_v9 }
 0x311   :  { %v4148_v24 = vmul.f32 0.1, %v2338_v45  ;;  %vm3756_vm6 = vcmp.ge.f32.partialorder %v2338_v45, 0.0  ;;  %v16519_v47 = vsel %vm3748_vm5, %v2334_v59, %v4140_v18  ;;  %21559 = vst [vmem:[#allocation100_spill] sm:$0xff] %v16524_v2 }
 0x312   :  { %3194 = vmatmul.mubr.bf16.gmra.mrb[136].mxu1 %v14594_v43  ;;  %v16489_v43 = vsel %vm3740_vm2, %v2328_v16, %v4132_v60  ;;  %21558 = vst [vmem:[#allocation99_spill] sm:$0xff] %v16519_v47  ;;  %v16531_v30 = vsel %vm3755_vm8, %v16450_v27, %v4147_v46  ;;  %v14600_v27 = vld [vmem:[%s21083_s0 + $0x120] ss:$12 sps:$4 sm:$0xff]  }
 0x313   :  { %3203 = vmatprep.mubr.bf16.mxu1 %v14595_v4  ;;  %v14597_v4 = vld [vmem:[%s21083_s0 + $0x10c] ss:$12 sps:$4 sm:$0xff]   ;;  %21560 = vst [vmem:[#allocation101_spill] sm:$0xff] %v16531_v30 }
 0x315   :  { %12054 = vmatmul.mubr.msk.bf16.gmra.mrb[160].mxu0 %vm1309_vm0, %v15927_v54  ;;  %v16475_v32 = vpop.f32.mrb[32].mxu1  ;;  %v14596_v54 = vld [vmem:[%s21083_s0 + $0xf0] ss:$12 sps:$4 sm:$0xff]  }
 0x316   :  { %2982 = vmatprep.mubr.bf16.mxu0 %v21453_v61  ;;  %v2344_v48 = vpop.f32.mrb[33].mxu1  ;;  %v4155_v26 = vmul.f32 0.1, %v16475_v32  ;;  %vm3763_vm11 = vcmp.ge.f32.partialorder %v16475_v32, 0.0 }
 0x317   :  { %v16478_v3 = vpop.f32.mrb[34].mxu1  ;;  %v4156_v9 = vmul.f32 0.1, %v2344_v48  ;;  %vm3764_vm9 = vcmp.ge.f32.partialorder %v2344_v48, 0.0 }
 0x318   :  { %v2348_v1 = vpop.f32.mrb[35].mxu1  ;;  %vm3771_vm12 = vcmp.ge.f32.partialorder %v16478_v3, 0.0  ;;  %v16557_v2 = vsel %vm3763_vm11, %v16475_v32, %v4155_v26 }
 0x319   :  { %v4164_v18 = vmul.f32 0.1, %v2348_v1  ;;  %vm3772_vm10 = vcmp.ge.f32.partialorder %v2348_v1, 0.0  ;;  %v16552_v59 = vsel %vm3764_vm9, %v2344_v48, %v4156_v9  ;;  %21562 = vst [vmem:[#allocation103_spill] sm:$0xff] %v16557_v2 }
 0x31a   :  { %3204 = vmatmul.mubr.bf16.gmra.mrb[140].mxu1 %v14596_v54  ;;  %v16521_v54 = vsel %vm3756_vm6, %v2338_v45, %v4148_v24  ;;  %21561 = vst [vmem:[#allocation102_spill] sm:$0xff] %v16552_v59 }
 0x31b   :  { %3213 = vmatprep.mubr.bf16.mxu1 %v14597_v4  ;;  %v14599_v4 = vld [vmem:[%s21083_s0 + $0x124] ss:$12 sps:$4 sm:$0xff]  }
 0x31d   :  { %12055 = vmatmul.mubr.msk.bf16.gmra.mrb[164].mxu0 %vm1309_vm0, %v15953_v5  ;;  %v16503_v56 = vpop.f32.mrb[36].mxu1  ;;  %v14598_v5 = vld [vmem:[%s21083_s0 + $0x108] ss:$12 sps:$4 sm:$0xff]  }
 0x31e   :  { %2992 = vmatprep.mubr.bf16.mxu0 %v21453_v61  ;;  %v16505_v16 = vpop.f32.mrb[37].mxu1  ;;  %v4171_v26 = vmul.f32 0.1, %v16503_v56  ;;  %vm3779_vm15 = vcmp.ge.f32.partialorder %v16503_v56, 0.0 }
 0x31f   :  { %v16509_v15 = vpop.f32.mrb[38].mxu1  ;;  %v4172_v9 = vmul.f32 0.1, %v16505_v16  ;;  %vm3780_vm13 = vcmp.ge.f32.partialorder %v16505_v16, 0.0 }
 0x320   :  { %v2358_v60 = vpop.f32.mrb[39].mxu1  ;;  %vm3787_vm1 = vcmp.ge.f32.partialorder %v16509_v15, 0.0  ;;  %v16591_v2 = vsel %vm3779_vm15, %v16503_v56, %v4171_v26  ;;  %v14604_v26 = vld [vmem:[%s21083_s0 + $0x150] ss:$12 sps:$4 sm:$0xff]  }
 0x321   :  { %v4180_v32 = vmul.f32 0.1, %v2358_v60  ;;  %vm3788_vm14 = vcmp.ge.f32.partialorder %v2358_v60, 0.0  ;;  %v16582_v48 = vsel %vm3780_vm13, %v16505_v16, %v4172_v9  ;;  %21566 = vst [vmem:[#allocation107_spill] sm:$0xff] %v16591_v2 }
 0x322   :  { %3214 = vmatmul.mubr.bf16.gmra.mrb[144].mxu1 %v14598_v5  ;;  %v16554_v5 = vsel %vm3772_vm10, %v2348_v1, %v4164_v18  ;;  %21564 = vst [vmem:[#allocation105_spill] sm:$0xff] %v16582_v48 }
 0x323   :  { %3223 = vmatprep.mubr.bf16.mxu1 %v14599_v4  ;;  %v14601_v4 = vld [vmem:[%s21083_s0 + $0x13c] ss:$12 sps:$4 sm:$0xff]  }
 0x325   :  { %12056 = vmatmul.mubr.msk.bf16.gmra.mrb[168].mxu0 %vm1309_vm0, %v15985_v12  ;;  %v16534_v13 = vpop.f32.mrb[40].mxu1  ;;  %v4163_v12 = vmul.f32 0.1, %v16478_v3 }
 0x326   :  { %3002 = vmatprep.mubr.bf16.mxu0 %v21453_v61  ;;  %v16538_v45 = vpop.f32.mrb[41].mxu1  ;;  %vm3795_vm4 = vcmp.ge.f32.partialorder %v16534_v13, 0.0 }
 0x327   :  { %v16542_v24 = vpop.f32.mrb[42].mxu1  ;;  %v16564_v30 = vsel %vm3771_vm12, %v16478_v3, %v4163_v12  ;;  %v14602_v3 = vld [vmem:[%s21083_s0 + $0x138] ss:$12 sps:$4 sm:$0xff]   ;;  %v4188_v9 = vmul.f32 0.1, %v16538_v45  ;;  %vm3796_vm2 = vcmp.ge.f32.partialorder %v16538_v45, 0.0 }
 0x328   :  { %v2368_v46 = vpop.f32.mrb[43].mxu1  ;;  %21563 = vst [vmem:[#allocation104_spill] sm:$0xff] %v16564_v30  ;;  %vm3803_vm5 = vcmp.ge.f32.partialorder %v16542_v24, 0.0 }
 0x329   :  { %vm3804_vm3 = vcmp.ge.f32.partialorder %v2368_v46, 0.0 }
 0x32a   :  { %3224 = vmatmul.mubr.bf16.gmra.mrb[148].mxu1 %v14600_v27  ;;  %v16584_v27 = vsel %vm3788_vm14, %v2358_v60, %v4180_v32  ;;  %v4187_v32 = vmul.f32 0.1, %v16534_v13  ;;  %v16614_v60 = vsel %vm3796_vm2, %v16538_v45, %v4188_v9 }
 0x32b   :  { %3233 = vmatprep.mubr.bf16.mxu1 %v14601_v4  ;;  %v14603_v4 = vld [vmem:[%s21083_s0 + $0x154] ss:$12 sps:$4 sm:$0xff]   ;;  %21565 = vst [vmem:[#allocation106_spill] sm:$0xff] %v16584_v27  ;;  %21568 = vst [vmem:[#allocation109_spill] sm:$0xff] %v16614_v60 }
 0x32c   :  { %v16623_v27 = vsel %vm3795_vm4, %v16534_v13, %v4187_v32 }
 0x32d   :  { %12057 = vmatmul.mubr.msk.bf16.gmra.mrb[172].mxu0 %vm1309_vm0, %v16022_v53  ;;  %v2372_v47 = vpop.f32.mrb[44].mxu1  ;;  %v4179_v53 = vmul.f32 0.1, %v16509_v15 }
 0x32e   :  { %3012 = vmatprep.mubr.bf16.mxu0 %v21453_v61  ;;  %v2374_v1 = vpop.f32.mrb[45].mxu1  ;;  %vm3811_vm6 = vcmp.ge.f32.partialorder %v2372_v47, 0.0 }
 0x32f   :  { %v2376_v18 = vpop.f32.mrb[46].mxu1  ;;  %vm3812_vm7 = vcmp.ge.f32.partialorder %v2374_v1, 0.0 }
 0x330   :  { %v2378_v12 = vpop.f32.mrb[47].mxu1  ;;  %vm3819_vm8 = vcmp.ge.f32.partialorder %v2376_v18, 0.0 }
 0x331   :  { %v4212_v59 = vmul.f32 0.1, %v2378_v12  ;;  %vm3820_vm9 = vcmp.ge.f32.partialorder %v2378_v12, 0.0 }
 0x332   :  { %3234 = vmatmul.mubr.bf16.gmra.mrb[152].mxu1 %v14602_v3  ;;  %v4195_v3 = vmul.f32 0.1, %v16542_v24 }
 0x333   :  { %3243 = vmatprep.mubr.bf16.mxu1 %v14603_v4  ;;  %v16597_v4 = vsel %vm3787_vm1, %v16509_v15, %v4179_v53  ;;  %v14605_v53 = vld [vmem:[%s21083_s0 + $0x16c] ss:$12 sps:$4 sm:$0xff]   ;;  %v16641_v48 = vsel %vm3820_vm9, %v2378_v12, %v4212_v59 }
 0x334   :  { %21567 = vst [vmem:[#allocation108_spill] sm:$0xff] %v16597_v4  ;;  %v4204_v4 = vmul.f32 0.1, %v2374_v1  ;;  %21573 = vst [vmem:[#allocation114_spill] sm:$0xff] %v16641_v48 }
 0x335   :  { %12058 = vmatmul.mubr.msk.bf16.gmra.mrb[176].mxu0 %vm1309_vm0, %v16060_v17  ;;  %v16594_v30 = vpop.f32.mrb[48].mxu1  ;;  %v4196_v17 = vmul.f32 0.1, %v2368_v46 }
 0x336   :  { %3022 = vmatprep.mubr.bf16.mxu0 %v21453_v61  ;;  %v2384_v16 = vpop.f32.mrb[49].mxu1  ;;  %vm3827_vm10 = vcmp.ge.f32.partialorder %v16594_v30, 0.0 }
 0x337   :  { %v2386_v56 = vpop.f32.mrb[50].mxu1  ;;  %v16616_v2 = vsel %vm3804_vm3, %v2368_v46, %v4196_v17  ;;  %v16631_v46 = vsel %vm3803_vm5, %v16542_v24, %v4195_v3  ;;  %v16637_v17 = vsel %vm3812_vm7, %v2374_v1, %v4204_v4  ;;  %v14606_v24 = vld [vmem:[%s21083_s0 + $0x168] ss:$12 sps:$4 sm:$0xff]   ;;  %v4220_v1 = vmul.f32 0.1, %v2384_v16 }
 0x338   :  { %v2388_v15 = vpop.f32.mrb[51].mxu1  ;;  %21569 = vst [vmem:[#allocation110_spill] sm:$0xff] %v16616_v2  ;;  %21571 = vst [vmem:[#allocation112_spill] sm:$0xff] %v16637_v17  ;;  %v14607_v2 = vld [vmem:[%s21083_s0 + $0x184] ss:$12 sps:$4 sm:$0xff]   ;;  %vm3828_vm11 = vcmp.ge.f32.partialorder %v2384_v16, 0.0 }
 0x339   :  { %v4227_v12 = vmul.f32 0.1, %v2386_v56  ;;  %v4228_v4 = vmul.f32 0.1, %v2388_v15  ;;  %vm3835_vm12 = vcmp.ge.f32.partialorder %v2386_v56, 0.0  ;;  %vm3836_vm13 = vcmp.ge.f32.partialorder %v2388_v15, 0.0 }
 0x33a   :  { %3244 = vmatmul.mubr.bf16.gmra.mrb[156].mxu1 %v14604_v26  ;;  %v4203_v26 = vmul.f32 0.1, %v2372_v47 }
 0x33b   :  { %3253 = vmatprep.mubr.bf16.mxu1 %v14605_v53  ;;  %v4211_v53 = vmul.f32 0.1, %v2376_v18  ;;  %v16663_v59 = vsel %vm3835_vm12, %v2386_v56, %v4227_v12 }
 0x33c   :  { %v16635_v9 = vsel %vm3811_vm6, %v2372_v47, %v4203_v26  ;;  %v4219_v47 = vmul.f32 0.1, %v16594_v30  ;;  %21575 = vst [vmem:[#allocation116_spill] sm:$0xff] %v16663_v59 }
 0x33d   :  { %12059 = vmatmul.mubr.msk.bf16.gmra.mrb[180].mxu0 %vm1309_vm0, %v16111_v23  ;;  %v16626_v45 = vpop.f32.mrb[52].mxu1  ;;  %21570 = vst [vmem:[#allocation111_spill] sm:$0xff] %v16635_v9  ;;  %v16639_v32 = vsel %vm3819_vm8, %v2376_v18, %v4211_v53  ;;  %v16665_v18 = vsel %vm3836_vm13, %v2388_v15, %v4228_v4  ;;  %v14608_v9 = vld [vmem:[%s21083_s0 + $0x180] ss:$12 sps:$4 sm:$0xff]  }
 0x33e   :  { %3032 = vmatprep.mubr.bf16.mxu0 %v21453_v61  ;;  %v2394_v23 = vpop.f32.mrb[53].mxu1  ;;  %21572 = vst [vmem:[#allocation113_spill] sm:$0xff] %v16639_v32  ;;  %v16659_v53 = vsel %vm3827_vm10, %v16594_v30, %v4219_v47  ;;  %v14609_v30 = vld [vmem:[%s21083_s0 + $0x19c] ss:$12 sps:$4 sm:$0xff]   ;;  %vm3843_vm1 = vcmp.ge.f32.partialorder %v16626_v45, 0.0 }
 0x33f   :  { %v2396_v60 = vpop.f32.mrb[54].mxu1  ;;  %21574 = vst [vmem:[#allocation115_spill] sm:$0xff] %v16659_v53  ;;  %v4236_v56 = vmul.f32 0.1, %v2394_v23  ;;  %vm3844_vm2 = vcmp.ge.f32.partialorder %v2394_v23, 0.0 }
 0x340   :  { %v2398_v3 = vpop.f32.mrb[55].mxu1  ;;  %v4243_v47 = vmul.f32 0.1, %v2396_v60  ;;  %vm3851_vm3 = vcmp.ge.f32.partialorder %v2396_v60, 0.0 }
 0x341   :  { %vm3852_vm4 = vcmp.ge.f32.partialorder %v2398_v3, 0.0 }
 0x342   :  { %3254 = vmatmul.mubr.bf16.gmra.mrb[160].mxu1 %v14606_v24  ;;  %v16661_v24 = vsel %vm3828_vm11, %v2384_v16, %v4220_v1  ;;  %v4235_v16 = vmul.f32 0.1, %v16626_v45  ;;  %v4244_v1 = vmul.f32 0.1, %v2398_v3  ;;  %v16693_v15 = vsel %vm3851_vm3, %v2396_v60, %v4243_v47 }
 0x343   :  { %3263 = vmatprep.mubr.bf16.mxu1 %v14607_v2 }
 0x344   :  { %v16695_v53 = vsel %vm3852_vm4, %v2398_v3, %v4244_v1  ;;  %v14613_v1 = vld [vmem:[%s21083_s0 + $0x1cc] ss:$12 sps:$4 sm:$0xff]  }
 0x345   :  { %12060 = vmatmul.mubr.msk.bf16.gmra.mrb[184].mxu0 %vm1309_vm0, %v16144_v62  ;;  %v2402_v26 = vpop.f32.mrb[56].mxu1 }
 0x346   :  { %3042 = vmatprep.mubr.bf16.mxu0 %v21453_v61  ;;  %v2404_v2 = vpop.f32.mrb[57].mxu1  ;;  %v4251_v62 = vmul.f32 0.1, %v2402_v26  ;;  %vm3859_vm14 = vcmp.ge.f32.partialorder %v2402_v26, 0.0 }
 0x347   :  { %v2406_v13 = vpop.f32.mrb[58].mxu1  ;;  %v4252_v3 = vmul.f32 0.1, %v2404_v2  ;;  %vm3860_vm7 = vcmp.ge.f32.partialorder %v2404_v2, 0.0 }
 0x348   :  { %v16670_v32 = vsel %vm3859_vm14, %v2402_v26, %v4251_v62  ;;  %vm3867_vm15 = vcmp.ge.f32.partialorder %v2406_v13, 0.0  ;;  %v4259_v17 = vmul.f32 0.1, %v2406_v13  ;;  %v2408_v48 = vpop.f32.mrb[59].mxu1 }
 0x349   :  { %21576 = vst [vmem:[#allocation117_spill] sm:$0xff] %v16670_v32  ;;  %vm3868_vm8 = vcmp.ge.f32.partialorder %v2408_v48, 0.0 }
 0x34a   :  { %3264 = vmatmul.mubr.bf16.gmra.mrb[164].mxu1 %v14608_v9  ;;  %v16684_v12 = vsel %vm3867_vm15, %v2406_v13, %v4259_v17  ;;  %v16691_v9 = vsel %vm3844_vm2, %v2394_v23, %v4236_v56  ;;  %v14610_v17 = vld [vmem:[%s21083_s0 + $0x198] ss:$12 sps:$4 sm:$0xff]   ;;  %v14612_v23 = vld [vmem:[%s21083_s0 + $0x1b0] ss:$12 sps:$4 sm:$0xff]  }
 0x34b   :  { %3273 = vmatprep.mubr.bf16.mxu1 %v14609_v30  ;;  %v16689_v30 = vsel %vm3843_vm1, %v16626_v45, %v4235_v16  ;;  %v14611_v45 = vld [vmem:[%s21083_s0 + $0x1b4] ss:$12 sps:$4 sm:$0xff]   ;;  %v4260_v16 = vmul.f32 0.1, %v2408_v48 }
 0x34d   :  { %12061 = vmatmul.mubr.msk.bf16.gmra.mrb[188].mxu0 %vm1309_vm0, %v16177_v10  ;;  %v2412_v4 = vpop.f32.mrb[60].mxu1 }
 0x34e   :  { %3052 = vmatprep.mubr.bf16.mxu0 %v21453_v61  ;;  %v2414_v26 = vpop.f32.mrb[61].mxu1  ;;  %v4267_v62 = vmul.f32 0.1, %v2412_v4  ;;  %vm3875_vm5 = vcmp.ge.f32.partialorder %v2412_v4, 0.0 }
 0x34f   :  { %v2416_v13 = vpop.f32.mrb[62].mxu1  ;;  %vm3876_vm11 = vcmp.ge.f32.partialorder %v2414_v26, 0.0 }
 0x350   :  { %v16700_v59 = vsel %vm3875_vm5, %v2412_v4, %v4267_v62  ;;  %vm3883_vm6 = vcmp.ge.f32.partialorder %v2416_v13, 0.0  ;;  %v4275_v10 = vmul.f32 0.1, %v2416_v13  ;;  %v2418_v32 = vpop.f32.mrb[63].mxu1  ;;  %v16716_v62 = vsel %vm3860_vm7, %v2404_v2, %v4252_v3 }
 0x351   :  { %21577 = vst [vmem:[#allocation118_spill] sm:$0xff] %v16700_v59  ;;  %v21580_v2 = vpack.c.bf16 %v15522_v41, %v15520_v40  ;;  %v4276_v3 = vmul.f32 0.1, %v2418_v32  ;;  %vm3884_vm12 = vcmp.ge.f32.partialorder %v2418_v32, 0.0 }
 0x352   :  { %3274 = vmatmul.mubr.bf16.gmra.mrb[168].mxu1 %v14610_v17  ;;  %v16712_v56 = vsel %vm3883_vm6, %v2416_v13, %v4275_v10  ;;  %v16718_v17 = vsel %vm3868_vm8, %v2408_v48, %v4260_v16  ;;  %v14056_v48 = vld [vmem:[%s21084_s2 + $0x80] sm:$0xff]  }
 0x353   :  { %3283 = vmatprep.mubr.bf16.mxu1 %v14611_v45  ;;  %21578 = vst [vmem:[#allocation119_spill] sm:$0xff] %v16712_v56  ;;  %v16746_v41 = vsel %vm3884_vm12, %v2418_v32, %v4276_v3  ;;  %v21583_v32 = vpack.c.bf16 %v15517_v8, %v15515_v7  ;;  %v14057_v3 = vld [vmem:[%s21084_s2 + $0x88] sm:$0xff]  }
 0x355   :  { %12062 = vmatmul.mubr.msk.bf16.gmra.mrb[192].mxu0 %vm1309_vm0, %v16210_v22  ;;  %v2422_v47 = vpop.f32.mrb[64].mxu1 }
 0x356   :  { %3062 = vmatprep.mubr.bf16.mxu0 %v21453_v61  ;;  %v2424_v4 = vpop.f32.mrb[65].mxu1  ;;  %v4283_v22 = vmul.f32 0.1, %v2422_v47  ;;  %vm3891_vm9 = vcmp.ge.f32.partialorder %v2422_v47, 0.0 }
 0x357   :  { %v2426_v45 = vpop.f32.mrb[66].mxu1  ;;  %vm3892_vm15 = vcmp.ge.f32.partialorder %v2424_v4, 0.0 }
 0x358   :  { %v16723_v10 = vsel %vm3891_vm9, %v2422_v47, %v4283_v22  ;;  %vm3899_vm10 = vcmp.ge.f32.partialorder %v2426_v45, 0.0  ;;  %v4291_v13 = vmul.f32 0.1, %v2426_v45  ;;  %v2428_v60 = vpop.f32.mrb[67].mxu1 }
 0x359   :  { %21579 = vst [vmem:[#allocation120_spill] sm:$0xff] %v16723_v10  ;;  %vm3900_vm1 = vcmp.ge.f32.partialorder %v2428_v60, 0.0 }
 0x35a   :  { %3284 = vmatmul.mubr.bf16.gmra.mrb[172].mxu1 %v14612_v23  ;;  %v4268_v23 = vmul.f32 0.1, %v2414_v26  ;;  %v16735_v16 = vsel %vm3899_vm10, %v2426_v45, %v4291_v13  ;;  %v14614_v13 = vld [vmem:[%s21083_s0 + $0x1c8] ss:$12 sps:$4 sm:$0xff]  }
 0x35b   :  { %3293 = vmatprep.mubr.bf16.mxu1 %v14613_v1  ;;  %21581 = vst [vmem:[#allocation121_spill] sm:$0xff] %v16735_v16  ;;  %v14615_v16 = vld [vmem:[%s21083_s0 + $0x1e4] ss:$12 sps:$4 sm:$0xff]  }
 0x35c   :  { %v16744_v40 = vsel %vm3876_vm11, %v2414_v26, %v4268_v23  ;;  %v21584_v23 = vpack.c.bf16 %v15538_v55, %v15536_v52  ;;  %v14058_v55 = vld [vmem:[%s21084_s2 + $0x90] sm:$0xff]  }
 0x35d   :  { %12063 = vmatmul.mubr.msk.bf16.gmra.mrb[196].mxu0 %vm1309_vm0, %v16243_v6  ;;  %v2432_v47 = vpop.f32.mrb[68].mxu1 }
 0x35e   :  { %5557 = vmatprep.mubr.bf16.mxu0 %v21580_v2  ;;  %v16739_v22 = vpop.f32.mrb[69].mxu1  ;;  %v4299_v6 = vmul.f32 0.1, %v2432_v47  ;;  %vm3907_vm13 = vcmp.ge.f32.partialorder %v2432_v47, 0.0 }
 0x35f   :  { %v2436_v45 = vpop.f32.mrb[70].mxu1  ;;  %vm3908_vm4 = vcmp.ge.f32.partialorder %v16739_v22, 0.0 }
 0x360   :  { %v16751_v2 = vsel %vm3907_vm13, %v2432_v47, %v4299_v6  ;;  %vm3915_vm14 = vcmp.ge.f32.partialorder %v2436_v45, 0.0  ;;  %v4307_v1 = vmul.f32 0.1, %v2436_v45  ;;  %v16753_v10 = vpop.f32.mrb[71].mxu1  ;;  %v4284_v47 = vmul.f32 0.1, %v2424_v4 }
 0x361   :  { %21582 = vst [vmem:[#allocation122_spill] sm:$0xff] %v16751_v2  ;;  %v4292_v6 = vmul.f32 0.1, %v2428_v60  ;;  %vm3916_vm5 = vcmp.ge.f32.partialorder %v16753_v10, 0.0 }
 0x362   :  { %3294 = vmatmul.mubr.bf16.gmra.mrb[176].mxu1 %v14614_v13  ;;  %v16769_v13 = vsel %vm3915_vm14, %v2436_v45, %v4307_v1 }
 0x363   :  { %3303 = vmatprep.mubr.bf16.mxu1 %v14615_v16  ;;  %21585 = vst [vmem:[#allocation123_spill] sm:$0xff] %v16769_v13  ;;  %v16781_v1 = vsel %vm3900_vm1, %v2428_v60, %v4292_v6  ;;  %v21589_v60 = vpack.c.bf16 %v15533_v51, %v15531_v50  ;;  %v21590_v6 = vpack.c.bf16 %v15554_v21, %v15552_v20  ;;  %v4300_v50 = vmul.f32 0.1, %v16739_v22 }
 0x364   :  { %21587 = vst [vmem:[#allocation125_spill] sm:$0xff] %v16781_v1  ;;  %v4308_v51 = vmul.f32 0.1, %v16753_v10 }
 0x365   :  { %5558 = vmatmul.mubr.bf16.vlgmr.msra.gmra.mrb[200].mxu0 %v21583_v32  ;;  %v2442_v16 = vpop.f32.mrb[72].mxu1  ;;  %v14616_v32 = vld [vmem:[%s21083_s0 + $0x1e0] ss:$12 sps:$4 sm:$0xff]  }
 0x366   :  { %5565 = vmatprep.mubr.bf16.mxu0 %v21584_v23  ;;  %5758 = vmatpush1.bf16.msra.mxu0 %v14056_v48  ;;  %v16774_v8 = vpop.f32.mrb[73].mxu1  ;;  %v4315_v52 = vmul.f32 0.1, %v2442_v16  ;;  %vm3923_vm2 = vcmp.ge.f32.partialorder %v2442_v16, 0.0  ;;  %v16779_v48 = vsel %vm3892_vm15, %v2424_v4, %v4284_v47  ;;  %v14617_v4 = vld [vmem:[%s21083_s0 + $0x1fc] ss:$12 sps:$4 sm:$0xff]  }
 0x367   :  { %5759 = vmatprep.subr.bf16.mxu0 %v21453_v61  ;;  %21586 = vst [vmem:[#allocation124_spill] sm:$0xff] %v16779_v48  ;;  %v2446_v45 = vpop.f32.mrb[74].mxu1  ;;  %v14060_v47 = vld [vmem:[%s21084_s2 + $0xa0] sm:$0xff]   ;;  %vm3924_vm12 = vcmp.ge.f32.partialorder %v16774_v8, 0.0 }
 0x368   :  { %v16787_v23 = vsel %vm3923_vm2, %v2442_v16, %v4315_v52  ;;  %vm3931_vm3 = vcmp.ge.f32.partialorder %v2446_v45, 0.0  ;;  %v16789_v7 = vpop.f32.mrb[75].mxu1  ;;  %v14059_v16 = vld [vmem:[%s21084_s2 + $0x98] sm:$0xff]  }
 0x369   :  { %21588 = vst [vmem:[#allocation126_spill] sm:$0xff] %v16787_v23  ;;  %v16821_v23 = vsel %vm3908_vm4, %v16739_v22, %v4300_v50  ;;  %v14619_v22 = vld [vmem:[%s21083_s0 + $0x214] ss:$12 sps:$4 sm:$0xff]   ;;  %vm3932_vm13 = vcmp.ge.f32.partialorder %v16789_v7, 0.0 }
 0x36a   :  { %5760 = vmatpush1.bf16.msra.mxu0 %v14057_v3  ;;  %3304 = vmatmul.mubr.bf16.gmra.mrb[180].mxu1 %v14616_v32  ;;  %v4323_v3 = vmul.f32 0.1, %v2446_v45 }
 0x36b   :  { %5761 = vmatprep.subr.bf16.mxu0 %v21453_v61  ;;  %3313 = vmatprep.mubr.bf16.mxu1 %v14617_v4 }
 0x36c   :  { %v16805_v52 = vsel %vm3931_vm3, %v2446_v45, %v4323_v3 }
 0x36d   :  { %5566 = vmatmul.mubr.bf16.gmra.mrb[204].mxu0 %v21589_v60  ;;  %21591 = vst [vmem:[#allocation127_spill] sm:$0xff] %v16805_v52  ;;  %v2452_v32 = vpop.f32.mrb[76].mxu1  ;;  %v16824_v52 = vsel %vm3916_vm5, %v16753_v10, %v4308_v51  ;;  %v21594_v51 = vpack.c.bf16 %v15549_v19, %v15547_v0 }
 0x36e   :  { %5573 = vmatprep.mubr.bf16.mxu0 %v21590_v6  ;;  %5762 = vmatpush1.bf16.msra.mxu0 %v14058_v55  ;;  %v16812_v60 = vpop.f32.mrb[77].mxu1  ;;  %v4331_v45 = vmul.f32 0.1, %v2452_v32  ;;  %vm3939_vm7 = vcmp.ge.f32.partialorder %v2452_v32, 0.0 }
 0x36f   :  { %5763 = vmatprep.subr.bf16.mxu0 %v21453_v61  ;;  %v2456_v2 = vpop.f32.mrb[78].mxu1  ;;  %vm3940_vm5 = vcmp.ge.f32.partialorder %v16812_v60, 0.0 }
 0x370   :  { %v2824_v20 = vpop.f32.mrb[100].mxu0  ;;  %vm3947_vm11 = vcmp.ge.f32.partialorder %v2456_v2, 0.0  ;;  %v16829_v48 = vpop.f32.mrb[79].mxu1  ;;  %v4339_v1 = vmul.f32 0.1, %v2456_v2 }
 0x371   :  { %v4029_v21 = vmul.f32 0.1, %v2824_v20  ;;  %v2826_v55 = vpop.f32.mrb[101].mxu0  ;;  %vm3637_vm6 = vcmp.ge.f32.partialorder %v2824_v20, 0.0 }
 0x372   :  { %v4030_v3 = vmul.f32 0.1, %v2826_v55  ;;  %v2828_v6 = vpop.f32.mrb[102].mxu0  ;;  %5764 = vmatpush1.bf16.msra.mxu0 %v14059_v16  ;;  %v14618_v16 = vld [vmem:[%s21083_s0 + $0x1f8] ss:$12 sps:$4 sm:$0xff]   ;;  %vm3638_vm9 = vcmp.ge.f32.partialorder %v2826_v55, 0.0 }
 0x373   :  { %vm3645_vm8 = vcmp.ge.f32.partialorder %v2828_v6, 0.0  ;;  %v4037_v4 = vmul.f32 0.1, %v2828_v6  ;;  %v2830_v26 = vpop.f32.mrb[103].mxu0  ;;  %5765 = vmatprep.subr.bf16.mxu0 %v21453_v61  ;;  %3314 = vmatmul.mubr.bf16.gmra.mrb[184].mxu1 %v14618_v16  ;;  %v16835_v10 = vsel %vm3637_vm6, %v2824_v20, %v4029_v21  ;;  %v16844_v16 = vsel %vm3939_vm7, %v2452_v32, %v4331_v45  ;;  %v14620_v21 = vld [vmem:[%s21083_s0 + $0x210] ss:$12 sps:$4 sm:$0xff]  }
 0x374   :  { %vm3646_vm10 = vcmp.ge.f32.partialorder %v2830_v26, 0.0  ;;  %v4038_v13 = vmul.f32 0.1, %v2830_v26  ;;  %3323 = vmatprep.mubr.bf16.mxu1 %v14619_v22  ;;  %21592 = vst [vmem:[#allocation128_spill] sm:$0xff] %v16835_v10  ;;  %v21596_v20 = vpack.c.bf16 %v15576_v44, %v15574_v39  ;;  %v16859_v32 = vsel %vm3638_vm9, %v2826_v55, %v4030_v3 }
 0x375   :  { %v16838_v50 = vsel %vm3645_vm8, %v2828_v6, %v4037_v4  ;;  %5574 = vmatmul.mubr.bf16.gmra.mrb[208].mxu0 %v21594_v51  ;;  %v14061_v4 = vld [vmem:[%s21084_s2 + $0xa8] sm:$0xff]   ;;  %v2462_v0 = vpop.f32.mrb[80].mxu1  ;;  %21597 = vst [vmem:[#allocation131_spill] sm:$0xff] %v16859_v32  ;;  %v16865_v39 = vsel %vm3947_vm11, %v2456_v2, %v4339_v1  ;;  %v14062_v1 = vld [vmem:[%s21084_s2 + $0xb0] sm:$0xff]   ;;  %vm3948_vm6 = vcmp.ge.f32.partialorder %v16829_v48, 0.0 }
 0x376   :  { %21593 = vst [vmem:[#allocation129_spill] sm:$0xff] %v16838_v50  ;;  %v16848_v56 = vsel %vm3646_vm10, %v2830_v26, %v4038_v13  ;;  %5581 = vmatprep.mubr.bf16.mxu0 %v21596_v20  ;;  %5766 = vmatpush1.bf16.msra.mxu0 %v14060_v47  ;;  %v4316_v26 = vmul.f32 0.1, %v16774_v8  ;;  %v4324_v13 = vmul.f32 0.1, %v16789_v7  ;;  %v16867_v44 = vpop.f32.mrb[81].mxu1 }
 0x377   :  { %21595 = vst [vmem:[#allocation130_spill] sm:$0xff] %v16848_v56  ;;  %5767 = vmatprep.subr.bf16.mxu0 %v21453_v61  ;;  %v4347_v6 = vmul.f32 0.1, %v2462_v0  ;;  %vm3955_vm15 = vcmp.ge.f32.partialorder %v2462_v0, 0.0  ;;  %v21602_v56 = vpack.c.bf16 %v15593_v63, %v15591_v28  ;;  %v4332_v28 = vmul.f32 0.1, %v16812_v60 }
 0x378   :  { %v2834_v47 = vpop.f32.mrb[104].mxu0  ;;  %v16882_v59 = vsel %vm3924_vm12, %v16774_v8, %v4316_v26  ;;  %v16887_v55 = vsel %vm3932_vm13, %v16789_v7, %v4324_v13  ;;  %v14621_v8 = vld [vmem:[%s21083_s0 + $0x22c] ss:$12 sps:$4 sm:$0xff]   ;;  %v21600_v13 = vpack.c.bf16 %v15571_v38, %v15569_v37  ;;  %v4340_v63 = vmul.f32 0.1, %v16829_v48 }
 0x379   :  { %v4045_v45 = vmul.f32 0.1, %v2834_v47  ;;  %v2836_v3 = vpop.f32.mrb[105].mxu0  ;;  %vm3653_vm14 = vcmp.ge.f32.partialorder %v2834_v47, 0.0  ;;  %v16945_v38 = vsel %vm3940_vm5, %v16812_v60, %v4332_v28  ;;  %v21606_v28 = vpack.c.bf16 %v15588_v11, %v15586_v58 }
 0x37a   :  { %v4046_v22 = vmul.f32 0.1, %v2836_v3  ;;  %v2838_v2 = vpop.f32.mrb[106].mxu0  ;;  %5768 = vmatpush1.bf16.msra.mxu0 %v14061_v4  ;;  %v2466_v4 = vpop.f32.mrb[82].mxu1  ;;  %vm3654_vm2 = vcmp.ge.f32.partialorder %v2836_v3, 0.0  ;;  %vm3956_vm13 = vcmp.ge.f32.partialorder %v16867_v44, 0.0 }
 0x37b   :  { %vm3661_vm1 = vcmp.ge.f32.partialorder %v2838_v2, 0.0  ;;  %v4053_v51 = vmul.f32 0.1, %v2838_v2  ;;  %v2840_v20 = vpop.f32.mrb[107].mxu0  ;;  %5769 = vmatprep.subr.bf16.mxu0 %v21453_v61  ;;  %3324 = vmatmul.mubr.bf16.gmra.mrb[188].mxu1 %v14620_v21  ;;  %vm3963_vm4 = vcmp.ge.f32.partialorder %v2466_v4, 0.0  ;;  %v16892_v10 = vpop.f32.mrb[83].mxu1  ;;  %v16898_v7 = vsel %vm3653_vm14, %v2834_v47, %v4045_v45 }
 0x37c   :  { %vm3662_vm3 = vcmp.ge.f32.partialorder %v2840_v20, 0.0  ;;  %v4054_v19 = vmul.f32 0.1, %v2840_v20  ;;  %3333 = vmatprep.mubr.bf16.mxu1 %v14621_v8  ;;  %21598 = vst [vmem:[#allocation132_spill] sm:$0xff] %v16898_v7  ;;  %v16907_v21 = vsel %vm3955_vm15, %v2462_v0, %v4347_v6  ;;  %v4355_v50 = vmul.f32 0.1, %v2466_v4 }
 0x37d   :  { %v16901_v26 = vsel %vm3661_vm1, %v2838_v2, %v4053_v51  ;;  %5582 = vmatmul.mubr.bf16.gmra.mrb[212].mxu0 %v21600_v13  ;;  %v14063_v47 = vld [vmem:[%s21084_s2 + $0xb8] sm:$0xff]   ;;  %v2472_v45 = vpop.f32.mrb[84].mxu1  ;;  %v16922_v0 = vsel %vm3654_vm2, %v2836_v3, %v4046_v22  ;;  %v16950_v22 = vsel %vm3948_vm6, %v16829_v48, %v4340_v63  ;;  %v14622_v3 = vld [vmem:[%s21083_s0 + $0x228] ss:$12 sps:$4 sm:$0xff]   ;;  %vm3964_vm14 = vcmp.ge.f32.partialorder %v16892_v10, 0.0 }
 0x37e   :  { %21599 = vst [vmem:[#allocation133_spill] sm:$0xff] %v16901_v26  ;;  %v16909_v32 = vsel %vm3662_vm3, %v2840_v20, %v4054_v19  ;;  %5589 = vmatprep.mubr.bf16.mxu0 %v21602_v56  ;;  %5770 = vmatpush1.bf16.msra.mxu0 %v14062_v1  ;;  %21603 = vst [vmem:[#allocation135_spill] sm:$0xff] %v16922_v0  ;;  %v16928_v56 = vsel %vm3963_vm4, %v2466_v4, %v4355_v50  ;;  %v16930_v19 = vpop.f32.mrb[85].mxu1  ;;  %v4363_v51 = vmul.f32 0.1, %v2472_v45  ;;  %v14064_v4 = vld [vmem:[%s21084_s2 + $0xc0] sm:$0xff]  }
 0x37f   :  { %21601 = vst [vmem:[#allocation134_spill] sm:$0xff] %v16909_v32  ;;  %5771 = vmatprep.subr.bf16.mxu0 %v21453_v61  ;;  %vm3971_vm8 = vcmp.ge.f32.partialorder %v2472_v45, 0.0  ;;  %v21609_v0 = vpack.c.bf16 %v15614_v36, %v15612_v35  ;;  %v4356_v35 = vmul.f32 0.1, %v16892_v10  ;;  %vm3972_vm3 = vcmp.ge.f32.partialorder %v16930_v19, 0.0 }
 0x380   :  { %v2844_v6 = vpop.f32.mrb[108].mxu0  ;;  %v16968_v63 = vsel %vm3971_vm8, %v2472_v45, %v4363_v51 }
 0x381   :  { %v4061_v2 = vmul.f32 0.1, %v2844_v6  ;;  %v2846_v1 = vpop.f32.mrb[109].mxu0  ;;  %vm3669_vm7 = vcmp.ge.f32.partialorder %v2844_v6, 0.0  ;;  %21607 = vst [vmem:[#allocation138_spill] sm:$0xff] %v16968_v63  ;;  %v21631_v63 = vld [vmem:[#allocation10_spill] sm:$0xff] }
 0x382   :  { %v4062_v20 = vmul.f32 0.1, %v2846_v1  ;;  %v2848_v50 = vpop.f32.mrb[110].mxu0  ;;  %5772 = vmatpush1.bf16.msra.mxu0 %v14063_v47  ;;  %v2476_v47 = vpop.f32.mrb[86].mxu1  ;;  %vm3670_vm10 = vcmp.ge.f32.partialorder %v2846_v1, 0.0 }
 0x383   :  { %vm3677_vm9 = vcmp.ge.f32.partialorder %v2848_v50, 0.0  ;;  %v4069_v8 = vmul.f32 0.1, %v2848_v50  ;;  %v2850_v13 = vpop.f32.mrb[111].mxu0  ;;  %5773 = vmatprep.subr.bf16.mxu0 %v21453_v61  ;;  %3334 = vmatmul.mubr.bf16.gmra.mrb[192].mxu1 %v14622_v3  ;;  %vm3979_vm12 = vcmp.ge.f32.partialorder %v2476_v47, 0.0  ;;  %v16955_v7 = vpop.f32.mrb[87].mxu1  ;;  %v16959_v60 = vsel %vm3669_vm7, %v2844_v6, %v4061_v2 }
 0x384   :  { %vm3678_vm11 = vcmp.ge.f32.partialorder %v2850_v13, 0.0  ;;  %v4070_v37 = vmul.f32 0.1, %v2850_v13  ;;  %3343 = vmatprep.mubr.bf16.mxu1 %v21456_v25  ;;  %21604 = vst [vmem:[#allocation136_spill] sm:$0xff] %v16959_v60  ;;  %v4371_v3 = vmul.f32 0.1, %v2476_v47  ;;  %v16984_v45 = vsel %vm3670_vm10, %v2846_v1, %v4062_v20 }
 0x385   :  { %v16962_v48 = vsel %vm3677_vm9, %v2848_v50, %v4069_v8  ;;  %5590 = vmatmul.mubr.bf16.gmra.mrb[216].mxu0 %v21606_v28  ;;  %v14065_v25 = vld [vmem:[%s21084_s2 + $0xc8] sm:$0xff]   ;;  %v4348_v6 = vmul.f32 0.1, %v16867_v44  ;;  %v2482_v2 = vpop.f32.mrb[88].mxu1  ;;  %21610 = vst [vmem:[#allocation140_spill] sm:$0xff] %v16984_v45  ;;  %v17011_v1 = vsel %vm3964_vm14, %v16892_v10, %v4356_v35  ;;  %v21614_v10 = vpack.c.bf16 %v15607_v34, %v15605_v14  ;;  %v21618_v45 = vld [vmem:[#allocation5_spill] sm:$0xff] }
 0x386   :  { %21605 = vst [vmem:[#allocation137_spill] sm:$0xff] %v16962_v48  ;;  %v16970_v26 = vsel %vm3678_vm11, %v2850_v13, %v4070_v37  ;;  %5597 = vmatprep.mubr.bf16.mxu0 %v21609_v0  ;;  %5774 = vmatpush1.bf16.msra.mxu0 %v14064_v4  ;;  %v16990_v36 = vsel %vm3979_vm12, %v2476_v47, %v4371_v3  ;;  %v16992_v37 = vpop.f32.mrb[89].mxu1  ;;  %v4379_v4 = vmul.f32 0.1, %v2482_v2  ;;  %v14066_v47 = vld [vmem:[%s21084_s2 + $0xd0] sm:$0xff]   ;;  %vm3987_vm1 = vcmp.ge.f32.partialorder %v2482_v2, 0.0 }
 0x387   :  { %21608 = vst [vmem:[#allocation139_spill] sm:$0xff] %v16970_v26  ;;  %5775 = vmatprep.subr.bf16.mxu0 %v21453_v61  ;;  %21611 = vst [vmem:[#allocation141_spill] sm:$0xff] %v16990_v36  ;;  %v17005_v28 = vsel %vm3956_vm13, %v16867_v44, %v4348_v6  ;;  %v21617_v48 = vld [vmem:[#allocation6_spill] sm:$0xff]  ;;  %vm3980_vm7 = vcmp.ge.f32.partialorder %v16955_v7, 0.0  ;;  %vm3988_vm14 = vcmp.ge.f32.partialorder %v16992_v37, 0.0 }
 0x388   :  { %v2854_v0 = vpop.f32.mrb[112].mxu0  ;;  %v17027_v35 = vsel %vm3987_vm1, %v2482_v2, %v4379_v4  ;;  %v21619_v26 = vpack.c.bf16 %v21617_v48, %v21618_v45  ;;  %v254_v14 = vld [vmem:[%s21082_s1 + $0x418] sm:$0xff] }
 0x389   :  { %v4077_v20 = vmul.f32 0.1, %v2854_v0  ;;  %v2856_v50 = vpop.f32.mrb[113].mxu0  ;;  %vm3685_vm15 = vcmp.ge.f32.partialorder %v2854_v0, 0.0  ;;  %21615 = vst [vmem:[#allocation144_spill] sm:$0xff] %v17027_v35 }
 0x38a   :  { %v4078_v8 = vmul.f32 0.1, %v2856_v50  ;;  %v2858_v13 = vpop.f32.mrb[114].mxu0  ;;  %5776 = vmatpush1.bf16.msra.mxu0 %v14065_v25  ;;  %v2486_v25 = vpop.f32.mrb[90].mxu1  ;;  %vm3686_vm4 = vcmp.ge.f32.partialorder %v2856_v50, 0.0 }
 0x38b   :  { %vm3693_vm2 = vcmp.ge.f32.partialorder %v2858_v13, 0.0  ;;  %v4085_v3 = vmul.f32 0.1, %v2858_v13  ;;  %v2860_v11 = vpop.f32.mrb[115].mxu0  ;;  %5777 = vmatprep.subr.bf16.mxu0 %v21453_v61  ;;  %3344 = vmatmul.mubr.bf16.gmra.mrb[196].mxu1 %v21457_v33  ;;  %vm3995_vm6 = vcmp.ge.f32.partialorder %v2486_v25, 0.0  ;;  %v17015_v6 = vpop.f32.mrb[91].mxu1  ;;  %v17019_v51 = vsel %vm3685_vm15, %v2854_v0, %v4077_v20 }
 0x38c   :  { %vm3694_vm5 = vcmp.ge.f32.partialorder %v2860_v11, 0.0  ;;  %v4086_v44 = vmul.f32 0.1, %v2860_v11  ;;  %3384 = vmatprep.mubr.bf16.mxu1 %v21453_v61  ;;  %21612 = vst [vmem:[#allocation142_spill] sm:$0xff] %v17019_v51  ;;  %v4387_v33 = vmul.f32 0.1, %v2486_v25  ;;  %v17043_v2 = vsel %vm3686_vm4, %v2856_v50, %v4078_v8 }
 0x38d   :  { %v17021_v58 = vsel %vm3693_vm2, %v2858_v13, %v4085_v3  ;;  %5598 = vmatmul.mubr.bf16.gmra.mrb[220].mxu0 %v21614_v10  ;;  %v14067_v0 = vld [vmem:[%s21084_s2 + $0xd8] sm:$0xff]   ;;  %v4364_v20 = vmul.f32 0.1, %v16930_v19  ;;  %v2492_v13 = vpop.f32.mrb[92].mxu1  ;;  %21620 = vst [vmem:[#allocation6_spill] sm:$0xff] %v17043_v2  ;;  %v14068_v10 = vld [vmem:[%s21084_s2 + $0xe0] sm:$0xff]  }
 0x38e   :  { %21613 = vst [vmem:[#allocation143_spill] sm:$0xff] %v17021_v58  ;;  %v17029_v60 = vsel %vm3694_vm5, %v2860_v11, %v4086_v44  ;;  %5605 = vmatprep.mubr.bf16.mxu0 %v21619_v26  ;;  %5778 = vmatpush1.bf16.msra.mxu0 %v14066_v47  ;;  %v4372_v26 = vmul.f32 0.1, %v16955_v7  ;;  %v17048_v48 = vsel %vm3995_vm6, %v2486_v25, %v4387_v33  ;;  %v4395_v11 = vmul.f32 0.1, %v2492_v13  ;;  %v17050_v45 = vpop.f32.mrb[93].mxu1 }
 0x38f   :  { %21616 = vst [vmem:[#allocation145_spill] sm:$0xff] %v17029_v60  ;;  %5779 = vmatprep.subr.bf16.mxu0 %v21453_v61  ;;  %21621 = vst [vmem:[#allocation5_spill] sm:$0xff] %v17048_v48  ;;  %vm4003_vm8 = vcmp.ge.f32.partialorder %v2492_v13, 0.0  ;;  %v17063_v33 = vsel %vm3972_vm3, %v16930_v19, %v4364_v20  ;;  %v258_v19 = vld [vmem:[%s21082_s1 + $0x438] sm:$0xff]  ;;  %v2496_v2 = vpop.f32.mrb[94].mxu1  ;;  %vm3996_vm15 = vcmp.ge.f32.partialorder %v17015_v6, 0.0 }
 0x390   :  { %v2864_v4 = vpop.f32.mrb[116].mxu0  ;;  %v17069_v50 = vsel %vm3980_vm7, %v16955_v7, %v4372_v26  ;;  %v11987_v58 = vcombine.low %v254_v14, %v258_v19  ;;  %v21625_v26 = vld [vmem:[#allocation4_spill] sm:$0xff]  ;;  %v11988_v60 = vcombine.high %v254_v14, %v258_v19  ;;  %vm4011_vm13 = vcmp.ge.f32.partialorder %v2496_v2, 0.0  ;;  %v17088_v35 = vpop.f32.mrb[95].mxu1 }
 0x391   :  { %vm3701_vm9 = vcmp.ge.f32.partialorder %v2864_v4, 0.0  ;;  %v4093_v8 = vmul.f32 0.1, %v2864_v4  ;;  %v2866_v3 = vpop.f32.mrb[117].mxu0  ;;  %v4403_v32 = vmul.f32 0.1, %v2496_v2 }
 0x392   :  { %vm3702_vm10 = vcmp.ge.f32.partialorder %v2866_v3, 0.0  ;;  %v4094_v44 = vmul.f32 0.1, %v2866_v3  ;;  %v2868_v25 = vpop.f32.mrb[118].mxu0  ;;  %5780 = vmatpush1.bf16.msra.mxu0 %v14067_v0  ;;  %v17072_v0 = vsel %vm4003_vm8, %v2492_v13, %v4395_v11  ;;  %v21626_v13 = vld [vmem:[#allocation3_spill] sm:$0xff]  ;;  %v14069_v14 = vld [vmem:[%s21084_s2 + $0xe8] sm:$0xff]   ;;  %3352 = vmatprep.subr.bf16.mxu1 %v11988_v60 }
 0x393   :  { %vm3709_vm11 = vcmp.ge.f32.partialorder %v2868_v25, 0.0  ;;  %v4101_v34 = vmul.f32 0.1, %v2868_v25  ;;  %v2870_v47 = vpop.f32.mrb[119].mxu0  ;;  %5781 = vmatprep.subr.bf16.mxu0 %v21453_v61  ;;  %21622 = vst [vmem:[#allocation146_spill] sm:$0xff] %v17072_v0  ;;  %v17081_v20 = vsel %vm3701_vm9, %v2864_v4, %v4093_v8  ;;  %v21627_v11 = vpack.c.bf16 %v21625_v26, %v21626_v13  ;;  %v21630_v8 = vld [vmem:[#allocation11_spill] sm:$0xff]  ;;  %3353 = vmatpush1.bf16.msra.mxu1 %v11987_v58 }
 0x394   :  { %21623 = vst [vmem:[#allocation147_spill] sm:$0xff] %v17081_v20  ;;  %vm3710_vm12 = vcmp.ge.f32.partialorder %v2870_v47, 0.0  ;;  %v4102_v51 = vmul.f32 0.1, %v2870_v47  ;;  %v17091_v48 = vsel %vm3702_vm10, %v2866_v3, %v4094_v44  ;;  %v21632_v36 = vpack.c.bf16 %v21630_v8, %v21631_v63  ;;  %v14623_v58 = vld [vmem:[%s21083_s0 + $0x8] ss:$12 sps:$4 sm:$0xff]  }
 0x395   :  { %v17083_v7 = vsel %vm3709_vm11, %v2868_v25, %v4101_v34  ;;  %5606 = vmatmul.mubr.bf16.gmra.mrb[224].mxu0 %v21627_v11  ;;  %21628 = vst [vmem:[#allocation4_spill] sm:$0xff] %v17091_v48  ;;  %v4380_v34 = vmul.f32 0.1, %v16992_v37  ;;  %v4388_v3 = vmul.f32 0.1, %v17015_v6  ;;  %v21640_v48 = vld [vmem:[#allocation12_spill] sm:$0xff] }
 0x396   :  { %21624 = vst [vmem:[#allocation148_spill] sm:$0xff] %v17083_v7  ;;  %v17093_v4 = vsel %vm3710_vm12, %v2870_v47, %v4102_v51  ;;  %5613 = vmatprep.mubr.bf16.mxu0 %v21632_v36  ;;  %5782 = vmatpush1.bf16.msra.mxu0 %v14068_v10  ;;  %v17106_v51 = vsel %vm4011_vm13, %v2496_v2, %v4403_v32  ;;  %v14070_v2 = vld [vmem:[%s21084_s2 + $0xf0] sm:$0xff]   ;;  %v4396_v25 = vmul.f32 0.1, %v17050_v45  ;;  %vm4004_vm5 = vcmp.ge.f32.partialorder %v17050_v45, 0.0 }
 0x397   :  { %21629 = vst [vmem:[#allocation3_spill] sm:$0xff] %v17093_v4  ;;  %5783 = vmatprep.subr.bf16.mxu0 %v21453_v61  ;;  %v17120_v11 = vsel %vm3988_vm14, %v16992_v37, %v4380_v34  ;;  %v17123_v8 = vsel %vm3996_vm15, %v17015_v6, %v4388_v3  ;;  %12064 = vmatmul.mubr.msk.bf16.vlgmr.msra.gmra.mrb[100].mxu1 %vm1309_vm0, %v14623_v58  ;;  %v21636_v3 = vld [vmem:[#allocation8_spill] sm:$0xff]  ;;  %v21637_v58 = vld [vmem:[#allocation7_spill] sm:$0xff]  ;;  %v21641_v4 = vld [vmem:[#allocation9_spill] sm:$0xff]  ;;  %vm4012_vm6 = vcmp.ge.f32.partialorder %v17088_v35, 0.0 }
 0x398   :  { %v2874_v47 = vpop.f32.mrb[120].mxu0  ;;  %3394 = vmatprep.mubr.bf16.mxu1 %v21453_v61  ;;  %v21638_v44 = vpack.c.bf16 %v21636_v3, %v21637_v58  ;;  %v21642_v0 = vpack.c.bf16 %v21640_v48, %v21641_v4  ;;  %v14624_v3 = vld [vmem:[%s21083_s0 + $0x20] ss:$12 sps:$4 sm:$0xff]  }
 0x399   :  { %v4109_v10 = vmul.f32 0.1, %v2874_v47  ;;  %v2876_v19 = vpop.f32.mrb[121].mxu0  ;;  %vm3717_vm1 = vcmp.ge.f32.partialorder %v2874_v47, 0.0 }
 0x39a   :  { %vm3718_vm2 = vcmp.ge.f32.partialorder %v2876_v19, 0.0  ;;  %v4110_v32 = vmul.f32 0.1, %v2876_v19  ;;  %v2878_v60 = vpop.f32.mrb[122].mxu0  ;;  %5784 = vmatpush1.bf16.msra.mxu0 %v14069_v14  ;;  %v17130_v14 = vpop.f32.mrb[96].mxu1 }
 0x39b   :  { %vm3725_vm3 = vcmp.ge.f32.partialorder %v2878_v60, 0.0  ;;  %v4117_v26 = vmul.f32 0.1, %v2878_v60  ;;  %v2880_v13 = vpop.f32.mrb[123].mxu0  ;;  %5785 = vmatprep.subr.bf16.mxu0 %v21453_v61  ;;  %v17132_v63 = vpop.f32.mrb[97].mxu1  ;;  %v17136_v37 = vsel %vm3717_vm1, %v2874_v47, %v4109_v10 }
 0x39c   :  { %vm3726_vm4 = vcmp.ge.f32.partialorder %v2880_v13, 0.0  ;;  %v4118_v36 = vmul.f32 0.1, %v2880_v13  ;;  %21633 = vst [vmem:[#allocation11_spill] sm:$0xff] %v17136_v37  ;;  %v17139_v6 = vsel %vm3718_vm2, %v2876_v19, %v4110_v32  ;;  %v2506_v20 = vpop.f32.mrb[98].mxu1  ;;  %v21651_v37 = vld [vmem:[#allocation15_spill] sm:$0xff] }
 0x39d   :  { %21634 = vst [vmem:[#allocation10_spill] sm:$0xff] %v17139_v6  ;;  %v17141_v34 = vsel %vm3725_vm3, %v2878_v60, %v4117_v26  ;;  %5614 = vmatmul.mubr.bf16.gmra.mrb[228].mxu0 %v21638_v44  ;;  %v4404_v47 = vmul.f32 0.1, %v17088_v35  ;;  %v2507_v10 = vpop.f32.mrb[99].mxu1  ;;  %v17163_v60 = vsel %vm4004_vm5, %v17050_v45, %v4396_v25  ;;  %v21646_v25 = vld [vmem:[#allocation13_spill] sm:$0xff] }
 0x39e   :  { %21635 = vst [vmem:[#allocation149_spill] sm:$0xff] %v17141_v34  ;;  %v17147_v7 = vsel %vm3726_vm4, %v2880_v13, %v4118_v36  ;;  %5621 = vmatprep.mubr.bf16.mxu0 %v21642_v0  ;;  %5786 = vmatpush1.bf16.msra.mxu0 %v14070_v2  ;;  %v21792_v6 = vld [vmem:[#allocation73_spill] sm:$0xff] }
 0x39f   :  { %21639 = vst [vmem:[#allocation8_spill] sm:$0xff] %v17147_v7  ;;  %5787 = vmatprep.subr.bf16.mxu0 %v21453_v61  ;;  %v17166_v2 = vsel %vm4012_vm6, %v17088_v35, %v4404_v47  ;;  %12065 = vmatmul.mubr.msk.bf16.gmra.mrb[104].mxu1 %vm1309_vm0, %v14624_v3  ;;  %v21645_v35 = vld [vmem:[#allocation14_spill] sm:$0xff]  ;;  %v21650_v3 = vld [vmem:[#allocation16_spill] sm:$0xff] }
 0x3a0   :  { %v2884_v0 = vpop.f32.mrb[124].mxu0  ;;  %3404 = vmatprep.mubr.bf16.mxu1 %v21453_v61  ;;  %v21647_v47 = vpack.c.bf16 %v21645_v35, %v21646_v25  ;;  %v21652_v34 = vpack.c.bf16 %v21650_v3, %v21651_v37  ;;  %v14625_v35 = vld [vmem:[%s21083_s0 + $0x38] ss:$12 sps:$4 sm:$0xff]  }
 0x3a1   :  { %v4125_v20 = vmul.f32 0.1, %v2884_v0  ;;  %v2886_v4 = vpop.f32.mrb[125].mxu0  ;;  %vm3733_vm7 = vcmp.ge.f32.partialorder %v2884_v0, 0.0 }
 0x3a2   :  { %v4126_v36 = vmul.f32 0.1, %v2886_v4  ;;  %v2888_v44 = vpop.f32.mrb[126].mxu0  ;;  %vm3734_vm8 = vcmp.ge.f32.partialorder %v2886_v4, 0.0 }
 0x3a3   :  { %vm3741_vm9 = vcmp.ge.f32.partialorder %v2888_v44, 0.0  ;;  %v4133_v26 = vmul.f32 0.1, %v2888_v44  ;;  %v2890_v13 = vpop.f32.mrb[127].mxu0  ;;  %v17173_v10 = vsel %vm3733_vm7, %v2884_v0, %v4125_v20  ;;  %v14071_v0 = vld [vmem:[%s21084_s2 + $0xf8] sm:$0xff]   ;;  %v21656_v20 = vld [vmem:[#allocation17_spill] sm:$0xff] }
 0x3a4   :  { %vm3742_vm10 = vcmp.ge.f32.partialorder %v2890_v13, 0.0  ;;  %v4134_v58 = vmul.f32 0.1, %v2890_v13  ;;  %21643 = vst [vmem:[#allocation7_spill] sm:$0xff] %v17173_v10  ;;  %v17182_v48 = vsel %vm3734_vm8, %v2886_v4, %v4126_v36  ;;  %5788 = vmatpush1.bf16.msra.mxu0 %v14071_v0  ;;  %v21655_v0 = vld [vmem:[#allocation18_spill] sm:$0xff] }
 0x3a5   :  { %v17175_v45 = vsel %vm3741_vm9, %v2888_v44, %v4133_v26  ;;  %5622 = vmatmul.mubr.bf16.gmra.mrb[232].mxu0 %v21647_v47  ;;  %21648 = vst [vmem:[#allocation9_spill] sm:$0xff] %v17182_v48  ;;  %5989 = vmatprep.subr.bf16.mxu0 %v21453_v61  ;;  %v21657_v44 = vpack.c.bf16 %v21655_v0, %v21656_v20  ;;  %v21661_v48 = vld [vmem:[#allocation19_spill] sm:$0xff]  ;;  %v21666_v0 = vld [vmem:[#allocation21_spill] sm:$0xff] }
 0x3a6   :  { %21644 = vst [vmem:[#allocation12_spill] sm:$0xff] %v17175_v45  ;;  %v17184_v19 = vsel %vm3742_vm10, %v2890_v13, %v4134_v58  ;;  %5629 = vmatprep.mubr.bf16.mxu0 %v21652_v34  ;;  %v21660_v45 = vld [vmem:[#allocation20_spill] sm:$0xff] }
 0x3a7   :  { %21649 = vst [vmem:[#allocation14_spill] sm:$0xff] %v17184_v19  ;;  %12066 = vmatmul.mubr.msk.bf16.gmra.mrb[108].mxu1 %vm1309_vm0, %v14625_v35  ;;  %v21662_v19 = vpack.c.bf16 %v21660_v45, %v21661_v48 }
 0x3a8   :  { %v2894_v26 = vpop.f32.mrb[128].mxu0  ;;  %3414 = vmatprep.mubr.bf16.mxu1 %v21453_v61 }
 0x3a9   :  { %v4141_v4 = vmul.f32 0.1, %v2894_v26  ;;  %v2896_v36 = vpop.f32.mrb[129].mxu0  ;;  %vm3749_vm11 = vcmp.ge.f32.partialorder %v2894_v26, 0.0 }
 0x3aa   :  { %v4142_v13 = vmul.f32 0.1, %v2896_v36  ;;  %v2898_v37 = vpop.f32.mrb[130].mxu0  ;;  %vm3750_vm12 = vcmp.ge.f32.partialorder %v2896_v36, 0.0 }
 0x3ab   :  { %vm3757_vm13 = vcmp.ge.f32.partialorder %v2898_v37, 0.0  ;;  %v4149_v34 = vmul.f32 0.1, %v2898_v37  ;;  %v2900_v58 = vpop.f32.mrb[131].mxu0  ;;  %v17202_v47 = vsel %vm3749_vm11, %v2894_v26, %v4141_v4 }
 0x3ac   :  { %vm3758_vm14 = vcmp.ge.f32.partialorder %v2900_v58, 0.0  ;;  %v4150_v25 = vmul.f32 0.1, %v2900_v58  ;;  %21653 = vst [vmem:[#allocation13_spill] sm:$0xff] %v17202_v47  ;;  %v17209_v32 = vsel %vm3750_vm12, %v2896_v36, %v4142_v13 }
 0x3ad   :  { %v17204_v3 = vsel %vm3757_vm13, %v2898_v37, %v4149_v34  ;;  %5630 = vmatmul.mubr.bf16.gmra.mrb[236].mxu0 %v21657_v44  ;;  %21658 = vst [vmem:[#allocation15_spill] sm:$0xff] %v17209_v32  ;;  %v21671_v32 = vld [vmem:[#allocation25_spill] sm:$0xff] }
 0x3ae   :  { %21654 = vst [vmem:[#allocation16_spill] sm:$0xff] %v17204_v3  ;;  %v17211_v10 = vsel %vm3758_vm14, %v2900_v58, %v4150_v25  ;;  %5637 = vmatprep.mubr.bf16.mxu0 %v21662_v19  ;;  %v14626_v19 = vld [vmem:[%s21083_s0 + $0x50] ss:$12 sps:$4 sm:$0xff]  }
 0x3af   :  { %21659 = vst [vmem:[#allocation18_spill] sm:$0xff] %v17211_v10  ;;  %12067 = vmatmul.mubr.msk.bf16.gmra.mrb[112].mxu1 %vm1309_vm0, %v14626_v19  ;;  %v21665_v25 = vld [vmem:[#allocation22_spill] sm:$0xff] }
 0x3b0   :  { %v2904_v4 = vpop.f32.mrb[132].mxu0  ;;  %3424 = vmatprep.mubr.bf16.mxu1 %v21453_v61  ;;  %v21667_v35 = vpack.c.bf16 %v21665_v25, %v21666_v0  ;;  %v21670_v3 = vld [vmem:[#allocation26_spill] sm:$0xff]  ;;  %v21676_v0 = vld [vmem:[#allocation23_spill] sm:$0xff] }
 0x3b1   :  { %v4157_v37 = vmul.f32 0.1, %v2904_v4  ;;  %v2906_v34 = vpop.f32.mrb[133].mxu0  ;;  %vm3765_vm15 = vcmp.ge.f32.partialorder %v2904_v4, 0.0  ;;  %v21672_v10 = vpack.c.bf16 %v21670_v3, %v21671_v32  ;;  %v14627_v32 = vld [vmem:[%s21083_s0 + $0x68] ss:$12 sps:$4 sm:$0xff]  }
 0x3b2   :  { %v4158_v20 = vmul.f32 0.1, %v2906_v34  ;;  %v2908_v44 = vpop.f32.mrb[134].mxu0  ;;  %vm3766_vm1 = vcmp.ge.f32.partialorder %v2906_v34, 0.0 }
 0x3b3   :  { %vm3773_vm2 = vcmp.ge.f32.partialorder %v2908_v44, 0.0  ;;  %v4165_v36 = vmul.f32 0.1, %v2908_v44  ;;  %v2910_v13 = vpop.f32.mrb[135].mxu0  ;;  %v17225_v45 = vsel %vm3765_vm15, %v2904_v4, %v4157_v37 }
 0x3b4   :  { %vm3774_vm3 = vcmp.ge.f32.partialorder %v2910_v13, 0.0  ;;  %v4166_v48 = vmul.f32 0.1, %v2910_v13  ;;  %21663 = vst [vmem:[#allocation17_spill] sm:$0xff] %v17225_v45  ;;  %v17232_v26 = vsel %vm3766_vm1, %v2906_v34, %v4158_v20 }
 0x3b5   :  { %v17227_v58 = vsel %vm3773_vm2, %v2908_v44, %v4165_v36  ;;  %5638 = vmatmul.mubr.bf16.gmra.mrb[240].mxu0 %v21667_v35  ;;  %21668 = vst [vmem:[#allocation19_spill] sm:$0xff] %v17232_v26  ;;  %v21681_v26 = vld [vmem:[#allocation29_spill] sm:$0xff] }
 0x3b6   :  { %21664 = vst [vmem:[#allocation20_spill] sm:$0xff] %v17227_v58  ;;  %v17234_v47 = vsel %vm3774_vm3, %v2910_v13, %v4166_v48  ;;  %5645 = vmatprep.mubr.bf16.mxu0 %v21672_v10  ;;  %v21675_v48 = vld [vmem:[#allocation24_spill] sm:$0xff]  ;;  %v21680_v58 = vld [vmem:[#allocation30_spill] sm:$0xff] }
 0x3b7   :  { %21669 = vst [vmem:[#allocation22_spill] sm:$0xff] %v17234_v47  ;;  %12068 = vmatmul.mubr.msk.bf16.gmra.mrb[116].mxu1 %vm1309_vm0, %v14627_v32  ;;  %v21677_v19 = vpack.c.bf16 %v21675_v48, %v21676_v0  ;;  %v21682_v47 = vpack.c.bf16 %v21680_v58, %v21681_v26  ;;  %v21686_v0 = vld [vmem:[#allocation27_spill] sm:$0xff] }
 0x3b8   :  { %v2914_v37 = vpop.f32.mrb[136].mxu0  ;;  %3434 = vmatprep.mubr.bf16.mxu1 %v21453_v61 }
 0x3b9   :  { %v4173_v44 = vmul.f32 0.1, %v2914_v37  ;;  %v2916_v36 = vpop.f32.mrb[137].mxu0  ;;  %vm3781_vm4 = vcmp.ge.f32.partialorder %v2914_v37, 0.0 }
 0x3ba   :  { %v4174_v25 = vmul.f32 0.1, %v2916_v36  ;;  %v2918_v35 = vpop.f32.mrb[138].mxu0  ;;  %vm3782_vm5 = vcmp.ge.f32.partialorder %v2916_v36, 0.0 }
 0x3bb   :  { %vm3789_vm6 = vcmp.ge.f32.partialorder %v2918_v35, 0.0  ;;  %v4181_v34 = vmul.f32 0.1, %v2918_v35  ;;  %v2920_v20 = vpop.f32.mrb[139].mxu0  ;;  %v17248_v3 = vsel %vm3781_vm4, %v2914_v37, %v4173_v44 }
 0x3bc   :  { %vm3790_vm7 = vcmp.ge.f32.partialorder %v2920_v20, 0.0  ;;  %v4182_v10 = vmul.f32 0.1, %v2920_v20  ;;  %21673 = vst [vmem:[#allocation21_spill] sm:$0xff] %v17248_v3  ;;  %v17255_v4 = vsel %vm3782_vm5, %v2916_v36, %v4174_v25 }
 0x3bd   :  { %v17250_v13 = vsel %vm3789_vm6, %v2918_v35, %v4181_v34  ;;  %5646 = vmatmul.mubr.bf16.gmra.mrb[244].mxu0 %v21677_v19  ;;  %21678 = vst [vmem:[#allocation25_spill] sm:$0xff] %v17255_v4  ;;  %v21691_v4 = vld [vmem:[#allocation33_spill] sm:$0xff] }
 0x3be   :  { %21674 = vst [vmem:[#allocation26_spill] sm:$0xff] %v17250_v13  ;;  %v17257_v45 = vsel %vm3790_vm7, %v2920_v20, %v4182_v10  ;;  %5653 = vmatprep.mubr.bf16.mxu0 %v21682_v47  ;;  %v14628_v47 = vld [vmem:[%s21083_s0 + $0x80] ss:$12 sps:$4 sm:$0xff]   ;;  %v21690_v13 = vld [vmem:[#allocation34_spill] sm:$0xff] }
 0x3bf   :  { %21679 = vst [vmem:[#allocation24_spill] sm:$0xff] %v17257_v45  ;;  %12069 = vmatmul.mubr.msk.bf16.gmra.mrb[120].mxu1 %vm1309_vm0, %v14628_v47  ;;  %v21685_v10 = vld [vmem:[#allocation28_spill] sm:$0xff]  ;;  %v21692_v45 = vpack.c.bf16 %v21690_v13, %v21691_v4 }
 0x3c0   :  { %v2924_v44 = vpop.f32.mrb[140].mxu0  ;;  %3444 = vmatprep.mubr.bf16.mxu1 %v21453_v61  ;;  %v21687_v32 = vpack.c.bf16 %v21685_v10, %v21686_v0  ;;  %v21696_v0 = vld [vmem:[#allocation31_spill] sm:$0xff] }
 0x3c1   :  { %v4189_v35 = vmul.f32 0.1, %v2924_v44  ;;  %v2926_v34 = vpop.f32.mrb[141].mxu0  ;;  %vm3797_vm8 = vcmp.ge.f32.partialorder %v2924_v44, 0.0 }
 0x3c2   :  { %v4190_v48 = vmul.f32 0.1, %v2926_v34  ;;  %v2928_v19 = vpop.f32.mrb[142].mxu0  ;;  %vm3798_vm9 = vcmp.ge.f32.partialorder %v2926_v34, 0.0 }
 0x3c3   :  { %vm3805_vm10 = vcmp.ge.f32.partialorder %v2928_v19, 0.0  ;;  %v4197_v36 = vmul.f32 0.1, %v2928_v19  ;;  %v2930_v25 = vpop.f32.mrb[143].mxu0  ;;  %v17271_v58 = vsel %vm3797_vm8, %v2924_v44, %v4189_v35 }
 0x3c4   :  { %vm3806_vm11 = vcmp.ge.f32.partialorder %v2930_v25, 0.0  ;;  %v4198_v26 = vmul.f32 0.1, %v2930_v25  ;;  %21683 = vst [vmem:[#allocation23_spill] sm:$0xff] %v17271_v58  ;;  %v17278_v37 = vsel %vm3798_vm9, %v2926_v34, %v4190_v48 }
 0x3c5   :  { %v17273_v20 = vsel %vm3805_vm10, %v2928_v19, %v4197_v36  ;;  %5654 = vmatmul.mubr.bf16.gmra.mrb[248].mxu0 %v21687_v32  ;;  %21688 = vst [vmem:[#allocation29_spill] sm:$0xff] %v17278_v37  ;;  %v21701_v37 = vld [vmem:[#allocation37_spill] sm:$0xff] }
 0x3c6   :  { %21684 = vst [vmem:[#allocation30_spill] sm:$0xff] %v17273_v20  ;;  %v17280_v3 = vsel %vm3806_vm11, %v2930_v25, %v4198_v26  ;;  %5661 = vmatprep.mubr.bf16.mxu0 %v21692_v45  ;;  %v14629_v45 = vld [vmem:[%s21083_s0 + $0x98] ss:$12 sps:$4 sm:$0xff]   ;;  %v21695_v26 = vld [vmem:[#allocation32_spill] sm:$0xff] }
 0x3c7   :  { %21689 = vst [vmem:[#allocation28_spill] sm:$0xff] %v17280_v3  ;;  %12070 = vmatmul.mubr.msk.bf16.gmra.mrb[124].mxu1 %vm1309_vm0, %v14629_v45  ;;  %v21697_v47 = vpack.c.bf16 %v21695_v26, %v21696_v0  ;;  %v21700_v20 = vld [vmem:[#allocation38_spill] sm:$0xff]  ;;  %v21706_v0 = vld [vmem:[#allocation35_spill] sm:$0xff] }
 0x3c8   :  { %v2934_v35 = vpop.f32.mrb[144].mxu0  ;;  %3454 = vmatprep.mubr.bf16.mxu1 %v21453_v61  ;;  %v21702_v3 = vpack.c.bf16 %v21700_v20, %v21701_v37 }
 0x3c9   :  { %v4205_v19 = vmul.f32 0.1, %v2934_v35  ;;  %v2936_v36 = vpop.f32.mrb[145].mxu0  ;;  %vm3813_vm12 = vcmp.ge.f32.partialorder %v2934_v35, 0.0 }
 0x3ca   :  { %v4206_v10 = vmul.f32 0.1, %v2936_v36  ;;  %v2938_v32 = vpop.f32.mrb[146].mxu0  ;;  %vm3814_vm13 = vcmp.ge.f32.partialorder %v2936_v36, 0.0 }
 0x3cb   :  { %vm3821_vm14 = vcmp.ge.f32.partialorder %v2938_v32, 0.0  ;;  %v4213_v34 = vmul.f32 0.1, %v2938_v32  ;;  %v2940_v48 = vpop.f32.mrb[147].mxu0  ;;  %v17294_v13 = vsel %vm3813_vm12, %v2934_v35, %v4205_v19 }
 0x3cc   :  { %vm3822_vm15 = vcmp.ge.f32.partialorder %v2940_v48, 0.0  ;;  %v4214_v4 = vmul.f32 0.1, %v2940_v48  ;;  %21693 = vst [vmem:[#allocation27_spill] sm:$0xff] %v17294_v13  ;;  %v17301_v44 = vsel %vm3814_vm13, %v2936_v36, %v4206_v10 }
 0x3cd   :  { %v17296_v25 = vsel %vm3821_vm14, %v2938_v32, %v4213_v34  ;;  %5662 = vmatmul.mubr.bf16.gmra.mrb[252].mxu0 %v21697_v47  ;;  %21698 = vst [vmem:[#allocation33_spill] sm:$0xff] %v17301_v44  ;;  %v21711_v44 = vld [vmem:[#allocation41_spill] sm:$0xff] }
 0x3ce   :  { %21694 = vst [vmem:[#allocation34_spill] sm:$0xff] %v17296_v25  ;;  %v17303_v58 = vsel %vm3822_vm15, %v2940_v48, %v4214_v4  ;;  %5669 = vmatprep.mubr.bf16.mxu0 %v21702_v3  ;;  %v14630_v3 = vld [vmem:[%s21083_s0 + $0xb0] ss:$12 sps:$4 sm:$0xff]   ;;  %v21705_v4 = vld [vmem:[#allocation36_spill] sm:$0xff] }
 0x3cf   :  { %21699 = vst [vmem:[#allocation32_spill] sm:$0xff] %v17303_v58  ;;  %12071 = vmatmul.mubr.msk.bf16.gmra.mrb[128].mxu1 %vm1309_vm0, %v14630_v3  ;;  %v21707_v45 = vpack.c.bf16 %v21705_v4, %v21706_v0  ;;  %v21710_v25 = vld [vmem:[#allocation42_spill] sm:$0xff]  ;;  %v21716_v0 = vld [vmem:[#allocation39_spill] sm:$0xff] }
 0x3d0   :  { %v2944_v19 = vpop.f32.mrb[148].mxu0  ;;  %3464 = vmatprep.mubr.bf16.mxu1 %v21453_v61  ;;  %v21712_v58 = vpack.c.bf16 %v21710_v25, %v21711_v44 }
 0x3d1   :  { %v4221_v32 = vmul.f32 0.1, %v2944_v19  ;;  %v2946_v34 = vpop.f32.mrb[149].mxu0  ;;  %vm3829_vm1 = vcmp.ge.f32.partialorder %v2944_v19, 0.0 }
 0x3d2   :  { %v4222_v26 = vmul.f32 0.1, %v2946_v34  ;;  %v2948_v47 = vpop.f32.mrb[150].mxu0  ;;  %vm3830_vm2 = vcmp.ge.f32.partialorder %v2946_v34, 0.0 }
 0x3d3   :  { %vm3837_vm3 = vcmp.ge.f32.partialorder %v2948_v47, 0.0  ;;  %v4229_v36 = vmul.f32 0.1, %v2948_v47  ;;  %v2950_v10 = vpop.f32.mrb[151].mxu0  ;;  %v17317_v20 = vsel %vm3829_vm1, %v2944_v19, %v4221_v32 }
 0x3d4   :  { %vm3838_vm4 = vcmp.ge.f32.partialorder %v2950_v10, 0.0  ;;  %v4230_v37 = vmul.f32 0.1, %v2950_v10  ;;  %21703 = vst [vmem:[#allocation31_spill] sm:$0xff] %v17317_v20  ;;  %v17324_v35 = vsel %vm3830_vm2, %v2946_v34, %v4222_v26 }
 0x3d5   :  { %v17319_v48 = vsel %vm3837_vm3, %v2948_v47, %v4229_v36  ;;  %5670 = vmatmul.mubr.bf16.gmra.mrb[0].mxu0 %v21707_v45  ;;  %21708 = vst [vmem:[#allocation37_spill] sm:$0xff] %v17324_v35  ;;  %v21721_v35 = vld [vmem:[#allocation45_spill] sm:$0xff] }
 0x3d6   :  { %21704 = vst [vmem:[#allocation38_spill] sm:$0xff] %v17319_v48  ;;  %v17326_v13 = vsel %vm3838_vm4, %v2950_v10, %v4230_v37  ;;  %5677 = vmatprep.mubr.bf16.mxu0 %v21712_v58  ;;  %v14631_v58 = vld [vmem:[%s21083_s0 + $0xc8] ss:$12 sps:$4 sm:$0xff]   ;;  %v21720_v48 = vld [vmem:[#allocation46_spill] sm:$0xff] }
 0x3d7   :  { %21709 = vst [vmem:[#allocation36_spill] sm:$0xff] %v17326_v13  ;;  %12072 = vmatmul.mubr.msk.bf16.gmra.mrb[132].mxu1 %vm1309_vm0, %v14631_v58  ;;  %v21715_v37 = vld [vmem:[#allocation40_spill] sm:$0xff]  ;;  %v21722_v13 = vpack.c.bf16 %v21720_v48, %v21721_v35 }
 0x3d8   :  { %v2954_v32 = vpop.f32.mrb[152].mxu0  ;;  %3474 = vmatprep.mubr.bf16.mxu1 %v21453_v61  ;;  %v21717_v3 = vpack.c.bf16 %v21715_v37, %v21716_v0  ;;  %v21726_v0 = vld [vmem:[#allocation43_spill] sm:$0xff] }
 0x3d9   :  { %v4237_v47 = vmul.f32 0.1, %v2954_v32  ;;  %v2956_v36 = vpop.f32.mrb[153].mxu0  ;;  %vm3845_vm5 = vcmp.ge.f32.partialorder %v2954_v32, 0.0 }
 0x3da   :  { %v4238_v4 = vmul.f32 0.1, %v2956_v36  ;;  %v2958_v45 = vpop.f32.mrb[154].mxu0  ;;  %vm3846_vm6 = vcmp.ge.f32.partialorder %v2956_v36, 0.0 }
 0x3db   :  { %vm3853_vm7 = vcmp.ge.f32.partialorder %v2958_v45, 0.0  ;;  %v4245_v34 = vmul.f32 0.1, %v2958_v45  ;;  %v2960_v26 = vpop.f32.mrb[155].mxu0  ;;  %v17340_v25 = vsel %vm3845_vm5, %v2954_v32, %v4237_v47 }
 0x3dc   :  { %vm3854_vm8 = vcmp.ge.f32.partialorder %v2960_v26, 0.0  ;;  %v4246_v44 = vmul.f32 0.1, %v2960_v26  ;;  %21713 = vst [vmem:[#allocation35_spill] sm:$0xff] %v17340_v25  ;;  %v17347_v19 = vsel %vm3846_vm6, %v2956_v36, %v4238_v4 }
 0x3dd   :  { %v17342_v10 = vsel %vm3853_vm7, %v2958_v45, %v4245_v34  ;;  %5678 = vmatmul.mubr.bf16.gmra.mrb[4].mxu0 %v21717_v3  ;;  %21718 = vst [vmem:[#allocation41_spill] sm:$0xff] %v17347_v19  ;;  %v21731_v19 = vld [vmem:[#allocation49_spill] sm:$0xff] }
 0x3de   :  { %21714 = vst [vmem:[#allocation42_spill] sm:$0xff] %v17342_v10  ;;  %v17349_v20 = vsel %vm3854_vm8, %v2960_v26, %v4246_v44  ;;  %5685 = vmatprep.mubr.bf16.mxu0 %v21722_v13  ;;  %v14632_v13 = vld [vmem:[%s21083_s0 + $0xe0] ss:$12 sps:$4 sm:$0xff]  }
 0x3df   :  { %21719 = vst [vmem:[#allocation40_spill] sm:$0xff] %v17349_v20  ;;  %12073 = vmatmul.mubr.msk.bf16.gmra.mrb[136].mxu1 %vm1309_vm0, %v14632_v13  ;;  %v21725_v44 = vld [vmem:[#allocation44_spill] sm:$0xff]  ;;  %v21730_v13 = vld [vmem:[#allocation50_spill] sm:$0xff] }
 0x3e0   :  { %v2964_v47 = vpop.f32.mrb[156].mxu0  ;;  %3484 = vmatprep.mubr.bf16.mxu1 %v21453_v61  ;;  %v21727_v58 = vpack.c.bf16 %v21725_v44, %v21726_v0  ;;  %v21732_v20 = vpack.c.bf16 %v21730_v13, %v21731_v19  ;;  %v21735_v0 = vld [vmem:[#allocation48_spill] sm:$0xff]  ;;  %v21736_v13 = vld [vmem:[#allocation47_spill] sm:$0xff] }
 0x3e1   :  { %v4253_v45 = vmul.f32 0.1, %v2964_v47  ;;  %v2966_v34 = vpop.f32.mrb[157].mxu0  ;;  %vm3861_vm9 = vcmp.ge.f32.partialorder %v2964_v47, 0.0  ;;  %v21737_v25 = vpack.c.bf16 %v21735_v0, %v21736_v13  ;;  %v21745_v13 = vld [vmem:[#allocation52_spill] sm:$0xff] }
 0x3e2   :  { %v4254_v37 = vmul.f32 0.1, %v2966_v34  ;;  %v2968_v3 = vpop.f32.mrb[158].mxu0  ;;  %vm3862_vm10 = vcmp.ge.f32.partialorder %v2966_v34, 0.0 }
 0x3e3   :  { %vm3869_vm11 = vcmp.ge.f32.partialorder %v2968_v3, 0.0  ;;  %v4261_v36 = vmul.f32 0.1, %v2968_v3  ;;  %v2970_v4 = vpop.f32.mrb[159].mxu0  ;;  %v17363_v48 = vsel %vm3861_vm9, %v2964_v47, %v4253_v45 }
 0x3e4   :  { %vm3870_vm12 = vcmp.ge.f32.partialorder %v2970_v4, 0.0  ;;  %v4262_v35 = vmul.f32 0.1, %v2970_v4  ;;  %21723 = vst [vmem:[#allocation39_spill] sm:$0xff] %v17363_v48  ;;  %v17370_v32 = vsel %vm3862_vm10, %v2966_v34, %v4254_v37 }
 0x3e5   :  { %v17365_v26 = vsel %vm3869_vm11, %v2968_v3, %v4261_v36  ;;  %5686 = vmatmul.mubr.bf16.gmra.mrb[8].mxu0 %v21727_v58  ;;  %21728 = vst [vmem:[#allocation45_spill] sm:$0xff] %v17370_v32  ;;  %v21741_v32 = vld [vmem:[#allocation53_spill] sm:$0xff] }
 0x3e6   :  { %21724 = vst [vmem:[#allocation46_spill] sm:$0xff] %v17365_v26  ;;  %v17374_v10 = vsel %vm3870_vm12, %v2970_v4, %v4262_v35  ;;  %5693 = vmatprep.mubr.bf16.mxu0 %v21732_v20  ;;  %v14633_v4 = vld [vmem:[%s21083_s0 + $0xf8] ss:$12 sps:$4 sm:$0xff]  }
 0x3e7   :  { %21729 = vst [vmem:[#allocation44_spill] sm:$0xff] %v17374_v10  ;;  %12074 = vmatmul.mubr.msk.bf16.gmra.mrb[140].mxu1 %vm1309_vm0, %v14633_v4  ;;  %v21740_v4 = vld [vmem:[#allocation54_spill] sm:$0xff] }
 0x3e8   :  { %v2974_v45 = vpop.f32.mrb[160].mxu0  ;;  %3494 = vmatprep.mubr.bf16.mxu1 %v21453_v61  ;;  %v21742_v10 = vpack.c.bf16 %v21740_v4, %v21741_v32  ;;  %v21746_v4 = vld [vmem:[#allocation51_spill] sm:$0xff] }
 0x3e9   :  { %v4269_v3 = vmul.f32 0.1, %v2974_v45  ;;  %v2976_v36 = vpop.f32.mrb[161].mxu0  ;;  %vm3877_vm13 = vcmp.ge.f32.partialorder %v2974_v45, 0.0  ;;  %v21747_v48 = vpack.c.bf16 %v21745_v13, %v21746_v4  ;;  %v21755_v4 = vld [vmem:[#allocation56_spill] sm:$0xff] }
 0x3ea   :  { %v4270_v44 = vmul.f32 0.1, %v2976_v36  ;;  %v2978_v58 = vpop.f32.mrb[162].mxu0  ;;  %vm3878_vm14 = vcmp.ge.f32.partialorder %v2976_v36, 0.0 }
 0x3eb   :  { %vm3885_vm15 = vcmp.ge.f32.partialorder %v2978_v58, 0.0  ;;  %v4277_v34 = vmul.f32 0.1, %v2978_v58  ;;  %v2980_v37 = vpop.f32.mrb[163].mxu0  ;;  %v17386_v19 = vsel %vm3877_vm13, %v2974_v45, %v4269_v3 }
 0x3ec   :  { %vm3886_vm1 = vcmp.ge.f32.partialorder %v2980_v37, 0.0  ;;  %v4278_v20 = vmul.f32 0.1, %v2980_v37  ;;  %21733 = vst [vmem:[#allocation43_spill] sm:$0xff] %v17386_v19  ;;  %v17393_v47 = vsel %vm3878_vm14, %v2976_v36, %v4270_v44 }
 0x3ed   :  { %v17388_v35 = vsel %vm3885_vm15, %v2978_v58, %v4277_v34  ;;  %5694 = vmatmul.mubr.bf16.gmra.mrb[12].mxu0 %v21737_v25  ;;  %21738 = vst [vmem:[#allocation49_spill] sm:$0xff] %v17393_v47  ;;  %v21751_v47 = vld [vmem:[#allocation57_spill] sm:$0xff] }
 0x3ee   :  { %21734 = vst [vmem:[#allocation50_spill] sm:$0xff] %v17388_v35  ;;  %v17397_v26 = vsel %vm3886_vm1, %v2980_v37, %v4278_v20  ;;  %5701 = vmatprep.mubr.bf16.mxu0 %v21742_v10  ;;  %v14634_v37 = vld [vmem:[%s21083_s0 + $0x110] ss:$12 sps:$4 sm:$0xff]  }
 0x3ef   :  { %21739 = vst [vmem:[#allocation48_spill] sm:$0xff] %v17397_v26  ;;  %12075 = vmatmul.mubr.msk.bf16.gmra.mrb[144].mxu1 %vm1309_vm0, %v14634_v37  ;;  %v21750_v37 = vld [vmem:[#allocation58_spill] sm:$0xff] }
 0x3f0   :  { %v2984_v3 = vpop.f32.mrb[164].mxu0  ;;  %3504 = vmatprep.mubr.bf16.mxu1 %v21453_v61  ;;  %v21752_v26 = vpack.c.bf16 %v21750_v37, %v21751_v47  ;;  %v21756_v37 = vld [vmem:[#allocation55_spill] sm:$0xff] }
 0x3f1   :  { %v4285_v58 = vmul.f32 0.1, %v2984_v3  ;;  %v2986_v34 = vpop.f32.mrb[165].mxu0  ;;  %vm3893_vm2 = vcmp.ge.f32.partialorder %v2984_v3, 0.0  ;;  %v21757_v19 = vpack.c.bf16 %v21755_v4, %v21756_v37  ;;  %v21765_v37 = vld [vmem:[#allocation60_spill] sm:$0xff] }
 0x3f2   :  { %v4286_v0 = vmul.f32 0.1, %v2986_v34  ;;  %v2988_v25 = vpop.f32.mrb[166].mxu0  ;;  %vm3894_vm3 = vcmp.ge.f32.partialorder %v2986_v34, 0.0 }
 0x3f3   :  { %vm3901_vm4 = vcmp.ge.f32.partialorder %v2988_v25, 0.0  ;;  %v4293_v36 = vmul.f32 0.1, %v2988_v25  ;;  %v2990_v44 = vpop.f32.mrb[167].mxu0  ;;  %v17409_v32 = vsel %vm3893_vm2, %v2984_v3, %v4285_v58 }
 0x3f4   :  { %vm3902_vm5 = vcmp.ge.f32.partialorder %v2990_v44, 0.0  ;;  %v4294_v10 = vmul.f32 0.1, %v2990_v44  ;;  %21743 = vst [vmem:[#allocation47_spill] sm:$0xff] %v17409_v32  ;;  %v17416_v45 = vsel %vm3894_vm3, %v2986_v34, %v4286_v0 }
 0x3f5   :  { %v17411_v20 = vsel %vm3901_vm4, %v2988_v25, %v4293_v36  ;;  %5702 = vmatmul.mubr.bf16.gmra.mrb[16].mxu0 %v21747_v48  ;;  %21748 = vst [vmem:[#allocation53_spill] sm:$0xff] %v17416_v45  ;;  %v21761_v45 = vld [vmem:[#allocation61_spill] sm:$0xff] }
 0x3f6   :  { %21744 = vst [vmem:[#allocation54_spill] sm:$0xff] %v17411_v20  ;;  %v17420_v35 = vsel %vm3902_vm5, %v2990_v44, %v4294_v10  ;;  %5709 = vmatprep.mubr.bf16.mxu0 %v21752_v26  ;;  %v14635_v44 = vld [vmem:[%s21083_s0 + $0x128] ss:$12 sps:$4 sm:$0xff]  }
 0x3f7   :  { %21749 = vst [vmem:[#allocation52_spill] sm:$0xff] %v17420_v35  ;;  %12076 = vmatmul.mubr.msk.bf16.gmra.mrb[148].mxu1 %vm1309_vm0, %v14635_v44  ;;  %v21760_v44 = vld [vmem:[#allocation62_spill] sm:$0xff] }
 0x3f8   :  { %v2994_v58 = vpop.f32.mrb[168].mxu0  ;;  %3514 = vmatprep.mubr.bf16.mxu1 %v21453_v61  ;;  %v21762_v35 = vpack.c.bf16 %v21760_v44, %v21761_v45  ;;  %v21766_v44 = vld [vmem:[#allocation59_spill] sm:$0xff] }
 0x3f9   :  { %v4301_v25 = vmul.f32 0.1, %v2994_v58  ;;  %v2996_v36 = vpop.f32.mrb[169].mxu0  ;;  %vm3909_vm6 = vcmp.ge.f32.partialorder %v2994_v58, 0.0  ;;  %v21767_v32 = vpack.c.bf16 %v21765_v37, %v21766_v44  ;;  %v21775_v44 = vld [vmem:[#allocation64_spill] sm:$0xff] }
 0x3fa   :  { %v4302_v13 = vmul.f32 0.1, %v2996_v36  ;;  %v2998_v48 = vpop.f32.mrb[170].mxu0  ;;  %vm3910_vm7 = vcmp.ge.f32.partialorder %v2996_v36, 0.0 }
 0x3fb   :  { %vm3917_vm8 = vcmp.ge.f32.partialorder %v2998_v48, 0.0  ;;  %v4309_v34 = vmul.f32 0.1, %v2998_v48  ;;  %v3000_v0 = vpop.f32.mrb[171].mxu0  ;;  %v17432_v47 = vsel %vm3909_vm6, %v2994_v58, %v4301_v25 }
 0x3fc   :  { %vm3918_vm9 = vcmp.ge.f32.partialorder %v3000_v0, 0.0  ;;  %v4310_v26 = vmul.f32 0.1, %v3000_v0  ;;  %21753 = vst [vmem:[#allocation51_spill] sm:$0xff] %v17432_v47  ;;  %v17439_v3 = vsel %vm3910_vm7, %v2996_v36, %v4302_v13 }
 0x3fd   :  { %v17434_v10 = vsel %vm3917_vm8, %v2998_v48, %v4309_v34  ;;  %5710 = vmatmul.mubr.bf16.gmra.mrb[20].mxu0 %v21757_v19  ;;  %21758 = vst [vmem:[#allocation57_spill] sm:$0xff] %v17439_v3  ;;  %v21771_v3 = vld [vmem:[#allocation65_spill] sm:$0xff] }
 0x3fe   :  { %21754 = vst [vmem:[#allocation58_spill] sm:$0xff] %v17434_v10  ;;  %v17443_v20 = vsel %vm3918_vm9, %v3000_v0, %v4310_v26  ;;  %5717 = vmatprep.mubr.bf16.mxu0 %v21762_v35  ;;  %v14636_v0 = vld [vmem:[%s21083_s0 + $0x140] ss:$12 sps:$4 sm:$0xff]  }
 0x3ff   :  { %21759 = vst [vmem:[#allocation56_spill] sm:$0xff] %v17443_v20  ;;  %12077 = vmatmul.mubr.msk.bf16.gmra.mrb[152].mxu1 %vm1309_vm0, %v14636_v0  ;;  %v21770_v0 = vld [vmem:[#allocation66_spill] sm:$0xff] }
 0x400   :  { %v3004_v25 = vpop.f32.mrb[172].mxu0  ;;  %3524 = vmatprep.mubr.bf16.mxu1 %v21453_v61  ;;  %v21772_v20 = vpack.c.bf16 %v21770_v0, %v21771_v3  ;;  %v21776_v0 = vld [vmem:[#allocation63_spill] sm:$0xff] }
 0x401   :  { %v4317_v48 = vmul.f32 0.1, %v3004_v25  ;;  %v3006_v34 = vpop.f32.mrb[173].mxu0  ;;  %vm3925_vm10 = vcmp.ge.f32.partialorder %v3004_v25, 0.0  ;;  %v21777_v47 = vpack.c.bf16 %v21775_v44, %v21776_v0 }
 0x402   :  { %v4318_v4 = vmul.f32 0.1, %v3006_v34  ;;  %v3008_v19 = vpop.f32.mrb[174].mxu0  ;;  %vm3926_vm11 = vcmp.ge.f32.partialorder %v3006_v34, 0.0 }
 0x403   :  { %vm3933_vm12 = vcmp.ge.f32.partialorder %v3008_v19, 0.0  ;;  %v4325_v36 = vmul.f32 0.1, %v3008_v19  ;;  %v3010_v13 = vpop.f32.mrb[175].mxu0  ;;  %v17455_v45 = vsel %vm3925_vm10, %v3004_v25, %v4317_v48 }
 0x404   :  { %vm3934_vm13 = vcmp.ge.f32.partialorder %v3010_v13, 0.0  ;;  %v4326_v35 = vmul.f32 0.1, %v3010_v13  ;;  %21763 = vst [vmem:[#allocation55_spill] sm:$0xff] %v17455_v45  ;;  %v17462_v58 = vsel %vm3926_vm11, %v3006_v34, %v4318_v4  ;;  %v21786_v45 = vld [vmem:[#allocation68_spill] sm:$0xff] }
 0x405   :  { %v17457_v26 = vsel %vm3933_vm12, %v3008_v19, %v4325_v36  ;;  %5718 = vmatmul.mubr.bf16.gmra.mrb[24].mxu0 %v21767_v32  ;;  %21768 = vst [vmem:[#allocation61_spill] sm:$0xff] %v17462_v58  ;;  %v21781_v58 = vld [vmem:[#allocation69_spill] sm:$0xff] }
 0x406   :  { %21764 = vst [vmem:[#allocation62_spill] sm:$0xff] %v17457_v26  ;;  %v17466_v10 = vsel %vm3934_vm13, %v3010_v13, %v4326_v35  ;;  %5725 = vmatprep.mubr.bf16.mxu0 %v21772_v20  ;;  %v14637_v13 = vld [vmem:[%s21083_s0 + $0x158] ss:$12 sps:$4 sm:$0xff]  }
 0x407   :  { %21769 = vst [vmem:[#allocation60_spill] sm:$0xff] %v17466_v10  ;;  %12078 = vmatmul.mubr.msk.bf16.gmra.mrb[156].mxu1 %vm1309_vm0, %v14637_v13  ;;  %v21780_v13 = vld [vmem:[#allocation70_spill] sm:$0xff] }
 0x408   :  { %v3014_v48 = vpop.f32.mrb[176].mxu0  ;;  %3534 = vmatprep.mubr.bf16.mxu1 %v21453_v61  ;;  %v21782_v10 = vpack.c.bf16 %v21780_v13, %v21781_v58  ;;  %v21783_v58 = vld [vmem:[#allocation76_spill] sm:$0xff] }
 0x409   :  { %v4333_v19 = vmul.f32 0.1, %v3014_v48  ;;  %v3016_v36 = vpop.f32.mrb[177].mxu0  ;;  %vm3941_vm14 = vcmp.ge.f32.partialorder %v3014_v48, 0.0  ;;  %vm4018_vm7 = vcmp.ge.f32.partialorder %v21783_v58, 0.0 }
 0x40a   :  { %v4334_v37 = vmul.f32 0.1, %v3016_v36  ;;  %v3018_v32 = vpop.f32.mrb[178].mxu0  ;;  %vm3942_vm15 = vcmp.ge.f32.partialorder %v3016_v36, 0.0 }
 0x40b   :  { %vm3949_vm1 = vcmp.ge.f32.partialorder %v3018_v32, 0.0  ;;  %v4341_v34 = vmul.f32 0.1, %v3018_v32  ;;  %v3020_v4 = vpop.f32.mrb[179].mxu0  ;;  %v17478_v3 = vsel %vm3941_vm14, %v3014_v48, %v4333_v19  ;;  %v21787_v48 = vld [vmem:[#allocation67_spill] sm:$0xff] }
 0x40c   :  { %vm3950_vm2 = vcmp.ge.f32.partialorder %v3020_v4, 0.0  ;;  %v4342_v20 = vmul.f32 0.1, %v3020_v4  ;;  %21773 = vst [vmem:[#allocation59_spill] sm:$0xff] %v17478_v3  ;;  %v17485_v25 = vsel %vm3942_vm15, %v3016_v36, %v4334_v37  ;;  %v21788_v3 = vpack.c.bf16 %v21786_v45, %v21787_v48 }
 0x40d   :  { %v17480_v35 = vsel %vm3949_vm1, %v3018_v32, %v4341_v34  ;;  %5726 = vmatmul.mubr.bf16.gmra.mrb[28].mxu0 %v21777_v47  ;;  %21778 = vst [vmem:[#allocation65_spill] sm:$0xff] %v17485_v25 }
 0x40e   :  { %21774 = vst [vmem:[#allocation66_spill] sm:$0xff] %v17480_v35  ;;  %v17489_v26 = vsel %vm3950_vm2, %v3020_v4, %v4342_v20  ;;  %5733 = vmatprep.mubr.bf16.mxu0 %v21782_v10  ;;  %v14638_v4 = vld [vmem:[%s21083_s0 + $0x170] ss:$12 sps:$4 sm:$0xff]   ;;  %v4410_v20 = vmul.f32 0.1, %v21783_v58 }
 0x40f   :  { %21779 = vst [vmem:[#allocation64_spill] sm:$0xff] %v17489_v26  ;;  %12079 = vmatmul.mubr.msk.bf16.gmra.mrb[160].mxu1 %vm1309_vm0, %v14638_v4  ;;  %v21791_v26 = vld [vmem:[#allocation74_spill] sm:$0xff]  ;;  %v21797_v4 = vld [vmem:[#allocation72_spill] sm:$0xff] }
 0x410   :  { %v3024_v19 = vpop.f32.mrb[180].mxu0  ;;  %3544 = vmatprep.mubr.bf16.mxu1 %v21453_v61  ;;  %v21793_v7 = vpack.c.bf16 %v21791_v26, %v21792_v6  ;;  %v4802_v45 = vsel %vm4018_vm7, %v21783_v58, %v4410_v20  ;;  %v14639_v6 = vld [vmem:[%s21083_s0 + $0x188] ss:$12 sps:$4 sm:$0xff]  }
 0x411   :  { %v4349_v32 = vmul.f32 0.1, %v3024_v19  ;;  %v3026_v34 = vpop.f32.mrb[181].mxu0  ;;  %vm3957_vm3 = vcmp.ge.f32.partialorder %v3024_v19, 0.0 }
 0x412   :  { %v4350_v44 = vmul.f32 0.1, %v3026_v34  ;;  %v3028_v47 = vpop.f32.mrb[182].mxu0  ;;  %vm3958_vm4 = vcmp.ge.f32.partialorder %v3026_v34, 0.0 }
 0x413   :  { %vm3965_vm5 = vcmp.ge.f32.partialorder %v3028_v47, 0.0  ;;  %v4357_v36 = vmul.f32 0.1, %v3028_v47  ;;  %v3030_v37 = vpop.f32.mrb[183].mxu0  ;;  %v17502_v0 = vsel %vm3957_vm3, %v3024_v19, %v4349_v32  ;;  %v21798_v19 = vld [vmem:[#allocation71_spill] sm:$0xff] }
 0x414   :  { %vm3966_vm6 = vcmp.ge.f32.partialorder %v3030_v37, 0.0  ;;  %v4358_v10 = vmul.f32 0.1, %v3030_v37  ;;  %21784 = vst [vmem:[#allocation63_spill] sm:$0xff] %v17502_v0  ;;  %v17510_v35 = vsel %vm3958_vm4, %v3026_v34, %v4350_v44  ;;  %v21799_v0 = vpack.c.bf16 %v21797_v4, %v21798_v19 }
 0x415   :  { %v17504_v13 = vsel %vm3965_vm5, %v3028_v47, %v4357_v36  ;;  %5734 = vmatmul.mubr.bf16.gmra.mrb[32].mxu0 %v21788_v3  ;;  %21789 = vst [vmem:[#allocation69_spill] sm:$0xff] %v17510_v35  ;;  %v21805_v35 = vld [vmem:[#allocation79_spill] sm:$0xff] }
 0x416   :  { %21785 = vst [vmem:[#allocation70_spill] sm:$0xff] %v17504_v13  ;;  %v17514_v25 = vsel %vm3966_vm6, %v3030_v37, %v4358_v10  ;;  %5741 = vmatprep.mubr.bf16.mxu0 %v21793_v7  ;;  %v21794_v7 = vld [vmem:[#allocation75_spill] sm:$0xff]  ;;  %v5002_v37 = vpack.c.bf16 %v4802_v45, %v4802_v45 }
 0x417   :  { %21790 = vst [vmem:[#allocation76_spill] sm:$0xff] %v17514_v25  ;;  %12080 = vmatmul.mubr.msk.bf16.gmra.mrb[164].mxu1 %vm1309_vm0, %v14639_v6  ;;  %v4409_v26 = vmul.f32 0.1, %v21794_v7  ;;  %vm4017_vm12 = vcmp.ge.f32.partialorder %v21794_v7, 0.0  ;;  %v21804_v6 = vld [vmem:[#allocation80_spill] sm:$0xff] }
 0x418   :  { %v3034_v32 = vpop.f32.mrb[184].mxu0  ;;  %3554 = vmatprep.mubr.bf16.mxu1 %v21453_v61 }
 0x419   :  { %v4365_v3 = vmul.f32 0.1, %v3034_v32  ;;  %v3036_v48 = vpop.f32.mrb[185].mxu0  ;;  %vm3973_vm8 = vcmp.ge.f32.partialorder %v3034_v32, 0.0 }
 0x41a   :  { %v4366_v34 = vmul.f32 0.1, %v3036_v48  ;;  %v3038_v44 = vpop.f32.mrb[186].mxu0  ;;  %vm3974_vm9 = vcmp.ge.f32.partialorder %v3036_v48, 0.0 }
 0x41b   :  { %vm3981_vm10 = vcmp.ge.f32.partialorder %v3038_v44, 0.0  ;;  %v4373_v47 = vmul.f32 0.1, %v3038_v44  ;;  %v3040_v36 = vpop.f32.mrb[187].mxu0  ;;  %v17529_v58 = vsel %vm3973_vm8, %v3034_v32, %v4365_v3  ;;  %v4801_v32 = vsel %vm4017_vm12, %v21794_v7, %v4409_v26 }
 0x41c   :  { %vm3982_vm11 = vcmp.ge.f32.partialorder %v3040_v36, 0.0  ;;  %v4374_v10 = vmul.f32 0.1, %v3040_v36  ;;  %21795 = vst [vmem:[#allocation68_spill] sm:$0xff] %v17529_v58  ;;  %v17536_v13 = vsel %vm3974_vm9, %v3036_v48, %v4366_v34  ;;  %v14640_v34 = vld [vmem:[%s21083_s0 + $0x1a0] ss:$12 sps:$4 sm:$0xff]   ;;  %v21806_v58 = vpack.c.bf16 %v21804_v6, %v21805_v35 }
 0x41d   :  { %v17531_v20 = vsel %vm3981_vm10, %v3038_v44, %v4373_v47  ;;  %5742 = vmatmul.mubr.bf16.gmra.mrb[36].mxu0 %v21799_v0  ;;  %v5001_v0 = vpack.c.bf16 %v4801_v32, %v4801_v32  ;;  %v14641_v35 = vld [vmem:[%s21083_s0 + $0x1b8] ss:$12 sps:$4 sm:$0xff]  }
 0x41e   :  { %21796 = vst [vmem:[#allocation67_spill] sm:$0xff] %v17531_v20  ;;  %v17540_v45 = vsel %vm3982_vm11, %v3040_v36, %v4374_v10  ;;  %5749 = vmatprep.mubr.bf16.mxu0 %v5002_v37  ;;  %v21808_v10 = vld [vmem:[#allocation77_spill] sm:$0xff] }
 0x41f   :  { %12081 = vmatmul.mubr.msk.bf16.gmra.mrb[168].mxu1 %vm1309_vm0, %v14640_v34 }
 0x420   :  { %v3044_v3 = vpop.f32.mrb[188].mxu0  ;;  %3564 = vmatprep.mubr.bf16.mxu1 %v21453_v61 }
 0x421   :  { %v4381_v44 = vmul.f32 0.1, %v3044_v3  ;;  %v3046_v47 = vpop.f32.mrb[189].mxu0  ;;  %vm3989_vm13 = vcmp.ge.f32.partialorder %v3044_v3, 0.0 }
 0x422   :  { %v4382_v25 = vmul.f32 0.1, %v3046_v47  ;;  %v3048_v4 = vpop.f32.mrb[190].mxu0  ;;  %vm3990_vm14 = vcmp.ge.f32.partialorder %v3046_v47, 0.0 }
 0x423   :  { %vm3997_vm15 = vcmp.ge.f32.partialorder %v3048_v4, 0.0  ;;  %v4389_v19 = vmul.f32 0.1, %v3048_v4  ;;  %v3050_v48 = vpop.f32.mrb[191].mxu0  ;;  %v17550_v7 = vsel %vm3989_vm13, %v3044_v3, %v4381_v44 }
 0x424   :  { %vm3998_vm1 = vcmp.ge.f32.partialorder %v3050_v48, 0.0  ;;  %v4390_v36 = vmul.f32 0.1, %v3050_v48  ;;  %21800 = vst [vmem:[#allocation74_spill] sm:$0xff] %v17550_v7  ;;  %v17554_v37 = vsel %vm3990_vm14, %v3046_v47, %v4382_v25  ;;  %v14072_v25 = vld [vmem:[%s21084_s2 + $0x100] sm:$0xff]  }
 0x425   :  { %v17552_v26 = vsel %vm3997_vm15, %v3048_v4, %v4389_v19  ;;  %5750 = vmatmul.mubr.bf16.gmra.mrb[40].mxu0 %v5001_v0  ;;  %21802 = vst [vmem:[#allocation75_spill] sm:$0xff] %v17554_v37 }
 0x426   :  { %21801 = vst [vmem:[#allocation73_spill] sm:$0xff] %v17552_v26  ;;  %v17558_v32 = vsel %vm3998_vm1, %v3050_v48, %v4390_v36  ;;  %5789 = vmatprep.mubr.bf16.mxu0 %v21806_v58  ;;  %v21807_v36 = vld [vmem:[#allocation78_spill] sm:$0xff] }
 0x427   :  { %21803 = vst [vmem:[#allocation72_spill] sm:$0xff] %v17558_v32  ;;  %12082 = vmatmul.mubr.msk.bf16.gmra.mrb[172].mxu1 %vm1309_vm0, %v14641_v35  ;;  %v21809_v34 = vpack.c.bf16 %v21807_v36, %v21808_v10  ;;  %v21810_v35 = vld [vmem:[#allocation81_spill] sm:$0xff]  ;;  %v14075_v36 = vld [vmem:[%s21084_s2 + $0x118] sm:$0xff]  }
 0x428   :  { %v3054_v20 = vpop.f32.mrb[192].mxu0  ;;  %3574 = vmatprep.mubr.bf16.mxu1 %v21453_v61  ;;  %v21811_v32 = vpack.c.bf16 %v16359_v31, %v21810_v35  ;;  %v14074_v31 = vld [vmem:[%s21084_s2 + $0x110] sm:$0xff]   ;;  %v14076_v35 = vld [vmem:[%s21084_s2 + $0x120] sm:$0xff]  }
 0x429   :  { %v4397_v3 = vmul.f32 0.1, %v3054_v20  ;;  %v3056_v44 = vpop.f32.mrb[193].mxu0  ;;  %vm4005_vm2 = vcmp.ge.f32.partialorder %v3054_v20, 0.0 }
 0x42a   :  { %v4398_v4 = vmul.f32 0.1, %v3056_v44  ;;  %v3058_v0 = vpop.f32.mrb[194].mxu0  ;;  %vm4006_vm3 = vcmp.ge.f32.partialorder %v3056_v44, 0.0 }
 0x42b   :  { %vm4013_vm4 = vcmp.ge.f32.partialorder %v3058_v0, 0.0  ;;  %v4405_v47 = vmul.f32 0.1, %v3058_v0  ;;  %v3060_v19 = vpop.f32.mrb[195].mxu0  ;;  %v17573_v6 = vsel %vm4005_vm2, %v3054_v20, %v4397_v3  ;;  %v14073_v20 = vld [vmem:[%s21084_s2 + $0x108] sm:$0xff]  }
 0x42c   :  { %vm4014_vm5 = vcmp.ge.f32.partialorder %v3060_v19, 0.0  ;;  %v4406_v58 = vmul.f32 0.1, %v3060_v19  ;;  %v17580_v7 = vsel %vm4006_vm3, %v3056_v44, %v4398_v4  ;;  %v14642_v4 = vld [vmem:[%s21083_s0 + $0x1d0] ss:$12 sps:$4 sm:$0xff]  }
 0x42d   :  { %v17575_v48 = vsel %vm4013_vm4, %v3058_v0, %v4405_v47  ;;  %5790 = vmatmul.mubr.bf16.vlgmr.msra.gmra.mrb[200].mxu0 %v21809_v34  ;;  %v21812_v0 = vld [vmem:[#allocation83_spill] sm:$0xff] }
 0x42e   :  { %v17584_v37 = vsel %vm4014_vm5, %v3060_v19, %v4406_v58  ;;  %5797 = vmatprep.mubr.bf16.mxu0 %v21811_v32  ;;  %5990 = vmatpush1.bf16.msra.mxu0 %v14072_v25  ;;  %v21813_v25 = vld [vmem:[#allocation82_spill] sm:$0xff]  ;;  %v21815_v19 = vld [vmem:[#allocation84_spill] sm:$0xff] }
 0x42f   :  { %5991 = vmatprep.subr.bf16.mxu0 %v21453_v61  ;;  %12083 = vmatmul.mubr.msk.bf16.gmra.mrb[176].mxu1 %vm1309_vm0, %v14642_v4  ;;  %v21814_v47 = vpack.c.bf16 %v21812_v0, %v21813_v25  ;;  %v21816_v58 = vpack.c.bf16 %v16382_v29, %v21815_v19  ;;  %v21817_v29 = vld [vmem:[#allocation86_spill] sm:$0xff]  ;;  %v14077_v0 = vld [vmem:[%s21084_s2 + $0x128] sm:$0xff]   ;;  %v14078_v25 = vld [vmem:[%s21084_s2 + $0x130] sm:$0xff]  }
 0x430   :  { %v17595_v34 = vpop.f32.mrb[196].mxu0  ;;  %3584 = vmatprep.mubr.bf16.mxu1 %v21453_v61  ;;  %v21823_v19 = vld [vmem:[#allocation88_spill] sm:$0xff] }
 0x431   :  { %v17597_v3 = vpop.f32.mrb[197].mxu0 }
 0x432   :  { %v3068_v44 = vpop.f32.mrb[198].mxu0  ;;  %5992 = vmatpush1.bf16.msra.mxu0 %v14073_v20  ;;  %v14643_v20 = vld [vmem:[%s21083_s0 + $0x1e8] ss:$12 sps:$4 sm:$0xff]  }
 0x433   :  { %v3069_v32 = vpop.f32.mrb[199].mxu0  ;;  %5993 = vmatprep.subr.bf16.mxu0 %v21453_v61  ;;  %v21818_v44 = vld [vmem:[#allocation85_spill] sm:$0xff] }
 0x434   :  { %v21820_v32 = vld [vmem:[#allocation87_spill] sm:$0xff] }
 0x435   :  { %5798 = vmatmul.mubr.bf16.gmra.mrb[204].mxu0 %v21814_v47  ;;  %v21821_v4 = vpack.c.bf16 %v16407_v49, %v21820_v32  ;;  %v14644_v47 = vld [vmem:[%s21083_s0 + $0x200] ss:$12 sps:$4 sm:$0xff]   ;;  %v21822_v49 = vld [vmem:[#allocation89_spill] sm:$0xff] }
 0x436   :  { %5805 = vmatprep.mubr.bf16.mxu0 %v21816_v58  ;;  %5994 = vmatpush1.bf16.msra.mxu0 %v14074_v31  ;;  %v21819_v31 = vpack.c.bf16 %v21817_v29, %v21818_v44  ;;  %v21824_v58 = vpack.c.bf16 %v21822_v49, %v21823_v19  ;;  %v14080_v29 = vld [vmem:[%s21084_s2 + $0x140] sm:$0xff]   ;;  %v14646_v49 = vld [vmem:[%s21083_s0 + $0x230] ss:$12 sps:$4 sm:$0xff]  }
 0x437   :  { %5995 = vmatprep.subr.bf16.mxu0 %v21453_v61  ;;  %12084 = vmatmul.mubr.msk.bf16.gmra.mrb[180].mxu1 %vm1309_vm0, %v14643_v20  ;;  %v14079_v20 = vld [vmem:[%s21084_s2 + $0x138] sm:$0xff]  }
 0x438   :  { %3594 = vmatprep.mubr.bf16.mxu1 %v21453_v61  ;;  %v14645_v44 = vld [vmem:[%s21083_s0 + $0x218] ss:$12 sps:$4 sm:$0xff]  }
 0x439   :  { %v21833_v19 = vld [vmem:[#allocation94_spill] sm:$0xff] }
 0x43a   :  { %5996 = vmatpush1.bf16.msra.mxu0 %v14075_v36  ;;  %v21825_v36 = vld [vmem:[#allocation90_spill] sm:$0xff] }
 0x43b   :  { %5997 = vmatprep.subr.bf16.mxu0 %v21453_v61 }
 0x43d   :  { %5806 = vmatmul.mubr.bf16.gmra.mrb[208].mxu0 %v21819_v31  ;;  %v21828_v31 = vld [vmem:[#allocation91_spill] sm:$0xff] }
 0x43e   :  { %5813 = vmatprep.mubr.bf16.mxu0 %v21821_v4  ;;  %5998 = vmatpush1.bf16.msra.mxu0 %v14076_v35  ;;  %v21826_v35 = vpack.c.bf16 %v16433_v42, %v21825_v36  ;;  %v21827_v42 = vld [vmem:[#allocation92_spill] sm:$0xff]  ;;  %v21830_v4 = vld [vmem:[#allocation93_spill] sm:$0xff] }
 0x43f   :  { %5999 = vmatprep.subr.bf16.mxu0 %v21453_v61  ;;  %12085 = vmatmul.mubr.msk.bf16.gmra.mrb[184].mxu1 %vm1309_vm0, %v14644_v47  ;;  %v21829_v32 = vpack.c.bf16 %v21827_v42, %v21828_v31  ;;  %v14082_v47 = vld [vmem:[%s21084_s2 + $0x150] sm:$0xff]   ;;  %v21835_v36 = vld [vmem:[#allocation96_spill] sm:$0xff] }
 0x440   :  { %3604 = vmatprep.mubr.bf16.mxu1 %v21453_v61  ;;  %v21838_v42 = vld [vmem:[#allocation97_spill] sm:$0xff] }
 0x442   :  { %6000 = vmatpush1.bf16.msra.mxu0 %v14077_v0  ;;  %v21831_v0 = vpack.c.bf16 %v16461_v57, %v21830_v4  ;;  %v21832_v57 = vld [vmem:[#allocation95_spill] sm:$0xff] }
 0x443   :  { %6001 = vmatprep.subr.bf16.mxu0 %v21453_v61 }
 0x445   :  { %5814 = vmatmul.mubr.bf16.gmra.mrb[212].mxu0 %v21824_v58  ;;  %v21834_v58 = vpack.c.bf16 %v21832_v57, %v21833_v19 }
 0x446   :  { %5821 = vmatprep.mubr.bf16.mxu0 %v21826_v35  ;;  %6002 = vmatpush1.bf16.msra.mxu0 %v14078_v25  ;;  %v14081_v25 = vld [vmem:[%s21084_s2 + $0x148] sm:$0xff]   ;;  %v21836_v35 = vpack.c.bf16 %v16489_v43, %v21835_v36  ;;  %v21837_v43 = vld [vmem:[#allocation98_spill] sm:$0xff] }
 0x447   :  { %6003 = vmatprep.subr.bf16.mxu0 %v21453_v61  ;;  %12086 = vmatmul.mubr.msk.bf16.gmra.mrb[188].mxu1 %vm1309_vm0, %v14645_v44  ;;  %v14647_v44 = vld [vmem:[%s21083_s0 + $0x248] ss:$0 sps:$4 sm:$0xff]   ;;  %v21839_v31 = vpack.c.bf16 %v21837_v43, %v21838_v42 }
 0x448   :  { %3614 = vmatprep.mubr.bf16.mxu1 %v21453_v61  ;;  %v21847_v36 = vld [vmem:[#allocation104_spill] sm:$0xff] }
 0x44a   :  { %6004 = vmatpush1.bf16.msra.mxu0 %v14079_v20  ;;  %v14083_v20 = vld [vmem:[%s21084_s2 + $0x158] sm:$0xff]  }
 0x44b   :  { %6005 = vmatprep.subr.bf16.mxu0 %v21453_v61 }
 0x44d   :  { %5822 = vmatmul.mubr.bf16.gmra.mrb[216].mxu0 %v21829_v32  ;;  %v21840_v32 = vld [vmem:[#allocation99_spill] sm:$0xff] }
 0x44e   :  { %5829 = vmatprep.mubr.bf16.mxu0 %v21831_v0  ;;  %6006 = vmatpush1.bf16.msra.mxu0 %v14080_v29  ;;  %v14084_v29 = vld [vmem:[%s21084_s2 + $0x160] sm:$0xff]   ;;  %v21841_v4 = vpack.c.bf16 %v16521_v54, %v21840_v32  ;;  %v14085_v0 = vld [vmem:[%s21084_s2 + $0x168] sm:$0xff]   ;;  %v21845_v54 = vld [vmem:[#allocation102_spill] sm:$0xff] }
 0x44f   :  { %6007 = vmatprep.subr.bf16.mxu0 %v21453_v61  ;;  %12087 = vmatmul.mubr.msk.bf16.gmra.mrb[192].mxu1 %vm1309_vm0, %v14646_v49  ;;  %v21843_v49 = vld [vmem:[#allocation100_spill] sm:$0xff]  ;;  %v21846_v19 = vpack.c.bf16 %v16554_v5, %v21845_v54  ;;  %v21856_v54 = vld [vmem:[#allocation107_spill] sm:$0xff] }
 0x450   :  { %3624 = vmatprep.mubr.bf16.mxu1 %v21453_v61 }
 0x452   :  { %6008 = vmatpush1.bf16.msra.mxu0 %v14081_v25  ;;  %v14086_v25 = vld [vmem:[%s21084_s2 + $0x170] sm:$0xff]  }
 0x453   :  { %6009 = vmatprep.subr.bf16.mxu0 %v21453_v61 }
 0x455   :  { %5830 = vmatmul.mubr.bf16.gmra.mrb[220].mxu0 %v21834_v58  ;;  %v14087_v58 = vld [vmem:[%s21084_s2 + $0x178] sm:$0xff]  }
 0x456   :  { %5837 = vmatprep.mubr.bf16.mxu0 %v21836_v35  ;;  %6010 = vmatpush1.bf16.msra.mxu0 %v14082_v47  ;;  %v21842_v47 = vld [vmem:[#allocation101_spill] sm:$0xff]  ;;  %v21848_v35 = vld [vmem:[#allocation103_spill] sm:$0xff] }
 0x457   :  { %6011 = vmatprep.subr.bf16.mxu0 %v21453_v61  ;;  %12088 = vmatmul.mubr.msk.bf16.gmra.mrb[196].mxu1 %vm1309_vm0, %v14647_v44  ;;  %v21844_v57 = vpack.c.bf16 %v21842_v47, %v21843_v49  ;;  %v21851_v44 = vld [vmem:[#allocation105_spill] sm:$0xff] }
 0x45a   :  { %6012 = vmatpush1.bf16.msra.mxu0 %v14083_v20  ;;  %v21849_v20 = vpack.c.bf16 %v21847_v36, %v21848_v35  ;;  %v21859_v36 = vld [vmem:[#allocation109_spill] sm:$0xff] }
 0x45b   :  { %6013 = vmatprep.subr.bf16.mxu0 %v21453_v61 }
 0x45d   :  { %5838 = vmatmul.mubr.bf16.gmra.mrb[224].mxu0 %v21839_v31 }
 0x45e   :  { %5845 = vmatprep.mubr.bf16.mxu0 %v21841_v4  ;;  %6014 = vmatpush1.bf16.msra.mxu0 %v14084_v29  ;;  %v21850_v29 = vld [vmem:[#allocation106_spill] sm:$0xff] }
 0x45f   :  { %6015 = vmatprep.subr.bf16.mxu0 %v21453_v61  ;;  %v21852_v43 = vpack.c.bf16 %v21850_v29, %v21851_v44 }
 0x462   :  { %6016 = vmatpush1.bf16.msra.mxu0 %v14085_v0 }
 0x463   :  { %6017 = vmatprep.subr.bf16.mxu0 %v21453_v61 }
 0x465   :  { %5846 = vmatmul.mubr.bf16.gmra.mrb[228].mxu0 %v21844_v57  ;;  %v21855_v57 = vld [vmem:[#allocation108_spill] sm:$0xff] }
 0x466   :  { %5853 = vmatprep.mubr.bf16.mxu0 %v21846_v19  ;;  %6018 = vmatpush1.bf16.msra.mxu0 %v14086_v25  ;;  %v21857_v19 = vpack.c.bf16 %v21855_v57, %v21856_v54  ;;  %v21863_v57 = vpack.c.bf16 %v16631_v46, %v16623_v27 }
 0x467   :  { %6019 = vmatprep.subr.bf16.mxu0 %v21453_v61 }
 0x46a   :  { %6020 = vmatpush1.bf16.msra.mxu0 %v14087_v58  ;;  %v3386_v5 = vpop.f32.mrb[100].mxu1  ;;  %v21858_v58 = vld [vmem:[#allocation110_spill] sm:$0xff] }
 0x46b   :  { %6221 = vmatprep.subr.bf16.mxu0 %v21453_v61  ;;  %vm3639_vm0 = vcmp.ge.f32.partialorder %v3386_v5, 0.0  ;;  %v4031_v42 = vmul.f32 0.1, %v3386_v5  ;;  %v3388_v31 = vpop.f32.mrb[101].mxu1  ;;  %v21860_v35 = vpack.c.bf16 %v21858_v58, %v21859_v36  ;;  %v21864_v36 = vld [vmem:[#allocation114_spill] sm:$0xff] }
 0x46c   :  { %v3390_v32 = vpop.f32.mrb[102].mxu1  ;;  %vm3640_vm7 = vcmp.ge.f32.partialorder %v3388_v31, 0.0 }
 0x46d   :  { %5854 = vmatmul.mubr.bf16.gmra.mrb[232].mxu0 %v21849_v20  ;;  %v17733_v4 = vsel %vm3639_vm0, %v3386_v5, %v4031_v42  ;;  %vm3647_vm6 = vcmp.ge.f32.partialorder %v3390_v32, 0.0  ;;  %v4039_v0 = vmul.f32 0.1, %v3390_v32  ;;  %v3392_v25 = vpop.f32.mrb[103].mxu1  ;;  %v4032_v20 = vmul.f32 0.1, %v3388_v31 }
 0x46e   :  { %5861 = vmatprep.mubr.bf16.mxu0 %v21852_v43  ;;  %21853 = vst [vmem:[#allocation71_spill] sm:$0xff] %v17733_v4  ;;  %v4040_v29 = vmul.f32 0.1, %v3392_v25  ;;  %vm3648_vm8 = vcmp.ge.f32.partialorder %v3392_v25, 0.0 }
 0x46f   :  { %v17735_v47 = vsel %vm3647_vm6, %v3390_v32, %v4039_v0  ;;  %v17745_v32 = vsel %vm3640_vm7, %v3388_v31, %v4032_v20 }
 0x470   :  { %21854 = vst [vmem:[#allocation80_spill] sm:$0xff] %v17735_v47  ;;  %21861 = vst [vmem:[#allocation79_spill] sm:$0xff] %v17745_v32  ;;  %v17747_v0 = vsel %vm3648_vm8, %v3392_v25, %v4040_v29 }
 0x471   :  { %21862 = vst [vmem:[#allocation78_spill] sm:$0xff] %v17747_v0 }
 0x472   :  { %v3396_v44 = vpop.f32.mrb[104].mxu1 }
 0x473   :  { %v3398_v43 = vpop.f32.mrb[105].mxu1  ;;  %v4047_v54 = vmul.f32 0.1, %v3396_v44  ;;  %vm3655_vm9 = vcmp.ge.f32.partialorder %v3396_v44, 0.0 }
 0x474   :  { %v3400_v5 = vpop.f32.mrb[106].mxu1  ;;  %vm3656_vm10 = vcmp.ge.f32.partialorder %v3398_v43, 0.0 }
 0x475   :  { %5862 = vmatmul.mubr.bf16.gmra.mrb[236].mxu0 %v21857_v19  ;;  %v3402_v42 = vpop.f32.mrb[107].mxu1  ;;  %v4048_v19 = vmul.f32 0.1, %v3398_v43  ;;  %v4055_v26 = vmul.f32 0.1, %v3400_v5  ;;  %vm3663_vm11 = vcmp.ge.f32.partialorder %v3400_v5, 0.0  ;;  %v17757_v46 = vsel %vm3655_vm9, %v3396_v44, %v4047_v54 }
 0x476   :  { %5869 = vmatprep.mubr.bf16.mxu0 %v21860_v35  ;;  %v21865_v35 = vld [vmem:[#allocation112_spill] sm:$0xff]  ;;  %v4056_v10 = vmul.f32 0.1, %v3402_v42  ;;  %vm3664_vm12 = vcmp.ge.f32.partialorder %v3402_v42, 0.0  ;;  %21867 = vst [vmem:[#allocation77_spill] sm:$0xff] %v17757_v46  ;;  %v21872_v44 = vpack.c.bf16 %v16665_v18, %v16661_v24  ;;  %v21874_v24 = vld [vmem:[#allocation115_spill] sm:$0xff] }
 0x477   :  { %v21866_v49 = vpack.c.bf16 %v21864_v36, %v21865_v35  ;;  %v17759_v20 = vsel %vm3656_vm10, %v3398_v43, %v4048_v19  ;;  %v17761_v29 = vsel %vm3663_vm11, %v3400_v5, %v4055_v26  ;;  %v21869_v36 = vld [vmem:[#allocation113_spill] sm:$0xff]  ;;  %v21873_v18 = vld [vmem:[#allocation116_spill] sm:$0xff] }
 0x478   :  { %21868 = vst [vmem:[#allocation81_spill] sm:$0xff] %v17761_v29 }
 0x47a   :  { %v3406_v4 = vpop.f32.mrb[108].mxu1 }
 0x47b   :  { %v3408_v31 = vpop.f32.mrb[109].mxu1  ;;  %v4063_v58 = vmul.f32 0.1, %v3406_v4  ;;  %vm3671_vm13 = vcmp.ge.f32.partialorder %v3406_v4, 0.0 }
 0x47c   :  { %v3410_v25 = vpop.f32.mrb[110].mxu1  ;;  %v4064_v47 = vmul.f32 0.1, %v3408_v31  ;;  %vm3672_vm14 = vcmp.ge.f32.partialorder %v3408_v31, 0.0 }
 0x47d   :  { %5870 = vmatmul.mubr.bf16.gmra.mrb[240].mxu0 %v21863_v57  ;;  %v3412_v27 = vpop.f32.mrb[111].mxu1  ;;  %v17763_v57 = vsel %vm3664_vm12, %v3402_v42, %v4056_v10  ;;  %v4071_v26 = vmul.f32 0.1, %v3410_v25  ;;  %vm3679_vm15 = vcmp.ge.f32.partialorder %v3410_v25, 0.0  ;;  %v17775_v19 = vsel %vm3671_vm13, %v3406_v4, %v4063_v58 }
 0x47e   :  { %5877 = vmatprep.mubr.bf16.mxu0 %v21866_v49  ;;  %v21870_v49 = vld [vmem:[#allocation111_spill] sm:$0xff]  ;;  %v4072_v43 = vmul.f32 0.1, %v3412_v27  ;;  %vm3680_vm1 = vcmp.ge.f32.partialorder %v3412_v27, 0.0  ;;  %v21876_v4 = vpack.c.bf16 %v16695_v53, %v16691_v9  ;;  %v21878_v53 = vpack.c.bf16 %v16693_v15, %v16689_v30 }
 0x47f   :  { %v21871_v35 = vpack.c.bf16 %v21869_v36, %v21870_v49  ;;  %v17777_v36 = vsel %vm3672_vm14, %v3408_v31, %v4064_v47  ;;  %v17779_v49 = vsel %vm3679_vm15, %v3410_v25, %v4071_v26 }
 0x482   :  { %v3416_v10 = vpop.f32.mrb[112].mxu1 }
 0x483   :  { %v3418_v5 = vpop.f32.mrb[113].mxu1  ;;  %v4079_v0 = vmul.f32 0.1, %v3416_v10  ;;  %vm3687_vm2 = vcmp.ge.f32.partialorder %v3416_v10, 0.0 }
 0x484   :  { %v3420_v42 = vpop.f32.mrb[114].mxu1  ;;  %v4080_v32 = vmul.f32 0.1, %v3418_v5  ;;  %vm3688_vm3 = vcmp.ge.f32.partialorder %v3418_v5, 0.0 }
 0x485   :  { %5878 = vmatmul.mubr.bf16.gmra.mrb[244].mxu0 %v21871_v35  ;;  %v3422_v54 = vpop.f32.mrb[115].mxu1  ;;  %v17781_v35 = vsel %vm3680_vm1, %v3412_v27, %v4072_v43  ;;  %v4087_v47 = vmul.f32 0.1, %v3420_v42  ;;  %vm3695_vm4 = vcmp.ge.f32.partialorder %v3420_v42, 0.0  ;;  %v17793_v43 = vsel %vm3687_vm2, %v3416_v10, %v4079_v0 }
 0x486   :  { %5885 = vmatprep.mubr.bf16.mxu0 %v21872_v44  ;;  %v21875_v44 = vpack.c.bf16 %v21873_v18, %v21874_v24  ;;  %v4088_v58 = vmul.f32 0.1, %v3422_v54  ;;  %vm3696_vm5 = vcmp.ge.f32.partialorder %v3422_v54, 0.0  ;;  %21877 = vst [vmem:[#allocation83_spill] sm:$0xff] %v17793_v43  ;;  %v17795_v18 = vsel %vm3688_vm3, %v3418_v5, %v4080_v32 }
 0x487   :  { %v17797_v24 = vsel %vm3695_vm4, %v3420_v42, %v4087_v47  ;;  %v21879_v32 = vpack.c.bf16 %v16718_v17, %v16716_v62  ;;  %v21882_v62 = vld [vmem:[#allocation117_spill] sm:$0xff] }
 0x488   :  { %v21883_v17 = vpack.c.bf16 %v16684_v12, %v21882_v62 }
 0x48a   :  { %v3426_v31 = vpop.f32.mrb[116].mxu1 }
 0x48b   :  { %v3428_v25 = vpop.f32.mrb[117].mxu1  ;;  %v4095_v9 = vmul.f32 0.1, %v3426_v31  ;;  %vm3703_vm0 = vcmp.ge.f32.partialorder %v3426_v31, 0.0 }
 0x48c   :  { %v3430_v27 = vpop.f32.mrb[118].mxu1  ;;  %vm3704_vm6 = vcmp.ge.f32.partialorder %v3428_v25, 0.0 }
 0x48d   :  { %5886 = vmatmul.mubr.bf16.gmra.mrb[248].mxu0 %v21875_v44  ;;  %v3432_v26 = vpop.f32.mrb[119].mxu1  ;;  %v17799_v44 = vsel %vm3696_vm5, %v3422_v54, %v4088_v58  ;;  %v4103_v0 = vmul.f32 0.1, %v3430_v27  ;;  %vm3711_vm7 = vcmp.ge.f32.partialorder %v3430_v27, 0.0  ;;  %v17811_v54 = vsel %vm3703_vm0, %v3426_v31, %v4095_v9 }
 0x48e   :  { %5893 = vmatprep.mubr.bf16.mxu0 %v21876_v4  ;;  %v4096_v4 = vmul.f32 0.1, %v3428_v25  ;;  %v4104_v10 = vmul.f32 0.1, %v3432_v26  ;;  %vm3712_vm8 = vcmp.ge.f32.partialorder %v3432_v26, 0.0  ;;  %21880 = vst [vmem:[#allocation82_spill] sm:$0xff] %v17811_v54  ;;  %v21884_v31 = vpack.c.bf16 %v16746_v41, %v16744_v40 }
 0x48f   :  { %v17815_v58 = vsel %vm3711_vm7, %v3430_v27, %v4103_v0  ;;  %v21889_v40 = vld [vmem:[#allocation119_spill] sm:$0xff]  ;;  %v21890_v41 = vld [vmem:[#allocation118_spill] sm:$0xff] }
 0x490   :  { %v17813_v47 = vsel %vm3704_vm6, %v3428_v25, %v4096_v4  ;;  %21881 = vst [vmem:[#allocation84_spill] sm:$0xff] %v17815_v58 }
 0x492   :  { %v3436_v5 = vpop.f32.mrb[120].mxu1 }
 0x493   :  { %v3438_v15 = vpop.f32.mrb[121].mxu1  ;;  %vm3719_vm9 = vcmp.ge.f32.partialorder %v3436_v5, 0.0 }
 0x494   :  { %v3440_v30 = vpop.f32.mrb[122].mxu1  ;;  %v4112_v46 = vmul.f32 0.1, %v3438_v15  ;;  %vm3720_vm10 = vcmp.ge.f32.partialorder %v3438_v15, 0.0 }
 0x495   :  { %5894 = vmatmul.mubr.bf16.gmra.mrb[252].mxu0 %v21878_v53  ;;  %v3442_v42 = vpop.f32.mrb[123].mxu1  ;;  %v17817_v53 = vsel %vm3712_vm8, %v3432_v26, %v4104_v10  ;;  %v4119_v25 = vmul.f32 0.1, %v3440_v30  ;;  %vm3727_vm11 = vcmp.ge.f32.partialorder %v3440_v30, 0.0 }
 0x496   :  { %5901 = vmatprep.mubr.bf16.mxu0 %v21879_v32  ;;  %v4111_v32 = vmul.f32 0.1, %v3436_v5  ;;  %v4120_v27 = vmul.f32 0.1, %v3442_v42  ;;  %vm3728_vm12 = vcmp.ge.f32.partialorder %v3442_v42, 0.0  ;;  %v17831_v10 = vsel %vm3720_vm10, %v3438_v15, %v4112_v46 }
 0x497   :  { %21886 = vst [vmem:[#allocation85_spill] sm:$0xff] %v17831_v10  ;;  %v17833_v62 = vsel %vm3727_vm11, %v3440_v30, %v4119_v25 }
 0x498   :  { %v17829_v0 = vsel %vm3719_vm9, %v3436_v5, %v4111_v32  ;;  %21887 = vst [vmem:[#allocation87_spill] sm:$0xff] %v17833_v62  ;;  %v21892_v5 = vld [vmem:[#allocation125_spill] sm:$0xff]  ;;  %v21893_v32 = vld [vmem:[#allocation124_spill] sm:$0xff] }
 0x499   :  { %21885 = vst [vmem:[#allocation86_spill] sm:$0xff] %v17829_v0  ;;  %v21894_v46 = vpack.c.bf16 %v21892_v5, %v21893_v32  ;;  %v21897_v5 = vld [vmem:[#allocation121_spill] sm:$0xff]  ;;  %v21898_v32 = vld [vmem:[#allocation120_spill] sm:$0xff] }
 0x49a   :  { %v3446_v26 = vpop.f32.mrb[124].mxu1 }
 0x49b   :  { %v3448_v12 = vpop.f32.mrb[125].mxu1  ;;  %v4127_v43 = vmul.f32 0.1, %v3446_v26  ;;  %vm3735_vm13 = vcmp.ge.f32.partialorder %v3446_v26, 0.0 }
 0x49c   :  { %v3450_v9 = vpop.f32.mrb[126].mxu1  ;;  %v4128_v29 = vmul.f32 0.1, %v3448_v12  ;;  %vm3736_vm14 = vcmp.ge.f32.partialorder %v3448_v12, 0.0 }
 0x49d   :  { %5902 = vmatmul.mubr.bf16.gmra.mrb[0].mxu0 %v21883_v17  ;;  %v3452_v4 = vpop.f32.mrb[127].mxu1  ;;  %v17835_v17 = vsel %vm3728_vm12, %v3442_v42, %v4120_v27  ;;  %v4135_v15 = vmul.f32 0.1, %v3450_v9  ;;  %vm3743_vm15 = vcmp.ge.f32.partialorder %v3450_v9, 0.0 }
 0x49e   :  { %5909 = vmatprep.mubr.bf16.mxu0 %v21884_v31  ;;  %21888 = vst [vmem:[#allocation89_spill] sm:$0xff] %v17835_v17  ;;  %v21891_v31 = vpack.c.bf16 %v21889_v40, %v21890_v41  ;;  %v4136_v30 = vmul.f32 0.1, %v3452_v4  ;;  %vm3744_vm1 = vcmp.ge.f32.partialorder %v3452_v4, 0.0  ;;  %v17847_v41 = vsel %vm3735_vm13, %v3446_v26, %v4127_v43 }
 0x49f   :  { %21895 = vst [vmem:[#allocation88_spill] sm:$0xff] %v17847_v41  ;;  %v17851_v54 = vsel %vm3743_vm15, %v3450_v9, %v4135_v15 }
 0x4a0   :  { %21896 = vst [vmem:[#allocation90_spill] sm:$0xff] %v17851_v54  ;;  %v17853_v58 = vsel %vm3744_vm1, %v3452_v4, %v4136_v30 }
 0x4a2   :  { %v3456_v42 = vpop.f32.mrb[128].mxu1 }
 0x4a3   :  { %v3458_v25 = vpop.f32.mrb[129].mxu1  ;;  %v4143_v0 = vmul.f32 0.1, %v3456_v42  ;;  %vm3751_vm2 = vcmp.ge.f32.partialorder %v3456_v42, 0.0 }
 0x4a4   :  { %v3460_v27 = vpop.f32.mrb[130].mxu1  ;;  %v4144_v62 = vmul.f32 0.1, %v3458_v25  ;;  %vm3752_vm3 = vcmp.ge.f32.partialorder %v3458_v25, 0.0 }
 0x4a5   :  { %5910 = vmatmul.mubr.bf16.gmra.mrb[4].mxu0 %v21891_v31  ;;  %v3462_v40 = vpop.f32.mrb[131].mxu1  ;;  %v17849_v31 = vsel %vm3736_vm14, %v3448_v12, %v4128_v29  ;;  %v21900_v29 = vpack.c.bf16 %v16824_v52, %v16821_v23  ;;  %v4151_v43 = vmul.f32 0.1, %v3460_v27  ;;  %vm3759_vm4 = vcmp.ge.f32.partialorder %v3460_v27, 0.0  ;;  %v21903_v23 = vld [vmem:[#allocation123_spill] sm:$0xff]  ;;  %v21904_v52 = vld [vmem:[#allocation122_spill] sm:$0xff] }
 0x4a6   :  { %5917 = vmatprep.mubr.bf16.mxu0 %v21894_v46  ;;  %v21899_v46 = vpack.c.bf16 %v21897_v5, %v21898_v32  ;;  %v4152_v26 = vmul.f32 0.1, %v3462_v40  ;;  %vm3760_vm5 = vcmp.ge.f32.partialorder %v3462_v40, 0.0  ;;  %v17865_v30 = vsel %vm3751_vm2, %v3456_v42, %v4143_v0 }
 0x4a7   :  { %21901 = vst [vmem:[#allocation92_spill] sm:$0xff] %v17865_v30  ;;  %v17867_v5 = vsel %vm3752_vm3, %v3458_v25, %v4144_v62  ;;  %v17869_v32 = vsel %vm3759_vm4, %v3460_v27, %v4151_v43  ;;  %v21906_v0 = vpack.c.bf16 %v16887_v55, %v16882_v59  ;;  %v21907_v59 = vld [vmem:[#allocation127_spill] sm:$0xff]  ;;  %v21908_v55 = vld [vmem:[#allocation126_spill] sm:$0xff] }
 0x4a8   :  { %21902 = vst [vmem:[#allocation91_spill] sm:$0xff] %v17869_v32 }
 0x4aa   :  { %v3466_v12 = vpop.f32.mrb[132].mxu1 }
 0x4ab   :  { %v3468_v9 = vpop.f32.mrb[133].mxu1  ;;  %v4159_v17 = vmul.f32 0.1, %v3466_v12  ;;  %vm3767_vm0 = vcmp.ge.f32.partialorder %v3466_v12, 0.0 }
 0x4ac   :  { %v3470_v4 = vpop.f32.mrb[134].mxu1  ;;  %v4160_v10 = vmul.f32 0.1, %v3468_v9  ;;  %vm3768_vm6 = vcmp.ge.f32.partialorder %v3468_v9, 0.0 }
 0x4ad   :  { %5918 = vmatmul.mubr.bf16.gmra.mrb[8].mxu0 %v21899_v46  ;;  %v3472_v15 = vpop.f32.mrb[135].mxu1  ;;  %v17871_v46 = vsel %vm3760_vm5, %v3462_v40, %v4152_v26  ;;  %v4167_v62 = vmul.f32 0.1, %v3470_v4  ;;  %vm3775_vm7 = vcmp.ge.f32.partialorder %v3470_v4, 0.0  ;;  %v17883_v26 = vsel %vm3767_vm0, %v3466_v12, %v4159_v17 }
 0x4ae   :  { %5925 = vmatprep.mubr.bf16.mxu0 %v21900_v29  ;;  %v21905_v29 = vpack.c.bf16 %v21903_v23, %v21904_v52  ;;  %v4168_v42 = vmul.f32 0.1, %v3472_v15  ;;  %vm3776_vm8 = vcmp.ge.f32.partialorder %v3472_v15, 0.0  ;;  %v17885_v23 = vsel %vm3768_vm6, %v3468_v9, %v4160_v10 }
 0x4af   :  { %v17887_v52 = vsel %vm3775_vm7, %v3470_v4, %v4167_v62  ;;  %v21910_v10 = vpack.c.bf16 %v16950_v22, %v16945_v38  ;;  %v21911_v38 = vpack.c.bf16 %v16865_v39, %v16844_v16 }
 0x4b2   :  { %v3476_v25 = vpop.f32.mrb[136].mxu1 }
 0x4b3   :  { %v3478_v27 = vpop.f32.mrb[137].mxu1  ;;  %v4175_v54 = vmul.f32 0.1, %v3476_v25  ;;  %vm3783_vm9 = vcmp.ge.f32.partialorder %v3476_v25, 0.0 }
 0x4b4   :  { %v3480_v40 = vpop.f32.mrb[138].mxu1  ;;  %v4176_v41 = vmul.f32 0.1, %v3478_v27  ;;  %vm3784_vm10 = vcmp.ge.f32.partialorder %v3478_v27, 0.0 }
 0x4b5   :  { %5926 = vmatmul.mubr.bf16.gmra.mrb[12].mxu0 %v21905_v29  ;;  %v3482_v43 = vpop.f32.mrb[139].mxu1  ;;  %v17889_v29 = vsel %vm3776_vm8, %v3472_v15, %v4168_v42  ;;  %v4183_v17 = vmul.f32 0.1, %v3480_v40  ;;  %vm3791_vm11 = vcmp.ge.f32.partialorder %v3480_v40, 0.0  ;;  %v17901_v42 = vsel %vm3783_vm9, %v3476_v25, %v4175_v54 }
 0x4b6   :  { %5933 = vmatprep.mubr.bf16.mxu0 %v21906_v0  ;;  %v21909_v0 = vpack.c.bf16 %v21907_v59, %v21908_v55  ;;  %v4184_v12 = vmul.f32 0.1, %v3482_v43  ;;  %vm3792_vm12 = vcmp.ge.f32.partialorder %v3482_v43, 0.0  ;;  %v17903_v59 = vsel %vm3784_vm10, %v3478_v27, %v4176_v41 }
 0x4b7   :  { %v17905_v55 = vsel %vm3791_vm11, %v3480_v40, %v4183_v17  ;;  %v21912_v54 = vpack.c.bf16 %v17011_v1, %v17005_v28  ;;  %v21915_v1 = vpack.c.bf16 %v16928_v56, %v16907_v21  ;;  %vm4020_vm9 = vcmp.ge.f32.partialorder %v17132_v63, 0.0 }
 0x4ba   :  { %v3486_v9 = vpop.f32.mrb[140].mxu1 }
 0x4bb   :  { %v3488_v4 = vpop.f32.mrb[141].mxu1  ;;  %v4191_v22 = vmul.f32 0.1, %v3486_v9  ;;  %vm3799_vm13 = vcmp.ge.f32.partialorder %v3486_v9, 0.0 }
 0x4bc   :  { %v3490_v15 = vpop.f32.mrb[142].mxu1  ;;  %vm3800_vm14 = vcmp.ge.f32.partialorder %v3488_v4, 0.0 }
 0x4bd   :  { %5934 = vmatmul.mubr.bf16.gmra.mrb[16].mxu0 %v21909_v0  ;;  %v3492_v62 = vpop.f32.mrb[143].mxu1  ;;  %v17907_v0 = vsel %vm3792_vm12, %v3482_v43, %v4184_v12  ;;  %v4199_v41 = vmul.f32 0.1, %v3490_v15  ;;  %vm3807_vm15 = vcmp.ge.f32.partialorder %v3490_v15, 0.0  ;;  %v17919_v43 = vsel %vm3799_vm13, %v3486_v9, %v4191_v22 }
 0x4be   :  { %5941 = vmatprep.mubr.bf16.mxu0 %v21910_v10  ;;  %v4192_v10 = vmul.f32 0.1, %v3488_v4  ;;  %v4200_v25 = vmul.f32 0.1, %v3492_v62  ;;  %vm3808_vm1 = vcmp.ge.f32.partialorder %v3492_v62, 0.0  ;;  %21913 = vst [vmem:[#allocation93_spill] sm:$0xff] %v17919_v43  ;;  %v21916_v9 = vpack.c.bf16 %v17069_v50, %v17063_v33 }
 0x4bf   :  { %v17923_v12 = vsel %vm3807_vm15, %v3490_v15, %v4199_v41  ;;  %v21918_v50 = vld [vmem:[#allocation141_spill] sm:$0xff]  ;;  %v21919_v33 = vld [vmem:[#allocation138_spill] sm:$0xff] }
 0x4c0   :  { %v17921_v17 = vsel %vm3800_vm14, %v3488_v4, %v4192_v10  ;;  %21914 = vst [vmem:[#allocation95_spill] sm:$0xff] %v17923_v12 }
 0x4c2   :  { %v3496_v27 = vpop.f32.mrb[144].mxu1 }
 0x4c3   :  { %v3498_v16 = vpop.f32.mrb[145].mxu1  ;;  %v4207_v28 = vmul.f32 0.1, %v3496_v27  ;;  %vm3815_vm2 = vcmp.ge.f32.partialorder %v3496_v27, 0.0 }
 0x4c4   :  { %v3500_v39 = vpop.f32.mrb[146].mxu1  ;;  %vm3816_vm3 = vcmp.ge.f32.partialorder %v3498_v16, 0.0 }
 0x4c5   :  { %5942 = vmatmul.mubr.bf16.gmra.mrb[20].mxu0 %v21911_v38  ;;  %v3502_v40 = vpop.f32.mrb[147].mxu1  ;;  %v17925_v38 = vsel %vm3808_vm1, %v3492_v62, %v4200_v25  ;;  %v4215_v4 = vmul.f32 0.1, %v3500_v39  ;;  %vm3823_vm4 = vcmp.ge.f32.partialorder %v3500_v39, 0.0  ;;  %v17937_v10 = vsel %vm3815_vm2, %v3496_v27, %v4207_v28 }
 0x4c6   :  { %5949 = vmatprep.mubr.bf16.mxu0 %v21912_v54  ;;  %v4208_v54 = vmul.f32 0.1, %v3498_v16  ;;  %v4216_v15 = vmul.f32 0.1, %v3502_v40  ;;  %vm3824_vm5 = vcmp.ge.f32.partialorder %v3502_v40, 0.0  ;;  %21917 = vst [vmem:[#allocation94_spill] sm:$0xff] %v17937_v10  ;;  %v21921_v27 = vpack.c.bf16 %v17123_v8, %v17120_v11 }
 0x4c7   :  { %v17941_v25 = vsel %vm3823_vm4, %v3500_v39, %v4215_v4  ;;  %v4412_v11 = vmul.f32 0.1, %v17132_v63  ;;  %v21925_v8 = vld [vmem:[#allocation5_spill] sm:$0xff]  ;;  %vm4019_vm1 = vcmp.ge.f32.partialorder %v17130_v14, 0.0 }
 0x4c8   :  { %v17939_v41 = vsel %vm3816_vm3, %v3498_v16, %v4208_v54 }
 0x4ca   :  { %v3506_v62 = vpop.f32.mrb[148].mxu1 }
 0x4cb   :  { %v3508_v21 = vpop.f32.mrb[149].mxu1  ;;  %v4223_v32 = vmul.f32 0.1, %v3506_v62  ;;  %vm3831_vm0 = vcmp.ge.f32.partialorder %v3506_v62, 0.0 }
 0x4cc   :  { %v3510_v56 = vpop.f32.mrb[150].mxu1  ;;  %v4224_v30 = vmul.f32 0.1, %v3508_v21  ;;  %vm3832_vm6 = vcmp.ge.f32.partialorder %v3508_v21, 0.0 }
 0x4cd   :  { %5950 = vmatmul.mubr.bf16.gmra.mrb[24].mxu0 %v21915_v1  ;;  %v3512_v22 = vpop.f32.mrb[151].mxu1  ;;  %v17943_v1 = vsel %vm3824_vm5, %v3502_v40, %v4216_v15  ;;  %v4231_v16 = vmul.f32 0.1, %v3510_v56  ;;  %vm3839_vm7 = vcmp.ge.f32.partialorder %v3510_v56, 0.0  ;;  %v17955_v15 = vsel %vm3831_vm0, %v3506_v62, %v4223_v32 }
 0x4ce   :  { %5957 = vmatprep.mubr.bf16.mxu0 %v21916_v9  ;;  %v21920_v9 = vpack.c.bf16 %v21918_v50, %v21919_v33  ;;  %v4232_v39 = vmul.f32 0.1, %v3512_v22  ;;  %vm3840_vm8 = vcmp.ge.f32.partialorder %v3512_v22, 0.0  ;;  %21922 = vst [vmem:[#allocation96_spill] sm:$0xff] %v17955_v15  ;;  %v17957_v50 = vsel %vm3832_vm6, %v3508_v21, %v4224_v30 }
 0x4cf   :  { %21923 = vst [vmem:[#allocation98_spill] sm:$0xff] %v17957_v50  ;;  %v17959_v33 = vsel %vm3839_vm7, %v3510_v56, %v4231_v16  ;;  %v21928_v62 = vpack.c.bf16 %v17166_v2, %v17163_v60  ;;  %v4411_v50 = vmul.f32 0.1, %v17130_v14 }
 0x4d0   :  { %21924 = vst [vmem:[#allocation97_spill] sm:$0xff] %v17959_v33 }
 0x4d2   :  { %v3516_v40 = vpop.f32.mrb[152].mxu1 }
 0x4d3   :  { %v3518_v28 = vpop.f32.mrb[153].mxu1  ;;  %vm3847_vm10 = vcmp.ge.f32.partialorder %v3516_v40, 0.0  ;;  %v4239_v43 = vmul.f32 0.1, %v3516_v40 }
 0x4d4   :  { %v3520_v54 = vpop.f32.mrb[154].mxu1  ;;  %v4240_v10 = vmul.f32 0.1, %v3518_v28  ;;  %vm3848_vm11 = vcmp.ge.f32.partialorder %v3518_v28, 0.0 }
 0x4d5   :  { %5958 = vmatmul.mubr.bf16.gmra.mrb[28].mxu0 %v21920_v9  ;;  %v3522_v4 = vpop.f32.mrb[155].mxu1  ;;  %v17961_v9 = vsel %vm3840_vm8, %v3512_v22, %v4232_v39  ;;  %v4247_v21 = vmul.f32 0.1, %v3520_v54  ;;  %vm3855_vm12 = vcmp.ge.f32.partialorder %v3520_v54, 0.0  ;;  %v17981_v2 = vsel %vm3847_vm10, %v3516_v40, %v4239_v43  ;;  %v21931_v43 = vld [vmem:[#allocation146_spill] sm:$0xff] }
 0x4d6   :  { %5965 = vmatprep.mubr.bf16.mxu0 %v21921_v27  ;;  %v21926_v27 = vld [vmem:[#allocation144_spill] sm:$0xff]  ;;  %v4248_v56 = vmul.f32 0.1, %v3522_v4  ;;  %vm3856_vm13 = vcmp.ge.f32.partialorder %v3522_v4, 0.0  ;;  %v21932_v40 = vpack.c.bf16 %v17106_v51, %v21931_v43 }
 0x4d7   :  { %v21927_v12 = vpack.c.bf16 %v21925_v8, %v21926_v27  ;;  %v4804_v8 = vsel %vm4020_vm9, %v17132_v63, %v4412_v11  ;;  %v17986_v32 = vsel %vm3855_vm12, %v3520_v54, %v4247_v21 }
 0x4d8   :  { %v17988_v15 = vsel %vm3856_vm13, %v3522_v4, %v4248_v56  ;;  %v5004_v63 = vpack.c.bf16 %v4804_v8, %v4804_v8 }
 0x4da   :  { %v3526_v22 = vpop.f32.mrb[156].mxu1 }
 0x4db   :  { %vm3863_vm14 = vcmp.ge.f32.partialorder %v3526_v22, 0.0  ;;  %v3528_v16 = vpop.f32.mrb[157].mxu1 }
 0x4dc   :  { %v3530_v39 = vpop.f32.mrb[158].mxu1  ;;  %v4256_v54 = vmul.f32 0.1, %v3528_v16  ;;  %vm3864_vm2 = vcmp.ge.f32.partialorder %v3528_v16, 0.0 }
 0x4dd   :  { %5966 = vmatmul.mubr.bf16.gmra.mrb[32].mxu0 %v21927_v12  ;;  %v4255_v12 = vmul.f32 0.1, %v3526_v22  ;;  %vm3871_vm15 = vcmp.ge.f32.partialorder %v3530_v39, 0.0  ;;  %v4263_v30 = vmul.f32 0.1, %v3530_v39  ;;  %v3532_v60 = vpop.f32.mrb[159].mxu1 }
 0x4de   :  { %5973 = vmatprep.mubr.bf16.mxu0 %v21928_v62  ;;  %v17984_v62 = vsel %vm3848_vm11, %v3518_v28, %v4240_v10  ;;  %v4264_v4 = vmul.f32 0.1, %v3532_v60  ;;  %vm3872_vm3 = vcmp.ge.f32.partialorder %v3532_v60, 0.0  ;;  %v18006_v43 = vsel %vm3864_vm2, %v3528_v16, %v4256_v54 }
 0x4df   :  { %v17978_v27 = vsel %vm3863_vm14, %v3526_v22, %v4255_v12  ;;  %v17990_v33 = vsel %vm3871_vm15, %v3530_v39, %v4263_v30  ;;  %v4803_v22 = vsel %vm4019_vm1, %v17130_v14, %v4411_v50  ;;  %21934 = vst [vmem:[#allocation102_spill] sm:$0xff] %v18006_v43  ;;  %v21936_v50 = vld [vmem:[#allocation130_spill] sm:$0xff]  ;;  %v21942_v14 = vld [vmem:[#allocation129_spill] sm:$0xff] }
 0x4e0   :  { %21929 = vst [vmem:[#allocation99_spill] sm:$0xff] %v17978_v27  ;;  %21930 = vst [vmem:[#allocation101_spill] sm:$0xff] %v17990_v33  ;;  %v21946_v33 = vld [vmem:[#allocation135_spill] sm:$0xff] }
 0x4e2   :  { %v3536_v30 = vpop.f32.mrb[160].mxu1 }
 0x4e3   :  { %vm3879_vm4 = vcmp.ge.f32.partialorder %v3536_v30, 0.0  ;;  %v4271_v21 = vmul.f32 0.1, %v3536_v30  ;;  %v3538_v56 = vpop.f32.mrb[161].mxu1 }
 0x4e4   :  { %v3540_v12 = vpop.f32.mrb[162].mxu1  ;;  %v4272_v10 = vmul.f32 0.1, %v3538_v56  ;;  %vm3880_vm0 = vcmp.ge.f32.partialorder %v3538_v56, 0.0 }
 0x4e5   :  { %5974 = vmatmul.mubr.bf16.gmra.mrb[36].mxu0 %v21932_v40  ;;  %v18004_v51 = vsel %vm3879_vm4, %v3536_v30, %v4271_v21  ;;  %vm3887_vm5 = vcmp.ge.f32.partialorder %v3540_v12, 0.0  ;;  %v4279_v39 = vmul.f32 0.1, %v3540_v12  ;;  %v3542_v8 = vpop.f32.mrb[163].mxu1  ;;  %v18008_v40 = vsel %vm3872_vm3, %v3532_v60, %v4264_v4  ;;  %v21937_v30 = vld [vmem:[#allocation131_spill] sm:$0xff] }
 0x4e6   :  { %5981 = vmatprep.mubr.bf16.mxu0 %v5004_v63  ;;  %21933 = vst [vmem:[#allocation100_spill] sm:$0xff] %v18004_v51  ;;  %v5003_v63 = vpack.c.bf16 %v4803_v22, %v4803_v22  ;;  %v21938_v21 = vpack.c.bf16 %v21936_v50, %v21937_v30  ;;  %v4280_v27 = vmul.f32 0.1, %v3542_v8  ;;  %vm3888_vm6 = vcmp.ge.f32.partialorder %v3542_v8, 0.0  ;;  %v21943_v51 = vld [vmem:[#allocation128_spill] sm:$0xff] }
 0x4e7   :  { %v18010_v11 = vsel %vm3887_vm5, %v3540_v12, %v4279_v39  ;;  %v18024_v50 = vsel %vm3880_vm0, %v3538_v56, %v4272_v10 }
 0x4e8   :  { %21935 = vst [vmem:[#allocation104_spill] sm:$0xff] %v18010_v11  ;;  %21940 = vst [vmem:[#allocation106_spill] sm:$0xff] %v18024_v50  ;;  %v18026_v30 = vsel %vm3888_vm6, %v3542_v8, %v4280_v27  ;;  %v21945_v11 = vld [vmem:[#allocation134_spill] sm:$0xff]  ;;  %v14089_v27 = vld [vmem:[%s21084_s2 + $0x188] sm:$0xff]  }
 0x4e9   :  { %v21947_v43 = vpack.c.bf16 %v21945_v11, %v21946_v33  ;;  %v21956_v50 = vld [vmem:[#allocation140_spill] sm:$0xff] }
 0x4ea   :  { %v3546_v16 = vpop.f32.mrb[164].mxu1 }
 0x4eb   :  { %vm3895_vm7 = vcmp.ge.f32.partialorder %v3546_v16, 0.0  ;;  %v4287_v60 = vmul.f32 0.1, %v3546_v16  ;;  %v3548_v54 = vpop.f32.mrb[165].mxu1 }
 0x4ec   :  { %v3550_v4 = vpop.f32.mrb[166].mxu1  ;;  %v4288_v10 = vmul.f32 0.1, %v3548_v54  ;;  %vm3896_vm9 = vcmp.ge.f32.partialorder %v3548_v54, 0.0 }
 0x4ed   :  { %5982 = vmatmul.mubr.bf16.gmra.mrb[40].mxu0 %v5003_v63  ;;  %v18019_v22 = vsel %vm3895_vm7, %v3546_v16, %v4287_v60  ;;  %vm3903_vm8 = vcmp.ge.f32.partialorder %v3550_v4, 0.0  ;;  %v4295_v12 = vmul.f32 0.1, %v3550_v4  ;;  %v3552_v39 = vpop.f32.mrb[167].mxu1  ;;  %v14088_v63 = vld [vmem:[%s21084_s2 + $0x180] sm:$0xff]   ;;  %v21944_v16 = vpack.c.bf16 %v21942_v14, %v21943_v51  ;;  %v21953_v60 = vld [vmem:[#allocation132_spill] sm:$0xff] }
 0x4ee   :  { %6021 = vmatprep.mubr.bf16.mxu0 %v21938_v21  ;;  %21939 = vst [vmem:[#allocation103_spill] sm:$0xff] %v18019_v22  ;;  %v4296_v56 = vmul.f32 0.1, %v3552_v39  ;;  %vm3904_vm10 = vcmp.ge.f32.partialorder %v3552_v39, 0.0 }
 0x4ef   :  { %v18028_v21 = vsel %vm3903_vm8, %v3550_v4, %v4295_v12 }
 0x4f0   :  { %21941 = vst [vmem:[#allocation105_spill] sm:$0xff] %v18028_v21  ;;  %v21955_v21 = vld [vmem:[#allocation139_spill] sm:$0xff] }
 0x4f2   :  { %v3556_v8 = vpop.f32.mrb[168].mxu1 }
 0x4f3   :  { %vm3911_vm11 = vcmp.ge.f32.partialorder %v3556_v8, 0.0  ;;  %v4303_v51 = vmul.f32 0.1, %v3556_v8  ;;  %v3558_v14 = vpop.f32.mrb[169].mxu1 }
 0x4f4   :  { %v3560_v4 = vpop.f32.mrb[170].mxu1  ;;  %vm3912_vm13 = vcmp.ge.f32.partialorder %v3558_v14, 0.0 }
 0x4f5   :  { %6022 = vmatmul.mubr.bf16.vlgmr.msra.gmra.mrb[200].mxu0 %v21944_v16  ;;  %v18044_v12 = vsel %vm3911_vm11, %v3556_v8, %v4303_v51  ;;  %vm3919_vm12 = vcmp.ge.f32.partialorder %v3560_v4, 0.0  ;;  %v4311_v33 = vmul.f32 0.1, %v3560_v4  ;;  %v3562_v11 = vpop.f32.mrb[171].mxu1  ;;  %v18051_v16 = vsel %vm3904_vm10, %v3552_v39, %v4296_v56  ;;  %v21952_v51 = vld [vmem:[#allocation133_spill] sm:$0xff]  ;;  %v14091_v39 = vld [vmem:[%s21084_s2 + $0x198] sm:$0xff]  }
 0x4f6   :  { %6029 = vmatprep.mubr.bf16.mxu0 %v21947_v43  ;;  %6222 = vmatpush1.bf16.msra.mxu0 %v14088_v63  ;;  %21948 = vst [vmem:[#allocation108_spill] sm:$0xff] %v18044_v12  ;;  %v14090_v43 = vld [vmem:[%s21084_s2 + $0x190] sm:$0xff]   ;;  %v18049_v63 = vsel %vm3896_vm9, %v3548_v54, %v4288_v10  ;;  %21950 = vst [vmem:[#allocation110_spill] sm:$0xff] %v18051_v16  ;;  %v21954_v22 = vpack.c.bf16 %v21952_v51, %v21953_v60  ;;  %v4304_v10 = vmul.f32 0.1, %v3558_v14  ;;  %v21963_v12 = vld [vmem:[#allocation136_spill] sm:$0xff] }
 0x4f7   :  { %6223 = vmatprep.subr.bf16.mxu0 %v21453_v61  ;;  %21949 = vst [vmem:[#allocation107_spill] sm:$0xff] %v18049_v63  ;;  %v18054_v28 = vsel %vm3919_vm12, %v3560_v4, %v4311_v33  ;;  %v21957_v54 = vpack.c.bf16 %v21955_v21, %v21956_v50  ;;  %v4312_v56 = vmul.f32 0.1, %v3562_v11  ;;  %vm3920_vm14 = vcmp.ge.f32.partialorder %v3562_v11, 0.0  ;;  %v21965_v63 = vld [vmem:[#allocation145_spill] sm:$0xff]  ;;  %v21966_v16 = vld [vmem:[#allocation6_spill] sm:$0xff] }
 0x4f8   :  { %21951 = vst [vmem:[#allocation109_spill] sm:$0xff] %v18054_v28 }
 0x4f9   :  { %v18077_v8 = vsel %vm3920_vm14, %v3562_v11, %v4312_v56  ;;  %v14093_v11 = vld [vmem:[%s21084_s2 + $0x1a8] sm:$0xff]  }
 0x4fa   :  { %6224 = vmatpush1.bf16.msra.mxu0 %v14089_v27  ;;  %v3566_v4 = vpop.f32.mrb[172].mxu1  ;;  %21960 = vst [vmem:[#allocation113_spill] sm:$0xff] %v18077_v8  ;;  %v21976_v8 = vld [vmem:[#allocation4_spill] sm:$0xff] }
 0x4fb   :  { %6225 = vmatprep.subr.bf16.mxu0 %v21453_v61  ;;  %vm3927_vm15 = vcmp.ge.f32.partialorder %v3566_v4, 0.0  ;;  %v3568_v60 = vpop.f32.mrb[173].mxu1 }
 0x4fc   :  { %v3570_v33 = vpop.f32.mrb[174].mxu1  ;;  %vm3928_vm2 = vcmp.ge.f32.partialorder %v3568_v60, 0.0 }
 0x4fd   :  { %6030 = vmatmul.mubr.bf16.gmra.mrb[204].mxu0 %v21954_v22  ;;  %v4319_v22 = vmul.f32 0.1, %v3566_v4  ;;  %vm3935_vm1 = vcmp.ge.f32.partialorder %v3570_v33, 0.0  ;;  %v4327_v50 = vmul.f32 0.1, %v3570_v33  ;;  %v3572_v21 = vpop.f32.mrb[175].mxu1 }
 0x4fe   :  { %6037 = vmatprep.mubr.bf16.mxu0 %v21957_v54  ;;  %6226 = vmatpush1.bf16.msra.mxu0 %v14090_v43  ;;  %v14092_v43 = vld [vmem:[%s21084_s2 + $0x1a0] sm:$0xff]   ;;  %v18075_v54 = vsel %vm3912_vm13, %v3558_v14, %v4304_v10  ;;  %v21967_v14 = vpack.c.bf16 %v21965_v63, %v21966_v16  ;;  %v4320_v10 = vmul.f32 0.1, %v3568_v60  ;;  %v4328_v56 = vmul.f32 0.1, %v3572_v21 }
 0x4ff   :  { %6227 = vmatprep.subr.bf16.mxu0 %v21453_v61  ;;  %v18070_v51 = vsel %vm3927_vm15, %v3566_v4, %v4319_v22  ;;  %21959 = vst [vmem:[#allocation112_spill] sm:$0xff] %v18075_v54  ;;  %v18080_v27 = vsel %vm3935_vm1, %v3570_v33, %v4327_v50  ;;  %v21962_v22 = vld [vmem:[#allocation137_spill] sm:$0xff]  ;;  %vm3936_vm3 = vcmp.ge.f32.partialorder %v3572_v21, 0.0  ;;  %v21975_v54 = vld [vmem:[#allocation3_spill] sm:$0xff] }
 0x500   :  { %21958 = vst [vmem:[#allocation114_spill] sm:$0xff] %v18070_v51  ;;  %21961 = vst [vmem:[#allocation111_spill] sm:$0xff] %v18080_v27  ;;  %v21964_v28 = vpack.c.bf16 %v21962_v22, %v21963_v12  ;;  %v18103_v4 = vsel %vm3936_vm3, %v3572_v21, %v4328_v56  ;;  %v21973_v51 = vld [vmem:[#allocation142_spill] sm:$0xff] }
 0x501   :  { %21970 = vst [vmem:[#allocation117_spill] sm:$0xff] %v18103_v4  ;;  %v14095_v21 = vld [vmem:[%s21084_s2 + $0x1b8] sm:$0xff]  }
 0x502   :  { %6228 = vmatpush1.bf16.msra.mxu0 %v14091_v39  ;;  %v3576_v33 = vpop.f32.mrb[176].mxu1  ;;  %v21986_v4 = vld [vmem:[#allocation10_spill] sm:$0xff] }
 0x503   :  { %6229 = vmatprep.subr.bf16.mxu0 %v21453_v61  ;;  %vm3943_vm4 = vcmp.ge.f32.partialorder %v3576_v33, 0.0  ;;  %v3578_v12 = vpop.f32.mrb[177].mxu1 }
 0x504   :  { %v3580_v50 = vpop.f32.mrb[178].mxu1  ;;  %vm3944_vm0 = vcmp.ge.f32.partialorder %v3578_v12, 0.0 }
 0x505   :  { %6038 = vmatmul.mubr.bf16.gmra.mrb[208].mxu0 %v21964_v28  ;;  %v4335_v28 = vmul.f32 0.1, %v3576_v33  ;;  %vm3951_vm5 = vcmp.ge.f32.partialorder %v3580_v50, 0.0  ;;  %v4343_v63 = vmul.f32 0.1, %v3580_v50  ;;  %v3582_v16 = vpop.f32.mrb[179].mxu1 }
 0x506   :  { %6045 = vmatprep.mubr.bf16.mxu0 %v21967_v14  ;;  %6230 = vmatpush1.bf16.msra.mxu0 %v14092_v43  ;;  %v14094_v43 = vld [vmem:[%s21084_s2 + $0x1b0] sm:$0xff]   ;;  %v18101_v14 = vsel %vm3928_vm2, %v3568_v60, %v4320_v10  ;;  %v21977_v60 = vpack.c.bf16 %v21975_v54, %v21976_v8  ;;  %v4336_v10 = vmul.f32 0.1, %v3578_v12  ;;  %v4344_v56 = vmul.f32 0.1, %v3582_v16 }
 0x507   :  { %6231 = vmatprep.subr.bf16.mxu0 %v21453_v61  ;;  %v18096_v22 = vsel %vm3943_vm4, %v3576_v33, %v4335_v28  ;;  %21969 = vst [vmem:[#allocation115_spill] sm:$0xff] %v18101_v14  ;;  %v18106_v39 = vsel %vm3951_vm5, %v3580_v50, %v4343_v63  ;;  %v21972_v28 = vld [vmem:[#allocation143_spill] sm:$0xff]  ;;  %vm3952_vm6 = vcmp.ge.f32.partialorder %v3582_v16, 0.0  ;;  %v21985_v14 = vld [vmem:[#allocation8_spill] sm:$0xff] }
 0x508   :  { %21968 = vst [vmem:[#allocation116_spill] sm:$0xff] %v18096_v22  ;;  %21971 = vst [vmem:[#allocation119_spill] sm:$0xff] %v18106_v39  ;;  %v21974_v27 = vpack.c.bf16 %v21972_v28, %v21973_v51  ;;  %v18129_v33 = vsel %vm3952_vm6, %v3582_v16, %v4344_v56  ;;  %v21983_v22 = vld [vmem:[#allocation147_spill] sm:$0xff]  ;;  %v14097_v16 = vld [vmem:[%s21084_s2 + $0x1c8] sm:$0xff]  }
 0x509   :  { %21980 = vst [vmem:[#allocation124_spill] sm:$0xff] %v18129_v33  ;;  %v21996_v33 = vld [vmem:[#allocation9_spill] sm:$0xff] }
 0x50a   :  { %6232 = vmatpush1.bf16.msra.mxu0 %v14093_v11  ;;  %v3586_v50 = vpop.f32.mrb[180].mxu1 }
 0x50b   :  { %6233 = vmatprep.subr.bf16.mxu0 %v21453_v61  ;;  %vm3959_vm7 = vcmp.ge.f32.partialorder %v3586_v50, 0.0  ;;  %v3588_v51 = vpop.f32.mrb[181].mxu1 }
 0x50c   :  { %v3590_v63 = vpop.f32.mrb[182].mxu1  ;;  %vm3960_vm9 = vcmp.ge.f32.partialorder %v3588_v51, 0.0 }
 0x50d   :  { %6046 = vmatmul.mubr.bf16.gmra.mrb[212].mxu0 %v21974_v27  ;;  %v4351_v27 = vmul.f32 0.1, %v3586_v50  ;;  %vm3967_vm8 = vcmp.ge.f32.partialorder %v3590_v63, 0.0  ;;  %v4359_v8 = vmul.f32 0.1, %v3590_v63  ;;  %v3592_v54 = vpop.f32.mrb[183].mxu1 }
 0x50e   :  { %6053 = vmatprep.mubr.bf16.mxu0 %v21977_v60  ;;  %6234 = vmatpush1.bf16.msra.mxu0 %v14094_v43  ;;  %v14096_v43 = vld [vmem:[%s21084_s2 + $0x1c0] sm:$0xff]   ;;  %v18127_v60 = vsel %vm3944_vm0, %v3578_v12, %v4336_v10  ;;  %v21987_v12 = vpack.c.bf16 %v21985_v14, %v21986_v4  ;;  %v4352_v10 = vmul.f32 0.1, %v3588_v51  ;;  %v4360_v56 = vmul.f32 0.1, %v3592_v54 }
 0x50f   :  { %6235 = vmatprep.subr.bf16.mxu0 %v21453_v61  ;;  %v18122_v28 = vsel %vm3959_vm7, %v3586_v50, %v4351_v27  ;;  %21979 = vst [vmem:[#allocation125_spill] sm:$0xff] %v18127_v60  ;;  %v18132_v11 = vsel %vm3967_vm8, %v3590_v63, %v4359_v8  ;;  %v21982_v27 = vld [vmem:[#allocation148_spill] sm:$0xff]  ;;  %vm3968_vm10 = vcmp.ge.f32.partialorder %v3592_v54, 0.0  ;;  %v21995_v60 = vld [vmem:[#allocation14_spill] sm:$0xff]  ;;  %vm4022_vm7 = vcmp.ge.f32.partialorder %v17597_v3, 0.0 }
 0x510   :  { %21978 = vst [vmem:[#allocation118_spill] sm:$0xff] %v18122_v28  ;;  %21981 = vst [vmem:[#allocation121_spill] sm:$0xff] %v18132_v11  ;;  %v21984_v39 = vpack.c.bf16 %v21982_v27, %v21983_v22  ;;  %v18155_v50 = vsel %vm3968_vm10, %v3592_v54, %v4360_v56  ;;  %v21993_v28 = vld [vmem:[#allocation11_spill] sm:$0xff]  ;;  %v14099_v54 = vld [vmem:[%s21084_s2 + $0x1d8] sm:$0xff]   ;;  %vm4021_vm8 = vcmp.ge.f32.partialorder %v17595_v34, 0.0 }
 0x511   :  { %21990 = vst [vmem:[#allocation122_spill] sm:$0xff] %v18155_v50  ;;  %v22005_v50 = vld [vmem:[#allocation15_spill] sm:$0xff] }
 0x512   :  { %6236 = vmatpush1.bf16.msra.mxu0 %v14095_v21  ;;  %v3596_v63 = vpop.f32.mrb[184].mxu1 }
 0x513   :  { %6237 = vmatprep.subr.bf16.mxu0 %v21453_v61  ;;  %vm3975_vm11 = vcmp.ge.f32.partialorder %v3596_v63, 0.0  ;;  %v3598_v22 = vpop.f32.mrb[185].mxu1 }
 0x514   :  { %v3600_v8 = vpop.f32.mrb[186].mxu1  ;;  %vm3976_vm13 = vcmp.ge.f32.partialorder %v3598_v22, 0.0 }
 0x515   :  { %6054 = vmatmul.mubr.bf16.gmra.mrb[216].mxu0 %v21984_v39  ;;  %v4367_v39 = vmul.f32 0.1, %v3596_v63  ;;  %vm3983_vm12 = vcmp.ge.f32.partialorder %v3600_v8, 0.0  ;;  %v4375_v4 = vmul.f32 0.1, %v3600_v8  ;;  %v3602_v14 = vpop.f32.mrb[187].mxu1 }
 0x516   :  { %6061 = vmatprep.mubr.bf16.mxu0 %v21987_v12  ;;  %6238 = vmatpush1.bf16.msra.mxu0 %v14096_v43  ;;  %v14098_v43 = vld [vmem:[%s21084_s2 + $0x1d0] sm:$0xff]   ;;  %v18153_v12 = vsel %vm3960_vm9, %v3588_v51, %v4352_v10  ;;  %v21997_v51 = vpack.c.bf16 %v21995_v60, %v21996_v33  ;;  %v4368_v10 = vmul.f32 0.1, %v3598_v22  ;;  %v4376_v56 = vmul.f32 0.1, %v3602_v14 }
 0x517   :  { %6239 = vmatprep.subr.bf16.mxu0 %v21453_v61  ;;  %v18148_v27 = vsel %vm3975_vm11, %v3596_v63, %v4367_v39  ;;  %21989 = vst [vmem:[#allocation123_spill] sm:$0xff] %v18153_v12  ;;  %v18158_v21 = vsel %vm3983_vm12, %v3600_v8, %v4375_v4  ;;  %v21992_v39 = vld [vmem:[#allocation149_spill] sm:$0xff]  ;;  %vm3984_vm14 = vcmp.ge.f32.partialorder %v3602_v14, 0.0  ;;  %v22004_v12 = vld [vmem:[#allocation18_spill] sm:$0xff] }
 0x518   :  { %21988 = vst [vmem:[#allocation120_spill] sm:$0xff] %v18148_v27  ;;  %21991 = vst [vmem:[#allocation127_spill] sm:$0xff] %v18158_v21  ;;  %v21994_v11 = vpack.c.bf16 %v21992_v39, %v21993_v28  ;;  %v18181_v63 = vsel %vm3984_vm14, %v3602_v14, %v4376_v56  ;;  %v22002_v27 = vld [vmem:[#allocation7_spill] sm:$0xff] }
 0x51a   :  { %6240 = vmatpush1.bf16.msra.mxu0 %v14097_v16  ;;  %v3606_v8 = vpop.f32.mrb[188].mxu1 }
 0x51b   :  { %6241 = vmatprep.subr.bf16.mxu0 %v21453_v61  ;;  %vm3991_vm15 = vcmp.ge.f32.partialorder %v3606_v8, 0.0  ;;  %v3608_v28 = vpop.f32.mrb[189].mxu1 }
 0x51c   :  { %v3610_v4 = vpop.f32.mrb[190].mxu1  ;;  %v4384_v14 = vmul.f32 0.1, %v3608_v28  ;;  %vm3992_vm2 = vcmp.ge.f32.partialorder %v3608_v28, 0.0 }
 0x51d   :  { %6062 = vmatmul.mubr.bf16.gmra.mrb[220].mxu0 %v21994_v11  ;;  %v4383_v11 = vmul.f32 0.1, %v3606_v8  ;;  %vm3999_vm1 = vcmp.ge.f32.partialorder %v3610_v4, 0.0  ;;  %v4391_v33 = vmul.f32 0.1, %v3610_v4  ;;  %v3612_v60 = vpop.f32.mrb[191].mxu1 }
 0x51e   :  { %6069 = vmatprep.mubr.bf16.mxu0 %v21997_v51  ;;  %6242 = vmatpush1.bf16.msra.mxu0 %v14098_v43  ;;  %v14100_v43 = vld [vmem:[%s21084_s2 + $0x1e0] sm:$0xff]   ;;  %v18179_v51 = vsel %vm3976_vm13, %v3598_v22, %v4368_v10  ;;  %v22006_v22 = vpack.c.bf16 %v22004_v12, %v22005_v50  ;;  %v14101_v10 = vld [vmem:[%s21084_s2 + $0x1e8] sm:$0xff]   ;;  %v4392_v56 = vmul.f32 0.1, %v3612_v60  ;;  %vm4000_vm3 = vcmp.ge.f32.partialorder %v3612_v60, 0.0 }
 0x51f   :  { %6243 = vmatprep.subr.bf16.mxu0 %v21453_v61  ;;  %v18174_v39 = vsel %vm3991_vm15, %v3606_v8, %v4383_v11  ;;  %21999 = vst [vmem:[#allocation141_spill] sm:$0xff] %v18179_v51  ;;  %v18184_v16 = vsel %vm3999_vm1, %v3610_v4, %v4391_v33  ;;  %v22001_v11 = vld [vmem:[#allocation12_spill] sm:$0xff]  ;;  %v14102_v8 = vld [vmem:[%s21084_s2 + $0x1f0] sm:$0xff]  }
 0x520   :  { %21998 = vst [vmem:[#allocation126_spill] sm:$0xff] %v18174_v39  ;;  %22000 = vst [vmem:[#allocation138_spill] sm:$0xff] %v18184_v16  ;;  %v22003_v21 = vpack.c.bf16 %v22001_v11, %v22002_v27  ;;  %v22010_v39 = vld [vmem:[#allocation13_spill] sm:$0xff] }
 0x522   :  { %6244 = vmatpush1.bf16.msra.mxu0 %v14099_v54  ;;  %v3616_v4 = vpop.f32.mrb[192].mxu1 }
 0x523   :  { %6245 = vmatprep.subr.bf16.mxu0 %v21453_v61  ;;  %vm4007_vm4 = vcmp.ge.f32.partialorder %v3616_v4, 0.0  ;;  %v3618_v27 = vpop.f32.mrb[193].mxu1 }
 0x524   :  { %v3620_v33 = vpop.f32.mrb[194].mxu1  ;;  %vm4008_vm0 = vcmp.ge.f32.partialorder %v3618_v27, 0.0 }
 0x525   :  { %6070 = vmatmul.mubr.bf16.gmra.mrb[224].mxu0 %v22003_v21  ;;  %v4399_v21 = vmul.f32 0.1, %v3616_v4  ;;  %vm4015_vm5 = vcmp.ge.f32.partialorder %v3620_v33, 0.0  ;;  %v4407_v50 = vmul.f32 0.1, %v3620_v33  ;;  %v3622_v12 = vpop.f32.mrb[195].mxu1 }
 0x526   :  { %6077 = vmatprep.mubr.bf16.mxu0 %v22006_v22  ;;  %6246 = vmatpush1.bf16.msra.mxu0 %v14100_v43  ;;  %v18202_v43 = vsel %vm3992_vm2, %v3608_v28, %v4384_v14  ;;  %v18204_v22 = vsel %vm4000_vm3, %v3612_v60, %v4392_v56  ;;  %v22012_v60 = vld [vmem:[#allocation22_spill] sm:$0xff]  ;;  %v22013_v14 = vld [vmem:[#allocation19_spill] sm:$0xff]  ;;  %v4400_v56 = vmul.f32 0.1, %v3618_v27  ;;  %v4408_v51 = vmul.f32 0.1, %v3622_v12 }
 0x527   :  { %6247 = vmatprep.subr.bf16.mxu0 %v21453_v61  ;;  %v18200_v11 = vsel %vm4007_vm4, %v3616_v4, %v4399_v21  ;;  %v18209_v54 = vsel %vm4015_vm5, %v3620_v33, %v4407_v50  ;;  %v22009_v21 = vld [vmem:[#allocation16_spill] sm:$0xff]  ;;  %v14103_v50 = vld [vmem:[%s21084_s2 + $0x1f8] sm:$0xff]   ;;  %vm4016_vm6 = vcmp.ge.f32.partialorder %v3622_v12, 0.0 }
 0x528   :  { %22007 = vst [vmem:[#allocation5_spill] sm:$0xff] %v18200_v11  ;;  %22008 = vst [vmem:[#allocation144_spill] sm:$0xff] %v18209_v54  ;;  %v22011_v16 = vpack.c.bf16 %v22009_v21, %v22010_v39  ;;  %v18230_v4 = vsel %vm4008_vm0, %v3618_v27, %v4400_v56  ;;  %v22021_v11 = vld [vmem:[#allocation24_spill] sm:$0xff]  ;;  %v22022_v54 = vld [vmem:[#allocation25_spill] sm:$0xff] }
 0x529   :  { %22017 = vst [vmem:[#allocation131_spill] sm:$0xff] %v18230_v4  ;;  %v22027_v27 = vld [vmem:[#allocation28_spill] sm:$0xff]  ;;  %v22028_v56 = vld [vmem:[#allocation29_spill] sm:$0xff]  ;;  %v22036_v28 = vld [vmem:[#allocation34_spill] sm:$0xff] }
 0x52a   :  { %6248 = vmatpush1.bf16.msra.mxu0 %v14101_v10  ;;  %v22014_v10 = vpack.c.bf16 %v22012_v60, %v22013_v14  ;;  %v18222_v33 = vpop.f32.mrb[196].mxu1  ;;  %v18232_v60 = vsel %vm4016_vm6, %v3622_v12, %v4408_v51  ;;  %v22019_v14 = vld [vmem:[#allocation17_spill] sm:$0xff]  ;;  %v22029_v51 = vpack.c.bf16 %v22027_v27, %v22028_v56  ;;  %v22030_v12 = vld [vmem:[#allocation30_spill] sm:$0xff]  ;;  %v22037_v4 = vld [vmem:[#allocation27_spill] sm:$0xff] }
 0x52b   :  { %6249 = vmatprep.subr.bf16.mxu0 %v21453_v61  ;;  %22015 = vst [vmem:[#allocation146_spill] sm:$0xff] %v18222_v33  ;;  %v18227_v39 = vpop.f32.mrb[197].mxu1  ;;  %v22023_v33 = vpack.c.bf16 %v22021_v11, %v22022_v54  ;;  %v22038_v54 = vpack.c.bf16 %v22036_v28, %v22037_v4  ;;  %v22039_v11 = vld [vmem:[#allocation36_spill] sm:$0xff]  ;;  %v22054_v28 = vld [vmem:[#allocation46_spill] sm:$0xff] }
 0x52c   :  { %22016 = vst [vmem:[#allocation130_spill] sm:$0xff] %v18227_v39  ;;  %v22024_v39 = vld [vmem:[#allocation26_spill] sm:$0xff]  ;;  %v22045_v56 = vld [vmem:[#allocation40_spill] sm:$0xff] }
 0x52d   :  { %6078 = vmatmul.mubr.bf16.gmra.mrb[228].mxu0 %v22011_v16  ;;  %v3630_v16 = vpop.f32.mrb[198].mxu1 }
 0x52e   :  { %6085 = vmatprep.mubr.bf16.mxu0 %v22014_v10  ;;  %6250 = vmatpush1.bf16.msra.mxu0 %v14102_v8  ;;  %v3631_v21 = vpop.f32.mrb[199].mxu1  ;;  %v22018_v8 = vld [vmem:[#allocation20_spill] sm:$0xff] }
 0x52f   :  { %6251 = vmatprep.subr.bf16.mxu0 %v21453_v61  ;;  %v22020_v10 = vpack.c.bf16 %v22018_v8, %v22019_v14  ;;  %v22025_v61 = vld [vmem:[#allocation21_spill] sm:$0xff]  ;;  %v22033_v8 = vld [vmem:[#allocation32_spill] sm:$0xff] }
 0x530   :  { %v22026_v16 = vpack.c.bf16 %v22024_v39, %v22025_v61  ;;  %v22034_v14 = vld [vmem:[#allocation33_spill] sm:$0xff]  ;;  %v22042_v61 = vld [vmem:[#allocation38_spill] sm:$0xff] }
 0x532   :  { %6252 = vmatpush1.bf16.msra.mxu0 %v14103_v50  ;;  %v22031_v50 = vld [vmem:[#allocation23_spill] sm:$0xff] }
 0x533   :  { %v22032_v21 = vpack.c.bf16 %v22030_v12, %v22031_v50  ;;  %v22048_v50 = vld [vmem:[#allocation42_spill] sm:$0xff] }
 0x535   :  { %6086 = vmatmul.mubr.bf16.gmra.mrb[232].mxu0 %v22020_v10  ;;  %v22035_v10 = vpack.c.bf16 %v22033_v8, %v22034_v14  ;;  %v22051_v14 = vld [vmem:[#allocation44_spill] sm:$0xff] }
 0x536   :  { %6093 = vmatprep.mubr.bf16.mxu0 %v22023_v33  ;;  %v22040_v33 = vld [vmem:[#allocation37_spill] sm:$0xff] }
 0x537   :  { %v22041_v39 = vpack.c.bf16 %v22039_v11, %v22040_v33  ;;  %v22057_v33 = vld [vmem:[#allocation48_spill] sm:$0xff] }
 0x53d   :  { %6094 = vmatmul.mubr.bf16.gmra.mrb[236].mxu0 %v22026_v16  ;;  %v22043_v16 = vld [vmem:[#allocation31_spill] sm:$0xff] }
 0x53e   :  { %6101 = vmatprep.mubr.bf16.mxu0 %v22029_v51  ;;  %v22044_v27 = vpack.c.bf16 %v22042_v61, %v22043_v16  ;;  %v22046_v51 = vld [vmem:[#allocation41_spill] sm:$0xff]  ;;  %v22060_v16 = vld [vmem:[#allocation50_spill] sm:$0xff] }
 0x53f   :  { %v22047_v12 = vpack.c.bf16 %v22045_v56, %v22046_v51  ;;  %v22063_v51 = vld [vmem:[#allocation52_spill] sm:$0xff] }
 0x545   :  { %6102 = vmatmul.mubr.bf16.gmra.mrb[240].mxu0 %v22032_v21  ;;  %v22049_v21 = vld [vmem:[#allocation35_spill] sm:$0xff] }
 0x546   :  { %6109 = vmatprep.mubr.bf16.mxu0 %v22035_v10  ;;  %v22050_v8 = vpack.c.bf16 %v22048_v50, %v22049_v21  ;;  %v22052_v10 = vld [vmem:[#allocation45_spill] sm:$0xff]  ;;  %v22066_v21 = vld [vmem:[#allocation54_spill] sm:$0xff] }
 0x547   :  { %v22053_v4 = vpack.c.bf16 %v22051_v14, %v22052_v10  ;;  %v22069_v10 = vld [vmem:[#allocation56_spill] sm:$0xff] }
 0x54d   :  { %6110 = vmatmul.mubr.bf16.gmra.mrb[244].mxu0 %v22038_v54  ;;  %v22055_v54 = vld [vmem:[#allocation39_spill] sm:$0xff] }
 0x54e   :  { %6117 = vmatprep.mubr.bf16.mxu0 %v22041_v39  ;;  %v22056_v11 = vpack.c.bf16 %v22054_v28, %v22055_v54  ;;  %v22058_v39 = vld [vmem:[#allocation49_spill] sm:$0xff]  ;;  %v22072_v54 = vld [vmem:[#allocation58_spill] sm:$0xff] }
 0x54f   :  { %v22059_v61 = vpack.c.bf16 %v22057_v33, %v22058_v39  ;;  %v22075_v39 = vld [vmem:[#allocation60_spill] sm:$0xff] }
 0x555   :  { %6118 = vmatmul.mubr.bf16.gmra.mrb[248].mxu0 %v22044_v27  ;;  %v22061_v27 = vld [vmem:[#allocation43_spill] sm:$0xff] }
 0x556   :  { %6125 = vmatprep.mubr.bf16.mxu0 %v22047_v12  ;;  %v22062_v56 = vpack.c.bf16 %v22060_v16, %v22061_v27  ;;  %v22064_v12 = vld [vmem:[#allocation53_spill] sm:$0xff]  ;;  %v22078_v27 = vld [vmem:[#allocation62_spill] sm:$0xff] }
 0x557   :  { %v22065_v50 = vpack.c.bf16 %v22063_v51, %v22064_v12  ;;  %v22081_v12 = vld [vmem:[#allocation64_spill] sm:$0xff] }
 0x55d   :  { %6126 = vmatmul.mubr.bf16.gmra.mrb[252].mxu0 %v22050_v8  ;;  %v22067_v8 = vld [vmem:[#allocation47_spill] sm:$0xff] }
 0x55e   :  { %6133 = vmatprep.mubr.bf16.mxu0 %v22053_v4  ;;  %v22068_v14 = vpack.c.bf16 %v22066_v21, %v22067_v8  ;;  %v22070_v4 = vld [vmem:[#allocation57_spill] sm:$0xff]  ;;  %v22084_v8 = vld [vmem:[#allocation66_spill] sm:$0xff] }
 0x55f   :  { %v22071_v28 = vpack.c.bf16 %v22069_v10, %v22070_v4  ;;  %v22087_v4 = vld [vmem:[#allocation76_spill] sm:$0xff] }
 0x565   :  { %6134 = vmatmul.mubr.bf16.gmra.mrb[0].mxu0 %v22056_v11  ;;  %v22073_v11 = vld [vmem:[#allocation51_spill] sm:$0xff] }
 0x566   :  { %6141 = vmatprep.mubr.bf16.mxu0 %v22059_v61  ;;  %v22074_v33 = vpack.c.bf16 %v22072_v54, %v22073_v11  ;;  %v22076_v61 = vld [vmem:[#allocation61_spill] sm:$0xff]  ;;  %v22090_v11 = vld [vmem:[#allocation70_spill] sm:$0xff] }
 0x567   :  { %v22077_v16 = vpack.c.bf16 %v22075_v39, %v22076_v61  ;;  %v22093_v61 = vpack.c.bf16 %v17540_v45, %v17536_v13  ;;  %v22103_v13 = vpack.c.bf16 %v17584_v37, %v17580_v7  ;;  %v22108_v37 = vld [vmem:[#allocation80_spill] sm:$0xff] }
 0x56d   :  { %6142 = vmatmul.mubr.bf16.gmra.mrb[4].mxu0 %v22062_v56  ;;  %v22079_v56 = vld [vmem:[#allocation55_spill] sm:$0xff] }
 0x56e   :  { %6149 = vmatprep.mubr.bf16.mxu0 %v22065_v50  ;;  %v22080_v51 = vpack.c.bf16 %v22078_v27, %v22079_v56  ;;  %v22082_v50 = vld [vmem:[#allocation65_spill] sm:$0xff]  ;;  %v22095_v27 = vld [vmem:[#allocation68_spill] sm:$0xff] }
 0x56f   :  { %v22083_v21 = vpack.c.bf16 %v22081_v12, %v22082_v50  ;;  %v22098_v12 = vld [vmem:[#allocation75_spill] sm:$0xff] }
 0x575   :  { %6150 = vmatmul.mubr.bf16.gmra.mrb[8].mxu0 %v22068_v14  ;;  %v22085_v14 = vld [vmem:[#allocation59_spill] sm:$0xff] }
 0x576   :  { %6157 = vmatprep.mubr.bf16.mxu0 %v22071_v28  ;;  %v22086_v10 = vpack.c.bf16 %v22084_v8, %v22085_v14  ;;  %v22088_v28 = vld [vmem:[#allocation69_spill] sm:$0xff]  ;;  %v22101_v14 = vld [vmem:[#allocation74_spill] sm:$0xff] }
 0x577   :  { %v22089_v54 = vpack.c.bf16 %v22087_v4, %v22088_v28  ;;  %v22100_v8 = vld [vmem:[#allocation73_spill] sm:$0xff]  ;;  %v4413_v4 = vmul.f32 0.1, %v17595_v34 }
 0x57d   :  { %6158 = vmatmul.mubr.bf16.gmra.mrb[12].mxu0 %v22074_v33  ;;  %v22091_v33 = vld [vmem:[#allocation63_spill] sm:$0xff] }
 0x57e   :  { %6165 = vmatprep.mubr.bf16.mxu0 %v22077_v16  ;;  %v22092_v39 = vpack.c.bf16 %v22090_v11, %v22091_v33  ;;  %v22094_v16 = vld [vmem:[#allocation67_spill] sm:$0xff]  ;;  %v4805_v11 = vsel %vm4021_vm8, %v17595_v34, %v4413_v4  ;;  %v22115_v34 = vpack.c.bf16 %v17781_v35, %v17777_v36  ;;  %v22124_v35 = vld [vmem:[#allocation89_spill] sm:$0xff]  ;;  %v22136_v4 = vld [vmem:[#allocation92_spill] sm:$0xff] }
 0x57f   :  { %v22096_v56 = vpack.c.bf16 %v22094_v16, %v22095_v27  ;;  %v5005_v33 = vpack.c.bf16 %v4805_v11, %v4805_v11  ;;  %v22111_v27 = vpack.c.bf16 %v17763_v57, %v17759_v20  ;;  %v22120_v57 = vpack.c.bf16 %v17817_v53, %v17813_v47  ;;  %v22143_v11 = vld [vmem:[#allocation95_spill] sm:$0xff] }
 0x580   :  { %v22134_v53 = vpack.c.bf16 %v17871_v46, %v17867_v5  ;;  %v22141_v5 = vpack.c.bf16 %v17905_v55, %v17901_v42  ;;  %v22142_v46 = vpack.c.bf16 %v17925_v38, %v17921_v17  ;;  %v22149_v42 = vld [vmem:[#allocation98_spill] sm:$0xff]  ;;  %v22152_v17 = vld [vmem:[#allocation96_spill] sm:$0xff] }
 0x581   :  { %v22150_v55 = vpack.c.bf16 %v17961_v9, %v22149_v42 }
 0x585   :  { %6166 = vmatmul.mubr.bf16.gmra.mrb[16].mxu0 %v22080_v51  ;;  %v22097_v51 = vld [vmem:[#allocation72_spill] sm:$0xff] }
 0x586   :  { %6173 = vmatprep.mubr.bf16.mxu0 %v22083_v21  ;;  %v22099_v50 = vpack.c.bf16 %v22097_v51, %v22098_v12  ;;  %v4414_v21 = vmul.f32 0.1, %v17597_v3  ;;  %v22116_v51 = vpack.c.bf16 %v17779_v49, %v17775_v19  ;;  %v22117_v12 = vpack.c.bf16 %v17799_v44, %v17795_v18  ;;  %v22127_v49 = vld [vmem:[#allocation87_spill] sm:$0xff]  ;;  %v22131_v44 = vld [vmem:[#allocation90_spill] sm:$0xff] }
 0x588   :  { %v4806_v45 = vsel %vm4022_vm7, %v17597_v3, %v4414_v21  ;;  %v22109_v3 = vld [vmem:[#allocation71_spill] sm:$0xff]  ;;  %v22121_v21 = vld [vmem:[#allocation84_spill] sm:$0xff] }
 0x589   :  { %v5006_v28 = vpack.c.bf16 %v4806_v45, %v4806_v45  ;;  %v22110_v16 = vpack.c.bf16 %v22108_v37, %v22109_v3  ;;  %v22135_v45 = vld [vmem:[#allocation91_spill] sm:$0xff]  ;;  %v22161_v37 = vld [vmem:[#allocation106_spill] sm:$0xff] }
 0x58a   :  { %v22162_v3 = vpack.c.bf16 %v18026_v30, %v22161_v37 }
 0x58d   :  { %6174 = vmatmul.mubr.bf16.gmra.mrb[20].mxu0 %v22086_v10  ;;  %v22102_v10 = vpack.c.bf16 %v22100_v8, %v22101_v14  ;;  %v22122_v8 = vld [vmem:[#allocation82_spill] sm:$0xff]  ;;  %v22125_v14 = vld [vmem:[#allocation85_spill] sm:$0xff] }
 0x58e   :  { %6181 = vmatprep.mubr.bf16.mxu0 %v22089_v54  ;;  %v22104_v54 = vpack.c.bf16 %v17575_v48, %v17573_v6  ;;  %v22113_v6 = vld [vmem:[#allocation77_spill] sm:$0xff]  ;;  %v22123_v36 = vpack.c.bf16 %v22121_v21, %v22122_v8  ;;  %v22126_v19 = vpack.c.bf16 %v22124_v35, %v22125_v14  ;;  %v22181_v8 = vld [vmem:[#allocation111_spill] sm:$0xff]  ;;  %v22184_v14 = vld [vmem:[#allocation124_spill] sm:$0xff] }
 0x595   :  { %6182 = vmatmul.mubr.bf16.gmra.mrb[24].mxu0 %v22092_v39  ;;  %v22105_v39 = vld [vmem:[#allocation78_spill] sm:$0xff] }
 0x596   :  { %6189 = vmatprep.mubr.bf16.mxu0 %v22093_v61  ;;  %v22106_v61 = vld [vmem:[#allocation79_spill] sm:$0xff] }
 0x597   :  { %v22107_v7 = vpack.c.bf16 %v22105_v39, %v22106_v61  ;;  %v22154_v39 = vpack.c.bf16 %v17988_v15, %v17984_v62  ;;  %v22158_v61 = vld [vmem:[#allocation101_spill] sm:$0xff]  ;;  %v22166_v62 = vld [vmem:[#allocation110_spill] sm:$0xff] }
 0x59d   :  { %6190 = vmatmul.mubr.bf16.gmra.mrb[28].mxu0 %v22096_v56  ;;  %v22112_v56 = vld [vmem:[#allocation81_spill] sm:$0xff] }
 0x59e   :  { %6197 = vmatprep.mubr.bf16.mxu0 %v22099_v50  ;;  %v22114_v48 = vpack.c.bf16 %v22112_v56, %v22113_v6  ;;  %v22118_v50 = vld [vmem:[#allocation83_spill] sm:$0xff] }
 0x59f   :  { %v22119_v20 = vpack.c.bf16 %v17797_v24, %v22118_v50  ;;  %v22130_v24 = vpack.c.bf16 %v17853_v58, %v17849_v31  ;;  %v22139_v58 = vpack.c.bf16 %v17887_v52, %v17883_v26  ;;  %v22140_v31 = vpack.c.bf16 %v17907_v0, %v17903_v59  ;;  %v22151_v0 = vld [vmem:[#allocation97_spill] sm:$0xff]  ;;  %v22167_v56 = vld [vmem:[#allocation107_spill] sm:$0xff]  ;;  %v22176_v50 = vld [vmem:[#allocation108_spill] sm:$0xff] }
 0x5a0   :  { %v22146_v26 = vpack.c.bf16 %v17943_v1, %v17939_v41  ;;  %v21382_v52 = vmov 0.0   ;;  %v22153_v38 = vpack.c.bf16 %v22151_v0, %v22152_v17  ;;  %v22155_v41 = vpack.c.bf16 %v17986_v32, %v17981_v2  ;;  %v22156_v1 = vld [vmem:[#allocation102_spill] sm:$0xff]  ;;  %v22169_v2 = vld [vmem:[#allocation105_spill] sm:$0xff]  ;;  %v22170_v6 = vld [vmem:[#allocation103_spill] sm:$0xff] }
 0x5a1   :  { %13169 = vmatprep.subr.bf16.mxu0 %v21382_v52  ;;  %v22168_v32 = vpack.c.bf16 %v22166_v62, %v22167_v56 }
 0x5a5   :  { %6198 = vmatmul.mubr.bf16.gmra.mrb[32].mxu0 %v22102_v10  ;;  %v22128_v10 = vld [vmem:[#allocation86_spill] sm:$0xff] }
 0x5a6   :  { %6205 = vmatprep.mubr.bf16.mxu0 %v22103_v13  ;;  %v22129_v18 = vpack.c.bf16 %v22127_v49, %v22128_v10  ;;  %v22132_v13 = vld [vmem:[#allocation88_spill] sm:$0xff]  ;;  %v22187_v10 = vld [vmem:[#allocation119_spill] sm:$0xff] }
 0x5a7   :  { %v22133_v47 = vpack.c.bf16 %v22131_v44, %v22132_v13  ;;  %v22190_v44 = vld [vmem:[#allocation122_spill] sm:$0xff]  ;;  %v22191_v13 = vld [vmem:[#allocation123_spill] sm:$0xff] }
 0x5ad   :  { %6206 = vmatmul.mubr.bf16.gmra.mrb[36].mxu0 %v22104_v54  ;;  %v22138_v54 = vpack.c.bf16 %v17889_v29, %v17885_v23  ;;  %v22147_v29 = vld [vmem:[#allocation94_spill] sm:$0xff] }
 0x5ae   :  { %6213 = vmatprep.mubr.bf16.mxu0 %v5006_v28  ;;  %v22137_v28 = vpack.c.bf16 %v22135_v45, %v22136_v4  ;;  %v22148_v59 = vpack.c.bf16 %v17941_v25, %v22147_v29  ;;  %v22157_v25 = vpack.c.bf16 %v18008_v40, %v22156_v1  ;;  %v22171_v40 = vpack.c.bf16 %v22169_v2, %v22170_v6  ;;  %v22194_v45 = vld [vmem:[#allocation118_spill] sm:$0xff] }
 0x5af   :  { %v21379_v1 = vlaneseq }
 0x5b5   :  { %6214 = vmatmul.mubr.bf16.gmra.mrb[40].mxu0 %v5005_v33  ;;  %v22144_v33 = vld [vmem:[#allocation93_spill] sm:$0xff] }
 0x5b6   :  { %6253 = vmatprep.mubr.bf16.mxu0 %v22107_v7  ;;  %v22145_v23 = vpack.c.bf16 %v22143_v11, %v22144_v33  ;;  %v22159_v7 = vld [vmem:[#allocation99_spill] sm:$0xff]  ;;  %v22202_v11 = vld [vmem:[#allocation130_spill] sm:$0xff] }
 0x5b7   :  { %v22160_v9 = vpack.c.bf16 %v22158_v61, %v22159_v7  ;;  %v4416_v33 = vmul.f32 0.1, %v22202_v11  ;;  %vm4024_vm9 = vcmp.ge.f32.partialorder %v22202_v11, 0.0 }
 0x5b9   :  { %v4808_v42 = vsel %vm4024_vm9, %v22202_v11, %v4416_v33 }
 0x5ba   :  { %v5008_v17 = vpack.c.bf16 %v4808_v42, %v4808_v42 }
 0x5bd   :  { %6254 = vmatmul.mubr.bf16.vlgmr.msra.gmra.mrb[200].mxu0 %v22110_v16  ;;  %v22163_v16 = vld [vmem:[#allocation104_spill] sm:$0xff] }
 0x5be   :  { %6261 = vmatprep.mubr.bf16.mxu0 %v22111_v27  ;;  %v22164_v27 = vld [vmem:[#allocation100_spill] sm:$0xff] }
 0x5bf   :  { %v22165_v15 = vpack.c.bf16 %v22163_v16, %v22164_v27 }
 0x5c5   :  { %6262 = vmatmul.mubr.bf16.gmra.mrb[204].mxu0 %v22114_v48  ;;  %v22172_v48 = vld [vmem:[#allocation113_spill] sm:$0xff] }
 0x5c6   :  { %6269 = vmatprep.mubr.bf16.mxu0 %v22115_v34  ;;  %v22173_v34 = vld [vmem:[#allocation112_spill] sm:$0xff] }
 0x5cd   :  { %6270 = vmatmul.mubr.bf16.gmra.mrb[208].mxu0 %v22116_v51  ;;  %v22174_v51 = vpack.c.bf16 %v22172_v48, %v22173_v34 }
 0x5ce   :  { %6277 = vmatprep.mubr.bf16.mxu0 %v22117_v12  ;;  %v22175_v12 = vld [vmem:[#allocation109_spill] sm:$0xff] }
 0x5cf   :  { %v22177_v30 = vpack.c.bf16 %v22175_v12, %v22176_v50 }
 0x5d5   :  { %6278 = vmatmul.mubr.bf16.gmra.mrb[212].mxu0 %v22119_v20  ;;  %v22178_v20 = vld [vmem:[#allocation117_spill] sm:$0xff] }
 0x5d6   :  { %6285 = vmatprep.mubr.bf16.mxu0 %v22120_v57  ;;  %v22179_v57 = vld [vmem:[#allocation115_spill] sm:$0xff] }
 0x5d7   :  { %v22180_v21 = vpack.c.bf16 %v22178_v20, %v22179_v57 }
 0x5dd   :  { %6286 = vmatmul.mubr.bf16.gmra.mrb[216].mxu0 %v22123_v36  ;;  %v22182_v36 = vld [vmem:[#allocation114_spill] sm:$0xff] }
 0x5de   :  { %6293 = vmatprep.mubr.bf16.mxu0 %v22126_v19  ;;  %v22183_v35 = vpack.c.bf16 %v22181_v8, %v22182_v36  ;;  %v22185_v19 = vld [vmem:[#allocation125_spill] sm:$0xff] }
 0x5df   :  { %v22186_v49 = vpack.c.bf16 %v22184_v14, %v22185_v19 }
 0x5e5   :  { %6294 = vmatmul.mubr.bf16.gmra.mrb[220].mxu0 %v22129_v18  ;;  %v22188_v18 = vld [vmem:[#allocation116_spill] sm:$0xff] }
 0x5e6   :  { %6301 = vmatprep.mubr.bf16.mxu0 %v22130_v24  ;;  %v22189_v24 = vpack.c.bf16 %v22187_v10, %v22188_v18 }
 0x5ed   :  { %6302 = vmatmul.mubr.bf16.gmra.mrb[224].mxu0 %v22133_v47  ;;  %v22192_v47 = vpack.c.bf16 %v22190_v44, %v22191_v13 }
 0x5ee   :  { %6309 = vmatprep.mubr.bf16.mxu0 %v22134_v53  ;;  %v22193_v53 = vld [vmem:[#allocation121_spill] sm:$0xff] }
 0x5ef   :  { %v22195_v4 = vpack.c.bf16 %v22193_v53, %v22194_v45 }
 0x5f5   :  { %6310 = vmatmul.mubr.bf16.gmra.mrb[228].mxu0 %v22137_v28  ;;  %v22196_v28 = vld [vmem:[#allocation141_spill] sm:$0xff] }
 0x5f6   :  { %6317 = vmatprep.mubr.bf16.mxu0 %v22138_v54  ;;  %v22197_v54 = vpack.c.bf16 %v18181_v63, %v22196_v28 }
 0x5fd   :  { %6318 = vmatmul.mubr.bf16.gmra.mrb[232].mxu0 %v22139_v58  ;;  %v22198_v58 = vld [vmem:[#allocation127_spill] sm:$0xff] }
 0x5fe   :  { %6325 = vmatprep.mubr.bf16.mxu0 %v22140_v31  ;;  %v22199_v31 = vld [vmem:[#allocation120_spill] sm:$0xff] }
 0x605   :  { %6326 = vmatmul.mubr.bf16.gmra.mrb[236].mxu0 %v22141_v5  ;;  %v22200_v5 = vpack.c.bf16 %v22198_v58, %v22199_v31  ;;  %v14104_v31 = vld [vmem:[%s21086_s3 + $0x40] sm:$0xff]  }
 0x606   :  { %6333 = vmatprep.mubr.bf16.mxu0 %v22142_v46  ;;  %v22201_v46 = vpack.c.bf16 %v18204_v22, %v18202_v43  ;;  %v22209_v43 = vld [vmem:[#allocation144_spill] sm:$0xff]  ;;  %v22210_v22 = vld [vmem:[#allocation5_spill] sm:$0xff]  ;;  %12603 = vmatprep.subr.bf16.mxu1 %v14104_v31 }
 0x60d   :  { %6334 = vmatmul.mubr.bf16.gmra.mrb[240].mxu0 %v22145_v23  ;;  %v22203_v23 = vld [vmem:[#allocation138_spill] sm:$0xff] }
 0x60e   :  { %6341 = vmatprep.mubr.bf16.mxu0 %v22146_v26  ;;  %v22204_v26 = vld [vmem:[#allocation126_spill] sm:$0xff] }
 0x60f   :  { %v22205_v29 = vpack.c.bf16 %v22203_v23, %v22204_v26 }
 0x615   :  { %6342 = vmatmul.mubr.bf16.gmra.mrb[244].mxu0 %v22148_v59  ;;  %v22206_v59 = vld [vmem:[#allocation131_spill] sm:$0xff] }
 0x616   :  { %6349 = vmatprep.mubr.bf16.mxu0 %v22150_v55  ;;  %v22207_v63 = vpack.c.bf16 %v18232_v60, %v22206_v59  ;;  %v22208_v55 = vld [vmem:[#allocation146_spill] sm:$0xff]  ;;  %v18487_v60 = vshrl.u32 %v21379_v1, 7 }
 0x617   :  { %v4415_v0 = vmul.f32 0.1, %v22208_v55  ;;  %vm4023_vm10 = vcmp.ge.f32.partialorder %v22208_v55, 0.0 }
 0x618   :  { %22212 = vst [vmem:[#allocation129_spill] sm:$0xff] %v18487_v60  ;;  %v6456_v27 = vadd.s32 16, %v18487_v60  ;;  %v6457_v2 = vadd.s32 24, %v18487_v60  ;;  %v6459_v48 = vadd.s32 40, %v18487_v60  ;;  %v6460_v34 = vadd.s32 48, %v18487_v60 }
 0x619   :  { %v6461_v36 = vadd.s32 56, %v18487_v60  ;;  %v6463_v14 = vadd.s32 72, %v18487_v60  ;;  %v6465_v10 = vadd.s32 88, %v18487_v60  ;;  %v6466_v18 = vadd.s32 96, %v18487_v60 }
 0x61a   :  { %v6508_v57 = vand.u32 7, %v6459_v48  ;;  %v6509_v8 = vand.u32 7, %v6460_v34  ;;  %v6469_v53 = vadd.s32 120, %v18487_v60  ;;  %v6470_v45 = vadd.s32 128, %v18487_v60 }
 0x61b   :  { %v6471_v58 = vadd.s32 136, %v18487_v60  ;;  %v6512_v11 = vand.u32 7, %v6463_v14  ;;  %v6514_v23 = vand.u32 7, %v6465_v10  ;;  %v6515_v26 = vand.u32 7, %v6466_v18 }
 0x61c   :  { %vm18532_vm1 = vcmp.lt.s32.totalorder %v6508_v57, 2  ;;  %vm18537_vm2 = vcmp.lt.s32.totalorder %v6509_v8, 2  ;;  %v6518_v42 = vand.u32 7, %v6469_v53  ;;  %v6473_v48 = vadd.s32 152, %v18487_v60 }
 0x61d   :  { %6350 = vmatmul.mubr.bf16.gmra.mrb[248].mxu0 %v22153_v38  ;;  %v22211_v38 = vpack.c.bf16 %v22209_v43, %v22210_v22  ;;  %v6520_v43 = vand.u32 7, %v6471_v58  ;;  %v6472_v22 = vadd.s32 144, %v18487_v60  ;;  %vm18570_vm5 = vcmp.lt.s32.totalorder %v6512_v11, 2  ;;  %v24_v11 = vld [vmem:[%s21085_s5] sm:$0xff] }
 0x61e   :  { %6357 = vmatprep.mubr.bf16.mxu0 %v22154_v39  ;;  %v4807_v39 = vsel %vm4023_vm10, %v22208_v55, %v4415_v0  ;;  %v6519_v55 = vand.u32 7, %v6470_v45  ;;  %vm18578_vm6 = vcmp.lt.s32.totalorder %v6514_v23, 2  ;;  %vm18582_vm7 = vcmp.lt.s32.totalorder %v6515_v26, 2  ;;  %v14105_v26 = vld [vmem:[%s21086_s3] sm:$0xff]  }
 0x61f   :  { %vm18596_vm10 = vcmp.lt.s32.totalorder %v6518_v42, 2  ;;  %v6475_v57 = vadd.s32 168, %v18487_v60  ;;  %v6522_v45 = vand.u32 7, %v6473_v48  ;;  %12604 = vmatpush3.bf16.msra.mxu1 %v14105_v26  ;;  %v6482_v26 = vadd.s32 224, %v18487_v60 }
 0x621   :  { %v6524_v28 = vand.u32 7, %v6475_v57 }
 0x625   :  { %6358 = vmatmul.mubr.bf16.gmra.mrb[252].mxu0 %v22155_v41  ;;  %v5007_v41 = vpack.c.bf16 %v4807_v39, %v4807_v39  ;;  %v18560_v39 = vsel %vm18537_vm2, 1.0, %v21382_v52 }
 0x626   :  { %6365 = vmatprep.mubr.bf16.mxu0 %v22157_v25  ;;  %22220 = vst [vmem:[#allocation134_spill] sm:$0xff] %v18560_v39 }
 0x62d   :  { %6366 = vmatmul.mubr.bf16.gmra.mrb[0].mxu0 %v22160_v9  ;;  %v6455_v9 = vadd.s32 8, %v18487_v60 }
 0x62e   :  { %6373 = vmatprep.mubr.bf16.mxu0 %v22162_v3  ;;  %v6503_v3 = vand.u32 7, %v18487_v60 }
 0x62f   :  { %v6504_v16 = vand.u32 7, %v6455_v9  ;;  %v6479_v9 = vadd.s32 200, %v18487_v60 }
 0x630   :  { %vm6552_vm11 = vcmp.lt.s32.totalorder %v6503_v3, 2 }
 0x631   :  { %vm6553_vm12 = vcmp.lt.s32.totalorder %v6504_v16, 2  ;;  %v18506_v12 = vsel %vm6552_vm11, 1.0, %v21382_v52  ;;  %vm18600_vm11 = vcmp.lt.s32.totalorder %v6519_v55, 2 }
 0x632   :  { %v18509_v50 = vsel %vm6553_vm12, 1.0, %v21382_v52  ;;  %vm6569_vm12 = vcmp.lt.s32.totalorder %v6520_v43, 2 }
 0x633   :  { %v18658_v53 = vsel %vm6569_vm12, 1.0, %v21382_v52 }
 0x634   :  { %22251 = vst [vmem:[#allocation142_spill] sm:$0xff] %v18658_v53 }
 0x635   :  { %6374 = vmatmul.mubr.bf16.gmra.mrb[4].mxu0 %v22165_v15 }
 0x636   :  { %6381 = vmatprep.mubr.bf16.mxu0 %v22168_v32  ;;  %v6505_v32 = vand.u32 7, %v6456_v27  ;;  %v6480_v27 = vadd.s32 208, %v18487_v60 }
 0x638   :  { %vm6554_vm13 = vcmp.lt.s32.totalorder %v6505_v32, 2 }
 0x639   :  { %v18521_v44 = vsel %vm6554_vm13, 1.0, %v21382_v52 }
 0x63d   :  { %6382 = vmatmul.mubr.bf16.gmra.mrb[8].mxu0 %v22171_v40  ;;  %v6458_v40 = vadd.s32 32, %v18487_v60 }
 0x63e   :  { %6389 = vmatprep.mubr.bf16.mxu0 %v22174_v51  ;;  %v5139_v51 = vsub.s32 0, %v18487_v60 }
 0x63f   :  { %v6507_v20 = vand.u32 7, %v6458_v40 }
 0x641   :  { %vm18528_vm15 = vcmp.lt.s32.totalorder %v6507_v20, 2  ;;  %v6474_v20 = vadd.s32 160, %v18487_v60 }
 0x642   :  { %v18547_v0 = vsel %vm18528_vm15, 1.0, %v21382_v52 }
 0x645   :  { %6390 = vmatmul.mubr.bf16.gmra.mrb[12].mxu0 %v22177_v30  ;;  %v6506_v30 = vand.u32 7, %v6457_v2 }
 0x646   :  { %6397 = vmatprep.mubr.bf16.mxu0 %v22180_v21 }
 0x647   :  { %vm6555_vm14 = vcmp.lt.s32.totalorder %v6506_v30, 2  ;;  %v6521_v30 = vand.u32 7, %v6472_v22  ;;  %v6478_v22 = vadd.s32 192, %v18487_v60 }
 0x648   :  { %v18542_v59 = vsel %vm6555_vm14, 1.0, %v21382_v52  ;;  %vm6571_vm14 = vcmp.lt.s32.totalorder %v6522_v45, 2 }
 0x649   :  { %vm6570_vm13 = vcmp.lt.s32.totalorder %v6521_v30, 2  ;;  %v18679_v42 = vsel %vm6571_vm14, 1.0, %v21382_v52  ;;  %v6527_v2 = vand.u32 7, %v6478_v22  ;;  %v6529_v30 = vand.u32 7, %v6480_v27 }
 0x64a   :  { %v18673_v23 = vsel %vm6570_vm13, 1.0, %v21382_v52  ;;  %22253 = vst [vmem:[#allocation4_spill] sm:$0xff] %v18679_v42  ;;  %v6483_v22 = vadd.s32 232, %v18487_v60  ;;  %v6484_v27 = vadd.s32 240, %v18487_v60 }
 0x64b   :  { %22252 = vst [vmem:[#allocation3_spill] sm:$0xff] %v18673_v23 }
 0x64d   :  { %6398 = vmatmul.mubr.bf16.gmra.mrb[16].mxu0 %v22183_v35  ;;  %v6462_v35 = vadd.s32 64, %v18487_v60 }
 0x64e   :  { %6405 = vmatprep.mubr.bf16.mxu0 %v22186_v49  ;;  %v6464_v49 = vadd.s32 80, %v18487_v60 }
 0x650   :  { %v6513_v33 = vand.u32 7, %v6464_v49  ;;  %v18635_v49 = vsel %vm18582_vm7, 1.0, %v21382_v52 }
 0x651   :  { %22246 = vst [vmem:[#allocation137_spill] sm:$0xff] %v18635_v49 }
 0x652   :  { %vm18574_vm0 = vcmp.lt.s32.totalorder %v6513_v33, 2 }
 0x653   :  { %v18625_v14 = vsel %vm18574_vm0, 1.0, %v21382_v52  ;;  %vm6578_vm0 = vcmp.lt.s32.totalorder %v6529_v30, 2  ;;  %v14106_v30 = vld [vmem:[%s21086_s3 + $0x48] sm:$0xff]  }
 0x654   :  { %22244 = vst [vmem:[#allocation139_spill] sm:$0xff] %v18625_v14  ;;  %12605 = vmatprep.subr.bf16.mxu1 %v14106_v30 }
 0x655   :  { %6406 = vmatmul.mubr.bf16.gmra.mrb[20].mxu0 %v22189_v24  ;;  %v6467_v24 = vadd.s32 104, %v18487_v60 }
 0x656   :  { %6413 = vmatprep.mubr.bf16.mxu0 %v22192_v47  ;;  %v6468_v47 = vadd.s32 112, %v18487_v60 }
 0x65d   :  { %6414 = vmatmul.mubr.bf16.gmra.mrb[24].mxu0 %v22195_v4  ;;  %v6523_v4 = vand.u32 7, %v6474_v20 }
 0x65e   :  { %6421 = vmatprep.mubr.bf16.mxu0 %v22197_v54 }
 0x65f   :  { %vm6572_vm15 = vcmp.lt.s32.totalorder %v6523_v4, 2 }
 0x660   :  { %v18682_v43 = vsel %vm6572_vm15, 1.0, %v21382_v52 }
 0x661   :  { %22254 = vst [vmem:[#allocation148_spill] sm:$0xff] %v18682_v43 }
 0x665   :  { %6422 = vmatmul.mubr.bf16.gmra.mrb[28].mxu0 %v22200_v5  ;;  %v6510_v5 = vand.u32 7, %v6461_v36 }
 0x666   :  { %6429 = vmatprep.mubr.bf16.mxu0 %v22201_v46  ;;  %v6511_v46 = vand.u32 7, %v6462_v35  ;;  %v18620_v35 = vsel %vm18570_vm5, 1.0, %v21382_v52 }
 0x667   :  { %vm18562_vm3 = vcmp.lt.s32.totalorder %v6510_v5, 2  ;;  %22243 = vst [vmem:[#allocation132_spill] sm:$0xff] %v18620_v35 }
 0x668   :  { %vm18566_vm4 = vcmp.lt.s32.totalorder %v6511_v46, 2  ;;  %v18610_v8 = vsel %vm18562_vm3, 1.0, %v21382_v52  ;;  %v6477_v46 = vadd.s32 184, %v18487_v60 }
 0x669   :  { %22241 = vst [vmem:[#allocation135_spill] sm:$0xff] %v18610_v8  ;;  %v18615_v36 = vsel %vm18566_vm4, 1.0, %v21382_v52  ;;  %vm18727_vm4 = vcmp.lt.s32.totalorder %v6527_v2, 2  ;;  %v18765_v2 = vsel %vm6578_vm0, 1.0, %v21382_v52 }
 0x66a   :  { %22242 = vst [vmem:[#allocation133_spill] sm:$0xff] %v18615_v36  ;;  %v6526_v55 = vand.u32 7, %v6477_v46  ;;  %22262 = vst [vmem:[#allocation149_spill] sm:$0xff] %v18765_v2 }
 0x66c   :  { %vm6575_vm3 = vcmp.lt.s32.totalorder %v6526_v55, 2 }
 0x66d   :  { %6430 = vmatmul.mubr.bf16.gmra.mrb[32].mxu0 %v22205_v29  ;;  %v6516_v29 = vand.u32 7, %v6467_v24  ;;  %v18650_v24 = vsel %vm18596_vm10, 1.0, %v21382_v52  ;;  %v18717_v45 = vsel %vm6575_vm3, 1.0, %v21382_v52 }
 0x66e   :  { %6437 = vmatprep.mubr.bf16.mxu0 %v22207_v63  ;;  %v6517_v63 = vand.u32 7, %v6468_v47  ;;  %22249 = vst [vmem:[#allocation6_spill] sm:$0xff] %v18650_v24  ;;  %v18655_v47 = vsel %vm18600_vm11, 1.0, %v21382_v52  ;;  %22255 = vst [vmem:[#allocation147_spill] sm:$0xff] %v18717_v45 }
 0x66f   :  { %vm18586_vm8 = vcmp.lt.s32.totalorder %v6516_v29, 2  ;;  %22250 = vst [vmem:[#allocation143_spill] sm:$0xff] %v18655_v47 }
 0x670   :  { %vm18592_vm9 = vcmp.lt.s32.totalorder %v6517_v63, 2  ;;  %v18640_v10 = vsel %vm18586_vm8, 1.0, %v21382_v52 }
 0x671   :  { %22247 = vst [vmem:[#allocation136_spill] sm:$0xff] %v18640_v10  ;;  %v18645_v18 = vsel %vm18592_vm9, 1.0, %v21382_v52 }
 0x672   :  { %22248 = vst [vmem:[#allocation145_spill] sm:$0xff] %v18645_v18 }
 0x675   :  { %6438 = vmatmul.mubr.bf16.gmra.mrb[36].mxu0 %v22211_v38 }
 0x676   :  { %6445 = vmatprep.mubr.bf16.mxu0 %v5008_v17  ;;  %v18552_v17 = vsel %vm18532_vm1, 1.0, %v21382_v52  ;;  %vm6573_vm1 = vcmp.lt.s32.totalorder %v6524_v28, 2 }
 0x677   :  { %22219 = vst [vmem:[#allocation128_spill] sm:$0xff] %v18552_v17 }
 0x67d   :  { %6446 = vmatmul.mubr.bf16.gmra.mrb[40].mxu0 %v5007_v41  ;;  %v18687_v41 = vrot.slane %v24_v11, %v5139_v51 }
 0x690   :  { %v18489_v25 = vpop.f32.mrb[200].mxu0 }
 0x691   :  { %v6257_v61 = vpop.f32.mrb[201].mxu0 }
 0x692   :  { %v18491_v7 = vpop.f32.mrb[202].mxu0  ;;  %v18690_v61 = vsel %vm6573_vm1, 1.0, %v21382_v52 }
 0x693   :  { %v6260_v37 = vpop.f32.mrb[203].mxu0  ;;  %v18697_v3 = vadd.f32 %v18491_v7, %v18687_v41  ;;  %v6528_v7 = vand.u32 7, %v6479_v9 }
 0x695   :  { %vm18733_vm5 = vcmp.lt.s32.totalorder %v6528_v7, 2 }
 0x698   :  { %v18496_v15 = vpop.f32.mrb[204].mxu0 }
 0x699   :  { %v6265_v62 = vpop.f32.mrb[205].mxu0  ;;  %v18709_v40 = vadd.f32 %v18496_v15, %v18687_v41 }
 0x69a   :  { %v18498_v56 = vpop.f32.mrb[206].mxu0  ;;  %v6481_v62 = vadd.s32 216, %v18487_v60 }
 0x69b   :  { %v6268_v6 = vpop.f32.mrb[207].mxu0  ;;  %v6701_v15 = vmul.f32 %v18709_v40, %v18521_v44  ;;  %v18725_v4 = vadd.f32 %v18498_v56, %v18687_v41 }
 0x69c   :  { %v18705_v6 = vadd.f32 %v18489_v25, %v18687_v41  ;;  %v6530_v20 = vand.u32 7, %v6481_v62  ;;  %v18762_v62 = vsel %vm18733_vm5, 1.0, %v21382_v52 }
 0x69d   :  { %22261 = vst [vmem:[#allocation10_spill] sm:$0xff] %v18762_v62 }
 0x69e   :  { %v6699_v25 = vmul.f32 %v18705_v6, %v18506_v12 }
 0x6a0   :  { %v18511_v21 = vpop.f32.mrb[208].mxu0 }
 0x6a1   :  { %v6273_v19 = vpop.f32.mrb[209].mxu0  ;;  %v18739_v46 = vadd.f32 %v18511_v21, %v18687_v41 }
 0x6a2   :  { %v18523_v13 = vpop.f32.mrb[210].mxu0  ;;  %v18630_v19 = vsel %vm18578_vm6, 1.0, %v21382_v52  ;;  %vm6579_vm6 = vcmp.lt.s32.totalorder %v6530_v20, 2  ;;  %v14107_v20 = vld [vmem:[%s21086_s3 + $0x8] sm:$0xff]  }
 0x6a3   :  { %v6276_v54 = vpop.f32.mrb[211].mxu0  ;;  %22245 = vst [vmem:[#allocation140_spill] sm:$0xff] %v18630_v19  ;;  %v6703_v9 = vmul.f32 %v18739_v46, %v18547_v0  ;;  %v18751_v21 = vadd.f32 %v18523_v13, %v18687_v41  ;;  %v18772_v7 = vsel %vm6579_vm6, 1.0, %v21382_v52  ;;  %12606 = vmatpush3.bf16.msra.mxu1 %v14107_v20 }
 0x6a4   :  { %v6476_v54 = vadd.s32 176, %v18487_v60  ;;  %22263 = vst [vmem:[#allocation11_spill] sm:$0xff] %v18772_v7 }
 0x6a5   :  { %v6704_v31 = vmul.f32 %v18751_v21, %v18552_v17 }
 0x6a6   :  { %v6525_v63 = vand.u32 7, %v6476_v54 }
 0x6a8   :  { %v18555_v38 = vpop.f32.mrb[212].mxu0  ;;  %vm6574_vm2 = vcmp.lt.s32.totalorder %v6525_v63, 2  ;;  %v6702_v63 = vmul.f32 %v18725_v4, %v18542_v59 }
 0x6a9   :  { %v6281_v37 = vpop.f32.mrb[213].mxu0  ;;  %v18714_v57 = vsel %vm6574_vm2, 1.0, %v21382_v52  ;;  %v18769_v13 = vadd.f32 %v18555_v38, %v18687_v41 }
 0x6aa   :  { %v18590_v32 = vpop.f32.mrb[214].mxu0 }
 0x6ab   :  { %v6284_v34 = vpop.f32.mrb[215].mxu0 }
 0x6ac   :  { %v6700_v34 = vmul.f32 %v18697_v3, %v18509_v50 }
 0x6b0   :  { %v18661_v58 = vpop.f32.mrb[216].mxu0 }
 0x6b1   :  { %v6289_v5 = vpop.f32.mrb[217].mxu0 }
 0x6b2   :  { %v18670_v33 = vpop.f32.mrb[218].mxu0  ;;  %v6748_v5 = vadd.f32 %v6700_v34, %v6699_v25  ;;  %v6531_v34 = vand.u32 7, %v6482_v26 }
 0x6b3   :  { %v6292_v29 = vpop.f32.mrb[219].mxu0 }
 0x6b4   :  { %v6749_v29 = vadd.f32 %v6748_v5, %v6701_v15  ;;  %v6532_v15 = vand.u32 7, %v6483_v22  ;;  %v6533_v5 = vand.u32 7, %v6484_v27  ;;  %vm6580_vm7 = vcmp.lt.s32.totalorder %v6531_v34, 2 }
 0x6b5   :  { %v18794_v27 = vadd.f32 %v18661_v58, %v18687_v41  ;;  %v18799_v1 = vsel %vm6580_vm7, 1.0, %v21382_v52 }
 0x6b6   :  { %vm6581_vm8 = vcmp.lt.s32.totalorder %v6532_v15, 2  ;;  %vm6582_vm9 = vcmp.lt.s32.totalorder %v6533_v5, 2  ;;  %22264 = vst [vmem:[#allocation14_spill] sm:$0xff] %v18799_v1  ;;  %v18809_v15 = vadd.f32 %v18670_v33, %v18687_v41 }
 0x6b7   :  { %v18803_v34 = vsel %vm6581_vm8, 1.0, %v21382_v52  ;;  %v6707_v58 = vmul.f32 %v18794_v27, %v18615_v36 }
 0x6b8   :  { %v18693_v37 = vpop.f32.mrb[220].mxu0  ;;  %22265 = vst [vmem:[#allocation9_spill] sm:$0xff] %v18803_v34  ;;  %v6708_v36 = vmul.f32 %v18809_v15, %v18620_v35 }
 0x6b9   :  { %v6297_v16 = vpop.f32.mrb[221].mxu0 }
 0x6ba   :  { %v18701_v51 = vpop.f32.mrb[222].mxu0  ;;  %v18756_v16 = vsel %vm18727_vm4, 1.0, %v21382_v52 }
 0x6bb   :  { %v6300_v48 = vpop.f32.mrb[223].mxu0  ;;  %22260 = vst [vmem:[#allocation8_spill] sm:$0xff] %v18756_v16 }
 0x6bc   :  { %v6750_v48 = vadd.f32 %v6749_v29, %v6702_v63  ;;  %v6486_v29 = vadd.s32 256, %v18487_v60  ;;  %v6705_v63 = vmul.f32 %v18769_v13, %v18560_v39 }
 0x6be   :  { %v6751_v28 = vadd.f32 %v6750_v48, %v6703_v9  ;;  %v6535_v30 = vand.u32 7, %v6486_v29  ;;  %v18816_v29 = vadd.f32 %v18693_v37, %v18687_v41 }
 0x6c0   :  { %v18731_v54 = vpop.f32.mrb[224].mxu0  ;;  %v6752_v9 = vadd.f32 %v6751_v28, %v6704_v31  ;;  %v18812_v31 = vsel %vm6582_vm9, 1.0, %v21382_v52  ;;  %vm6584_vm11 = vcmp.lt.s32.totalorder %v6535_v30, 2  ;;  %22267 = vst [vmem:[#allocation7_spill] sm:$0xff] %v18816_v29  ;;  %v6489_v30 = vadd.s32 280, %v18487_v60 }
 0x6c1   :  { %v6305_v11 = vpop.f32.mrb[225].mxu0  ;;  %22266 = vst [vmem:[#allocation12_spill] sm:$0xff] %v18812_v31  ;;  %v6709_v37 = vmul.f32 %v18816_v29, %v18625_v14  ;;  %v6490_v29 = vadd.s32 288, %v18487_v60 }
 0x6c2   :  { %v18741_v56 = vpop.f32.mrb[226].mxu0  ;;  %v6485_v11 = vadd.s32 248, %v18487_v60  ;;  %v6538_v39 = vand.u32 7, %v6489_v30  ;;  %v22272_v30 = vmov 0.0  }
 0x6c3   :  { %v6308_v55 = vpop.f32.mrb[227].mxu0 }
 0x6c4   :  { %v18790_v55 = vadd.f32 %v18590_v32, %v18687_v41  ;;  %v6534_v48 = vand.u32 7, %v6485_v11  ;;  %v6487_v32 = vadd.s32 264, %v18487_v60  ;;  %vm6587_vm14 = vcmp.lt.s32.totalorder %v6538_v39, 2 }
 0x6c6   :  { %v6706_v20 = vmul.f32 %v18790_v55, %v18610_v8  ;;  %vm6583_vm10 = vcmp.lt.s32.totalorder %v6534_v48, 2  ;;  %v18825_v48 = vsel %vm6584_vm11, 1.0, %v21382_v52 }
 0x6c7   :  { %v18821_v33 = vsel %vm6583_vm10, 1.0, %v21382_v52  ;;  %22269 = vst [vmem:[#allocation15_spill] sm:$0xff] %v18825_v48 }
 0x6c8   :  { %v6311_v25 = vpop.f32.mrb[228].mxu0  ;;  %22268 = vst [vmem:[#allocation18_spill] sm:$0xff] %v18821_v33 }
 0x6c9   :  { %v6313_v38 = vpop.f32.mrb[229].mxu0 }
 0x6ca   :  { %v18783_v26 = vpop.f32.mrb[230].mxu0  ;;  %v6753_v38 = vadd.f32 %v6752_v9, %v6705_v63  ;;  %v6536_v9 = vand.u32 7, %v6487_v32 }
 0x6cb   :  { %v6316_v22 = vpop.f32.mrb[231].mxu0 }
 0x6cc   :  { %v6754_v11 = vadd.f32 %v6753_v38, %v6706_v20  ;;  %v18832_v38 = vadd.f32 %v18701_v51, %v18687_v41  ;;  %vm18834_vm12 = vcmp.lt.s32.totalorder %v6536_v9, 2 }
 0x6ce   :  { %v6755_v8 = vadd.f32 %v6754_v11, %v6707_v58  ;;  %v18840_v11 = vadd.f32 %v18731_v54, %v18687_v41  ;;  %v6710_v14 = vmul.f32 %v18832_v38, %v18630_v19  ;;  %v18852_v54 = vadd.f32 %v6311_v25, %v18687_v41 }
 0x6cf   :  { %v6539_v25 = vand.u32 7, %v6490_v29  ;;  %v18881_v29 = vsel %vm6587_vm14, 1.0, %v22272_v30 }
 0x6d0   :  { %v6319_v22 = vpop.f32.mrb[232].mxu0  ;;  %v6756_v58 = vadd.f32 %v6755_v8, %v6708_v36  ;;  %v6711_v9 = vmul.f32 %v18840_v11, %v18635_v49  ;;  %v18849_v8 = vadd.f32 %v18741_v56, %v18687_v41  ;;  %22275 = vst [vmem:[#allocation22_spill] sm:$0xff] %v18881_v29 }
 0x6d1   :  { %v6321_v28 = vpop.f32.mrb[233].mxu0  ;;  %v18868_v19 = vadd.f32 %v6319_v22, %v18687_v41  ;;  %vm6588_vm15 = vcmp.lt.s32.totalorder %v6539_v25, 2 }
 0x6d2   :  { %v6322_v5 = vpop.f32.mrb[234].mxu0  ;;  %v6488_v28 = vadd.s32 272, %v18487_v60  ;;  %v6757_v17 = vadd.f32 %v6756_v58, %v6709_v37  ;;  %v18857_v37 = vsel %vm18834_vm12, 1.0, %v22272_v30  ;;  %v18895_v25 = vsel %vm6588_vm15, 1.0, %v22272_v30 }
 0x6d3   :  { %v6324_v63 = vpop.f32.mrb[235].mxu0  ;;  %22273 = vst [vmem:[#allocation16_spill] sm:$0xff] %v18857_v37  ;;  %22278 = vst [vmem:[#allocation17_spill] sm:$0xff] %v18895_v25 }
 0x6d4   :  { %v6537_v52 = vand.u32 7, %v6488_v28  ;;  %v6758_v36 = vadd.f32 %v6757_v17, %v6710_v14  ;;  %v6713_v17 = vmul.f32 %v18852_v54, %v18645_v18  ;;  %v18865_v14 = vadd.f32 %v18783_v26, %v18687_v41 }
 0x6d5   :  { %v18878_v26 = vadd.f32 %v6322_v5, %v18687_v41 }
 0x6d6   :  { %v6759_v58 = vadd.f32 %v6758_v36, %v6711_v9  ;;  %vm6586_vm13 = vcmp.lt.s32.totalorder %v6537_v52, 2  ;;  %v6714_v36 = vmul.f32 %v18865_v14, %v18650_v24 }
 0x6d7   :  { %v18873_v39 = vsel %vm6586_vm13, 1.0, %v22272_v30 }
 0x6d8   :  { %v6327_v20 = vpop.f32.mrb[236].mxu0  ;;  %22274 = vst [vmem:[#allocation13_spill] sm:$0xff] %v18873_v39 }
 0x6d9   :  { %v6329_v63 = vpop.f32.mrb[237].mxu0 }
 0x6da   :  { %v6330_v35 = vpop.f32.mrb[238].mxu0  ;;  %v6712_v63 = vmul.f32 %v18849_v8, %v18640_v10 }
 0x6db   :  { %v6332_v51 = vpop.f32.mrb[239].mxu0 }
 0x6dc   :  { %v6760_v32 = vadd.f32 %v6759_v58, %v6712_v63  ;;  %v18884_v63 = vadd.f32 %v6327_v20, %v18687_v41 }
 0x6de   :  { %v6761_v9 = vadd.f32 %v6760_v32, %v6713_v17  ;;  %22276 = vst [vmem:[#allocation19_spill] sm:$0xff] %v18884_v63  ;;  %v6491_v32 = vadd.s32 296, %v18487_v60  ;;  %v6717_v5 = vmul.f32 %v18884_v63, %v18673_v23 }
 0x6e0   :  { %v6335_v28 = vpop.f32.mrb[240].mxu0  ;;  %v6762_v58 = vadd.f32 %v6761_v9, %v6714_v36 }
 0x6e1   :  { %v6337_v51 = vpop.f32.mrb[241].mxu0  ;;  %v18898_v20 = vadd.f32 %v6335_v28, %v18687_v41 }
 0x6e2   :  { %v6338_v49 = vpop.f32.mrb[242].mxu0  ;;  %v6715_v51 = vmul.f32 %v18868_v19, %v18655_v47  ;;  %v6716_v47 = vmul.f32 %v18878_v26, %v18658_v53 }
 0x6e3   :  { %v6340_v56 = vpop.f32.mrb[243].mxu0  ;;  %22279 = vst [vmem:[#allocation24_spill] sm:$0xff] %v18898_v20  ;;  %v6719_v10 = vmul.f32 %v18898_v20, %v18682_v43 }
 0x6e4   :  { %v6763_v24 = vadd.f32 %v6762_v58, %v6715_v51  ;;  %v6492_v58 = vadd.s32 304, %v18487_v60 }
 0x6e6   :  { %v6764_v9 = vadd.f32 %v6763_v24, %v6716_v47  ;;  %v18907_v24 = vadd.f32 %v6338_v49, %v18687_v41 }
 0x6e8   :  { %v6343_v52 = vpop.f32.mrb[244].mxu0  ;;  %v6765_v53 = vadd.f32 %v6764_v9, %v6717_v5 }
 0x6e9   :  { %v6345_v56 = vpop.f32.mrb[245].mxu0  ;;  %v18910_v28 = vadd.f32 %v6343_v52, %v18687_v41  ;;  %v6494_v52 = vadd.s32 320, %v18487_v60 }
 0x6ea   :  { %v6346_v22 = vpop.f32.mrb[246].mxu0  ;;  %v18892_v56 = vadd.f32 %v6330_v35, %v18687_v41  ;;  %v6493_v35 = vadd.s32 312, %v18487_v60 }
 0x6eb   :  { %v6348_v17 = vpop.f32.mrb[247].mxu0  ;;  %v6721_v49 = vmul.f32 %v18910_v28, %v18714_v57 }
 0x6ec   :  { %22277 = vst [vmem:[#allocation20_spill] sm:$0xff] %v18892_v56  ;;  %v6540_v17 = vand.u32 7, %v6491_v32  ;;  %v6718_v23 = vmul.f32 %v18892_v56, %v18679_v42  ;;  %v6541_v42 = vand.u32 7, %v6492_v58  ;;  %v6542_v43 = vand.u32 7, %v6493_v35 }
 0x6ee   :  { %v6766_v47 = vadd.f32 %v6765_v53, %v6718_v23  ;;  %vm18912_vm1 = vcmp.lt.s32.totalorder %v6540_v17, 2  ;;  %v18921_v53 = vadd.f32 %v6346_v22, %v18687_v41  ;;  %vm6590_vm2 = vcmp.lt.s32.totalorder %v6541_v42, 2 }
 0x6ef   :  { %v18932_v35 = vsel %vm18912_vm1, 1.0, %v22272_v30  ;;  %vm6591_vm3 = vcmp.lt.s32.totalorder %v6542_v43, 2  ;;  %v18950_v42 = vsel %vm6590_vm2, 1.0, %v22272_v30 }
 0x6f0   :  { %v6351_v18 = vpop.f32.mrb[248].mxu0  ;;  %v6767_v5 = vadd.f32 %v6766_v47, %v6719_v10  ;;  %v6722_v47 = vmul.f32 %v18921_v53, %v18717_v45  ;;  %22282 = vst [vmem:[#allocation25_spill] sm:$0xff] %v18932_v35  ;;  %22283 = vst [vmem:[#allocation26_spill] sm:$0xff] %v18950_v42 }
 0x6f1   :  { %v6353_v36 = vpop.f32.mrb[249].mxu0  ;;  %v18925_v20 = vadd.f32 %v6351_v18, %v18687_v41 }
 0x6f2   :  { %v6354_v51 = vpop.f32.mrb[250].mxu0 }
 0x6f3   :  { %v6356_v63 = vpop.f32.mrb[251].mxu0  ;;  %v6723_v22 = vmul.f32 %v18925_v20, %v18756_v16 }
 0x6f4   :  { %v6720_v63 = vmul.f32 %v18907_v24, %v18690_v61 }
 0x6f6   :  { %v6768_v17 = vadd.f32 %v6767_v5, %v6720_v63 }
 0x6f8   :  { %v6359_v32 = vpop.f32.mrb[252].mxu0  ;;  %v6769_v10 = vadd.f32 %v6768_v17, %v6721_v49  ;;  %v6543_v17 = vand.u32 7, %v6494_v52  ;;  %v18956_v52 = vsel %vm6591_vm3, 1.0, %v22272_v30 }
 0x6f9   :  { %v6361_v9 = vpop.f32.mrb[253].mxu0  ;;  %v18940_v49 = vadd.f32 %v6359_v32, %v18687_v41  ;;  %22285 = vst [vmem:[#allocation28_spill] sm:$0xff] %v18956_v52 }
 0x6fa   :  { %v6362_v56 = vpop.f32.mrb[254].mxu0  ;;  %v18937_v9 = vadd.f32 %v6354_v51, %v18687_v41  ;;  %v6770_v63 = vadd.f32 %v6769_v10, %v6722_v47  ;;  %vm6592_vm4 = vcmp.lt.s32.totalorder %v6543_v17, 2 }
 0x6fb   :  { %v6364_v23 = vpop.f32.mrb[255].mxu0  ;;  %v6725_v16 = vmul.f32 %v18940_v49, %v18765_v2  ;;  %v18947_v51 = vadd.f32 %v6362_v56, %v18687_v41 }
 0x6fc   :  { %v6771_v45 = vadd.f32 %v6770_v63, %v6723_v22  ;;  %v6724_v36 = vmul.f32 %v18937_v9, %v18762_v62  ;;  %v6495_v22 = vadd.s32 328, %v18487_v60  ;;  %v18970_v62 = vsel %vm6592_vm4, 1.0, %v22272_v30 }
 0x6fd   :  { %v6726_v56 = vmul.f32 %v18947_v51, %v18772_v7  ;;  %22287 = vst [vmem:[#allocation30_spill] sm:$0xff] %v18970_v62 }
 0x6fe   :  { %v6772_v43 = vadd.f32 %v6771_v45, %v6724_v36  ;;  %v6544_v17 = vand.u32 7, %v6495_v22 }
 0x700   :  { %v6367_v58 = vpop.f32.mrb[0].mxu0  ;;  %v6773_v63 = vadd.f32 %v6772_v43, %v6725_v16  ;;  %vm18986_vm5 = vcmp.lt.s32.totalorder %v6544_v17, 2  ;;  %v6498_v17 = vadd.s32 352, %v18487_v60 }
 0x701   :  { %v6369_v5 = vpop.f32.mrb[1].mxu0  ;;  %v18953_v32 = vadd.f32 %v6367_v58, %v18687_v41 }
 0x702   :  { %v6370_v18 = vpop.f32.mrb[2].mxu0  ;;  %v6774_v58 = vadd.f32 %v6773_v63, %v6726_v56  ;;  %v6497_v56 = vadd.s32 344, %v18487_v60 }
 0x703   :  { %v6372_v23 = vpop.f32.mrb[3].mxu0  ;;  %22284 = vst [vmem:[#allocation21_spill] sm:$0xff] %v18953_v32  ;;  %v6727_v2 = vmul.f32 %v18953_v32, %v18799_v1  ;;  %v18964_v45 = vadd.f32 %v6370_v18, %v18687_v41  ;;  %v6496_v1 = vadd.s32 336, %v18487_v60 }
 0x705   :  { %v6775_v16 = vadd.f32 %v6774_v58, %v6727_v2  ;;  %v6728_v43 = vmul.f32 %v18964_v45, %v18803_v34 }
 0x707   :  { %v6776_v32 = vadd.f32 %v6775_v16, %v6728_v43  ;;  %v6545_v16 = vand.u32 7, %v6496_v1 }
 0x708   :  { %v6375_v5 = vpop.f32.mrb[4].mxu0 }
 0x709   :  { %v6377_v10 = vpop.f32.mrb[5].mxu0  ;;  %v18967_v36 = vadd.f32 %v6375_v5, %v18687_v41  ;;  %vm6594_vm0 = vcmp.lt.s32.totalorder %v6545_v16, 2 }
 0x70a   :  { %v6378_v47 = vpop.f32.mrb[6].mxu0 }
 0x70b   :  { %v6380_v23 = vpop.f32.mrb[7].mxu0  ;;  %22286 = vst [vmem:[#allocation29_spill] sm:$0xff] %v18967_v36  ;;  %v6729_v18 = vmul.f32 %v18967_v36, %v18812_v31  ;;  %v18978_v63 = vadd.f32 %v6378_v47, %v18687_v41 }
 0x70d   :  { %22288 = vst [vmem:[#allocation23_spill] sm:$0xff] %v18978_v63  ;;  %v6777_v58 = vadd.f32 %v6776_v32, %v6729_v18  ;;  %v6730_v22 = vmul.f32 %v18978_v63, %v18821_v33 }
 0x70f   :  { %v6778_v36 = vadd.f32 %v6777_v58, %v6730_v22 }
 0x710   :  { %v6383_v10 = vpop.f32.mrb[8].mxu0 }
 0x711   :  { %v6385_v23 = vpop.f32.mrb[9].mxu0  ;;  %v18982_v2 = vadd.f32 %v6383_v10, %v18687_v41  ;;  %v6546_v10 = vand.u32 7, %v6497_v56 }
 0x712   :  { %v6386_v7 = vpop.f32.mrb[10].mxu0 }
 0x713   :  { %v6388_v5 = vpop.f32.mrb[11].mxu0  ;;  %v6731_v47 = vmul.f32 %v18982_v2, %v18825_v48  ;;  %vm6595_vm6 = vcmp.lt.s32.totalorder %v6546_v10, 2 }
 0x714   :  { %v18993_v5 = vadd.f32 %v6386_v7, %v18687_v41 }
 0x715   :  { %v6779_v33 = vadd.f32 %v6778_v36, %v6731_v47 }
 0x716   :  { %v6732_v63 = vmul.f32 %v18993_v5, %v18857_v37 }
 0x718   :  { %v6391_v23 = vpop.f32.mrb[12].mxu0  ;;  %v6780_v56 = vadd.f32 %v6779_v33, %v6732_v63 }
 0x719   :  { %v6393_v31 = vpop.f32.mrb[13].mxu0  ;;  %v18996_v32 = vadd.f32 %v6391_v23, %v18687_v41 }
 0x71a   :  { %v6394_v43 = vpop.f32.mrb[14].mxu0  ;;  %v19009_v31 = vsel %vm18986_vm5, 1.0, %v22272_v30 }
 0x71b   :  { %v6396_v18 = vpop.f32.mrb[15].mxu0  ;;  %v6733_v48 = vmul.f32 %v18996_v32, %v18873_v39  ;;  %v19004_v7 = vadd.f32 %v6394_v43, %v18687_v41  ;;  %22291 = vst [vmem:[#allocation32_spill] sm:$0xff] %v19009_v31 }
 0x71c   :  { %v6547_v18 = vand.u32 7, %v6498_v17  ;;  %v19030_v17 = vsel %vm6595_vm6, 1.0, %v22272_v30 }
 0x71d   :  { %v6781_v23 = vadd.f32 %v6780_v56, %v6733_v48  ;;  %v6734_v47 = vmul.f32 %v19004_v7, %v18881_v29  ;;  %22296 = vst [vmem:[#allocation37_spill] sm:$0xff] %v19030_v17 }
 0x71e   :  { %vm6596_vm7 = vcmp.lt.s32.totalorder %v6547_v18, 2 }
 0x71f   :  { %v6782_v33 = vadd.f32 %v6781_v23, %v6734_v47 }
 0x720   :  { %v6399_v1 = vpop.f32.mrb[16].mxu0 }
 0x721   :  { %v19012_v58 = vadd.f32 %v6399_v1, %v18687_v41  ;;  %v6401_v36 = vpop.f32.mrb[17].mxu0  ;;  %v19022_v1 = vsel %vm6594_vm0, 1.0, %v22272_v30 }
 0x722   :  { %v6402_v22 = vpop.f32.mrb[18].mxu0  ;;  %22294 = vst [vmem:[#allocation27_spill] sm:$0xff] %v19022_v1 }
 0x723   :  { %22292 = vst [vmem:[#allocation33_spill] sm:$0xff] %v19012_v58  ;;  %v6404_v43 = vpop.f32.mrb[19].mxu0  ;;  %v6735_v39 = vmul.f32 %v19012_v58, %v18895_v25  ;;  %v19019_v34 = vadd.f32 %v6402_v22, %v18687_v41 }
 0x725   :  { %22293 = vst [vmem:[#allocation34_spill] sm:$0xff] %v19019_v34  ;;  %v6783_v16 = vadd.f32 %v6782_v33, %v6735_v39  ;;  %v6736_v48 = vmul.f32 %v19019_v34, %v18932_v35  ;;  %v6499_v39 = vadd.s32 360, %v18487_v60  ;;  %v19041_v35 = vsel %vm6596_vm7, 1.0, %v22272_v30 }
 0x726   :  { %22298 = vst [vmem:[#allocation31_spill] sm:$0xff] %v19041_v35  ;;  %v6502_v34 = vadd.s32 384, %v18487_v60 }
 0x727   :  { %v6784_v43 = vadd.f32 %v6783_v16, %v6736_v48 }
 0x728   :  { %v6407_v63 = vpop.f32.mrb[20].mxu0 }
 0x729   :  { %v19027_v10 = vadd.f32 %v6407_v63, %v18687_v41  ;;  %v6409_v56 = vpop.f32.mrb[21].mxu0 }
 0x72a   :  { %v6410_v36 = vpop.f32.mrb[22].mxu0 }
 0x72b   :  { %22295 = vst [vmem:[#allocation36_spill] sm:$0xff] %v19027_v10  ;;  %v6737_v22 = vmul.f32 %v19027_v10, %v18950_v42  ;;  %v19035_v23 = vadd.f32 %v6410_v36, %v18687_v41  ;;  %v6412_v47 = vpop.f32.mrb[23].mxu0  ;;  %v6548_v42 = vand.u32 7, %v6499_v39  ;;  %v6500_v36 = vadd.s32 368, %v18487_v60 }
 0x72d   :  { %22297 = vst [vmem:[#allocation38_spill] sm:$0xff] %v19035_v23  ;;  %v6785_v33 = vadd.f32 %v6784_v43, %v6737_v22  ;;  %v6738_v63 = vmul.f32 %v19035_v23, %v18956_v52  ;;  %v6501_v43 = vadd.s32 376, %v18487_v60  ;;  %vm6597_vm8 = vcmp.lt.s32.totalorder %v6548_v42, 2 }
 0x72e   :  { %v19061_v42 = vsel %vm6597_vm8, 1.0, %v22272_v30 }
 0x72f   :  { %v6786_v47 = vadd.f32 %v6785_v33, %v6738_v63  ;;  %v6549_v33 = vand.u32 7, %v6500_v36  ;;  %v6550_v37 = vand.u32 7, %v6501_v43  ;;  %22299 = vst [vmem:[#allocation40_spill] sm:$0xff] %v19061_v42 }
 0x730   :  { %v6415_v56 = vpop.f32.mrb[24].mxu0 }
 0x731   :  { %v19044_v18 = vadd.f32 %v6415_v56, %v18687_v41  ;;  %v6417_v25 = vpop.f32.mrb[25].mxu0  ;;  %vm6598_vm9 = vcmp.lt.s32.totalorder %v6549_v33, 2  ;;  %vm6599_vm10 = vcmp.lt.s32.totalorder %v6550_v37, 2 }
 0x732   :  { %v6418_v29 = vpop.f32.mrb[26].mxu0  ;;  %v19068_v60 = vsel %vm6598_vm9, 1.0, %v22272_v30  ;;  %v19072_v37 = vsel %vm6599_vm10, 1.0, %v22272_v30 }
 0x733   :  { %v6739_v16 = vmul.f32 %v19044_v18, %v18970_v62  ;;  %v19050_v48 = vadd.f32 %v6418_v29, %v18687_v41  ;;  %v6420_v22 = vpop.f32.mrb[27].mxu0  ;;  %22300 = vst [vmem:[#allocation41_spill] sm:$0xff] %v19068_v60  ;;  %22301 = vst [vmem:[#allocation42_spill] sm:$0xff] %v19072_v37 }
 0x735   :  { %v6787_v52 = vadd.f32 %v6786_v47, %v6739_v16  ;;  %v6740_v56 = vmul.f32 %v19050_v48, %v19009_v31 }
 0x737   :  { %v6788_v23 = vadd.f32 %v6787_v52, %v6740_v56 }
 0x738   :  { %v6423_v25 = vpop.f32.mrb[28].mxu0 }
 0x739   :  { %v13231_v39 = vadd.f32 %v6423_v25, %v18687_v41  ;;  %v6425_v10 = vpop.f32.mrb[29].mxu0 }
 0x73a   :  { %v6426_v63 = vpop.f32.mrb[30].mxu0 }
 0x73b   :  { %v6741_v62 = vmul.f32 %v13231_v39, %v19022_v1  ;;  %v13232_v29 = vadd.f32 %v6426_v63, %v18687_v41  ;;  %v6428_v22 = vpop.f32.mrb[31].mxu0 }
 0x73c   :  { %v6551_v22 = vand.u32 7, %v6502_v34 }
 0x73d   :  { %v6789_v47 = vadd.f32 %v6788_v23, %v6741_v62  ;;  %v6742_v16 = vmul.f32 %v13232_v29, %v19030_v17 }
 0x73e   :  { %vm6600_vm11 = vcmp.lt.s32.totalorder %v6551_v22, 2 }
 0x73f   :  { %v6790_v31 = vadd.f32 %v6789_v47, %v6742_v16 }
 0x740   :  { %v6431_v52 = vpop.f32.mrb[32].mxu0 }
 0x741   :  { %v13233_v10 = vadd.f32 %v6431_v52, %v18687_v41  ;;  %v6433_v36 = vpop.f32.mrb[33].mxu0 }
 0x742   :  { %v6434_v43 = vpop.f32.mrb[34].mxu0 }
 0x743   :  { %v6743_v56 = vmul.f32 %v13233_v10, %v19041_v35  ;;  %v13234_v25 = vadd.f32 %v6434_v43, %v18687_v41  ;;  %v6436_v63 = vpop.f32.mrb[35].mxu0 }
 0x745   :  { %v6791_v62 = vadd.f32 %v6790_v31, %v6743_v56  ;;  %v6744_v23 = vmul.f32 %v13234_v25, %v19061_v42 }
 0x747   :  { %v6792_v47 = vadd.f32 %v6791_v62, %v6744_v23  ;;  %v19078_v23 = vsel %vm6600_vm11, 1.0, %v22272_v30  ;;  %v22344_v30 = vld [vmem:[#allocation15_spill] sm:$0xff] }
 0x748   :  { %v6439_v16 = vpop.f32.mrb[36].mxu0 }
 0x749   :  { %v13235_v52 = vadd.f32 %v6439_v16, %v18687_v41  ;;  %v6441_v36 = vpop.f32.mrb[37].mxu0 }
 0x74a   :  { %v6442_v33 = vpop.f32.mrb[38].mxu0 }
 0x74b   :  { %v6745_v35 = vmul.f32 %v13235_v52, %v19068_v60  ;;  %v13236_v43 = vadd.f32 %v6442_v33, %v18687_v41  ;;  %v6444_v34 = vpop.f32.mrb[39].mxu0 }
 0x74d   :  { %v6793_v31 = vadd.f32 %v6792_v47, %v6745_v35  ;;  %v6746_v56 = vmul.f32 %v13236_v43, %v19072_v37 }
 0x74f   :  { %v6794_v63 = vadd.f32 %v6793_v31, %v6746_v56 }
 0x750   :  { %v6447_v62 = vpop.f32.mrb[40].mxu0 }
 0x751   :  { %v13237_v16 = vadd.f32 %v6447_v62, %v18687_v41  ;;  %v6449_v36 = vpop.f32.mrb[41].mxu0 }
 0x752   :  { %v6450_v42 = vpop.f32.mrb[42].mxu0 }
 0x753   :  { %v6747_v17 = vmul.f32 %v13237_v16, %v19078_v23  ;;  %v6451_v1 = vpop.f32.mrb[43].mxu0 }
 0x755   :  { %v6795_v60 = vadd.f32 %v6794_v63, %v6747_v17 }
 0x757   :  { %v6796_v58 = vrot.slane %v6795_v60, 4 }
 0x759   :  { %v6797_v33 = vadd.f32 %v6796_v58, %v6795_v60 }
 0x75b   :  { %v6798_v34 = vrot.slane %v6797_v33, 2 }
 0x75d   :  { %v6799_v22 = vadd.f32 %v6798_v34, %v6797_v33 }
 0x75f   :  { %v6800_v35 = vrot.slane %v6799_v22, 1 }
 0x761   :  { %v6801_v47 = vadd.f32 %v6800_v35, %v6799_v22 }
 0x763   :  { %v19082_v37 = vmul.f32 0.010204081, %v6801_v47  ;;  %v22311_v47 = vld [vmem:[#allocation128_spill] sm:$0xff] }
 0x765   :  { %v19086_v31 = vsub.f32 %v19044_v18, %v19082_v37  ;;  %v19090_v41 = vsub.f32 %v19050_v48, %v19082_v37  ;;  %v19093_v42 = vsub.f32 %v13231_v39, %v19082_v37  ;;  %v19096_v1 = vsub.f32 %v13232_v29, %v19082_v37 }
 0x766   :  { %v19099_v60 = vsub.f32 %v13233_v10, %v19082_v37  ;;  %v19102_v58 = vsub.f32 %v13234_v25, %v19082_v37  ;;  %v19105_v17 = vsub.f32 %v13235_v52, %v19082_v37  ;;  %v19108_v18 = vsub.f32 %v13236_v43, %v19082_v37 }
 0x767   :  { %v19111_v48 = vsub.f32 %v13237_v16, %v19082_v37  ;;  %v19115_v39 = vsub.f32 %v18705_v6, %v19082_v37  ;;  %v19119_v29 = vsub.f32 %v18697_v3, %v19082_v37  ;;  %v19123_v10 = vsub.f32 %v18709_v40, %v19082_v37 }
 0x768   :  { %22302 = vst [vmem:[#allocation35_spill] sm:$0xff] %v19099_v60  ;;  %22303 = vst [vmem:[#allocation44_spill] sm:$0xff] %v19102_v58  ;;  %v19131_v43 = vsub.f32 %v18725_v4, %v19082_v37  ;;  %v19135_v6 = vsub.f32 %v18739_v46, %v19082_v37  ;;  %v19143_v63 = vsub.f32 %v18751_v21, %v19082_v37 }
 0x769   :  { %22304 = vst [vmem:[#allocation45_spill] sm:$0xff] %v19105_v17  ;;  %22305 = vst [vmem:[#allocation46_spill] sm:$0xff] %v19108_v18  ;;  %v6853_v25 = vmul.f32 %v19115_v39, %v19115_v39  ;;  %v6854_v52 = vmul.f32 %v19119_v29, %v19119_v29  ;;  %v6855_v3 = vmul.f32 %v19123_v10, %v19123_v10 }
 0x76a   :  { %22306 = vst [vmem:[#allocation39_spill] sm:$0xff] %v19115_v39  ;;  %22307 = vst [vmem:[#allocation48_spill] sm:$0xff] %v19119_v29  ;;  %v6856_v62 = vmul.f32 %v19131_v43, %v19131_v43  ;;  %v19149_v4 = vsub.f32 %v18769_v13, %v19082_v37  ;;  %v6857_v46 = vmul.f32 %v19135_v6, %v19135_v6 }
 0x76b   :  { %22308 = vst [vmem:[#allocation49_spill] sm:$0xff] %v19123_v10  ;;  %22309 = vst [vmem:[#allocation50_spill] sm:$0xff] %v19131_v43  ;;  %v6902_v40 = vmul.f32 %v18506_v12, %v6853_v25  ;;  %v6903_v56 = vmul.f32 %v18509_v50, %v6854_v52  ;;  %v6904_v16 = vmul.f32 %v18521_v44, %v6855_v3  ;;  %v22312_v52 = vld [vmem:[#allocation7_spill] sm:$0xff]  ;;  %v22349_v10 = vld [vmem:[#allocation13_spill] sm:$0xff] }
 0x76c   :  { %22310 = vst [vmem:[#allocation43_spill] sm:$0xff] %v19143_v63  ;;  %v19156_v12 = vsub.f32 %v18790_v55, %v19082_v37  ;;  %v6858_v50 = vmul.f32 %v19143_v63, %v19143_v63  ;;  %v6905_v21 = vmul.f32 %v18542_v59, %v6856_v62  ;;  %v19163_v13 = vsub.f32 %v18794_v27, %v19082_v37  ;;  %v22347_v63 = vld [vmem:[#allocation16_spill] sm:$0xff]  ;;  %v22351_v43 = vld [vmem:[#allocation22_spill] sm:$0xff] }
 0x76d   :  { %v6951_v36 = vadd.f32 %v6903_v56, %v6902_v40  ;;  %v6859_v34 = vmul.f32 %v19149_v4, %v19149_v4  ;;  %v6906_v44 = vmul.f32 %v18547_v0, %v6857_v46  ;;  %v19170_v55 = vsub.f32 %v18809_v15, %v19082_v37  ;;  %v22313_v40 = vld [vmem:[#allocation134_spill] sm:$0xff]  ;;  %v22314_v46 = vld [vmem:[#allocation135_spill] sm:$0xff] }
 0x76e   :  { %v6860_v35 = vmul.f32 %v19156_v12, %v19156_v12  ;;  %v6907_v59 = vmul.f32 %v22311_v47, %v6858_v50  ;;  %v19177_v27 = vsub.f32 %v22312_v52, %v19082_v37  ;;  %v6861_v3 = vmul.f32 %v19163_v13, %v19163_v13  ;;  %v22316_v47 = vld [vmem:[#allocation132_spill] sm:$0xff]  ;;  %v22317_v52 = vld [vmem:[#allocation139_spill] sm:$0xff] }
 0x76f   :  { %v6952_v33 = vadd.f32 %v6951_v36, %v6904_v16  ;;  %v6908_v0 = vmul.f32 %v22313_v40, %v6859_v34  ;;  %v19184_v15 = vsub.f32 %v18832_v38, %v19082_v37  ;;  %v6862_v62 = vmul.f32 %v19170_v55, %v19170_v55 }
 0x770   :  { %v6909_v16 = vmul.f32 %v22314_v46, %v6860_v35  ;;  %v19191_v50 = vsub.f32 %v18840_v11, %v19082_v37  ;;  %v19198_v38 = vsub.f32 %v18849_v8, %v19082_v37  ;;  %v19205_v11 = vsub.f32 %v18852_v54, %v19082_v37  ;;  %v14108_v54 = vld [vmem:[%s21086_s3 + $0x50] sm:$0xff]  }
 0x771   :  { %v6953_v22 = vadd.f32 %v6952_v33, %v6905_v21  ;;  %v6863_v21 = vmul.f32 %v19177_v27, %v19177_v27  ;;  %v22315_v33 = vld [vmem:[#allocation133_spill] sm:$0xff]  ;;  %v6911_v35 = vmul.f32 %v22316_v47, %v6862_v62  ;;  %v19212_v8 = vsub.f32 %v18865_v14, %v19082_v37  ;;  %12607 = vmatprep.subr.bf16.mxu1 %v14108_v54 }
 0x772   :  { %v6910_v34 = vmul.f32 %v22315_v33, %v6861_v3 }
 0x773   :  { %v6954_v25 = vadd.f32 %v6953_v22, %v6906_v44  ;;  %v6864_v22 = vmul.f32 %v19184_v15, %v19184_v15  ;;  %v6912_v3 = vmul.f32 %v22317_v52, %v6863_v21  ;;  %v22319_v21 = vld [vmem:[#allocation137_spill] sm:$0xff] }
 0x775   :  { %v6955_v56 = vadd.f32 %v6954_v25, %v6907_v59  ;;  %v6865_v25 = vmul.f32 %v19191_v50, %v19191_v50 }
 0x777   :  { %v6956_v36 = vadd.f32 %v6955_v56, %v6908_v0  ;;  %v6866_v0 = vmul.f32 %v19198_v38, %v19198_v38  ;;  %v22318_v56 = vld [vmem:[#allocation140_spill] sm:$0xff]  ;;  %v6914_v14 = vmul.f32 %v22319_v21, %v6865_v25  ;;  %v22321_v25 = vld [vmem:[#allocation19_spill] sm:$0xff]  ;;  %v22324_v21 = vld [vmem:[#allocation6_spill] sm:$0xff] }
 0x778   :  { %v6913_v62 = vmul.f32 %v22318_v56, %v6864_v22  ;;  %v6868_v22 = vmul.f32 %v19212_v8, %v19212_v8  ;;  %v19242_v52 = vsub.f32 %v22321_v25, %v19082_v37 }
 0x779   :  { %v6957_v44 = vadd.f32 %v6956_v36, %v6909_v16  ;;  %v19222_v16 = vsub.f32 %v18868_v19, %v19082_v37  ;;  %v6867_v36 = vmul.f32 %v19205_v11, %v19205_v11  ;;  %v22320_v19 = vld [vmem:[#allocation136_spill] sm:$0xff] }
 0x77a   :  { %v6915_v47 = vmul.f32 %v22320_v19, %v6866_v0  ;;  %v14111_v0 = vld [vmem:[%s21086_s3 + $0x18] sm:$0xff]  }
 0x77b   :  { %v6958_v59 = vadd.f32 %v6957_v44, %v6910_v34  ;;  %v14109_v34 = vld [vmem:[%s21086_s3 + $0x10] sm:$0xff]   ;;  %v19232_v44 = vsub.f32 %v18878_v26, %v19082_v37 }
 0x77c   :  { %12608 = vmatpush3.bf16.msra.mxu1 %v14109_v34  ;;  %v22322_v26 = vld [vmem:[#allocation145_spill] sm:$0xff]  ;;  %v22325_v34 = vld [vmem:[#allocation24_spill] sm:$0xff] }
 0x77d   :  { %v6959_v40 = vadd.f32 %v6958_v59, %v6911_v35  ;;  %v14110_v59 = vld [vmem:[%s21086_s3 + $0x58] sm:$0xff]   ;;  %v6870_v54 = vmul.f32 %v19232_v44, %v19232_v44  ;;  %v19262_v19 = vsub.f32 %v22325_v34, %v19082_v37  ;;  %v19292_v34 = vsub.f32 %v18921_v53, %v19082_v37  ;;  %v22330_v53 = vld [vmem:[#allocation148_spill] sm:$0xff] }
 0x77e   :  { %12609 = vmatprep.subr.bf16.mxu1 %v14110_v59 }
 0x77f   :  { %v6960_v46 = vadd.f32 %v6959_v40, %v6912_v3  ;;  %v6869_v3 = vmul.f32 %v19222_v16, %v19222_v16  ;;  %v6916_v40 = vmul.f32 %v22322_v26, %v6867_v36  ;;  %v14112_v36 = vld [vmem:[%s21086_s3 + $0x60] sm:$0xff]   ;;  %v19272_v26 = vsub.f32 %v18907_v24, %v19082_v37 }
 0x780   :  { %12610 = vmatpush3.bf16.msra.mxu1 %v14111_v0  ;;  %v22328_v24 = vld [vmem:[#allocation3_spill] sm:$0xff] }
 0x781   :  { %v6961_v33 = vadd.f32 %v6960_v46, %v6913_v62  ;;  %v22323_v62 = vld [vmem:[#allocation20_spill] sm:$0xff]  ;;  %12611 = vmatprep.subr.bf16.mxu1 %v14112_v36 }
 0x782   :  { %v19252_v46 = vsub.f32 %v22323_v62, %v19082_v37 }
 0x783   :  { %v6962_v35 = vadd.f32 %v6961_v33, %v6914_v14  ;;  %v6917_v14 = vmul.f32 %v22324_v21, %v6868_v22  ;;  %v14113_v22 = vld [vmem:[%s21086_s3 + $0x20] sm:$0xff]   ;;  %v19282_v21 = vsub.f32 %v18910_v28, %v19082_v37  ;;  %v22329_v28 = vld [vmem:[#allocation4_spill] sm:$0xff] }
 0x784   :  { %12612 = vmatpush3.bf16.msra.mxu1 %v14113_v22  ;;  %v19302_v22 = vsub.f32 %v18925_v20, %v19082_v37 }
 0x785   :  { %v6963_v56 = vadd.f32 %v6962_v35, %v6915_v47  ;;  %v6871_v47 = vmul.f32 %v19242_v52, %v19242_v52  ;;  %v22326_v35 = vld [vmem:[#allocation143_spill] sm:$0xff] }
 0x786   :  { %v6918_v59 = vmul.f32 %v22326_v35, %v6869_v3  ;;  %v14114_v3 = vld [vmem:[%s21086_s3 + $0x68] sm:$0xff]   ;;  %v6874_v35 = vmul.f32 %v19272_v26, %v19272_v26 }
 0x787   :  { %v6964_v33 = vadd.f32 %v6963_v56, %v6916_v40  ;;  %v6872_v40 = vmul.f32 %v19252_v46, %v19252_v46  ;;  %v22327_v56 = vld [vmem:[#allocation142_spill] sm:$0xff]  ;;  %12613 = vmatprep.subr.bf16.mxu1 %v14114_v3  ;;  %v19312_v3 = vsub.f32 %v18937_v9, %v19082_v37 }
 0x788   :  { %v6919_v0 = vmul.f32 %v22327_v56, %v6870_v54  ;;  %v14115_v54 = vld [vmem:[%s21086_s3 + $0x28] sm:$0xff]   ;;  %v6875_v56 = vmul.f32 %v19282_v21, %v19282_v21  ;;  %v6923_v20 = vmul.f32 %v18690_v61, %v6874_v35  ;;  %v14119_v61 = vld [vmem:[%s21086_s3 + $0x38] sm:$0xff]   ;;  %v19332_v35 = vsub.f32 %v18947_v51, %v19082_v37 }
 0x789   :  { %v6965_v25 = vadd.f32 %v6964_v33, %v6917_v14  ;;  %v6873_v14 = vmul.f32 %v19262_v19, %v19262_v19  ;;  %v6920_v33 = vmul.f32 %v22328_v24, %v6871_v47  ;;  %12614 = vmatpush3.bf16.msra.mxu1 %v14115_v54  ;;  %v14116_v47 = vld [vmem:[%s21086_s3 + $0x70] sm:$0xff]   ;;  %v6876_v24 = vmul.f32 %v19292_v34, %v19292_v34 }
 0x78a   :  { %12615 = vmatprep.subr.bf16.mxu1 %v14116_v47  ;;  %v6877_v54 = vmul.f32 %v19302_v22, %v19302_v22  ;;  %v6924_v9 = vmul.f32 %v18714_v57, %v6875_v56  ;;  %v19346_v51 = vsub.f32 %v18964_v45, %v19082_v37 }
 0x78b   :  { %v6966_v62 = vadd.f32 %v6965_v25, %v6918_v59  ;;  %v6921_v59 = vmul.f32 %v22329_v28, %v6872_v40  ;;  %v14117_v40 = vld [vmem:[%s21086_s3 + $0x30] sm:$0xff]  }
 0x78d   :  { %v6967_v36 = vadd.f32 %v6966_v62, %v6919_v0  ;;  %v6922_v0 = vmul.f32 %v22330_v53, %v6873_v14  ;;  %12616 = vmatpush3.bf16.msra.mxu1 %v14117_v40  ;;  %v14118_v14 = vld [vmem:[%s21086_s3 + $0x78] sm:$0xff]   ;;  %v22332_v53 = vld [vmem:[#allocation21_spill] sm:$0xff] }
 0x78e   :  { %12617 = vmatprep.subr.bf16.mxu1 %v14118_v14  ;;  %v19339_v57 = vsub.f32 %v22332_v53, %v19082_v37 }
 0x78f   :  { %v6968_v25 = vadd.f32 %v6967_v36, %v6920_v33  ;;  %v19322_v36 = vsub.f32 %v18940_v49, %v19082_v37  ;;  %v22331_v49 = vld [vmem:[#allocation147_spill] sm:$0xff] }
 0x791   :  { %v6969_v62 = vadd.f32 %v6968_v25, %v6921_v59  ;;  %v6878_v59 = vmul.f32 %v19312_v3, %v19312_v3  ;;  %v6925_v25 = vmul.f32 %v22331_v49, %v6876_v24  ;;  %12618 = vmatpush3.bf16.msra.mxu1 %v14119_v61  ;;  %v6879_v56 = vmul.f32 %v19322_v36, %v19322_v36  ;;  %v22334_v24 = vld [vmem:[#allocation10_spill] sm:$0xff]  ;;  %v22336_v49 = vld [vmem:[#allocation149_spill] sm:$0xff] }
 0x793   :  { %v6970_v33 = vadd.f32 %v6969_v62, %v6922_v0  ;;  %v22333_v0 = vld [vmem:[#allocation8_spill] sm:$0xff]  ;;  %v6928_v45 = vmul.f32 %v22336_v49, %v6879_v56  ;;  %v22339_v56 = vld [vmem:[#allocation14_spill] sm:$0xff] }
 0x794   :  { %v6926_v62 = vmul.f32 %v22333_v0, %v6877_v54  ;;  %v6881_v54 = vmul.f32 %v19339_v57, %v19339_v57  ;;  %v22338_v0 = vld [vmem:[#allocation11_spill] sm:$0xff] }
 0x795   :  { %v6971_v28 = vadd.f32 %v6970_v33, %v6923_v20  ;;  %v6880_v20 = vmul.f32 %v19332_v35, %v19332_v35  ;;  %v6927_v33 = vmul.f32 %v22334_v24, %v6878_v59  ;;  %v6882_v59 = vmul.f32 %v19346_v51, %v19346_v51 }
 0x796   :  { %v19370_v24 = vsub.f32 %v18982_v2, %v19082_v37  ;;  %v19384_v2 = vsub.f32 %v18996_v32, %v19082_v37 }
 0x797   :  { %v6972_v47 = vadd.f32 %v6971_v28, %v6924_v9  ;;  %v14120_v9 = vld [vmem:[%s21086_s3 + $0xc0] sm:$0xff]   ;;  %v22335_v28 = vld [vmem:[#allocation29_spill] sm:$0xff] }
 0x798   :  { %v19356_v61 = vsub.f32 %v22335_v28, %v19082_v37  ;;  %12625 = vmatprep.subr.bf16.mxu1 %v14120_v9  ;;  %v19377_v9 = vsub.f32 %v18993_v5, %v19082_v37  ;;  %v19391_v5 = vsub.f32 %v19004_v7, %v19082_v37 }
 0x799   :  { %v6973_v40 = vadd.f32 %v6972_v47, %v6925_v25  ;;  %v22337_v47 = vld [vmem:[#allocation23_spill] sm:$0xff] }
 0x79a   :  { %v19363_v53 = vsub.f32 %v22337_v47, %v19082_v37  ;;  %v6883_v28 = vmul.f32 %v19356_v61, %v19356_v61  ;;  %v22340_v47 = vld [vmem:[#allocation9_spill] sm:$0xff] }
 0x79b   :  { %v6974_v14 = vadd.f32 %v6973_v40, %v6926_v62  ;;  %v6929_v62 = vmul.f32 %v22338_v0, %v6880_v20  ;;  %v6931_v20 = vmul.f32 %v22340_v47, %v6882_v59  ;;  %v22341_v0 = vld [vmem:[#allocation12_spill] sm:$0xff]  ;;  %v6887_v47 = vmul.f32 %v19384_v2, %v19384_v2 }
 0x79c   :  { %v6884_v49 = vmul.f32 %v19363_v53, %v19363_v53 }
 0x79d   :  { %v6975_v25 = vadd.f32 %v6974_v14, %v6927_v33  ;;  %v6930_v33 = vmul.f32 %v22339_v56, %v6881_v54  ;;  %v6932_v54 = vmul.f32 %v22341_v0, %v6883_v28  ;;  %v22342_v56 = vld [vmem:[#allocation18_spill] sm:$0xff]  ;;  %v6888_v0 = vmul.f32 %v19391_v5, %v19391_v5 }
 0x79e   :  { %v6933_v59 = vmul.f32 %v22342_v56, %v6884_v49 }
 0x79f   :  { %v6976_v40 = vadd.f32 %v6975_v25, %v6928_v45  ;;  %v6885_v25 = vmul.f32 %v19370_v24, %v19370_v24 }
 0x7a1   :  { %v6977_v14 = vadd.f32 %v6976_v40, %v6929_v62  ;;  %v6886_v40 = vmul.f32 %v19377_v9, %v19377_v9  ;;  %v6934_v28 = vmul.f32 %v22344_v30, %v6885_v25  ;;  %v6936_v30 = vmul.f32 %v22349_v10, %v6887_v47  ;;  %v22353_v47 = vld [vmem:[#allocation25_spill] sm:$0xff] }
 0x7a3   :  { %v6978_v45 = vadd.f32 %v6977_v14, %v6930_v33  ;;  %v22343_v14 = vld [vmem:[#allocation33_spill] sm:$0xff]  ;;  %v6935_v49 = vmul.f32 %v22347_v63, %v6886_v40  ;;  %v6937_v63 = vmul.f32 %v22351_v43, %v6888_v0  ;;  %v6894_v43 = vmul.f32 %v19090_v41, %v19090_v41  ;;  %v22355_v0 = vld [vmem:[#allocation28_spill] sm:$0xff] }
 0x7a4   :  { %v19398_v32 = vsub.f32 %v22343_v14, %v19082_v37 }
 0x7a5   :  { %v6979_v62 = vadd.f32 %v6978_v45, %v6931_v20  ;;  %v22345_v45 = vld [vmem:[#allocation34_spill] sm:$0xff] }
 0x7a6   :  { %v19405_v7 = vsub.f32 %v22345_v45, %v19082_v37  ;;  %v6889_v14 = vmul.f32 %v19398_v32, %v19398_v32 }
 0x7a7   :  { %v6980_v33 = vadd.f32 %v6979_v62, %v6932_v54  ;;  %v22348_v62 = vld [vmem:[#allocation36_spill] sm:$0xff] }
 0x7a8   :  { %22346 = vst [vmem:[#allocation52_spill] sm:$0xff] %v19405_v7  ;;  %v19412_v56 = vsub.f32 %v22348_v62, %v19082_v37  ;;  %v6890_v45 = vmul.f32 %v19405_v7, %v19405_v7 }
 0x7a9   :  { %v6981_v20 = vadd.f32 %v6980_v33, %v6933_v59  ;;  %v22350_v59 = vld [vmem:[#allocation38_spill] sm:$0xff] }
 0x7aa   :  { %v19419_v33 = vsub.f32 %v22350_v59, %v19082_v37  ;;  %v6893_v37 = vmul.f32 %v19086_v31, %v19086_v31  ;;  %v22354_v59 = vld [vmem:[#allocation26_spill] sm:$0xff] }
 0x7ab   :  { %v6982_v54 = vadd.f32 %v6981_v20, %v6934_v28  ;;  %v6891_v28 = vmul.f32 %v19412_v56, %v19412_v56  ;;  %v22352_v20 = vld [vmem:[#allocation17_spill] sm:$0xff] }
 0x7ac   :  { %v6938_v62 = vmul.f32 %v22352_v20, %v6889_v14  ;;  %v6892_v10 = vmul.f32 %v19419_v33, %v19419_v33  ;;  %v6895_v14 = vmul.f32 %v19093_v42, %v19093_v42 }
 0x7ad   :  { %v6983_v25 = vadd.f32 %v6982_v54, %v6935_v49  ;;  %v6939_v49 = vmul.f32 %v22353_v47, %v6890_v45  ;;  %v6940_v39 = vmul.f32 %v22354_v59, %v6891_v28  ;;  %v22357_v45 = vld [vmem:[#allocation32_spill] sm:$0xff]  ;;  %v6897_v28 = vmul.f32 %v19099_v60, %v19099_v60 }
 0x7af   :  { %v6984_v40 = vadd.f32 %v6983_v25, %v6936_v30  ;;  %v6941_v30 = vmul.f32 %v22355_v0, %v6892_v10 }
 0x7b1   :  { %v6985_v29 = vadd.f32 %v6984_v40, %v6937_v63  ;;  %v22356_v63 = vld [vmem:[#allocation30_spill] sm:$0xff] }
 0x7b2   :  { %v6942_v40 = vmul.f32 %v22356_v63, %v6893_v37  ;;  %v6899_v37 = vmul.f32 %v19105_v17, %v19105_v17 }
 0x7b3   :  { %v6986_v54 = vadd.f32 %v6985_v29, %v6938_v62  ;;  %v6896_v29 = vmul.f32 %v19096_v1, %v19096_v1  ;;  %v6943_v62 = vmul.f32 %v22357_v45, %v6894_v43  ;;  %v6900_v43 = vmul.f32 %v19108_v18, %v19108_v18 }
 0x7b5   :  { %v6987_v7 = vadd.f32 %v6986_v54, %v6939_v49  ;;  %v22358_v49 = vld [vmem:[#allocation27_spill] sm:$0xff] }
 0x7b6   :  { %v6944_v54 = vmul.f32 %v22358_v49, %v6895_v14  ;;  %v6901_v14 = vmul.f32 %v19111_v48, %v19111_v48 }
 0x7b7   :  { %v6988_v25 = vadd.f32 %v6987_v7, %v6940_v39  ;;  %v6898_v39 = vmul.f32 %v19102_v58, %v19102_v58  ;;  %v22359_v7 = vld [vmem:[#allocation37_spill] sm:$0xff] }
 0x7b8   :  { %v6945_v10 = vmul.f32 %v22359_v7, %v6896_v29  ;;  %v22363_v29 = vld [vmem:[#allocation42_spill] sm:$0xff]  ;;  %v6950_v7 = vmul.f32 %v19078_v23, %v6901_v14 }
 0x7b9   :  { %v6989_v20 = vadd.f32 %v6988_v25, %v6941_v30  ;;  %v22360_v30 = vld [vmem:[#allocation31_spill] sm:$0xff] }
 0x7ba   :  { %v6946_v25 = vmul.f32 %v22360_v30, %v6897_v28 }
 0x7bb   :  { %v6990_v47 = vadd.f32 %v6989_v20, %v6942_v40  ;;  %v22361_v40 = vld [vmem:[#allocation40_spill] sm:$0xff] }
 0x7bc   :  { %v6947_v20 = vmul.f32 %v22361_v40, %v6898_v39  ;;  %v22364_v40 = vld [vmem:[#allocation129_spill] sm:$0xff] }
 0x7bd   :  { %v6991_v59 = vadd.f32 %v6990_v47, %v6943_v62  ;;  %v22362_v62 = vld [vmem:[#allocation41_spill] sm:$0xff]  ;;  %v7059_v60 = vsub.s32 1, %v22364_v40 }
 0x7be   :  { %v6948_v47 = vmul.f32 %v22362_v62, %v6899_v37  ;;  %v7112_v37 = vsub.s32 2, %v22364_v40 }
 0x7bf   :  { %v6992_v0 = vadd.f32 %v6991_v59, %v6944_v54  ;;  %v6949_v54 = vmul.f32 %v22363_v29, %v6900_v43  ;;  %v19464_v43 = vld [vmem:[%s21085_s5] sm:$0xff] }
 0x7c0   :  { %v19467_v23 = vrot.slane %v19464_v43, %v7059_v60 }
 0x7c1   :  { %v6993_v63 = vadd.f32 %v6992_v0, %v6945_v10 }
 0x7c3   :  { %v6994_v45 = vadd.f32 %v6993_v63, %v6946_v25 }
 0x7c5   :  { %v6995_v49 = vadd.f32 %v6994_v45, %v6947_v20  ;;  %v19472_v20 = vrot.slane %v19464_v43, %v7112_v37 }
 0x7c7   :  { %v6996_v59 = vadd.f32 %v6995_v49, %v6948_v47 }
 0x7c9   :  { %v6997_v17 = vadd.f32 %v6996_v59, %v6949_v54  ;;  %v22365_v54 = vld [vmem:[#allocation52_spill] sm:$0xff]  ;;  %v22366_v59 = vld [vmem:[#allocation35_spill] sm:$0xff] }
 0x7cb   :  { %v6998_v28 = vadd.f32 %v6997_v17, %v6950_v7 }
 0x7cd   :  { %v6999_v10 = vrot.slane %v6998_v28, 4 }
 0x7cf   :  { %v7000_v0 = vadd.f32 %v6999_v10, %v6998_v28  ;;  %v22367_v28 = vld [vmem:[#allocation44_spill] sm:$0xff]  ;;  %v22368_v10 = vld [vmem:[#allocation45_spill] sm:$0xff] }
 0x7d1   :  { %v7001_v30 = vrot.slane %v7000_v0, 2 }
 0x7d3   :  { %v7002_v18 = vadd.f32 %v7001_v30, %v7000_v0  ;;  %v22369_v0 = vld [vmem:[#allocation46_spill] sm:$0xff] }
 0x7d5   :  { %v7003_v58 = vrot.slane %v7002_v18, 1 }
 0x7d7   :  { %v7004_v39 = vadd.f32 %v7003_v58, %v7002_v18 }
 0x7d9   :  { %v7005_v25 = vmul.f32 0.010204081, %v7004_v39 }
 0x7db   :  { %v7006_v63 = vadd.f32 1e-05, %v7005_v25 }
 0x7dd   :  { %14504 = vrsqrt.f32 %v7006_v63 }
 0x7e7   :  { %v19469_v17 = vpop.eup %14504 }
 0x7e8   :  { %v7056_v58 = vmul.f32 %v19469_v17, %v19111_v48  ;;  %v7012_v14 = vmul.f32 %v19469_v17, %v19135_v6  ;;  %v7014_v60 = vmul.f32 %v19469_v17, %v19149_v4  ;;  %v7015_v62 = vmul.f32 %v19469_v17, %v19156_v12 }
 0x7e9   :  { %v7016_v47 = vmul.f32 %v19469_v17, %v19163_v13  ;;  %v7017_v48 = vmul.f32 %v19469_v17, %v19170_v55  ;;  %v7018_v49 = vmul.f32 %v19469_v17, %v19177_v27  ;;  %v7019_v29 = vmul.f32 %v19469_v17, %v19184_v15 }
 0x7ea   :  { %v7109_v18 = vmul.f32 %v19467_v23, %v7056_v58  ;;  %v7020_v6 = vmul.f32 %v19469_v17, %v19191_v50  ;;  %v7021_v4 = vmul.f32 %v19469_v17, %v19198_v38  ;;  %v7022_v12 = vmul.f32 %v19469_v17, %v19205_v11 }
 0x7eb   :  { %v7023_v13 = vmul.f32 %v19469_v17, %v19212_v8  ;;  %v7024_v55 = vmul.f32 %v19469_v17, %v19222_v16  ;;  %v7025_v27 = vmul.f32 %v19469_v17, %v19232_v44  ;;  %v7026_v15 = vmul.f32 %v19469_v17, %v19242_v52 }
 0x7ec   :  { %v19478_v45 = vadd.f32 %v19472_v20, %v7109_v18  ;;  %v7027_v50 = vmul.f32 %v19469_v17, %v19252_v46  ;;  %v7028_v38 = vmul.f32 %v19469_v17, %v19262_v19  ;;  %v7029_v11 = vmul.f32 %v19469_v17, %v19272_v26 }
 0x7ed   :  { %v7030_v8 = vmul.f32 %v19469_v17, %v19282_v21  ;;  %v7031_v16 = vmul.f32 %v19469_v17, %v19292_v34  ;;  %v7032_v44 = vmul.f32 %v19469_v17, %v19302_v22  ;;  %v7033_v52 = vmul.f32 %v19469_v17, %v19312_v3 }
 0x7ee   :  { %v7034_v46 = vmul.f32 %v19469_v17, %v19322_v36  ;;  %v7035_v19 = vmul.f32 %v19469_v17, %v19332_v35  ;;  %v7036_v26 = vmul.f32 %v19469_v17, %v19339_v57  ;;  %v7037_v21 = vmul.f32 %v19469_v17, %v19346_v51 }
 0x7ef   :  { %v7038_v34 = vmul.f32 %v19469_v17, %v19356_v61  ;;  %v7039_v22 = vmul.f32 %v19469_v17, %v19363_v53  ;;  %v7040_v3 = vmul.f32 %v19469_v17, %v19370_v24  ;;  %v7041_v36 = vmul.f32 %v19469_v17, %v19377_v9 }
 0x7f0   :  { %v7042_v35 = vmul.f32 %v19469_v17, %v19384_v2  ;;  %v7043_v57 = vmul.f32 %v19469_v17, %v19391_v5  ;;  %v7044_v51 = vmul.f32 %v19469_v17, %v19398_v32  ;;  %v7045_v61 = vmul.f32 %v19469_v17, %v22365_v54 }
 0x7f1   :  { %v7046_v53 = vmul.f32 %v19469_v17, %v19412_v56  ;;  %v7047_v24 = vmul.f32 %v19469_v17, %v19419_v33  ;;  %v7048_v9 = vmul.f32 %v19469_v17, %v19086_v31  ;;  %v7049_v2 = vmul.f32 %v19469_v17, %v19090_v41 }
 0x7f2   :  { %v7050_v5 = vmul.f32 %v19469_v17, %v19093_v42  ;;  %v7051_v32 = vmul.f32 %v19469_v17, %v19096_v1  ;;  %v7052_v7 = vmul.f32 %v19469_v17, %v22366_v59  ;;  %v7053_v56 = vmul.f32 %v19469_v17, %v22367_v28 }
 0x7f3   :  { %v7054_v33 = vmul.f32 %v19469_v17, %v22368_v10  ;;  %v7065_v31 = vmul.f32 %v19467_v23, %v7012_v14  ;;  %v7055_v41 = vmul.f32 %v19469_v17, %v22369_v0  ;;  %v7067_v30 = vmul.f32 %v19467_v23, %v7014_v60 }
 0x7f4   :  { %v7068_v42 = vmul.f32 %v19467_v23, %v7015_v62  ;;  %v7069_v1 = vmul.f32 %v19467_v23, %v7016_v47  ;;  %v7070_v39 = vmul.f32 %v19467_v23, %v7017_v48  ;;  %v7071_v25 = vmul.f32 %v19467_v23, %v7018_v49 }
 0x7f5   :  { %v7072_v63 = vmul.f32 %v19467_v23, %v7019_v29  ;;  %v7073_v37 = vmul.f32 %v19467_v23, %v7020_v6  ;;  %v7074_v58 = vmul.f32 %v19467_v23, %v7021_v4  ;;  %v7075_v18 = vmul.f32 %v19467_v23, %v7022_v12 }
 0x7f6   :  { %v7076_v14 = vmul.f32 %v19467_v23, %v7023_v13  ;;  %v7077_v60 = vmul.f32 %v19467_v23, %v7024_v55  ;;  %v7078_v62 = vmul.f32 %v19467_v23, %v7025_v27  ;;  %v7079_v47 = vmul.f32 %v19467_v23, %v7026_v15 }
 0x7f7   :  { %v7080_v48 = vmul.f32 %v19467_v23, %v7027_v50  ;;  %v7081_v49 = vmul.f32 %v19467_v23, %v7028_v38  ;;  %v7082_v29 = vmul.f32 %v19467_v23, %v7029_v11  ;;  %v7083_v6 = vmul.f32 %v19467_v23, %v7030_v8 }
 0x7f8   :  { %v7084_v4 = vmul.f32 %v19467_v23, %v7031_v16  ;;  %v7085_v12 = vmul.f32 %v19467_v23, %v7032_v44  ;;  %v7086_v13 = vmul.f32 %v19467_v23, %v7033_v52  ;;  %v7087_v55 = vmul.f32 %v19467_v23, %v7034_v46 }
 0x7f9   :  { %v7088_v27 = vmul.f32 %v19467_v23, %v7035_v19  ;;  %v7089_v15 = vmul.f32 %v19467_v23, %v7036_v26  ;;  %v7090_v50 = vmul.f32 %v19467_v23, %v7037_v21  ;;  %v7091_v38 = vmul.f32 %v19467_v23, %v7038_v34 }
 0x7fa   :  { %v7092_v11 = vmul.f32 %v19467_v23, %v7039_v22  ;;  %v7093_v8 = vmul.f32 %v19467_v23, %v7040_v3  ;;  %v7094_v16 = vmul.f32 %v19467_v23, %v7041_v36  ;;  %v7095_v44 = vmul.f32 %v19467_v23, %v7042_v35 }
 0x7fb   :  { %v7096_v52 = vmul.f32 %v19467_v23, %v7043_v57  ;;  %v7097_v46 = vmul.f32 %v19467_v23, %v7044_v51  ;;  %v7098_v19 = vmul.f32 %v19467_v23, %v7045_v61  ;;  %v7099_v26 = vmul.f32 %v19467_v23, %v7046_v53  ;;  %v22370_v61 = vld [vmem:[#allocation39_spill] sm:$0xff] }
 0x7fc   :  { %v7100_v21 = vmul.f32 %v19467_v23, %v7047_v24  ;;  %v7101_v34 = vmul.f32 %v19467_v23, %v7048_v9  ;;  %v7102_v22 = vmul.f32 %v19467_v23, %v7049_v2  ;;  %v7103_v3 = vmul.f32 %v19467_v23, %v7050_v5  ;;  %v22371_v24 = vld [vmem:[#allocation48_spill] sm:$0xff]  ;;  %v22372_v5 = vld [vmem:[#allocation50_spill] sm:$0xff] }
 0x7fd   :  { %v7104_v36 = vmul.f32 %v19467_v23, %v7051_v32  ;;  %v7105_v35 = vmul.f32 %v19467_v23, %v7052_v7  ;;  %v7106_v57 = vmul.f32 %v19467_v23, %v7053_v56  ;;  %v7107_v51 = vmul.f32 %v19467_v23, %v7054_v33 }
 0x7fe   :  { %v7108_v54 = vmul.f32 %v19467_v23, %v7055_v41  ;;  %v7008_v53 = vmul.f32 %v19469_v17, %v22370_v61  ;;  %v7009_v9 = vmul.f32 %v19469_v17, %v22371_v24  ;;  %v19614_v2 = vadd.f32 %v19472_v20, %v7065_v31 }
 0x7ff   :  { %v7011_v32 = vmul.f32 %v19469_v17, %v22372_v5  ;;  %v19619_v59 = vadd.f32 %v19472_v20, %v7067_v30  ;;  %v19622_v7 = vadd.f32 %v19472_v20, %v7068_v42  ;;  %v19625_v28 = vadd.f32 %v19472_v20, %v7069_v1 }
 0x800   :  { %v19628_v56 = vadd.f32 %v19472_v20, %v7070_v39  ;;  %v19631_v10 = vadd.f32 %v19472_v20, %v7071_v25  ;;  %v19634_v33 = vadd.f32 %v19472_v20, %v7072_v63  ;;  %v19637_v31 = vadd.f32 %v19472_v20, %v7073_v37 }
 0x801   :  { %v19640_v0 = vadd.f32 %v19472_v20, %v7074_v58  ;;  %v19643_v41 = vadd.f32 %v19472_v20, %v7075_v18  ;;  %v19646_v30 = vadd.f32 %v19472_v20, %v7076_v14  ;;  %v19649_v42 = vadd.f32 %v19472_v20, %v7077_v60 }
 0x802   :  { %v19652_v1 = vadd.f32 %v19472_v20, %v7078_v62  ;;  %v19655_v39 = vadd.f32 %v19472_v20, %v7079_v47  ;;  %v19658_v25 = vadd.f32 %v19472_v20, %v7080_v48  ;;  %v19661_v63 = vadd.f32 %v19472_v20, %v7081_v49 }
 0x803   :  { %v19664_v37 = vadd.f32 %v19472_v20, %v7082_v29  ;;  %v19667_v58 = vadd.f32 %v19472_v20, %v7083_v6  ;;  %v19670_v18 = vadd.f32 %v19472_v20, %v7084_v4  ;;  %v19673_v14 = vadd.f32 %v19472_v20, %v7085_v12 }
 0x804   :  { %v19676_v60 = vadd.f32 %v19472_v20, %v7086_v13  ;;  %v19679_v62 = vadd.f32 %v19472_v20, %v7087_v55  ;;  %v19682_v47 = vadd.f32 %v19472_v20, %v7088_v27  ;;  %v19685_v48 = vadd.f32 %v19472_v20, %v7089_v15 }
 0x805   :  { %v19688_v49 = vadd.f32 %v19472_v20, %v7090_v50  ;;  %v19691_v29 = vadd.f32 %v19472_v20, %v7091_v38  ;;  %v19694_v6 = vadd.f32 %v19472_v20, %v7092_v11  ;;  %v19697_v4 = vadd.f32 %v19472_v20, %v7093_v8 }
 0x806   :  { %v19700_v12 = vadd.f32 %v19472_v20, %v7094_v16  ;;  %v19703_v13 = vadd.f32 %v19472_v20, %v7095_v44  ;;  %v19706_v55 = vadd.f32 %v19472_v20, %v7096_v52  ;;  %v19709_v27 = vadd.f32 %v19472_v20, %v7097_v46 }
 0x807   :  { %v19712_v15 = vadd.f32 %v19472_v20, %v7098_v19  ;;  %v19715_v50 = vadd.f32 %v19472_v20, %v7099_v26  ;;  %v19718_v38 = vadd.f32 %v19472_v20, %v7100_v21  ;;  %v19721_v11 = vadd.f32 %v19472_v20, %v7101_v34 }
 0x808   :  { %v19724_v8 = vadd.f32 %v19472_v20, %v7102_v22  ;;  %v19727_v16 = vadd.f32 %v19472_v20, %v7103_v3  ;;  %v19730_v44 = vadd.f32 %v19472_v20, %v7104_v36  ;;  %v19733_v52 = vadd.f32 %v19472_v20, %v7105_v35 }
 0x809   :  { %v7061_v46 = vmul.f32 %v19467_v23, %v7008_v53  ;;  %v19737_v19 = vadd.f32 %v19472_v20, %v7106_v57  ;;  %v19740_v26 = vadd.f32 %v19472_v20, %v7107_v51  ;;  %v19743_v21 = vadd.f32 %v19472_v20, %v7108_v54 }
 0x80a   :  { %v7062_v34 = vmul.f32 %v19467_v23, %v7009_v9  ;;  %v7064_v22 = vmul.f32 %v19467_v23, %v7011_v32  ;;  %v14121_v9 = vld [vmem:[%s21086_s3 + $0x80] sm:$0xff]   ;;  %vm7167_vm2 = vcmp.ge.f32.partialorder %v19614_v2, 0.0  ;;  %vm7170_vm3 = vcmp.ge.f32.partialorder %v19622_v7, 0.0 }
 0x80b   :  { %v7114_v3 = vadd.f32 %v19472_v20, %v7061_v46  ;;  %v14122_v46 = vld [vmem:[%s21086_s3 + $0xc8] sm:$0xff]   ;;  %vm7169_vm4 = vcmp.ge.f32.partialorder %v19619_v59, 0.0  ;;  %vm7172_vm5 = vcmp.ge.f32.partialorder %v19628_v56, 0.0  ;;  %vm7171_vm0 = vcmp.ge.f32.partialorder %v19625_v28, 0.0 }
 0x80c   :  { %v7115_v36 = vadd.f32 %v19472_v20, %v7062_v34  ;;  %v7117_v35 = vadd.f32 %v19472_v20, %v7064_v22  ;;  %v14123_v22 = vld [vmem:[%s21086_s3 + $0x88] sm:$0xff]   ;;  %vm7174_vm6 = vcmp.ge.f32.partialorder %v19634_v33, 0.0  ;;  %vm7173_vm7 = vcmp.ge.f32.partialorder %v19631_v10, 0.0 }
 0x80d   :  { %v7212_v61 = vmul.f32 0.1, %v7114_v3  ;;  %vm7163_vm12 = vcmp.ge.f32.partialorder %v7114_v3, 0.0  ;;  %vm7176_vm8 = vcmp.ge.f32.partialorder %v19640_v0, 0.0  ;;  %vm7175_vm9 = vcmp.ge.f32.partialorder %v19637_v31, 0.0 }
 0x80e   :  { %vm7164_vm13 = vcmp.ge.f32.partialorder %v7115_v36, 0.0  ;;  %v7213_v57 = vmul.f32 0.1, %v7115_v36  ;;  %vm7166_vm14 = vcmp.ge.f32.partialorder %v7117_v35, 0.0  ;;  %v7215_v51 = vmul.f32 0.1, %v7117_v35 }
 0x80f   :  { %v7261_v53 = vsel %vm7163_vm12, %v7114_v3, %v7212_v61  ;;  %v14124_v3 = vld [vmem:[%s21086_s3 + $0xd0] sm:$0xff]   ;;  %v14127_v61 = vld [vmem:[%s21086_s3 + $0x98] sm:$0xff]   ;;  %vm7178_vm10 = vcmp.ge.f32.partialorder %v19646_v30, 0.0  ;;  %vm7177_vm11 = vcmp.ge.f32.partialorder %v19643_v41, 0.0  ;;  %vm7180_vm12 = vcmp.ge.f32.partialorder %v19652_v1, 0.0 }
 0x810   :  { %v7262_v24 = vsel %vm7164_vm13, %v7115_v36, %v7213_v57  ;;  %v7408_v54 = vpack.c.bf16 %v7261_v53, %v7261_v53  ;;  %v7264_v32 = vsel %vm7166_vm14, %v7117_v35, %v7215_v51  ;;  %v14125_v36 = vld [vmem:[%s21086_s3 + $0x90] sm:$0xff]   ;;  %v14126_v35 = vld [vmem:[%s21086_s3 + $0xd8] sm:$0xff]   ;;  %v14128_v57 = vld [vmem:[%s21086_s3 + $0xe0] sm:$0xff]   ;;  %vm7179_vm13 = vcmp.ge.f32.partialorder %v19649_v42, 0.0 }
 0x811   :  { %v7409_v5 = vpack.c.bf16 %v7262_v24, %v7262_v24  ;;  %v7411_v34 = vpack.c.bf16 %v7264_v32, %v7264_v32  ;;  %v22373_v53 = vld [vmem:[#allocation49_spill] sm:$0xff]  ;;  %v22374_v24 = vld [vmem:[#allocation43_spill] sm:$0xff]  ;;  %vm7182_vm14 = vcmp.ge.f32.partialorder %v19658_v25, 0.0 }
 0x812   :  { %v7010_v51 = vmul.f32 %v19469_v17, %v22373_v53 }
 0x813   :  { %10629 = vmatprep.mubr.bf16.mxu1 %v7409_v5  ;;  %v14129_v5 = vld [vmem:[%s21086_s3 + $0xa0] sm:$0xff]  }
 0x814   :  { %10630 = vmatmul.mubr.bf16.vlgmr.msra.gmra.mrb[200].mxu1 %v7408_v54  ;;  %v7013_v54 = vmul.f32 %v19469_v17, %v22374_v24  ;;  %v7063_v32 = vmul.f32 %v19467_v23, %v7010_v51  ;;  %v14132_v17 = vld [vmem:[%s21086_s3 + $0xf0] sm:$0xff]   ;;  %v14137_v24 = vld [vmem:[%s21086_s3 + $0x100] sm:$0xff]  }
 0x815   :  { %12626 = vmatpush3.bf16.msra.mxu1 %v14121_v9  ;;  %10669 = vmatprep.mubr.bf16.mxu1 %v7411_v34  ;;  %v14130_v9 = vld [vmem:[%s21086_s3 + $0xe8] sm:$0xff]  }
 0x816   :  { %12627 = vmatprep.subr.bf16.mxu1 %v14122_v46  ;;  %v7066_v46 = vmul.f32 %v19467_v23, %v7013_v54  ;;  %v14131_v34 = vld [vmem:[%s21086_s3 + $0xa8] sm:$0xff]   ;;  %v14134_v23 = vld [vmem:[%s21086_s3 + $0xf8] sm:$0xff]  }
 0x819   :  { %12628 = vmatpush3.bf16.msra.mxu1 %v14123_v22  ;;  %v7116_v22 = vadd.f32 %v19472_v20, %v7063_v32  ;;  %v14139_v32 = vld [vmem:[%s21086_s3 + $0x108] sm:$0xff]  }
 0x81a   :  { %12629 = vmatprep.subr.bf16.mxu1 %v14124_v3  ;;  %v7119_v3 = vadd.f32 %v19472_v20, %v7066_v46  ;;  %v14136_v20 = vld [vmem:[%s21086_s3 + $0x140] sm:$0xff]   ;;  %v14140_v46 = vld [vmem:[%s21086_s3 + $0x150] sm:$0xff]  }
 0x81b   :  { %vm7165_vm15 = vcmp.ge.f32.partialorder %v7116_v22, 0.0 }
 0x81c   :  { %vm7168_vm1 = vcmp.ge.f32.partialorder %v7119_v3, 0.0 }
 0x81d   :  { %12630 = vmatpush3.bf16.msra.mxu1 %v14125_v36  ;;  %v14133_v36 = vld [vmem:[%s21086_s3 + $0xb0] sm:$0xff]  }
 0x81e   :  { %12631 = vmatprep.subr.bf16.mxu1 %v14126_v35  ;;  %v7214_v35 = vmul.f32 0.1, %v7116_v22 }
 0x820   :  { %v7263_v53 = vsel %vm7165_vm15, %v7116_v22, %v7214_v35  ;;  %v14143_v22 = vld [vmem:[%s21086_s3 + $0x118] sm:$0xff]   ;;  %v14147_v35 = vld [vmem:[%s21086_s3 + $0x128] sm:$0xff]   ;;  %vm7181_vm15 = vcmp.ge.f32.partialorder %v19655_v39, 0.0 }
 0x821   :  { %12632 = vmatpush3.bf16.msra.mxu1 %v14127_v61  ;;  %v7217_v61 = vmul.f32 0.1, %v7119_v3  ;;  %v7410_v54 = vpack.c.bf16 %v7263_v53, %v7263_v53  ;;  %v7216_v53 = vmul.f32 0.1, %v19614_v2 }
 0x822   :  { %12633 = vmatprep.subr.bf16.mxu1 %v14128_v57  ;;  %v14135_v57 = vld [vmem:[%s21086_s3 + $0xb8] sm:$0xff]  }
 0x823   :  { %v7266_v51 = vsel %vm7168_vm1, %v7119_v3, %v7217_v61  ;;  %v14144_v3 = vld [vmem:[%s21086_s3 + $0x160] sm:$0xff]   ;;  %v14148_v61 = vld [vmem:[%s21086_s3 + $0x170] sm:$0xff]   ;;  %vm7184_vm1 = vcmp.ge.f32.partialorder %v19664_v37, 0.0 }
 0x825   :  { %12634 = vmatpush3.bf16.msra.mxu1 %v14129_v5  ;;  %v14138_v5 = vld [vmem:[%s21086_s3 + $0x148] sm:$0xff]  }
 0x826   :  { %12635 = vmatprep.subr.bf16.mxu1 %v14130_v9  ;;  %v7413_v9 = vpack.c.bf16 %v7266_v51, %v7266_v51  ;;  %v7219_v51 = vmul.f32 0.1, %v19622_v7 }
 0x829   :  { %12636 = vmatpush3.bf16.msra.mxu1 %v14131_v34  ;;  %v14141_v34 = vld [vmem:[%s21086_s3 + $0x110] sm:$0xff]  }
 0x82a   :  { %12637 = vmatprep.subr.bf16.mxu1 %v14132_v17  ;;  %v14142_v17 = vld [vmem:[%s21086_s3 + $0x158] sm:$0xff]  }
 0x82d   :  { %12638 = vmatpush3.bf16.msra.mxu1 %v14133_v36  ;;  %v14145_v36 = vld [vmem:[%s21086_s3 + $0x120] sm:$0xff]  }
 0x82e   :  { %12639 = vmatprep.subr.bf16.mxu1 %v14134_v23  ;;  %v14146_v23 = vld [vmem:[%s21086_s3 + $0x168] sm:$0xff]  }
 0x831   :  { %12640 = vmatpush3.bf16.msra.mxu1 %v14135_v57  ;;  %v14149_v57 = vld [vmem:[%s21086_s3 + $0x130] sm:$0xff]  }
 0x832   :  { %12647 = vmatprep.subr.bf16.mxu1 %v14136_v20  ;;  %v14150_v20 = vld [vmem:[%s21086_s3 + $0x178] sm:$0xff]  }
 0x834   :  { %10670 = vmatmul.mubr.bf16.vlgmr.msra.gmra.mrb[204].mxu1 %v7410_v54  ;;  %v14152_v54 = vld [vmem:[%s21086_s3 + $0x1c0] sm:$0xff]  }
 0x835   :  { %12648 = vmatpush3.bf16.msra.mxu1 %v14137_v24  ;;  %10709 = vmatprep.mubr.bf16.mxu1 %v7413_v9  ;;  %v14151_v24 = vld [vmem:[%s21086_s3 + $0x138] sm:$0xff]   ;;  %v7268_v9 = vsel %vm7170_vm3, %v19622_v7, %v7219_v51  ;;  %v14156_v7 = vld [vmem:[%s21086_s3 + $0x1d0] sm:$0xff]   ;;  %vm7186_vm3 = vcmp.ge.f32.partialorder %v19670_v18, 0.0 }
 0x836   :  { %12649 = vmatprep.subr.bf16.mxu1 %v14138_v5  ;;  %v7265_v5 = vsel %vm7167_vm2, %v19614_v2, %v7216_v53  ;;  %v14155_v2 = vld [vmem:[%s21086_s3 + $0x188] sm:$0xff]   ;;  %v14165_v53 = vld [vmem:[%s21086_s3 + $0x1b0] sm:$0xff]   ;;  %v14166_v51 = vld [vmem:[%s21086_s3 + $0x1f8] sm:$0xff]   ;;  %vm7183_vm2 = vcmp.ge.f32.partialorder %v19661_v63, 0.0 }
 0x839   :  { %12650 = vmatpush3.bf16.msra.mxu1 %v14139_v32  ;;  %v14153_v32 = vld [vmem:[%s21086_s3 + $0x180] sm:$0xff]  }
 0x83a   :  { %12651 = vmatprep.subr.bf16.mxu1 %v14140_v46  ;;  %v7412_v46 = vpack.c.bf16 %v7265_v5, %v7265_v5  ;;  %v14167_v5 = vld [vmem:[%s21086_s3 + $0x1b8] sm:$0xff]  }
 0x83d   :  { %12652 = vmatpush3.bf16.msra.mxu1 %v14141_v34  ;;  %v14154_v34 = vld [vmem:[%s21086_s3 + $0x1c8] sm:$0xff]  }
 0x83e   :  { %12653 = vmatprep.subr.bf16.mxu1 %v14142_v17  ;;  %v7415_v17 = vpack.c.bf16 %v7268_v9, %v7268_v9  ;;  %v14168_v9 = vld [vmem:[%s21086_s3 + $0x240] sm:$0xff]  }
 0x841   :  { %12654 = vmatpush3.bf16.msra.mxu1 %v14143_v22  ;;  %v14157_v22 = vld [vmem:[%s21086_s3 + $0x190] sm:$0xff]  }
 0x842   :  { %12655 = vmatprep.subr.bf16.mxu1 %v14144_v3  ;;  %v14158_v3 = vld [vmem:[%s21086_s3 + $0x1d8] sm:$0xff]  }
 0x845   :  { %12656 = vmatpush3.bf16.msra.mxu1 %v14145_v36  ;;  %v14159_v36 = vld [vmem:[%s21086_s3 + $0x198] sm:$0xff]  }
 0x846   :  { %12657 = vmatprep.subr.bf16.mxu1 %v14146_v23  ;;  %v14160_v23 = vld [vmem:[%s21086_s3 + $0x1e0] sm:$0xff]  }
 0x849   :  { %12658 = vmatpush3.bf16.msra.mxu1 %v14147_v35  ;;  %v14161_v35 = vld [vmem:[%s21086_s3 + $0x1a0] sm:$0xff]  }
 0x84a   :  { %12659 = vmatprep.subr.bf16.mxu1 %v14148_v61  ;;  %v14162_v61 = vld [vmem:[%s21086_s3 + $0x1e8] sm:$0xff]  }
 0x84d   :  { %12660 = vmatpush3.bf16.msra.mxu1 %v14149_v57  ;;  %v14163_v57 = vld [vmem:[%s21086_s3 + $0x1a8] sm:$0xff]  }
 0x84e   :  { %12661 = vmatprep.subr.bf16.mxu1 %v14150_v20  ;;  %v14164_v20 = vld [vmem:[%s21086_s3 + $0x1f0] sm:$0xff]  }
 0x851   :  { %12662 = vmatpush3.bf16.msra.mxu1 %v14151_v24  ;;  %v7218_v24 = vmul.f32 0.1, %v19619_v59 }
 0x852   :  { %12669 = vmatprep.subr.bf16.mxu1 %v14152_v54  ;;  %v7221_v54 = vmul.f32 0.1, %v19628_v56 }
 0x854   :  { %10710 = vmatmul.mubr.bf16.vlgmr.msra.gmra.mrb[208].mxu1 %v7412_v46  ;;  %v7270_v46 = vsel %vm7172_vm5, %v19628_v56, %v7221_v54  ;;  %v14172_v56 = vld [vmem:[%s21086_s3 + $0x250] sm:$0xff]   ;;  %v7223_v54 = vmul.f32 0.1, %v19634_v33  ;;  %vm7188_vm5 = vcmp.ge.f32.partialorder %v19676_v60, 0.0 }
 0x855   :  { %12670 = vmatpush3.bf16.msra.mxu1 %v14153_v32  ;;  %10749 = vmatprep.mubr.bf16.mxu1 %v7415_v17  ;;  %v7267_v32 = vsel %vm7169_vm4, %v19619_v59, %v7218_v24  ;;  %v14171_v59 = vld [vmem:[%s21086_s3 + $0x208] sm:$0xff]   ;;  %v7220_v24 = vmul.f32 0.1, %v19625_v28  ;;  %vm7185_vm4 = vcmp.ge.f32.partialorder %v19667_v58, 0.0 }
 0x856   :  { %12671 = vmatprep.subr.bf16.mxu1 %v14154_v34  ;;  %v14169_v34 = vld [vmem:[%s21086_s3 + $0x200] sm:$0xff]   ;;  %v7414_v17 = vpack.c.bf16 %v7267_v32, %v7267_v32 }
 0x857   :  { %v7269_v32 = vsel %vm7171_vm0, %v19625_v28, %v7220_v24  ;;  %v14187_v28 = vld [vmem:[%s21086_s3 + $0x288] sm:$0xff]   ;;  %v14199_v24 = vld [vmem:[%s21086_s3 + $0x2b8] sm:$0xff]   ;;  %vm7187_vm0 = vcmp.ge.f32.partialorder %v19673_v14, 0.0 }
 0x859   :  { %12672 = vmatpush3.bf16.msra.mxu1 %v14155_v2  ;;  %v14170_v2 = vld [vmem:[%s21086_s3 + $0x248] sm:$0xff]  }
 0x85a   :  { %12673 = vmatprep.subr.bf16.mxu1 %v14156_v7  ;;  %v7417_v7 = vpack.c.bf16 %v7270_v46, %v7270_v46  ;;  %v7272_v46 = vsel %vm7174_vm6, %v19634_v33, %v7223_v54  ;;  %v14188_v33 = vld [vmem:[%s21086_s3 + $0x2d0] sm:$0xff]   ;;  %v14200_v54 = vld [vmem:[%s21086_s3 + $0x340] sm:$0xff]   ;;  %vm7190_vm6 = vcmp.ge.f32.partialorder %v19682_v47, 0.0 }
 0x85d   :  { %12674 = vmatpush3.bf16.msra.mxu1 %v14157_v22  ;;  %v14173_v22 = vld [vmem:[%s21086_s3 + $0x210] sm:$0xff]  }
 0x85e   :  { %12675 = vmatprep.subr.bf16.mxu1 %v14158_v3  ;;  %v14174_v3 = vld [vmem:[%s21086_s3 + $0x258] sm:$0xff]  }
 0x861   :  { %12676 = vmatpush3.bf16.msra.mxu1 %v14159_v36  ;;  %v14175_v36 = vld [vmem:[%s21086_s3 + $0x218] sm:$0xff]  }
 0x862   :  { %12677 = vmatprep.subr.bf16.mxu1 %v14160_v23  ;;  %v14176_v23 = vld [vmem:[%s21086_s3 + $0x260] sm:$0xff]  }
 0x865   :  { %12678 = vmatpush3.bf16.msra.mxu1 %v14161_v35  ;;  %v14177_v35 = vld [vmem:[%s21086_s3 + $0x220] sm:$0xff]  }
 0x866   :  { %12679 = vmatprep.subr.bf16.mxu1 %v14162_v61  ;;  %v14178_v61 = vld [vmem:[%s21086_s3 + $0x268] sm:$0xff]  }
 0x869   :  { %12680 = vmatpush3.bf16.msra.mxu1 %v14163_v57  ;;  %v14179_v57 = vld [vmem:[%s21086_s3 + $0x228] sm:$0xff]  }
 0x86a   :  { %12681 = vmatprep.subr.bf16.mxu1 %v14164_v20  ;;  %v14180_v20 = vld [vmem:[%s21086_s3 + $0x270] sm:$0xff]  }
 0x86d   :  { %12682 = vmatpush3.bf16.msra.mxu1 %v14165_v53  ;;  %v14181_v53 = vld [vmem:[%s21086_s3 + $0x230] sm:$0xff]  }
 0x86e   :  { %12683 = vmatprep.subr.bf16.mxu1 %v14166_v51  ;;  %v14182_v51 = vld [vmem:[%s21086_s3 + $0x278] sm:$0xff]  }
 0x871   :  { %12684 = vmatpush3.bf16.msra.mxu1 %v14167_v5  ;;  %v14183_v5 = vld [vmem:[%s21086_s3 + $0x238] sm:$0xff]  }
 0x872   :  { %12691 = vmatprep.subr.bf16.mxu1 %v14168_v9  ;;  %v14184_v9 = vld [vmem:[%s21086_s3 + $0x2c0] sm:$0xff]  }
 0x874   :  { %10750 = vmatmul.mubr.bf16.vlgmr.msra.gmra.mrb[212].mxu1 %v7414_v17  ;;  %v7416_v17 = vpack.c.bf16 %v7269_v32, %v7269_v32  ;;  %v14201_v32 = vld [vmem:[%s21086_s3 + $0x300] sm:$0xff]  }
 0x875   :  { %12692 = vmatpush3.bf16.msra.mxu1 %v14169_v34  ;;  %10789 = vmatprep.mubr.bf16.mxu1 %v7417_v7  ;;  %v14185_v34 = vld [vmem:[%s21086_s3 + $0x280] sm:$0xff]   ;;  %v7419_v7 = vpack.c.bf16 %v7272_v46, %v7272_v46 }
 0x876   :  { %12693 = vmatprep.subr.bf16.mxu1 %v14170_v2  ;;  %v14186_v2 = vld [vmem:[%s21086_s3 + $0x2c8] sm:$0xff]  }
 0x879   :  { %12694 = vmatpush3.bf16.msra.mxu1 %v14171_v59  ;;  %v14189_v59 = vld [vmem:[%s21086_s3 + $0x290] sm:$0xff]  }
 0x87a   :  { %12695 = vmatprep.subr.bf16.mxu1 %v14172_v56  ;;  %v14190_v56 = vld [vmem:[%s21086_s3 + $0x2d8] sm:$0xff]  }
 0x87d   :  { %12696 = vmatpush3.bf16.msra.mxu1 %v14173_v22  ;;  %v14191_v22 = vld [vmem:[%s21086_s3 + $0x298] sm:$0xff]  }
 0x87e   :  { %12697 = vmatprep.subr.bf16.mxu1 %v14174_v3  ;;  %v14192_v3 = vld [vmem:[%s21086_s3 + $0x2e0] sm:$0xff]  }
 0x881   :  { %12698 = vmatpush3.bf16.msra.mxu1 %v14175_v36  ;;  %v14193_v36 = vld [vmem:[%s21086_s3 + $0x2a0] sm:$0xff]  }
 0x882   :  { %12699 = vmatprep.subr.bf16.mxu1 %v14176_v23  ;;  %v14194_v23 = vld [vmem:[%s21086_s3 + $0x2e8] sm:$0xff]  }
 0x885   :  { %12700 = vmatpush3.bf16.msra.mxu1 %v14177_v35  ;;  %v14195_v35 = vld [vmem:[%s21086_s3 + $0x2a8] sm:$0xff]  }
 0x886   :  { %12701 = vmatprep.subr.bf16.mxu1 %v14178_v61  ;;  %v14196_v61 = vld [vmem:[%s21086_s3 + $0x2f0] sm:$0xff]  }
 0x889   :  { %12702 = vmatpush3.bf16.msra.mxu1 %v14179_v57  ;;  %v14197_v57 = vld [vmem:[%s21086_s3 + $0x2b0] sm:$0xff]  }
 0x88a   :  { %12703 = vmatprep.subr.bf16.mxu1 %v14180_v20  ;;  %v14198_v20 = vld [vmem:[%s21086_s3 + $0x2f8] sm:$0xff]  }
 0x88d   :  { %12704 = vmatpush3.bf16.msra.mxu1 %v14181_v53  ;;  %v7222_v53 = vmul.f32 0.1, %v19631_v10 }
 0x88e   :  { %12705 = vmatprep.subr.bf16.mxu1 %v14182_v51  ;;  %v7225_v51 = vmul.f32 0.1, %v19640_v0 }
 0x891   :  { %12706 = vmatpush3.bf16.msra.mxu1 %v14183_v5  ;;  %v7271_v5 = vsel %vm7173_vm7, %v19631_v10, %v7222_v53  ;;  %v14203_v10 = vld [vmem:[%s21086_s3 + $0x308] sm:$0xff]   ;;  %vm7189_vm7 = vcmp.ge.f32.partialorder %v19679_v62, 0.0 }
 0x892   :  { %12713 = vmatprep.subr.bf16.mxu1 %v14184_v9  ;;  %v7274_v9 = vsel %vm7176_vm8, %v19640_v0, %v7225_v51  ;;  %v7418_v46 = vpack.c.bf16 %v7271_v5, %v7271_v5  ;;  %v14204_v0 = vld [vmem:[%s21086_s3 + $0x350] sm:$0xff]   ;;  %v14218_v5 = vld [vmem:[%s21086_s3 + $0x3c8] sm:$0xff]   ;;  %vm7192_vm8 = vcmp.ge.f32.partialorder %v19688_v49, 0.0 }
 0x894   :  { %10790 = vmatmul.mubr.bf16.vlgmr.msra.gmra.mrb[216].mxu1 %v7416_v17  ;;  %v7421_v17 = vpack.c.bf16 %v7274_v9, %v7274_v9 }
 0x895   :  { %12714 = vmatpush3.bf16.msra.mxu1 %v14185_v34  ;;  %10829 = vmatprep.mubr.bf16.mxu1 %v7419_v7  ;;  %v14202_v34 = vld [vmem:[%s21086_s3 + $0x348] sm:$0xff]   ;;  %v14206_v7 = vld [vmem:[%s21086_s3 + $0x358] sm:$0xff]  }
 0x896   :  { %12715 = vmatprep.subr.bf16.mxu1 %v14186_v2  ;;  %v14205_v2 = vld [vmem:[%s21086_s3 + $0x310] sm:$0xff]  }
 0x899   :  { %12716 = vmatpush3.bf16.msra.mxu1 %v14187_v28  ;;  %v14207_v28 = vld [vmem:[%s21086_s3 + $0x318] sm:$0xff]  }
 0x89a   :  { %12717 = vmatprep.subr.bf16.mxu1 %v14188_v33  ;;  %v14208_v33 = vld [vmem:[%s21086_s3 + $0x360] sm:$0xff]  }
 0x89d   :  { %12718 = vmatpush3.bf16.msra.mxu1 %v14189_v59  ;;  %v14209_v59 = vld [vmem:[%s21086_s3 + $0x320] sm:$0xff]  }
 0x89e   :  { %12719 = vmatprep.subr.bf16.mxu1 %v14190_v56  ;;  %v14210_v56 = vld [vmem:[%s21086_s3 + $0x368] sm:$0xff]  }
 0x8a1   :  { %12720 = vmatpush3.bf16.msra.mxu1 %v14191_v22  ;;  %v14211_v22 = vld [vmem:[%s21086_s3 + $0x328] sm:$0xff]  }
 0x8a2   :  { %12721 = vmatprep.subr.bf16.mxu1 %v14192_v3  ;;  %v14212_v3 = vld [vmem:[%s21086_s3 + $0x370] sm:$0xff]  }
 0x8a5   :  { %12722 = vmatpush3.bf16.msra.mxu1 %v14193_v36  ;;  %v14213_v36 = vld [vmem:[%s21086_s3 + $0x330] sm:$0xff]  }
 0x8a6   :  { %12723 = vmatprep.subr.bf16.mxu1 %v14194_v23  ;;  %v14214_v23 = vld [vmem:[%s21086_s3 + $0x378] sm:$0xff]  }
 0x8a9   :  { %12724 = vmatpush3.bf16.msra.mxu1 %v14195_v35  ;;  %v7224_v35 = vmul.f32 0.1, %v19637_v31 }
 0x8aa   :  { %12725 = vmatprep.subr.bf16.mxu1 %v14196_v61  ;;  %v7227_v61 = vmul.f32 0.1, %v19646_v30 }
 0x8ab   :  { %v7273_v53 = vsel %vm7175_vm9, %v19637_v31, %v7224_v35  ;;  %v14219_v31 = vld [vmem:[%s21086_s3 + $0x388] sm:$0xff]   ;;  %v7229_v35 = vmul.f32 0.1, %v19652_v1  ;;  %vm7191_vm9 = vcmp.ge.f32.partialorder %v19685_v48, 0.0 }
 0x8ac   :  { %v7276_v51 = vsel %vm7178_vm10, %v19646_v30, %v7227_v61  ;;  %v14220_v30 = vld [vmem:[%s21086_s3 + $0x3d0] sm:$0xff]   ;;  %v14231_v61 = vld [vmem:[%s21086_s3 + $0x3b8] sm:$0xff]   ;;  %vm7194_vm10 = vcmp.ge.f32.partialorder %v19694_v6, 0.0 }
 0x8ad   :  { %12726 = vmatpush3.bf16.msra.mxu1 %v14197_v57  ;;  %v14215_v57 = vld [vmem:[%s21086_s3 + $0x338] sm:$0xff]   ;;  %v7423_v9 = vpack.c.bf16 %v7276_v51, %v7276_v51  ;;  %v14233_v51 = vld [vmem:[%s21086_s3 + $0x400] sm:$0xff]  }
 0x8ae   :  { %12727 = vmatprep.subr.bf16.mxu1 %v14198_v20  ;;  %v14216_v20 = vld [vmem:[%s21086_s3 + $0x3c0] sm:$0xff]  }
 0x8b1   :  { %12728 = vmatpush3.bf16.msra.mxu1 %v14199_v24  ;;  %v14217_v24 = vld [vmem:[%s21086_s3 + $0x380] sm:$0xff]  }
 0x8b2   :  { %12735 = vmatprep.subr.bf16.mxu1 %v14200_v54  ;;  %v7420_v54 = vpack.c.bf16 %v7273_v53, %v7273_v53  ;;  %v7278_v53 = vsel %vm7180_vm12, %v19652_v1, %v7229_v35  ;;  %v14236_v1 = vld [vmem:[%s21086_s3 + $0x450] sm:$0xff]   ;;  %v7228_v35 = vmul.f32 0.1, %v19649_v42  ;;  %vm7196_vm12 = vcmp.ge.f32.partialorder %v19700_v12, 0.0 }
 0x8b4   :  { %10830 = vmatmul.mubr.bf16.vlgmr.msra.gmra.mrb[220].mxu1 %v7418_v46  ;;  %v14222_v46 = vld [vmem:[%s21086_s3 + $0x3d8] sm:$0xff]  }
 0x8b5   :  { %12736 = vmatpush3.bf16.msra.mxu1 %v14201_v32  ;;  %10869 = vmatprep.mubr.bf16.mxu1 %v7421_v17  ;;  %v14221_v32 = vld [vmem:[%s21086_s3 + $0x390] sm:$0xff]   ;;  %v14224_v17 = vld [vmem:[%s21086_s3 + $0x3e0] sm:$0xff]  }
 0x8b6   :  { %12737 = vmatprep.subr.bf16.mxu1 %v14202_v34  ;;  %v14223_v34 = vld [vmem:[%s21086_s3 + $0x398] sm:$0xff]  }
 0x8b9   :  { %12738 = vmatpush3.bf16.msra.mxu1 %v14203_v10  ;;  %v14225_v10 = vld [vmem:[%s21086_s3 + $0x3a0] sm:$0xff]  }
 0x8ba   :  { %12739 = vmatprep.subr.bf16.mxu1 %v14204_v0  ;;  %v14226_v0 = vld [vmem:[%s21086_s3 + $0x3e8] sm:$0xff]  }
 0x8bd   :  { %12740 = vmatpush3.bf16.msra.mxu1 %v14205_v2  ;;  %v14227_v2 = vld [vmem:[%s21086_s3 + $0x3a8] sm:$0xff]  }
 0x8be   :  { %12741 = vmatprep.subr.bf16.mxu1 %v14206_v7  ;;  %v14228_v7 = vld [vmem:[%s21086_s3 + $0x3f0] sm:$0xff]  }
 0x8c1   :  { %12742 = vmatpush3.bf16.msra.mxu1 %v14207_v28 }
 0x8c2   :  { %12743 = vmatprep.subr.bf16.mxu1 %v14208_v33 }
 0x8c5   :  { %12744 = vmatpush3.bf16.msra.mxu1 %v14209_v59 }
 0x8c6   :  { %12745 = vmatprep.subr.bf16.mxu1 %v14210_v56 }
 0x8c9   :  { %12746 = vmatpush3.bf16.msra.mxu1 %v14211_v22  ;;  %v14229_v22 = vld [vmem:[%s21086_s3 + $0x3b0] sm:$0xff]  }
 0x8ca   :  { %12747 = vmatprep.subr.bf16.mxu1 %v14212_v3 }
 0x8cd   :  { %12748 = vmatpush3.bf16.msra.mxu1 %v14213_v36  ;;  %v14230_v36 = vld [vmem:[%s21086_s3 + $0x3f8] sm:$0xff]  }
 0x8ce   :  { %12749 = vmatprep.subr.bf16.mxu1 %v14214_v23  ;;  %v7226_v23 = vmul.f32 0.1, %v19643_v41 }
 0x8d1   :  { %12750 = vmatpush3.bf16.msra.mxu1 %v14215_v57  ;;  %v14232_v57 = vld [vmem:[%s21086_s3 + $0x440] sm:$0xff]  }
 0x8d2   :  { %12757 = vmatprep.subr.bf16.mxu1 %v14216_v20  ;;  %v7275_v20 = vsel %vm7177_vm11, %v19643_v41, %v7226_v23  ;;  %v14235_v41 = vld [vmem:[%s21086_s3 + $0x408] sm:$0xff]   ;;  %vm7193_vm11 = vcmp.ge.f32.partialorder %v19691_v29, 0.0 }
 0x8d4   :  { %10870 = vmatmul.mubr.bf16.vlgmr.msra.gmra.mrb[224].mxu1 %v7420_v54  ;;  %v14234_v54 = vld [vmem:[%s21086_s3 + $0x448] sm:$0xff]  }
 0x8d5   :  { %12758 = vmatpush3.bf16.msra.mxu1 %v14217_v24  ;;  %10909 = vmatprep.mubr.bf16.mxu1 %v7423_v9  ;;  %v7422_v24 = vpack.c.bf16 %v7275_v20, %v7275_v20  ;;  %v14237_v9 = vld [vmem:[%s21086_s3 + $0x410] sm:$0xff]   ;;  %v7277_v20 = vsel %vm7179_vm13, %v19649_v42, %v7228_v35  ;;  %v14251_v42 = vld [vmem:[%s21086_s3 + $0x488] sm:$0xff]   ;;  %vm7195_vm13 = vcmp.ge.f32.partialorder %v19697_v4, 0.0 }
 0x8d6   :  { %12759 = vmatprep.subr.bf16.mxu1 %v14218_v5  ;;  %v7425_v5 = vpack.c.bf16 %v7278_v53, %v7278_v53 }
 0x8d9   :  { %12760 = vmatpush3.bf16.msra.mxu1 %v14219_v31  ;;  %v14238_v31 = vld [vmem:[%s21086_s3 + $0x458] sm:$0xff]  }
 0x8da   :  { %12761 = vmatprep.subr.bf16.mxu1 %v14220_v30  ;;  %v14239_v30 = vld [vmem:[%s21086_s3 + $0x418] sm:$0xff]  }
 0x8dd   :  { %12762 = vmatpush3.bf16.msra.mxu1 %v14221_v32  ;;  %v14240_v32 = vld [vmem:[%s21086_s3 + $0x460] sm:$0xff]  }
 0x8de   :  { %12763 = vmatprep.subr.bf16.mxu1 %v14222_v46  ;;  %v8243_v46 = vsub.s32 3, %v22364_v40 }
 0x8e1   :  { %12764 = vmatpush3.bf16.msra.mxu1 %v14223_v34  ;;  %v14241_v34 = vld [vmem:[%s21086_s3 + $0x420] sm:$0xff]  }
 0x8e2   :  { %12765 = vmatprep.subr.bf16.mxu1 %v14224_v17  ;;  %v14242_v17 = vld [vmem:[%s21086_s3 + $0x468] sm:$0xff]  }
 0x8e5   :  { %12766 = vmatpush3.bf16.msra.mxu1 %v14225_v10  ;;  %v8244_v10 = vrot.slane %v19464_v43, %v8243_v46  ;;  %v14245_v43 = vld [vmem:[%s21086_s3 + $0x430] sm:$0xff]   ;;  %v14259_v46 = vld [vmem:[%s21086_s3 + $0x4a8] sm:$0xff]  }
 0x8e6   :  { %12767 = vmatprep.subr.bf16.mxu1 %v14226_v0  ;;  %v14243_v0 = vld [vmem:[%s21086_s3 + $0x428] sm:$0xff]  }
 0x8e7   :  { %v12619_v28 = vpop.f32.mrb[200].mxu1 }
 0x8e8   :  { %v12620_v33 = vpop.f32.mrb[201].mxu1 }
 0x8e9   :  { %v12621_v59 = vadd.f32 %v12620_v33, %v12619_v28  ;;  %12768 = vmatpush3.bf16.msra.mxu1 %v14227_v2  ;;  %v12622_v56 = vpop.f32.mrb[202].mxu1  ;;  %v14244_v2 = vld [vmem:[%s21086_s3 + $0x470] sm:$0xff]  }
 0x8ea   :  { %v12623_v3 = vpop.f32.mrb[203].mxu1  ;;  %12769 = vmatprep.subr.bf16.mxu1 %v14228_v7 }
 0x8eb   :  { %v10632_v33 = vadd.f32 %v12621_v59, %v8244_v10  ;;  %v7231_v59 = vmul.f32 0.1, %v19658_v25 }
 0x8ed   :  { %12770 = vmatpush3.bf16.msra.mxu1 %v14229_v22  ;;  %v7280_v53 = vsel %vm7182_vm14, %v19658_v25, %v7231_v59  ;;  %v14252_v25 = vld [vmem:[%s21086_s3 + $0x4d0] sm:$0xff]   ;;  %v14265_v59 = vld [vmem:[%s21086_s3 + $0x500] sm:$0xff]   ;;  %vm7198_vm14 = vcmp.ge.f32.partialorder %v19706_v55, 0.0 }
 0x8ee   :  { %12771 = vmatprep.subr.bf16.mxu1 %v14230_v36  ;;  %v14246_v36 = vld [vmem:[%s21086_s3 + $0x478] sm:$0xff]  }
 0x8f1   :  { %12772 = vmatpush3.bf16.msra.mxu1 %v14231_v61  ;;  %v14247_v61 = vld [vmem:[%s21086_s3 + $0x438] sm:$0xff]  }
 0x8f2   :  { %12779 = vmatprep.subr.bf16.mxu1 %v14232_v57  ;;  %v14248_v57 = vld [vmem:[%s21086_s3 + $0x4c0] sm:$0xff]  }
 0x8f4   :  { %10910 = vmatmul.mubr.bf16.vlgmr.msra.gmra.mrb[228].mxu1 %v7422_v24  ;;  %v7424_v24 = vpack.c.bf16 %v7277_v20, %v7277_v20 }
 0x8f5   :  { %12780 = vmatpush3.bf16.msra.mxu1 %v14233_v51  ;;  %10949 = vmatprep.mubr.bf16.mxu1 %v7425_v5  ;;  %v14249_v51 = vld [vmem:[%s21086_s3 + $0x480] sm:$0xff]   ;;  %v7427_v5 = vpack.c.bf16 %v7280_v53, %v7280_v53  ;;  %v14269_v53 = vld [vmem:[%s21086_s3 + $0x510] sm:$0xff]  }
 0x8f6   :  { %12781 = vmatprep.subr.bf16.mxu1 %v14234_v54  ;;  %v14250_v54 = vld [vmem:[%s21086_s3 + $0x4c8] sm:$0xff]  }
 0x8f9   :  { %12782 = vmatpush3.bf16.msra.mxu1 %v14235_v41  ;;  %v14253_v41 = vld [vmem:[%s21086_s3 + $0x490] sm:$0xff]  }
 0x8fa   :  { %12783 = vmatprep.subr.bf16.mxu1 %v14236_v1  ;;  %v14254_v1 = vld [vmem:[%s21086_s3 + $0x4d8] sm:$0xff]  }
 0x8fd   :  { %12784 = vmatpush3.bf16.msra.mxu1 %v14237_v9  ;;  %v14255_v9 = vld [vmem:[%s21086_s3 + $0x498] sm:$0xff]  }
 0x8fe   :  { %12785 = vmatprep.subr.bf16.mxu1 %v14238_v31  ;;  %v14256_v31 = vld [vmem:[%s21086_s3 + $0x4e0] sm:$0xff]  }
 0x901   :  { %12786 = vmatpush3.bf16.msra.mxu1 %v14239_v30  ;;  %v14257_v30 = vld [vmem:[%s21086_s3 + $0x4a0] sm:$0xff]  }
 0x902   :  { %12787 = vmatprep.subr.bf16.mxu1 %v14240_v32  ;;  %v14258_v32 = vld [vmem:[%s21086_s3 + $0x4e8] sm:$0xff]  }
 0x905   :  { %12788 = vmatpush3.bf16.msra.mxu1 %v14241_v34  ;;  %v14260_v34 = vld [vmem:[%s21086_s3 + $0x4f0] sm:$0xff]  }
 0x906   :  { %12789 = vmatprep.subr.bf16.mxu1 %v14242_v17 }
 0x907   :  { %v12641_v7 = vpop.f32.mrb[204].mxu1 }
 0x908   :  { %v12642_v28 = vpop.f32.mrb[205].mxu1 }
 0x909   :  { %v12643_v56 = vadd.f32 %v12642_v28, %v12641_v7  ;;  %v12644_v22 = vpop.f32.mrb[206].mxu1  ;;  %12790 = vmatpush3.bf16.msra.mxu1 %v14243_v0  ;;  %v14261_v7 = vld [vmem:[%s21086_s3 + $0x4b0] sm:$0xff]  }
 0x90a   :  { %v12645_v3 = vpop.f32.mrb[207].mxu1  ;;  %12791 = vmatprep.subr.bf16.mxu1 %v14244_v2  ;;  %v7230_v22 = vmul.f32 0.1, %v19655_v39 }
 0x90b   :  { %v10672_v23 = vadd.f32 %v12643_v56, %v10632_v33  ;;  %v14262_v33 = vld [vmem:[%s21086_s3 + $0x4f8] sm:$0xff]  }
 0x90c   :  { %v14263_v3 = vld [vmem:[%s21086_s3 + $0x4b8] sm:$0xff]  }
 0x90d   :  { %12792 = vmatpush3.bf16.msra.mxu1 %v14245_v43  ;;  %v7233_v43 = vmul.f32 0.1, %v19664_v37 }
 0x90e   :  { %12793 = vmatprep.subr.bf16.mxu1 %v14246_v36  ;;  %v14264_v36 = vld [vmem:[%s21086_s3 + $0x540] sm:$0xff]  }
 0x90f   :  { %v7282_v35 = vsel %vm7184_vm1, %v19664_v37, %v7233_v43  ;;  %v14268_v37 = vld [vmem:[%s21086_s3 + $0x550] sm:$0xff]   ;;  %v14282_v43 = vld [vmem:[%s21086_s3 + $0x5c8] sm:$0xff]   ;;  %vm7200_vm1 = vcmp.ge.f32.partialorder %v19712_v15, 0.0 }
 0x910   :  { %v7429_v20 = vpack.c.bf16 %v7282_v35, %v7282_v35  ;;  %v14287_v35 = vld [vmem:[%s21086_s3 + $0x598] sm:$0xff]  }
 0x911   :  { %12794 = vmatpush3.bf16.msra.mxu1 %v14247_v61 }
 0x912   :  { %12801 = vmatprep.subr.bf16.mxu1 %v14248_v57  ;;  %v14266_v57 = vld [vmem:[%s21086_s3 + $0x548] sm:$0xff]  }
 0x914   :  { %10950 = vmatmul.mubr.bf16.vlgmr.msra.gmra.mrb[232].mxu1 %v7424_v24  ;;  %v14271_v24 = vld [vmem:[%s21086_s3 + $0x518] sm:$0xff]  }
 0x915   :  { %12802 = vmatpush3.bf16.msra.mxu1 %v14249_v51  ;;  %10989 = vmatprep.mubr.bf16.mxu1 %v7427_v5  ;;  %v14270_v51 = vld [vmem:[%s21086_s3 + $0x558] sm:$0xff]   ;;  %v14273_v5 = vld [vmem:[%s21086_s3 + $0x520] sm:$0xff]  }
 0x916   :  { %12803 = vmatprep.subr.bf16.mxu1 %v14250_v54  ;;  %v14272_v54 = vld [vmem:[%s21086_s3 + $0x560] sm:$0xff]  }
 0x919   :  { %12804 = vmatpush3.bf16.msra.mxu1 %v14251_v42  ;;  %v14274_v42 = vld [vmem:[%s21086_s3 + $0x568] sm:$0xff]  }
 0x91a   :  { %12805 = vmatprep.subr.bf16.mxu1 %v14252_v25  ;;  %v14275_v25 = vld [vmem:[%s21086_s3 + $0x528] sm:$0xff]  }
 0x91d   :  { %12806 = vmatpush3.bf16.msra.mxu1 %v14253_v41  ;;  %v14276_v41 = vld [vmem:[%s21086_s3 + $0x570] sm:$0xff]  }
 0x91e   :  { %12807 = vmatprep.subr.bf16.mxu1 %v14254_v1 }
 0x921   :  { %12808 = vmatpush3.bf16.msra.mxu1 %v14255_v9 }
 0x922   :  { %12809 = vmatprep.subr.bf16.mxu1 %v14256_v31 }
 0x925   :  { %12810 = vmatpush3.bf16.msra.mxu1 %v14257_v30 }
 0x926   :  { %12811 = vmatprep.subr.bf16.mxu1 %v14258_v32  ;;  %v14277_v32 = vld [vmem:[%s21086_s3 + $0x530] sm:$0xff]  }
 0x927   :  { %v12663_v17 = vpop.f32.mrb[208].mxu1 }
 0x928   :  { %v12664_v10 = vpop.f32.mrb[209].mxu1 }
 0x929   :  { %v12665_v0 = vadd.f32 %v12664_v10, %v12663_v17  ;;  %v12666_v2 = vpop.f32.mrb[210].mxu1  ;;  %12812 = vmatpush3.bf16.msra.mxu1 %v14259_v46  ;;  %v7232_v10 = vmul.f32 0.1, %v19661_v63 }
 0x92a   :  { %v12667_v28 = vpop.f32.mrb[211].mxu1  ;;  %12813 = vmatprep.subr.bf16.mxu1 %v14260_v34  ;;  %v14278_v34 = vld [vmem:[%s21086_s3 + $0x578] sm:$0xff]  }
 0x92b   :  { %v10712_v56 = vadd.f32 %v12665_v0, %v10672_v23  ;;  %v7279_v23 = vsel %vm7181_vm15, %v19655_v39, %v7230_v22  ;;  %v14267_v39 = vld [vmem:[%s21086_s3 + $0x508] sm:$0xff]   ;;  %v7235_v0 = vmul.f32 0.1, %v19670_v18  ;;  %v14279_v2 = vld [vmem:[%s21086_s3 + $0x538] sm:$0xff]   ;;  %v7281_v28 = vsel %vm7183_vm2, %v19661_v63, %v7232_v10 }
 0x92c   :  { %v7426_v61 = vpack.c.bf16 %v7279_v23, %v7279_v23  ;;  %v7428_v22 = vpack.c.bf16 %v7281_v28, %v7281_v28  ;;  %v14283_v63 = vld [vmem:[%s21086_s3 + $0x588] sm:$0xff]   ;;  %v14286_v23 = vld [vmem:[%s21086_s3 + $0x5d8] sm:$0xff]   ;;  %v14304_v28 = vld [vmem:[%s21086_s3 + $0x660] sm:$0xff]   ;;  %vm7197_vm15 = vcmp.ge.f32.partialorder %v19703_v13, 0.0  ;;  %vm7199_vm2 = vcmp.ge.f32.partialorder %v19709_v27, 0.0 }
 0x92d   :  { %12814 = vmatpush3.bf16.msra.mxu1 %v14261_v7  ;;  %v14280_v7 = vld [vmem:[%s21086_s3 + $0x5c0] sm:$0xff]  }
 0x92e   :  { %12815 = vmatprep.subr.bf16.mxu1 %v14262_v33  ;;  %v7284_v33 = vsel %vm7186_vm3, %v19670_v18, %v7235_v0  ;;  %v14284_v18 = vld [vmem:[%s21086_s3 + $0x5d0] sm:$0xff]   ;;  %vm7202_vm3 = vcmp.ge.f32.partialorder %v19718_v38, 0.0 }
 0x92f   :  { %v14301_v0 = vld [vmem:[%s21086_s3 + $0x610] sm:$0xff]  }
 0x931   :  { %12816 = vmatpush3.bf16.msra.mxu1 %v14263_v3  ;;  %v7431_v3 = vpack.c.bf16 %v7284_v33, %v7284_v33  ;;  %v14305_v33 = vld [vmem:[%s21086_s3 + $0x620] sm:$0xff]  }
 0x932   :  { %12823 = vmatprep.subr.bf16.mxu1 %v14264_v36  ;;  %v14285_v36 = vld [vmem:[%s21086_s3 + $0x590] sm:$0xff]  }
 0x934   :  { %10990 = vmatmul.mubr.bf16.vlgmr.msra.gmra.mrb[236].mxu1 %v7426_v61  ;;  %v14289_v61 = vld [vmem:[%s21086_s3 + $0x5a0] sm:$0xff]  }
 0x935   :  { %12824 = vmatpush3.bf16.msra.mxu1 %v14265_v59  ;;  %11029 = vmatprep.mubr.bf16.mxu1 %v7429_v20  ;;  %v14288_v59 = vld [vmem:[%s21086_s3 + $0x5e0] sm:$0xff]   ;;  %v14291_v20 = vld [vmem:[%s21086_s3 + $0x5a8] sm:$0xff]  }
 0x936   :  { %12825 = vmatprep.subr.bf16.mxu1 %v14266_v57  ;;  %v14290_v57 = vld [vmem:[%s21086_s3 + $0x5e8] sm:$0xff]  }
 0x939   :  { %12826 = vmatpush3.bf16.msra.mxu1 %v14267_v39  ;;  %v14292_v39 = vld [vmem:[%s21086_s3 + $0x5f0] sm:$0xff]  }
 0x93a   :  { %12827 = vmatprep.subr.bf16.mxu1 %v14268_v37 }
 0x93d   :  { %12828 = vmatpush3.bf16.msra.mxu1 %v14269_v53 }
 0x93e   :  { %12829 = vmatprep.subr.bf16.mxu1 %v14270_v51 }
 0x941   :  { %12830 = vmatpush3.bf16.msra.mxu1 %v14271_v24 }
 0x942   :  { %12831 = vmatprep.subr.bf16.mxu1 %v14272_v54  ;;  %v14293_v54 = vld [vmem:[%s21086_s3 + $0x5b0] sm:$0xff]  }
 0x945   :  { %12832 = vmatpush3.bf16.msra.mxu1 %v14273_v5 }
 0x946   :  { %12833 = vmatprep.subr.bf16.mxu1 %v14274_v42  ;;  %v14294_v42 = vld [vmem:[%s21086_s3 + $0x5f8] sm:$0xff]  }
 0x947   :  { %v12685_v1 = vpop.f32.mrb[212].mxu1 }
 0x948   :  { %v12686_v9 = vpop.f32.mrb[213].mxu1 }
 0x949   :  { %v12687_v31 = vadd.f32 %v12686_v9, %v12685_v1  ;;  %v12688_v30 = vpop.f32.mrb[214].mxu1  ;;  %12834 = vmatpush3.bf16.msra.mxu1 %v14275_v25  ;;  %v7237_v1 = vmul.f32 0.1, %v19676_v60  ;;  %v14295_v9 = vld [vmem:[%s21086_s3 + $0x5b8] sm:$0xff]  }
 0x94a   :  { %v12689_v46 = vpop.f32.mrb[215].mxu1  ;;  %12835 = vmatprep.subr.bf16.mxu1 %v14276_v41  ;;  %v7234_v41 = vmul.f32 0.1, %v19667_v58 }
 0x94b   :  { %v10752_v17 = vadd.f32 %v12687_v31, %v10712_v56  ;;  %v14281_v56 = vld [vmem:[%s21086_s3 + $0x580] sm:$0xff]  }
 0x94c   :  { %v14296_v31 = vld [vmem:[%s21086_s3 + $0x640] sm:$0xff]   ;;  %v7283_v30 = vsel %vm7185_vm4, %v19667_v58, %v7234_v41  ;;  %v14299_v58 = vld [vmem:[%s21086_s3 + $0x608] sm:$0xff]   ;;  %v14318_v41 = vld [vmem:[%s21086_s3 + $0x6d8] sm:$0xff]   ;;  %vm7201_vm4 = vcmp.ge.f32.partialorder %v19715_v50, 0.0 }
 0x94d   :  { %12836 = vmatpush3.bf16.msra.mxu1 %v14277_v32  ;;  %v7286_v32 = vsel %vm7188_vm5, %v19676_v60, %v7237_v1  ;;  %v14297_v46 = vld [vmem:[%s21086_s3 + $0x600] sm:$0xff]   ;;  %v14300_v60 = vld [vmem:[%s21086_s3 + $0x650] sm:$0xff]   ;;  %v14319_v1 = vld [vmem:[%s21086_s3 + $0x698] sm:$0xff]   ;;  %vm7204_vm5 = vcmp.ge.f32.partialorder %v19724_v8, 0.0 }
 0x94e   :  { %12837 = vmatprep.subr.bf16.mxu1 %v14278_v34  ;;  %v7430_v34 = vpack.c.bf16 %v7283_v30, %v7283_v30  ;;  %v7433_v10 = vpack.c.bf16 %v7286_v32, %v7286_v32  ;;  %v14322_v30 = vld [vmem:[%s21086_s3 + $0x6e8] sm:$0xff]  }
 0x94f   :  { %v14323_v32 = vld [vmem:[%s21086_s3 + $0x6a8] sm:$0xff]  }
 0x951   :  { %12838 = vmatpush3.bf16.msra.mxu1 %v14279_v2  ;;  %v14302_v2 = vld [vmem:[%s21086_s3 + $0x658] sm:$0xff]  }
 0x952   :  { %12845 = vmatprep.subr.bf16.mxu1 %v14280_v7  ;;  %v14303_v7 = vld [vmem:[%s21086_s3 + $0x618] sm:$0xff]  }
 0x954   :  { %11030 = vmatmul.mubr.bf16.vlgmr.msra.gmra.mrb[240].mxu1 %v7428_v22  ;;  %v14307_v22 = vld [vmem:[%s21086_s3 + $0x628] sm:$0xff]  }
 0x955   :  { %12846 = vmatpush3.bf16.msra.mxu1 %v14281_v56  ;;  %11069 = vmatprep.mubr.bf16.mxu1 %v7431_v3  ;;  %v14306_v56 = vld [vmem:[%s21086_s3 + $0x668] sm:$0xff]  }
 0x956   :  { %12847 = vmatprep.subr.bf16.mxu1 %v14282_v43  ;;  %v14308_v43 = vld [vmem:[%s21086_s3 + $0x670] sm:$0xff]  }
 0x959   :  { %12848 = vmatpush3.bf16.msra.mxu1 %v14283_v63 }
 0x95a   :  { %12849 = vmatprep.subr.bf16.mxu1 %v14284_v18 }
 0x95d   :  { %12850 = vmatpush3.bf16.msra.mxu1 %v14285_v36 }
 0x95e   :  { %12851 = vmatprep.subr.bf16.mxu1 %v14286_v23  ;;  %v14309_v23 = vld [vmem:[%s21086_s3 + $0x630] sm:$0xff]  }
 0x961   :  { %12852 = vmatpush3.bf16.msra.mxu1 %v14287_v35 }
 0x962   :  { %12853 = vmatprep.subr.bf16.mxu1 %v14288_v59  ;;  %v14310_v59 = vld [vmem:[%s21086_s3 + $0x678] sm:$0xff]  }
 0x965   :  { %12854 = vmatpush3.bf16.msra.mxu1 %v14289_v61 }
 0x966   :  { %12855 = vmatprep.subr.bf16.mxu1 %v14290_v57  ;;  %v7236_v57 = vmul.f32 0.1, %v19673_v14 }
 0x967   :  { %v12707_v37 = vpop.f32.mrb[216].mxu1 }
 0x968   :  { %v12708_v53 = vpop.f32.mrb[217].mxu1 }
 0x969   :  { %v12709_v51 = vadd.f32 %v12708_v53, %v12707_v37  ;;  %v12710_v24 = vpop.f32.mrb[218].mxu1  ;;  %12856 = vmatpush3.bf16.msra.mxu1 %v14291_v20  ;;  %v7239_v20 = vmul.f32 0.1, %v19682_v47  ;;  %v14312_v37 = vld [vmem:[%s21086_s3 + $0x6c0] sm:$0xff]   ;;  %v7285_v53 = vsel %vm7187_vm0, %v19673_v14, %v7236_v57  ;;  %v14315_v14 = vld [vmem:[%s21086_s3 + $0x688] sm:$0xff]   ;;  %vm7203_vm0 = vcmp.ge.f32.partialorder %v19721_v11, 0.0 }
 0x96a   :  { %v12711_v5 = vpop.f32.mrb[219].mxu1  ;;  %12857 = vmatprep.subr.bf16.mxu1 %v14292_v39  ;;  %v14311_v39 = vld [vmem:[%s21086_s3 + $0x638] sm:$0xff]   ;;  %v14313_v24 = vld [vmem:[%s21086_s3 + $0x680] sm:$0xff]  }
 0x96b   :  { %v10792_v25 = vadd.f32 %v12709_v51, %v10752_v17  ;;  %v14298_v17 = vld [vmem:[%s21086_s3 + $0x648] sm:$0xff]   ;;  %v7288_v51 = vsel %vm7190_vm6, %v19682_v47, %v7239_v20  ;;  %v14316_v47 = vld [vmem:[%s21086_s3 + $0x6d0] sm:$0xff]   ;;  %v14336_v57 = vld [vmem:[%s21086_s3 + $0x760] sm:$0xff]   ;;  %vm7206_vm6 = vcmp.ge.f32.partialorder %v19730_v44, 0.0 }
 0x96c   :  { %v14314_v5 = vld [vmem:[%s21086_s3 + $0x6c8] sm:$0xff]   ;;  %v14337_v20 = vld [vmem:[%s21086_s3 + $0x720] sm:$0xff]  }
 0x96d   :  { %12858 = vmatpush3.bf16.msra.mxu1 %v14293_v54  ;;  %v7432_v54 = vpack.c.bf16 %v7285_v53, %v7285_v53  ;;  %v14340_v53 = vld [vmem:[%s21086_s3 + $0x770] sm:$0xff]  }
 0x96e   :  { %12859 = vmatprep.subr.bf16.mxu1 %v14294_v42  ;;  %v7435_v42 = vpack.c.bf16 %v7288_v51, %v7288_v51 }
 0x971   :  { %12860 = vmatpush3.bf16.msra.mxu1 %v14295_v9  ;;  %v14320_v9 = vld [vmem:[%s21086_s3 + $0x6e0] sm:$0xff]  }
 0x972   :  { %12867 = vmatprep.subr.bf16.mxu1 %v14296_v31  ;;  %v14321_v31 = vld [vmem:[%s21086_s3 + $0x6a0] sm:$0xff]  }
 0x974   :  { %11070 = vmatmul.mubr.bf16.vlgmr.msra.gmra.mrb[244].mxu1 %v7430_v34 }
 0x975   :  { %12868 = vmatpush3.bf16.msra.mxu1 %v14297_v46  ;;  %11109 = vmatprep.mubr.bf16.mxu1 %v7433_v10  ;;  %v14324_v46 = vld [vmem:[%s21086_s3 + $0x6f0] sm:$0xff]  }
 0x976   :  { %12869 = vmatprep.subr.bf16.mxu1 %v14298_v17 }
 0x979   :  { %12870 = vmatpush3.bf16.msra.mxu1 %v14299_v58 }
 0x97a   :  { %12871 = vmatprep.subr.bf16.mxu1 %v14300_v60  ;;  %v14325_v60 = vld [vmem:[%s21086_s3 + $0x6b0] sm:$0xff]  }
 0x97d   :  { %12872 = vmatpush3.bf16.msra.mxu1 %v14301_v0 }
 0x97e   :  { %12873 = vmatprep.subr.bf16.mxu1 %v14302_v2  ;;  %v14326_v2 = vld [vmem:[%s21086_s3 + $0x6f8] sm:$0xff]  }
 0x981   :  { %12874 = vmatpush3.bf16.msra.mxu1 %v14303_v7 }
 0x982   :  { %12875 = vmatprep.subr.bf16.mxu1 %v14304_v28  ;;  %v7238_v28 = vmul.f32 0.1, %v19679_v62 }
 0x985   :  { %12876 = vmatpush3.bf16.msra.mxu1 %v14305_v33  ;;  %v7241_v33 = vmul.f32 0.1, %v19688_v49 }
 0x986   :  { %12877 = vmatprep.subr.bf16.mxu1 %v14306_v56  ;;  %v14327_v56 = vld [vmem:[%s21086_s3 + $0x6b8] sm:$0xff]  }
 0x987   :  { %v12729_v3 = vpop.f32.mrb[220].mxu1 }
 0x988   :  { %v12730_v63 = vpop.f32.mrb[221].mxu1 }
 0x989   :  { %v12731_v18 = vadd.f32 %v12730_v63, %v12729_v3  ;;  %v12732_v36 = vpop.f32.mrb[222].mxu1  ;;  %12878 = vmatpush3.bf16.msra.mxu1 %v14307_v22  ;;  %v14328_v22 = vld [vmem:[%s21086_s3 + $0x740] sm:$0xff]   ;;  %v7290_v3 = vsel %vm7192_vm8, %v19688_v49, %v7241_v33  ;;  %v14332_v49 = vld [vmem:[%s21086_s3 + $0x750] sm:$0xff]   ;;  %v14355_v33 = vld [vmem:[%s21086_s3 + $0x7a8] sm:$0xff]   ;;  %vm7205_vm8 = vcmp.ge.f32.partialorder %v19727_v16, 0.0 }
 0x98a   :  { %v12733_v35 = vpop.f32.mrb[223].mxu1  ;;  %12879 = vmatprep.subr.bf16.mxu1 %v14308_v43  ;;  %v7287_v43 = vsel %vm7189_vm7, %v19679_v62, %v7238_v28  ;;  %v14329_v63 = vld [vmem:[%s21086_s3 + $0x700] sm:$0xff]   ;;  %v14330_v36 = vld [vmem:[%s21086_s3 + $0x748] sm:$0xff]   ;;  %vm14652_vm7 = vmmov 0  }
 0x98b   :  { %v10832_v61 = vadd.f32 %v12731_v18, %v10792_v25  ;;  %v14317_v25 = vld [vmem:[%s21086_s3 + $0x690] sm:$0xff]   ;;  %v7434_v18 = vpack.c.bf16 %v7287_v43, %v7287_v43  ;;  %v14331_v62 = vld [vmem:[%s21086_s3 + $0x708] sm:$0xff]  }
 0x98c   :  { %v14333_v35 = vld [vmem:[%s21086_s3 + $0x710] sm:$0xff]   ;;  %v14354_v28 = vld [vmem:[%s21086_s3 + $0x7e8] sm:$0xff]  }
 0x98d   :  { %12880 = vmatpush3.bf16.msra.mxu1 %v14309_v23  ;;  %v7437_v23 = vpack.c.bf16 %v7290_v3, %v7290_v3 }
 0x98e   :  { %12881 = vmatprep.subr.bf16.mxu1 %v14310_v59  ;;  %v14334_v59 = vld [vmem:[%s21086_s3 + $0x758] sm:$0xff]  }
 0x991   :  { %12882 = vmatpush3.bf16.msra.mxu1 %v14311_v39  ;;  %v14338_v39 = vld [vmem:[%s21086_s3 + $0x768] sm:$0xff]  }
 0x992   :  { %12889 = vmatprep.subr.bf16.mxu1 %v14312_v37  ;;  %v14339_v37 = vld [vmem:[%s21086_s3 + $0x728] sm:$0xff]  }
 0x994   :  { %11110 = vmatmul.mubr.bf16.vlgmr.msra.gmra.mrb[248].mxu1 %v7432_v54 }
 0x995   :  { %12890 = vmatpush3.bf16.msra.mxu1 %v14313_v24  ;;  %11149 = vmatprep.mubr.bf16.mxu1 %v7435_v42  ;;  %v14341_v42 = vld [vmem:[%s21086_s3 + $0x730] sm:$0xff]  }
 0x996   :  { %12891 = vmatprep.subr.bf16.mxu1 %v14314_v5 }
 0x999   :  { %12892 = vmatpush3.bf16.msra.mxu1 %v14315_v14 }
 0x99a   :  { %12893 = vmatprep.subr.bf16.mxu1 %v14316_v47  ;;  %v14342_v47 = vld [vmem:[%s21086_s3 + $0x778] sm:$0xff]  }
 0x99d   :  { %12894 = vmatpush3.bf16.msra.mxu1 %v14317_v25  ;;  %v7240_v25 = vmul.f32 0.1, %v19685_v48 }
 0x99e   :  { %12895 = vmatprep.subr.bf16.mxu1 %v14318_v41 }
 0x9a1   :  { %12896 = vmatpush3.bf16.msra.mxu1 %v14319_v1  ;;  %v7243_v1 = vmul.f32 0.1, %v19694_v6 }
 0x9a2   :  { %12897 = vmatprep.subr.bf16.mxu1 %v14320_v9  ;;  %v14343_v9 = vld [vmem:[%s21086_s3 + $0x738] sm:$0xff]  }
 0x9a5   :  { %12898 = vmatpush3.bf16.msra.mxu1 %v14321_v31  ;;  %v14344_v31 = vld [vmem:[%s21086_s3 + $0x7c0] sm:$0xff]  }
 0x9a6   :  { %12899 = vmatprep.subr.bf16.mxu1 %v14322_v30  ;;  %v7289_v30 = vsel %vm7191_vm9, %v19685_v48, %v7240_v25  ;;  %v14347_v48 = vld [vmem:[%s21086_s3 + $0x788] sm:$0xff]   ;;  %vm7208_vm9 = vcmp.ge.f32.partialorder %v19737_v19, 0.0 }
 0x9a7   :  { %v12751_v34 = vpop.f32.mrb[224].mxu1  ;;  %v14371_v25 = vld [vmem:[%s21086_s3 + $0x828] sm:$0xff]  }
 0x9a8   :  { %v12752_v17 = vpop.f32.mrb[225].mxu1 }
 0x9a9   :  { %v12753_v10 = vadd.f32 %v12752_v17, %v12751_v34  ;;  %v12754_v58 = vpop.f32.mrb[226].mxu1  ;;  %12900 = vmatpush3.bf16.msra.mxu1 %v14323_v32  ;;  %v7292_v32 = vsel %vm7194_vm10, %v19694_v6, %v7243_v1  ;;  %v7436_v34 = vpack.c.bf16 %v7289_v30, %v7289_v30  ;;  %v14346_v17 = vld [vmem:[%s21086_s3 + $0x7c8] sm:$0xff]   ;;  %v14348_v6 = vld [vmem:[%s21086_s3 + $0x7d0] sm:$0xff]   ;;  %vm7207_vm10 = vcmp.ge.f32.partialorder %v19733_v52, 0.0 }
 0x9aa   :  { %v12755_v0 = vpop.f32.mrb[227].mxu1  ;;  %12901 = vmatprep.subr.bf16.mxu1 %v14324_v46  ;;  %v14345_v46 = vld [vmem:[%s21086_s3 + $0x780] sm:$0xff]   ;;  %v14349_v58 = vld [vmem:[%s21086_s3 + $0x790] sm:$0xff]  }
 0x9ab   :  { %v10872_v7 = vadd.f32 %v12753_v10, %v10832_v61  ;;  %v14335_v61 = vld [vmem:[%s21086_s3 + $0x718] sm:$0xff]   ;;  %v7439_v10 = vpack.c.bf16 %v7292_v32, %v7292_v32  ;;  %v14373_v32 = vld [vmem:[%s21086_s3 + $0x830] sm:$0xff]  }
 0x9ac   :  { %v14351_v0 = vld [vmem:[%s21086_s3 + $0x798] sm:$0xff]  }
 0x9ad   :  { %12902 = vmatpush3.bf16.msra.mxu1 %v14325_v60  ;;  %v14350_v60 = vld [vmem:[%s21086_s3 + $0x7d8] sm:$0xff]  }
 0x9ae   :  { %12903 = vmatprep.subr.bf16.mxu1 %v14326_v2  ;;  %v14352_v2 = vld [vmem:[%s21086_s3 + $0x7e0] sm:$0xff]  }
 0x9b1   :  { %12904 = vmatpush3.bf16.msra.mxu1 %v14327_v56  ;;  %v14356_v56 = vld [vmem:[%s21086_s3 + $0x7f0] sm:$0xff]  }
 0x9b2   :  { %12911 = vmatprep.subr.bf16.mxu1 %v14328_v22 }
 0x9b4   :  { %11150 = vmatmul.mubr.bf16.vlgmr.msra.gmra.mrb[252].mxu1 %v7434_v18  ;;  %v14357_v18 = vld [vmem:[%s21086_s3 + $0x7b0] sm:$0xff]  }
 0x9b5   :  { %12912 = vmatpush3.bf16.msra.mxu1 %v14329_v63  ;;  %11189 = vmatprep.mubr.bf16.mxu1 %v7437_v23  ;;  %v14358_v23 = vld [vmem:[%s21086_s3 + $0x7f8] sm:$0xff]  }
 0x9b6   :  { %12913 = vmatprep.subr.bf16.mxu1 %v14330_v36 }
 0x9b9   :  { %12914 = vmatpush3.bf16.msra.mxu1 %v14331_v62  ;;  %v7242_v62 = vmul.f32 0.1, %v19691_v29 }
 0x9ba   :  { %12915 = vmatprep.subr.bf16.mxu1 %v14332_v49 }
 0x9bd   :  { %12916 = vmatpush3.bf16.msra.mxu1 %v14333_v35  ;;  %v7245_v35 = vmul.f32 0.1, %v19700_v12 }
 0x9be   :  { %12917 = vmatprep.subr.bf16.mxu1 %v14334_v59  ;;  %v14359_v59 = vld [vmem:[%s21086_s3 + $0x7b8] sm:$0xff]  }
 0x9c1   :  { %12918 = vmatpush3.bf16.msra.mxu1 %v14335_v61  ;;  %v14360_v61 = vld [vmem:[%s21086_s3 + $0x840] sm:$0xff]  }
 0x9c2   :  { %12919 = vmatprep.subr.bf16.mxu1 %v14336_v57  ;;  %v7291_v57 = vsel %vm7193_vm11, %v19691_v29, %v7242_v62  ;;  %v14363_v29 = vld [vmem:[%s21086_s3 + $0x808] sm:$0xff]   ;;  %vm7210_vm11 = vcmp.ge.f32.partialorder %v19743_v21, 0.0 }
 0x9c5   :  { %12920 = vmatpush3.bf16.msra.mxu1 %v14337_v20  ;;  %v7294_v20 = vsel %vm7196_vm12, %v19700_v12, %v7245_v35  ;;  %v14364_v12 = vld [vmem:[%s21086_s3 + $0x850] sm:$0xff]   ;;  %vm7209_vm12 = vcmp.ge.f32.partialorder %v19740_v26, 0.0 }
 0x9c6   :  { %12921 = vmatprep.subr.bf16.mxu1 %v14338_v39  ;;  %v14361_v39 = vld [vmem:[%s21086_s3 + $0x800] sm:$0xff]  }
 0x9c7   :  { %v12773_v51 = vpop.f32.mrb[228].mxu1 }
 0x9c8   :  { %v12774_v24 = vpop.f32.mrb[229].mxu1 }
 0x9c9   :  { %v12775_v54 = vadd.f32 %v12774_v24, %v12773_v51  ;;  %v12776_v5 = vpop.f32.mrb[230].mxu1  ;;  %12922 = vmatpush3.bf16.msra.mxu1 %v14339_v37  ;;  %v7438_v37 = vpack.c.bf16 %v7291_v57, %v7291_v57  ;;  %v7441_v51 = vpack.c.bf16 %v7294_v20, %v7294_v20  ;;  %v14365_v24 = vld [vmem:[%s21086_s3 + $0x810] sm:$0xff]   ;;  %v14390_v20 = vld [vmem:[%s21086_s3 + $0x8f8] sm:$0xff]  }
 0x9ca   :  { %v12777_v14 = vpop.f32.mrb[231].mxu1  ;;  %12923 = vmatprep.subr.bf16.mxu1 %v14340_v53  ;;  %v14362_v53 = vld [vmem:[%s21086_s3 + $0x848] sm:$0xff]   ;;  %v14367_v5 = vld [vmem:[%s21086_s3 + $0x818] sm:$0xff]  }
 0x9cb   :  { %v10912_v41 = vadd.f32 %v12775_v54, %v10872_v7  ;;  %v14353_v7 = vld [vmem:[%s21086_s3 + $0x7a0] sm:$0xff]   ;;  %v14366_v54 = vld [vmem:[%s21086_s3 + $0x858] sm:$0xff]  }
 0x9cc   :  { %v14369_v14 = vld [vmem:[%s21086_s3 + $0x820] sm:$0xff]  }
 0x9cd   :  { %12924 = vmatpush3.bf16.msra.mxu1 %v14341_v42  ;;  %v14368_v42 = vld [vmem:[%s21086_s3 + $0x860] sm:$0xff]  }
 0x9ce   :  { %12925 = vmatprep.subr.bf16.mxu1 %v14342_v47  ;;  %v14370_v47 = vld [vmem:[%s21086_s3 + $0x868] sm:$0xff]  }
 0x9d1   :  { %12926 = vmatpush3.bf16.msra.mxu1 %v14343_v9 }
 0x9d2   :  { %12933 = vmatprep.subr.bf16.mxu1 %v14344_v31 }
 0x9d4   :  { %11190 = vmatmul.mubr.bf16.vlgmr.msra.gmra.mrb[0].mxu1 %v7436_v34  ;;  %v14374_v34 = vld [vmem:[%s21086_s3 + $0x878] sm:$0xff]  }
 0x9d5   :  { %12934 = vmatpush3.bf16.msra.mxu1 %v14345_v46  ;;  %11229 = vmatprep.mubr.bf16.mxu1 %v7439_v10 }
 0x9d6   :  { %12935 = vmatprep.subr.bf16.mxu1 %v14346_v17  ;;  %v7244_v17 = vmul.f32 0.1, %v19697_v4 }
 0x9d9   :  { %12936 = vmatpush3.bf16.msra.mxu1 %v14347_v48  ;;  %v7247_v48 = vmul.f32 0.1, %v19706_v55 }
 0x9da   :  { %12937 = vmatprep.subr.bf16.mxu1 %v14348_v6  ;;  %v14375_v6 = vld [vmem:[%s21086_s3 + $0x838] sm:$0xff]  }
 0x9dd   :  { %12938 = vmatpush3.bf16.msra.mxu1 %v14349_v58  ;;  %v14376_v58 = vld [vmem:[%s21086_s3 + $0x8c0] sm:$0xff]  }
 0x9de   :  { %12939 = vmatprep.subr.bf16.mxu1 %v14350_v60  ;;  %v7293_v60 = vsel %vm7195_vm13, %v19697_v4, %v7244_v17  ;;  %v14379_v4 = vld [vmem:[%s21086_s3 + $0x888] sm:$0xff]   ;;  %vm7211_vm13 = vcmp.ge.f32.partialorder %v19478_v45, 0.0 }
 0x9e1   :  { %12940 = vmatpush3.bf16.msra.mxu1 %v14351_v0  ;;  %v7296_v0 = vsel %vm7198_vm14, %v19706_v55, %v7247_v48  ;;  %v14380_v55 = vld [vmem:[%s21086_s3 + $0x8d0] sm:$0xff]   ;;  %vm11597_vm14 = vcmp.lt.s32.totalorder %v22364_v40, 2 }
 0x9e2   :  { %12941 = vmatprep.subr.bf16.mxu1 %v14352_v2  ;;  %v14377_v2 = vld [vmem:[%s21086_s3 + $0x880] sm:$0xff]   ;;  %v14405_v48 = vld [vmem:[%s21086_s3 + $0x930] sm:$0xff]  }
 0x9e5   :  { %12942 = vmatpush3.bf16.msra.mxu1 %v14353_v7  ;;  %v7440_v7 = vpack.c.bf16 %v7293_v60, %v7293_v60  ;;  %v7248_v60 = vmul.f32 0.1, %v19709_v27 }
 0x9e6   :  { %12943 = vmatprep.subr.bf16.mxu1 %v14354_v28  ;;  %v14378_v28 = vld [vmem:[%s21086_s3 + $0x8c8] sm:$0xff]  }
 0x9e7   :  { %v12795_v22 = vpop.f32.mrb[232].mxu1 }
 0x9e8   :  { %v12796_v43 = vpop.f32.mrb[233].mxu1 }
 0x9e9   :  { %v12797_v3 = vadd.f32 %v12796_v43, %v12795_v22  ;;  %v12798_v63 = vpop.f32.mrb[234].mxu1  ;;  %12944 = vmatpush3.bf16.msra.mxu1 %v14355_v33  ;;  %v7443_v33 = vpack.c.bf16 %v7296_v0, %v7296_v0  ;;  %v14382_v22 = vld [vmem:[%s21086_s3 + $0x8d8] sm:$0xff]  }
 0x9ea   :  { %v12799_v36 = vpop.f32.mrb[235].mxu1  ;;  %12945 = vmatprep.subr.bf16.mxu1 %v14356_v56  ;;  %v14381_v56 = vld [vmem:[%s21086_s3 + $0x890] sm:$0xff]   ;;  %v14383_v43 = vld [vmem:[%s21086_s3 + $0x898] sm:$0xff]   ;;  %v14385_v63 = vld [vmem:[%s21086_s3 + $0x8a0] sm:$0xff]  }
 0x9eb   :  { %v10952_v49 = vadd.f32 %v12797_v3, %v10912_v41  ;;  %v14372_v41 = vld [vmem:[%s21086_s3 + $0x870] sm:$0xff]   ;;  %v14384_v3 = vld [vmem:[%s21086_s3 + $0x8e0] sm:$0xff]   ;;  %v14387_v36 = vld [vmem:[%s21086_s3 + $0x8a8] sm:$0xff]  }
 0x9ed   :  { %12946 = vmatpush3.bf16.msra.mxu1 %v14357_v18  ;;  %v14386_v18 = vld [vmem:[%s21086_s3 + $0x8e8] sm:$0xff]  }
 0x9ee   :  { %12947 = vmatprep.subr.bf16.mxu1 %v14358_v23  ;;  %v14388_v23 = vld [vmem:[%s21086_s3 + $0x8f0] sm:$0xff]  }
 0x9f1   :  { %12948 = vmatpush3.bf16.msra.mxu1 %v14359_v59 }
 0x9f2   :  { %12955 = vmatprep.subr.bf16.mxu1 %v14360_v61  ;;  %v14389_v61 = vld [vmem:[%s21086_s3 + $0x8b0] sm:$0xff]  }
 0x9f4   :  { %11230 = vmatmul.mubr.bf16.vlgmr.msra.gmra.mrb[4].mxu1 %v7438_v37 }
 0x9f5   :  { %12956 = vmatpush3.bf16.msra.mxu1 %v14361_v39  ;;  %11269 = vmatprep.mubr.bf16.mxu1 %v7441_v51  ;;  %v7246_v39 = vmul.f32 0.1, %v19703_v13  ;;  %v14391_v51 = vld [vmem:[%s21086_s3 + $0x8b8] sm:$0xff]  }
 0x9f6   :  { %12957 = vmatprep.subr.bf16.mxu1 %v14362_v53  ;;  %v7249_v53 = vmul.f32 0.1, %v19712_v15 }
 0x9f9   :  { %12958 = vmatpush3.bf16.msra.mxu1 %v14363_v29  ;;  %v14392_v29 = vld [vmem:[%s21086_s3 + $0x940] sm:$0xff]  }
 0x9fa   :  { %12959 = vmatprep.subr.bf16.mxu1 %v14364_v12  ;;  %v7295_v12 = vsel %vm7197_vm15, %v19703_v13, %v7246_v39  ;;  %v14395_v13 = vld [vmem:[%s21086_s3 + $0x908] sm:$0xff]   ;;  %v14421_v39 = vld [vmem:[%s21086_s3 + $0x9b0] sm:$0xff]  }
 0x9fd   :  { %12960 = vmatpush3.bf16.msra.mxu1 %v14365_v24  ;;  %v7298_v24 = vsel %vm7200_vm1, %v19712_v15, %v7249_v53  ;;  %v14396_v15 = vld [vmem:[%s21086_s3 + $0x950] sm:$0xff]   ;;  %v14422_v53 = vld [vmem:[%s21086_s3 + $0x9f8] sm:$0xff]  }
 0x9fe   :  { %12961 = vmatprep.subr.bf16.mxu1 %v14366_v54  ;;  %v14393_v54 = vld [vmem:[%s21086_s3 + $0x900] sm:$0xff]  }
 0xa01   :  { %12962 = vmatpush3.bf16.msra.mxu1 %v14367_v5  ;;  %v7442_v5 = vpack.c.bf16 %v7295_v12, %v7295_v12  ;;  %v7253_v12 = vmul.f32 0.1, %v19724_v8 }
 0xa02   :  { %12963 = vmatprep.subr.bf16.mxu1 %v14368_v42  ;;  %v14394_v42 = vld [vmem:[%s21086_s3 + $0x948] sm:$0xff]  }
 0xa05   :  { %12964 = vmatpush3.bf16.msra.mxu1 %v14369_v14  ;;  %v7445_v14 = vpack.c.bf16 %v7298_v24, %v7298_v24  ;;  %v14423_v24 = vld [vmem:[%s21086_s3 + $0x9b8] sm:$0xff]  }
 0xa06   :  { %12965 = vmatprep.subr.bf16.mxu1 %v14370_v47  ;;  %v14397_v47 = vld [vmem:[%s21086_s3 + $0x910] sm:$0xff]  }
 0xa07   :  { %v12817_v1 = vpop.f32.mrb[236].mxu1 }
 0xa08   :  { %v12818_v9 = vpop.f32.mrb[237].mxu1 }
 0xa09   :  { %v12819_v31 = vadd.f32 %v12818_v9, %v12817_v1  ;;  %v12820_v30 = vpop.f32.mrb[238].mxu1  ;;  %12966 = vmatpush3.bf16.msra.mxu1 %v14371_v25  ;;  %v14398_v25 = vld [vmem:[%s21086_s3 + $0x958] sm:$0xff]   ;;  %v14400_v1 = vld [vmem:[%s21086_s3 + $0x960] sm:$0xff]  }
 0xa0a   :  { %v12821_v46 = vpop.f32.mrb[239].mxu1  ;;  %12967 = vmatprep.subr.bf16.mxu1 %v14372_v41  ;;  %v14399_v41 = vld [vmem:[%s21086_s3 + $0x918] sm:$0xff]   ;;  %v14401_v9 = vld [vmem:[%s21086_s3 + $0x920] sm:$0xff]   ;;  %v14403_v30 = vld [vmem:[%s21086_s3 + $0x928] sm:$0xff]  }
 0xa0b   :  { %v10992_v10 = vadd.f32 %v12819_v31, %v10952_v49  ;;  %v14402_v31 = vld [vmem:[%s21086_s3 + $0x968] sm:$0xff]  }
 0xa0d   :  { %12968 = vmatpush3.bf16.msra.mxu1 %v14373_v32  ;;  %v14404_v32 = vld [vmem:[%s21086_s3 + $0x970] sm:$0xff]  }
 0xa0e   :  { %12969 = vmatprep.subr.bf16.mxu1 %v14374_v34 }
 0xa11   :  { %12970 = vmatpush3.bf16.msra.mxu1 %v14375_v6 }
 0xa12   :  { %12977 = vmatprep.subr.bf16.mxu1 %v14376_v58  ;;  %v14406_v58 = vld [vmem:[%s21086_s3 + $0x978] sm:$0xff]  }
 0xa14   :  { %11270 = vmatmul.mubr.bf16.vlgmr.msra.gmra.mrb[8].mxu1 %v7440_v7  ;;  %v14407_v7 = vld [vmem:[%s21086_s3 + $0x938] sm:$0xff]  }
 0xa15   :  { %12978 = vmatpush3.bf16.msra.mxu1 %v14377_v2  ;;  %11309 = vmatprep.mubr.bf16.mxu1 %v7443_v33  ;;  %v7251_v2 = vmul.f32 0.1, %v19718_v38  ;;  %v7297_v33 = vsel %vm7199_vm2, %v19709_v27, %v7248_v60  ;;  %v14411_v27 = vld [vmem:[%s21086_s3 + $0x988] sm:$0xff]   ;;  %v14438_v60 = vld [vmem:[%s21086_s3 + $0xa78] sm:$0xff]  }
 0xa16   :  { %12979 = vmatprep.subr.bf16.mxu1 %v14378_v28  ;;  %v14408_v28 = vld [vmem:[%s21086_s3 + $0x9c0] sm:$0xff]  }
 0xa19   :  { %12980 = vmatpush3.bf16.msra.mxu1 %v14379_v4  ;;  %v7300_v4 = vsel %vm7202_vm3, %v19718_v38, %v7251_v2  ;;  %v14412_v38 = vld [vmem:[%s21086_s3 + $0x9d0] sm:$0xff]  }
 0xa1a   :  { %12981 = vmatprep.subr.bf16.mxu1 %v14380_v55  ;;  %v14409_v55 = vld [vmem:[%s21086_s3 + $0x980] sm:$0xff]  }
 0xa1d   :  { %12982 = vmatpush3.bf16.msra.mxu1 %v14381_v56  ;;  %v7444_v56 = vpack.c.bf16 %v7297_v33, %v7297_v33  ;;  %v14440_v33 = vld [vmem:[%s21086_s3 + $0xac0] sm:$0xff]  }
 0xa1e   :  { %12983 = vmatprep.subr.bf16.mxu1 %v14382_v22  ;;  %v14410_v22 = vld [vmem:[%s21086_s3 + $0x9c8] sm:$0xff]  }
 0xa21   :  { %12984 = vmatpush3.bf16.msra.mxu1 %v14383_v43  ;;  %v7447_v43 = vpack.c.bf16 %v7300_v4, %v7300_v4 }
 0xa22   :  { %12985 = vmatprep.subr.bf16.mxu1 %v14384_v3  ;;  %v14413_v3 = vld [vmem:[%s21086_s3 + $0x990] sm:$0xff]  }
 0xa25   :  { %12986 = vmatpush3.bf16.msra.mxu1 %v14385_v63  ;;  %v14414_v63 = vld [vmem:[%s21086_s3 + $0x9d8] sm:$0xff]  }
 0xa26   :  { %12987 = vmatprep.subr.bf16.mxu1 %v14386_v18  ;;  %v14415_v18 = vld [vmem:[%s21086_s3 + $0x998] sm:$0xff]  }
 0xa27   :  { %v12839_v62 = vpop.f32.mrb[240].mxu1 }
 0xa28   :  { %v12840_v49 = vpop.f32.mrb[241].mxu1 }
 0xa29   :  { %v12841_v35 = vadd.f32 %v12840_v49, %v12839_v62  ;;  %v12842_v59 = vpop.f32.mrb[242].mxu1  ;;  %12988 = vmatpush3.bf16.msra.mxu1 %v14387_v36  ;;  %v14416_v36 = vld [vmem:[%s21086_s3 + $0x9e0] sm:$0xff]   ;;  %v14418_v62 = vld [vmem:[%s21086_s3 + $0x9e8] sm:$0xff]  }
 0xa2a   :  { %v12843_v57 = vpop.f32.mrb[243].mxu1  ;;  %12989 = vmatprep.subr.bf16.mxu1 %v14388_v23  ;;  %v14417_v23 = vld [vmem:[%s21086_s3 + $0x9a0] sm:$0xff]   ;;  %v14419_v49 = vld [vmem:[%s21086_s3 + $0x9a8] sm:$0xff]  }
 0xa2b   :  { %v11032_v37 = vadd.f32 %v12841_v35, %v10992_v10  ;;  %v14420_v35 = vld [vmem:[%s21086_s3 + $0x9f0] sm:$0xff]  }
 0xa2d   :  { %12990 = vmatpush3.bf16.msra.mxu1 %v14389_v61 }
 0xa2e   :  { %12991 = vmatprep.subr.bf16.mxu1 %v14390_v20 }
 0xa31   :  { %12992 = vmatpush3.bf16.msra.mxu1 %v14391_v51  ;;  %v7250_v51 = vmul.f32 0.1, %v19715_v50 }
 0xa32   :  { %12999 = vmatprep.subr.bf16.mxu1 %v14392_v29 }
 0xa34   :  { %11310 = vmatmul.mubr.bf16.vlgmr.msra.gmra.mrb[12].mxu1 %v7442_v5  ;;  %v7299_v5 = vsel %vm7201_vm4, %v19715_v50, %v7250_v51  ;;  %v14427_v50 = vld [vmem:[%s21086_s3 + $0xa08] sm:$0xff]   ;;  %v7254_v51 = vmul.f32 0.1, %v19727_v16 }
 0xa35   :  { %13000 = vmatpush3.bf16.msra.mxu1 %v14393_v54  ;;  %11349 = vmatprep.mubr.bf16.mxu1 %v7445_v14  ;;  %v14424_v54 = vld [vmem:[%s21086_s3 + $0xa40] sm:$0xff]  }
 0xa36   :  { %13001 = vmatprep.subr.bf16.mxu1 %v14394_v42  ;;  %v7302_v42 = vsel %vm7204_vm5, %v19724_v8, %v7253_v12  ;;  %v14425_v14 = vld [vmem:[%s21086_s3 + $0xa00] sm:$0xff]   ;;  %v14428_v8 = vld [vmem:[%s21086_s3 + $0xa50] sm:$0xff]   ;;  %v7257_v12 = vmul.f32 0.1, %v19737_v19 }
 0xa39   :  { %13002 = vmatpush3.bf16.msra.mxu1 %v14395_v13  ;;  %v7446_v13 = vpack.c.bf16 %v7299_v5, %v7299_v5  ;;  %v7303_v5 = vsel %vm7205_vm8, %v19727_v16, %v7254_v51  ;;  %v14459_v16 = vld [vmem:[%s21086_s3 + $0xb08] sm:$0xff]   ;;  %v14487_v51 = vld [vmem:[%s21086_s3 + $0xbb8] sm:$0xff]  }
 0xa3a   :  { %13003 = vmatprep.subr.bf16.mxu1 %v14396_v15  ;;  %v14426_v15 = vld [vmem:[%s21086_s3 + $0xa48] sm:$0xff]  }
 0xa3d   :  { %13004 = vmatpush3.bf16.msra.mxu1 %v14397_v47  ;;  %v7449_v47 = vpack.c.bf16 %v7302_v42, %v7302_v42  ;;  %v7306_v42 = vsel %vm7208_vm9, %v19737_v19, %v7257_v12  ;;  %v14460_v19 = vld [vmem:[%s21086_s3 + $0xb50] sm:$0xff]   ;;  %v14488_v12 = vld [vmem:[%s21086_s3 + $0xc00] sm:$0xff]  }
 0xa3e   :  { %13005 = vmatprep.subr.bf16.mxu1 %v14398_v25  ;;  %v14429_v25 = vld [vmem:[%s21086_s3 + $0xa10] sm:$0xff]  }
 0xa41   :  { %13006 = vmatpush3.bf16.msra.mxu1 %v14399_v41  ;;  %v14430_v41 = vld [vmem:[%s21086_s3 + $0xa58] sm:$0xff]  }
 0xa42   :  { %13007 = vmatprep.subr.bf16.mxu1 %v14400_v1  ;;  %v14431_v1 = vld [vmem:[%s21086_s3 + $0xa18] sm:$0xff]  }
 0xa45   :  { %13008 = vmatpush3.bf16.msra.mxu1 %v14401_v9  ;;  %v14432_v9 = vld [vmem:[%s21086_s3 + $0xa60] sm:$0xff]  }
 0xa46   :  { %13009 = vmatprep.subr.bf16.mxu1 %v14402_v31  ;;  %v14433_v31 = vld [vmem:[%s21086_s3 + $0xa20] sm:$0xff]  }
 0xa47   :  { %v12861_v46 = vpop.f32.mrb[244].mxu1 }
 0xa48   :  { %v12862_v34 = vpop.f32.mrb[245].mxu1 }
 0xa49   :  { %v12863_v17 = vadd.f32 %v12862_v34, %v12861_v46  ;;  %v12864_v10 = vpop.f32.mrb[246].mxu1  ;;  %13010 = vmatpush3.bf16.msra.mxu1 %v14403_v30  ;;  %v14434_v30 = vld [vmem:[%s21086_s3 + $0xa68] sm:$0xff]   ;;  %v14436_v46 = vld [vmem:[%s21086_s3 + $0xa70] sm:$0xff]  }
 0xa4a   :  { %v12865_v6 = vpop.f32.mrb[247].mxu1  ;;  %13011 = vmatprep.subr.bf16.mxu1 %v14404_v32  ;;  %v14435_v32 = vld [vmem:[%s21086_s3 + $0xa28] sm:$0xff]  }
 0xa4b   :  { %v11072_v0 = vadd.f32 %v12863_v17, %v11032_v37  ;;  %v14437_v6 = vld [vmem:[%s21086_s3 + $0xa30] sm:$0xff]  }
 0xa4d   :  { %13012 = vmatpush3.bf16.msra.mxu1 %v14405_v48 }
 0xa4e   :  { %13013 = vmatprep.subr.bf16.mxu1 %v14406_v58 }
 0xa51   :  { %13014 = vmatpush3.bf16.msra.mxu1 %v14407_v7  ;;  %v7255_v7 = vmul.f32 0.1, %v19730_v44 }
 0xa52   :  { %13021 = vmatprep.subr.bf16.mxu1 %v14408_v28  ;;  %v14439_v28 = vld [vmem:[%s21086_s3 + $0xa38] sm:$0xff]  }
 0xa54   :  { %11350 = vmatmul.mubr.bf16.vlgmr.msra.gmra.mrb[16].mxu1 %v7444_v56  ;;  %v14441_v56 = vld [vmem:[%s21086_s3 + $0xa80] sm:$0xff]  }
 0xa55   :  { %13022 = vmatpush3.bf16.msra.mxu1 %v14409_v55  ;;  %11389 = vmatprep.mubr.bf16.mxu1 %v7447_v43  ;;  %v7304_v55 = vsel %vm7206_vm6, %v19730_v44, %v7255_v7  ;;  %v14442_v43 = vld [vmem:[%s21086_s3 + $0xac8] sm:$0xff]   ;;  %v14444_v44 = vld [vmem:[%s21086_s3 + $0xad0] sm:$0xff]   ;;  %v14472_v7 = vld [vmem:[%s21086_s3 + $0xbc0] sm:$0xff]  }
 0xa56   :  { %13023 = vmatprep.subr.bf16.mxu1 %v14410_v22 }
 0xa59   :  { %13024 = vmatpush3.bf16.msra.mxu1 %v14411_v27  ;;  %v22375_v27 = vmov 0.0  }
 0xa5a   :  { %13025 = vmatprep.subr.bf16.mxu1 %v14412_v38  ;;  %13185 = vmatprep.mubr.msk.bf16.mxu0 %vm14652_vm7, %v22375_v27  ;;  %v7451_v38 = vpack.c.bf16 %v7304_v55, %v7304_v55  ;;  %v14473_v55 = vld [vmem:[%s21086_s3 + $0xb80] sm:$0xff]  }
 0xa5d   :  { %13026 = vmatpush3.bf16.msra.mxu1 %v14413_v3  ;;  %v14445_v3 = vld [vmem:[%s21086_s3 + $0xa90] sm:$0xff]  }
 0xa5e   :  { %13027 = vmatprep.subr.bf16.mxu1 %v14414_v63  ;;  %v14446_v63 = vld [vmem:[%s21086_s3 + $0xad8] sm:$0xff]  }
 0xa61   :  { %13028 = vmatpush3.bf16.msra.mxu1 %v14415_v18  ;;  %v14447_v18 = vld [vmem:[%s21086_s3 + $0xa98] sm:$0xff]  }
 0xa62   :  { %13029 = vmatprep.subr.bf16.mxu1 %v14416_v36  ;;  %v14448_v36 = vld [vmem:[%s21086_s3 + $0xae0] sm:$0xff]  }
 0xa65   :  { %13030 = vmatpush3.bf16.msra.mxu1 %v14417_v23  ;;  %v14449_v23 = vld [vmem:[%s21086_s3 + $0xaa0] sm:$0xff]  }
 0xa66   :  { %13031 = vmatprep.subr.bf16.mxu1 %v14418_v62  ;;  %v14450_v62 = vld [vmem:[%s21086_s3 + $0xae8] sm:$0xff]  }
 0xa67   :  { %v12883_v59 = vpop.f32.mrb[248].mxu1 }
 0xa68   :  { %v12884_v61 = vpop.f32.mrb[249].mxu1 }
 0xa69   :  { %v12885_v57 = vadd.f32 %v12884_v61, %v12883_v59  ;;  %v12886_v20 = vpop.f32.mrb[250].mxu1  ;;  %13032 = vmatpush3.bf16.msra.mxu1 %v14419_v49  ;;  %v14451_v49 = vld [vmem:[%s21086_s3 + $0xaa8] sm:$0xff]  }
 0xa6a   :  { %v12887_v37 = vpop.f32.mrb[251].mxu1  ;;  %13033 = vmatprep.subr.bf16.mxu1 %v14420_v35  ;;  %v14452_v35 = vld [vmem:[%s21086_s3 + $0xaf0] sm:$0xff]  }
 0xa6b   :  { %v11112_v29 = vadd.f32 %v12885_v57, %v11072_v0  ;;  %v7252_v0 = vmul.f32 0.1, %v19721_v11 }
 0xa6d   :  { %13034 = vmatpush3.bf16.msra.mxu1 %v14421_v39  ;;  %v7301_v4 = vsel %vm7203_vm0, %v19721_v11, %v7252_v0  ;;  %v14443_v11 = vld [vmem:[%s21086_s3 + $0xa88] sm:$0xff]   ;;  %v14453_v39 = vld [vmem:[%s21086_s3 + $0xab0] sm:$0xff]   ;;  %v14471_v0 = vld [vmem:[%s21086_s3 + $0xb38] sm:$0xff]  }
 0xa6e   :  { %13035 = vmatprep.subr.bf16.mxu1 %v14422_v53  ;;  %v7448_v22 = vpack.c.bf16 %v7301_v4, %v7301_v4  ;;  %v14454_v53 = vld [vmem:[%s21086_s3 + $0xaf8] sm:$0xff]  }
 0xa71   :  { %13036 = vmatpush3.bf16.msra.mxu1 %v14423_v24  ;;  %v14455_v24 = vld [vmem:[%s21086_s3 + $0xab8] sm:$0xff]  }
 0xa72   :  { %13043 = vmatprep.subr.bf16.mxu1 %v14424_v54  ;;  %v14456_v54 = vld [vmem:[%s21086_s3 + $0xb40] sm:$0xff]  }
 0xa74   :  { %11390 = vmatmul.mubr.bf16.vlgmr.msra.gmra.mrb[20].mxu1 %v7446_v13  ;;  %v7450_v13 = vpack.c.bf16 %v7303_v5, %v7303_v5  ;;  %v14491_v5 = vld [vmem:[%s21086_s3 + $0xc18] sm:$0xff]  }
 0xa75   :  { %13044 = vmatpush3.bf16.msra.mxu1 %v14425_v14  ;;  %11429 = vmatprep.mubr.bf16.mxu1 %v7449_v47  ;;  %v14457_v14 = vld [vmem:[%s21086_s3 + $0xb00] sm:$0xff]   ;;  %v7453_v47 = vpack.c.bf16 %v7306_v42, %v7306_v42 }
 0xa76   :  { %13045 = vmatprep.subr.bf16.mxu1 %v14426_v15  ;;  %v14458_v15 = vld [vmem:[%s21086_s3 + $0xb48] sm:$0xff]   ;;  %v14492_v42 = vld [vmem:[%s21086_s3 + $0xc20] sm:$0xff]  }
 0xa79   :  { %13046 = vmatpush3.bf16.msra.mxu1 %v14427_v50  ;;  %v14461_v50 = vld [vmem:[%s21086_s3 + $0xb10] sm:$0xff]  }
 0xa7a   :  { %13047 = vmatprep.subr.bf16.mxu1 %v14428_v8  ;;  %v14462_v8 = vld [vmem:[%s21086_s3 + $0xb58] sm:$0xff]  }
 0xa7d   :  { %13048 = vmatpush3.bf16.msra.mxu1 %v14429_v25  ;;  %v14463_v25 = vld [vmem:[%s21086_s3 + $0xb18] sm:$0xff]  }
 0xa7e   :  { %13049 = vmatprep.subr.bf16.mxu1 %v14430_v41  ;;  %v14464_v41 = vld [vmem:[%s21086_s3 + $0xb60] sm:$0xff]  }
 0xa81   :  { %13050 = vmatpush3.bf16.msra.mxu1 %v14431_v1  ;;  %v14465_v1 = vld [vmem:[%s21086_s3 + $0xb20] sm:$0xff]  }
 0xa82   :  { %13051 = vmatprep.subr.bf16.mxu1 %v14432_v9  ;;  %v14466_v9 = vld [vmem:[%s21086_s3 + $0xb68] sm:$0xff]  }
 0xa85   :  { %13052 = vmatpush3.bf16.msra.mxu1 %v14433_v31  ;;  %v14467_v31 = vld [vmem:[%s21086_s3 + $0xb28] sm:$0xff]  }
 0xa86   :  { %13053 = vmatprep.subr.bf16.mxu1 %v14434_v30  ;;  %v14468_v30 = vld [vmem:[%s21086_s3 + $0xb70] sm:$0xff]  }
 0xa87   :  { %v12905_v34 = vpop.f32.mrb[252].mxu1 }
 0xa88   :  { %v12906_v17 = vpop.f32.mrb[253].mxu1 }
 0xa89   :  { %v12907_v10 = vadd.f32 %v12906_v17, %v12905_v34  ;;  %v12908_v48 = vpop.f32.mrb[254].mxu1  ;;  %13054 = vmatpush3.bf16.msra.mxu1 %v14435_v32 }
 0xa8a   :  { %v12909_v58 = vpop.f32.mrb[255].mxu1  ;;  %13055 = vmatprep.subr.bf16.mxu1 %v14436_v46 }
 0xa8b   :  { %v11152_v2 = vadd.f32 %v12907_v10, %v11112_v29  ;;  %v14469_v10 = vld [vmem:[%s21086_s3 + $0xb30] sm:$0xff]   ;;  %v7256_v58 = vmul.f32 0.1, %v19733_v52 }
 0xa8d   :  { %13056 = vmatpush3.bf16.msra.mxu1 %v14437_v6  ;;  %v14470_v6 = vld [vmem:[%s21086_s3 + $0xb78] sm:$0xff]  }
 0xa8e   :  { %13057 = vmatprep.subr.bf16.mxu1 %v14438_v60 }
 0xa91   :  { %13058 = vmatpush3.bf16.msra.mxu1 %v14439_v28  ;;  %v14496_v28 = vld [vmem:[%s21087_s4] sm:$0xff]  }
 0xa92   :  { %13065 = vmatprep.subr.bf16.mxu1 %v14440_v33  ;;  %13170 = vmatpush3.bf16.msra.mxu0 %v14496_v28  ;;  %v7305_v33 = vsel %vm7207_vm10, %v19733_v52, %v7256_v58  ;;  %v14475_v52 = vld [vmem:[%s21086_s3 + $0xb88] sm:$0xff]  }
 0xa93   :  { %13171 = vmatprep.subr.bf16.mxu0 %v22375_v27 }
 0xa94   :  { %11430 = vmatmul.mubr.bf16.vlgmr.msra.gmra.mrb[24].mxu1 %v7448_v22  ;;  %v14474_v22 = vld [vmem:[%s21086_s3 + $0xbc8] sm:$0xff]  }
 0xa95   :  { %13066 = vmatpush3.bf16.msra.mxu1 %v14441_v56  ;;  %11469 = vmatprep.mubr.bf16.mxu1 %v7451_v38  ;;  %v7452_v56 = vpack.c.bf16 %v7305_v33, %v7305_v33  ;;  %v14477_v38 = vld [vmem:[%s21086_s3 + $0xb90] sm:$0xff]  }
 0xa96   :  { %13067 = vmatprep.subr.bf16.mxu1 %v14442_v43 }
 0xa99   :  { %13068 = vmatpush3.bf16.msra.mxu1 %v14443_v11  ;;  %v14478_v11 = vld [vmem:[%s21086_s3 + $0xbd8] sm:$0xff]  }
 0xa9a   :  { %13069 = vmatprep.subr.bf16.mxu1 %v14444_v44  ;;  %v14479_v44 = vld [vmem:[%s21086_s3 + $0xb98] sm:$0xff]  }
 0xa9d   :  { %13070 = vmatpush3.bf16.msra.mxu1 %v14445_v3  ;;  %v14480_v3 = vld [vmem:[%s21086_s3 + $0xbe0] sm:$0xff]  }
 0xa9e   :  { %13071 = vmatprep.subr.bf16.mxu1 %v14446_v63  ;;  %v14481_v63 = vld [vmem:[%s21086_s3 + $0xba0] sm:$0xff]  }
 0xaa1   :  { %13072 = vmatpush3.bf16.msra.mxu1 %v14447_v18  ;;  %v14482_v18 = vld [vmem:[%s21086_s3 + $0xbe8] sm:$0xff]  }
 0xaa2   :  { %13073 = vmatprep.subr.bf16.mxu1 %v14448_v36  ;;  %v14483_v36 = vld [vmem:[%s21086_s3 + $0xba8] sm:$0xff]  }
 0xaa5   :  { %13074 = vmatpush3.bf16.msra.mxu1 %v14449_v23  ;;  %v14484_v23 = vld [vmem:[%s21086_s3 + $0xbf0] sm:$0xff]  }
 0xaa6   :  { %13075 = vmatprep.subr.bf16.mxu1 %v14450_v62 }
 0xaa7   :  { %v12927_v59 = vpop.f32.mrb[0].mxu1 }
 0xaa8   :  { %v12928_v61 = vpop.f32.mrb[1].mxu1 }
 0xaa9   :  { %v12929_v57 = vadd.f32 %v12928_v61, %v12927_v59  ;;  %v12930_v20 = vpop.f32.mrb[2].mxu1  ;;  %13076 = vmatpush3.bf16.msra.mxu1 %v14451_v49  ;;  %v14485_v61 = vld [vmem:[%s21086_s3 + $0xbb0] sm:$0xff]  }
 0xaaa   :  { %v12931_v37 = vpop.f32.mrb[3].mxu1  ;;  %13077 = vmatprep.subr.bf16.mxu1 %v14452_v35  ;;  %v14486_v20 = vld [vmem:[%s21086_s3 + $0xbf8] sm:$0xff]  }
 0xaab   :  { %v11192_v29 = vadd.f32 %v12929_v57, %v11152_v2  ;;  %v7259_v2 = vmul.f32 0.1, %v19743_v21 }
 0xaad   :  { %13078 = vmatpush3.bf16.msra.mxu1 %v14453_v39  ;;  %v7308_v4 = vsel %vm7210_vm11, %v19743_v21, %v7259_v2  ;;  %v14476_v21 = vld [vmem:[%s21086_s3 + $0xbd0] sm:$0xff]   ;;  %v7258_v39 = vmul.f32 0.1, %v19740_v26 }
 0xaae   :  { %13079 = vmatprep.subr.bf16.mxu1 %v14454_v53  ;;  %v7455_v43 = vpack.c.bf16 %v7308_v4, %v7308_v4  ;;  %v14497_v53 = vld [vmem:[%s21087_s4 + $0x8] sm:$0xff]  }
 0xaaf   :  { %13172 = vmatpush3.bf16.msra.mxu0 %v14497_v53 }
 0xab0   :  { %13173 = vmatprep.subr.bf16.mxu0 %v22375_v27 }
 0xab1   :  { %13080 = vmatpush3.bf16.msra.mxu1 %v14455_v24 }
 0xab2   :  { %13087 = vmatprep.subr.bf16.mxu1 %v14456_v54  ;;  %v14489_v54 = vld [vmem:[%s21086_s3 + $0xc08] sm:$0xff]  }
 0xab4   :  { %11470 = vmatmul.mubr.bf16.vlgmr.msra.gmra.mrb[28].mxu1 %v7450_v13 }
 0xab5   :  { %13088 = vmatpush3.bf16.msra.mxu1 %v14457_v14  ;;  %11509 = vmatprep.mubr.bf16.mxu1 %v7453_v47  ;;  %v14493_v14 = vld [vmem:[%s21086_s3 + $0xc28] sm:$0xff]  }
 0xab6   :  { %13089 = vmatprep.subr.bf16.mxu1 %v14458_v15 }
 0xab9   :  { %13090 = vmatpush3.bf16.msra.mxu1 %v14459_v16 }
 0xaba   :  { %13091 = vmatprep.subr.bf16.mxu1 %v14460_v19  ;;  %v14494_v19 = vld [vmem:[%s21086_s3 + $0xc30] sm:$0xff]  }
 0xabd   :  { %13092 = vmatpush3.bf16.msra.mxu1 %v14461_v50 }
 0xabe   :  { %13093 = vmatprep.subr.bf16.mxu1 %v14462_v8  ;;  %v7260_v8 = vmul.f32 0.1, %v19478_v45 }
 0xac1   :  { %13094 = vmatpush3.bf16.msra.mxu1 %v14463_v25 }
 0xac2   :  { %13095 = vmatprep.subr.bf16.mxu1 %v14464_v41  ;;  %v14498_v41 = vld [vmem:[%s21087_s4 + $0x10] sm:$0xff]  }
 0xac3   :  { %13174 = vmatpush3.bf16.msra.mxu0 %v14498_v41 }
 0xac4   :  { %13175 = vmatprep.subr.bf16.mxu0 %v22375_v27 }
 0xac5   :  { %13096 = vmatpush3.bf16.msra.mxu1 %v14465_v1  ;;  %v14495_v1 = vld [vmem:[%s21086_s3 + $0xc38] sm:$0xff]  }
 0xac6   :  { %13097 = vmatprep.subr.bf16.mxu1 %v14466_v9  ;;  %v7309_v9 = vsel %vm7211_vm13, %v19478_v45, %v7260_v8 }
 0xac7   :  { %v12949_v32 = vpop.f32.mrb[4].mxu1 }
 0xac8   :  { %v12950_v46 = vpop.f32.mrb[5].mxu1 }
 0xac9   :  { %v12951_v34 = vadd.f32 %v12950_v46, %v12949_v32  ;;  %v12952_v17 = vpop.f32.mrb[6].mxu1  ;;  %13098 = vmatpush3.bf16.msra.mxu1 %v14467_v31  ;;  %v7456_v31 = vpack.c.bf16 %v7309_v9, %v7309_v9 }
 0xaca   :  { %v12953_v48 = vpop.f32.mrb[7].mxu1  ;;  %13099 = vmatprep.subr.bf16.mxu1 %v14468_v30 }
 0xacb   :  { %v11232_v60 = vadd.f32 %v12951_v34, %v11192_v29  ;;  %v7307_v29 = vsel %vm7209_vm12, %v19740_v26, %v7258_v39  ;;  %v14490_v26 = vld [vmem:[%s21086_s3 + $0xc10] sm:$0xff]   ;;  %v14499_v48 = vld [vmem:[%s21087_s4 + $0x18] sm:$0xff]  }
 0xacc   :  { %v7454_v24 = vpack.c.bf16 %v7307_v29, %v7307_v29  ;;  %13176 = vmatpush3.bf16.msra.mxu0 %v14499_v48  ;;  %v12594_v29 = vsel %vm11597_vm14, 1.0, %v22375_v27 }
 0xacd   :  { %13100 = vmatpush3.bf16.msra.mxu1 %v14469_v10  ;;  %13177 = vmatprep.subr.bf16.mxu0 %v22375_v27 }
 0xace   :  { %13101 = vmatprep.subr.bf16.mxu1 %v14470_v6  ;;  %v14500_v6 = vld [vmem:[%s21087_s4 + $0x20] sm:$0xff]  }
 0xad0   :  { %13178 = vmatpush3.bf16.msra.mxu0 %v14500_v6 }
 0xad1   :  { %13102 = vmatpush3.bf16.msra.mxu1 %v14471_v0  ;;  %13179 = vmatprep.subr.bf16.mxu0 %v22375_v27 }
 0xad2   :  { %13109 = vmatprep.subr.bf16.mxu1 %v14472_v7  ;;  %v14501_v7 = vld [vmem:[%s21087_s4 + $0x28] sm:$0xff]  }
 0xad4   :  { %11510 = vmatmul.mubr.bf16.vlgmr.msra.gmra.mrb[32].mxu1 %v7452_v56  ;;  %13180 = vmatpush3.bf16.msra.mxu0 %v14501_v7 }
 0xad5   :  { %13110 = vmatpush3.bf16.msra.mxu1 %v14473_v55  ;;  %11549 = vmatprep.mubr.bf16.mxu1 %v7455_v43 }
 0xad6   :  { %13111 = vmatprep.subr.bf16.mxu1 %v14474_v22  ;;  %13181 = vmatprep.subr.bf16.mxu0 %v22375_v27 }
 0xad9   :  { %13112 = vmatpush3.bf16.msra.mxu1 %v14475_v52 }
 0xada   :  { %13113 = vmatprep.subr.bf16.mxu1 %v14476_v21 }
 0xadd   :  { %13114 = vmatpush3.bf16.msra.mxu1 %v14477_v38 }
 0xade   :  { %13115 = vmatprep.subr.bf16.mxu1 %v14478_v11 }
 0xae1   :  { %13116 = vmatpush3.bf16.msra.mxu1 %v14479_v44 }
 0xae2   :  { %13117 = vmatprep.subr.bf16.mxu1 %v14480_v3 }
 0xae5   :  { %13118 = vmatpush3.bf16.msra.mxu1 %v14481_v63  ;;  %v14502_v63 = vld [vmem:[%s21087_s4 + $0x30] sm:$0xff]  }
 0xae6   :  { %13119 = vmatprep.subr.bf16.mxu1 %v14482_v18  ;;  %13182 = vmatpush3.bf16.msra.mxu0 %v14502_v63  ;;  %v14503_v18 = vld [vmem:[%s21087_s4 + $0x38] sm:$0xff]  }
 0xae7   :  { %v12971_v62 = vpop.f32.mrb[8].mxu1  ;;  %13183 = vmatprep.subr.bf16.mxu0 %v22375_v27 }
 0xae8   :  { %v12972_v49 = vpop.f32.mrb[9].mxu1 }
 0xae9   :  { %v12973_v35 = vadd.f32 %v12972_v49, %v12971_v62  ;;  %v12974_v59 = vpop.f32.mrb[10].mxu1  ;;  %13120 = vmatpush3.bf16.msra.mxu1 %v14483_v36 }
 0xaea   :  { %v12975_v57 = vpop.f32.mrb[11].mxu1  ;;  %13121 = vmatprep.subr.bf16.mxu1 %v14484_v23  ;;  %13184 = vmatpush3.bf16.msra.mxu0 %v14503_v18 }
 0xaeb   :  { %v11272_v37 = vadd.f32 %v12973_v35, %v11232_v60 }
 0xaed   :  { %13122 = vmatpush3.bf16.msra.mxu1 %v14485_v61 }
 0xaee   :  { %13123 = vmatprep.subr.bf16.mxu1 %v14486_v20 }
 0xaf1   :  { %13124 = vmatpush3.bf16.msra.mxu1 %v14487_v51 }
 0xaf2   :  { %13149 = vmatprep.subr.bf16.mxu1 %v22375_v27 }
 0xaf4   :  { %11550 = vmatmul.mubr.bf16.vlgmr.msra.gmra.mrb[36].mxu1 %v7454_v24 }
 0xaf5   :  { %13150 = vmatpush3.bf16.msra.mxu1 %v14488_v12  ;;  %13165 = vmatprep.mubr.msk.bf16.mxu1 %vm14652_vm7, %v22375_v27 }
 0xaf6   :  { %13151 = vmatprep.subr.bf16.mxu1 %v22375_v27 }
 0xaf9   :  { %13152 = vmatpush3.bf16.msra.mxu1 %v14489_v54 }
 0xafa   :  { %13153 = vmatprep.subr.bf16.mxu1 %v22375_v27 }
 0xafd   :  { %13154 = vmatpush3.bf16.msra.mxu1 %v14490_v26 }
 0xafe   :  { %13155 = vmatprep.subr.bf16.mxu1 %v22375_v27 }
 0xb01   :  { %13156 = vmatpush3.bf16.msra.mxu1 %v14491_v5 }
 0xb02   :  { %13157 = vmatprep.subr.bf16.mxu1 %v22375_v27 }
 0xb05   :  { %13158 = vmatpush3.bf16.msra.mxu1 %v14492_v42 }
 0xb06   :  { %13159 = vmatprep.subr.bf16.mxu1 %v22375_v27 }
 0xb07   :  { %v12993_v13 = vpop.f32.mrb[12].mxu1 }
 0xb08   :  { %v12994_v15 = vpop.f32.mrb[13].mxu1 }
 0xb09   :  { %v12995_v47 = vadd.f32 %v12994_v15, %v12993_v13  ;;  %v12996_v16 = vpop.f32.mrb[14].mxu1  ;;  %13160 = vmatpush3.bf16.msra.mxu1 %v14493_v14 }
 0xb0a   :  { %v12997_v50 = vpop.f32.mrb[15].mxu1  ;;  %13161 = vmatprep.subr.bf16.mxu1 %v22375_v27 }
 0xb0b   :  { %v11312_v25 = vadd.f32 %v12995_v47, %v11272_v37 }
 0xb0d   :  { %13162 = vmatpush3.bf16.msra.mxu1 %v14494_v19 }
 0xb0e   :  { %13163 = vmatprep.subr.bf16.mxu1 %v22375_v27 }
 0xb11   :  { %13164 = vmatpush3.bf16.msra.mxu1 %v14495_v1 }
 0xb14   :  { %13166 = vmatmul.mubr.bf16.vlgmr.msra.gmra.mrb[40].mxu1 %v7456_v31 }
 0xb27   :  { %v13015_v30 = vpop.f32.mrb[16].mxu1 }
 0xb28   :  { %v13016_v32 = vpop.f32.mrb[17].mxu1 }
 0xb29   :  { %v13017_v46 = vadd.f32 %v13016_v32, %v13015_v30  ;;  %v13018_v34 = vpop.f32.mrb[18].mxu1 }
 0xb2a   :  { %v13019_v17 = vpop.f32.mrb[19].mxu1  ;;  %v11624_v34 = vsub.s32 4, %v22364_v40 }
 0xb2b   :  { %v11352_v10 = vadd.f32 %v13017_v46, %v11312_v25  ;;  %v11629_v17 = vsub.s32 5, %v22364_v40 }
 0xb47   :  { %v13037_v45 = vpop.f32.mrb[20].mxu1 }
 0xb48   :  { %v13038_v58 = vpop.f32.mrb[21].mxu1 }
 0xb49   :  { %v13039_v60 = vadd.f32 %v13038_v58, %v13037_v45  ;;  %v13040_v0 = vpop.f32.mrb[22].mxu1 }
 0xb4a   :  { %v13041_v2 = vpop.f32.mrb[23].mxu1 }
 0xb4b   :  { %v11392_v28 = vadd.f32 %v13039_v60, %v11352_v10  ;;  %v14649_v10 = vld [vmem:[%s21085_s5] sm:$0xff] }
 0xb4c   :  { %v11625_v48 = vrot.slane %v14649_v10, %v11624_v34  ;;  %v11630_v58 = vrot.slane %v14649_v10, %v11629_v17 }
 0xb67   :  { %v13059_v33 = vpop.f32.mrb[24].mxu1 }
 0xb68   :  { %v13060_v4 = vpop.f32.mrb[25].mxu1 }
 0xb69   :  { %v13061_v55 = vadd.f32 %v13060_v4, %v13059_v33  ;;  %v13062_v56 = vpop.f32.mrb[26].mxu1  ;;  %v11654_v33 = vsub.s32 6, %v22364_v40  ;;  %v22376_v4 = vlaneseq }
 0xb6a   :  { %v13063_v22 = vpop.f32.mrb[27].mxu1 }
 0xb6b   :  { %v11432_v43 = vadd.f32 %v13061_v55, %v11392_v28  ;;  %v11745_v55 = vand.u32 127, %v22376_v4  ;;  %v11655_v56 = vrot.slane %v14649_v10, %v11654_v33 }
 0xb6d   :  { %vm11746_vm1 = vcmp.ge.s32.totalorder %v11745_v55, 2  ;;  %vm11747_vm2 = vcmp.lt.s32.totalorder %v11745_v55, 12  ;;  %vm11770_vm4 = vcmp.eq.s32.totalorder %v11745_v55, 0 }
 0xb6e   :  { %vm21069_vm3 = vmand %vm11746_vm1, %vm11747_vm2 }
 0xb87   :  { %v13081_v52 = vpop.f32.mrb[28].mxu1 }
 0xb88   :  { %v13082_v21 = vpop.f32.mrb[29].mxu1 }
 0xb89   :  { %v13083_v38 = vadd.f32 %v13082_v21, %v13081_v52  ;;  %v13084_v11 = vpop.f32.mrb[30].mxu1 }
 0xb8a   :  { %v13085_v44 = vpop.f32.mrb[31].mxu1 }
 0xb8b   :  { %v11472_v3 = vadd.f32 %v13083_v38, %v11432_v43 }
 0xba7   :  { %v13103_v36 = vpop.f32.mrb[32].mxu1 }
 0xba8   :  { %v13104_v23 = vpop.f32.mrb[33].mxu1 }
 0xba9   :  { %v13105_v62 = vadd.f32 %v13104_v23, %v13103_v36  ;;  %v13106_v49 = vpop.f32.mrb[34].mxu1 }
 0xbaa   :  { %v13107_v35 = vpop.f32.mrb[35].mxu1 }
 0xbab   :  { %v11512_v59 = vadd.f32 %v13105_v62, %v11472_v3 }
 0xbc7   :  { %v13125_v61 = vpop.f32.mrb[36].mxu1 }
 0xbc8   :  { %v13126_v57 = vpop.f32.mrb[37].mxu1 }
 0xbc9   :  { %v13127_v20 = vadd.f32 %v13126_v57, %v13125_v61  ;;  %v13128_v39 = vpop.f32.mrb[38].mxu1 }
 0xbca   :  { %v13129_v37 = vpop.f32.mrb[39].mxu1 }
 0xbcb   :  { %v11552_v53 = vadd.f32 %v13127_v20, %v11512_v59 }
 0xbe7   :  { %v11591_v51 = vpop.f32.mrb[40].mxu1 }
 0xbe8   :  { %v11592_v12 = vadd.f32 %v11591_v51, %v11552_v53  ;;  %v13167_v24 = vpop.f32.mrb[41].mxu1 }
 0xbe9   :  { %v11594_v54 = vpop.f32.mrb[42].mxu1 }
 0xbea   :  { %v11600_v26 = vmul.f32 %v12594_v29, %v11592_v12  ;;  %v13168_v5 = vpop.f32.mrb[43].mxu1 }
 0xbec   :  { %v11601_v42 = vrot.slane %v11600_v26, 4 }
 0xbee   :  { %v11602_v14 = vadd.f32 %v11601_v42, %v11600_v26 }
 0xbf0   :  { %v11603_v13 = vrot.slane %v11602_v14, 2 }
 0xbf2   :  { %v11604_v15 = vadd.f32 %v11603_v13, %v11602_v14 }
 0xbf4   :  { %v11605_v47 = vrot.slane %v11604_v15, 1 }
 0xbf6   :  { %v11606_v16 = vadd.f32 %v11605_v47, %v11604_v15 }
 0xbf8   :  { %v11608_v19 = vmul.f32 0.5, %v11606_v16 }
 0xbfa   :  { %v11609_v50 = vsub.f32 %v11592_v12, %v11608_v19 }
 0xbfc   :  { %v11610_v8 = vmul.f32 %v11609_v50, %v11609_v50 }
 0xbfe   :  { %v11611_v25 = vmul.f32 %v12594_v29, %v11610_v8 }
 0xc00   :  { %v11612_v41 = vrot.slane %v11611_v25, 4 }
 0xc02   :  { %v11613_v1 = vadd.f32 %v11612_v41, %v11611_v25 }
 0xc04   :  { %v11614_v9 = vrot.slane %v11613_v1, 2 }
 0xc06   :  { %v11615_v31 = vadd.f32 %v11614_v9, %v11613_v1 }
 0xc08   :  { %v11616_v27 = vrot.slane %v11615_v31, 1 }
 0xc0a   :  { %v11617_v30 = vadd.f32 %v11616_v27, %v11615_v31 }
 0xc0c   :  { %v11618_v32 = vmul.f32 0.5, %v11617_v30 }
 0xc0e   :  { %v11619_v46 = vadd.f32 1e-05, %v11618_v32 }
 0xc10   :  { %14506 = vrsqrt.f32 %v11619_v46 }
 0xc1a   :  { %v14507_v6 = vpop.eup %14506 }
 0xc1b   :  { %v11621_v45 = vmul.f32 %v14507_v6, %v11609_v50 }
 0xc1d   :  { %v11626_v60 = vmul.f32 %v11625_v48, %v11621_v45 }
 0xc1f   :  { %v11631_v0 = vadd.f32 %v11630_v58, %v11626_v60 }
 0xc21   :  { %vm11632_vm15 = vcmp.ge.f32.partialorder %v11631_v0, 0.0  ;;  %v11633_v2 = vmul.f32 0.1, %v11631_v0 }
 0xc23   :  { %v11634_v7 = vsel %vm11632_vm15, %v11631_v0, %v11633_v2 }
 0xc24   :  { %v11635_v28 = vpack.c.bf16 %v11634_v7, %v11634_v7 }
 0xc26   :  { %13186 = vmatmul.mubr.bf16.vlgmr.msra.gmra.mrb[44].mxu0 %v11635_v28 }
 0xcf9   :  { %v11738_v22 = vpop.f32.mrb[44].mxu0 }
 0xcfa   :  { %v11739_v52 = vadd.f32 %v11738_v22, %v11655_v56  ;;  %v13187_v21 = vpop.f32.mrb[45].mxu0 }
 0xcfb   :  { %v11741_v38 = vpop.f32.mrb[46].mxu0 }
 0xcfc   :  { %v13188_v11 = vpop.f32.mrb[47].mxu0  ;;  %v11759_v44 = vsel %vm21069_vm3, %v11739_v52, -inf  ;;  %v11749_v23 = vand.u32 2147483647, %v11739_v52  ;;  %vm11753_vm5 = vcmp.ge.f32.partialorder %v11739_v52, 0.0 }
 0xcfd   :  { %11760 = vmax.xlane.f32.xlu0 %v11759_v44 }
 0xcfe   :  { %v11750_v62 = vsub.f32 0.0, %v11749_v23 }
 0xd00   :  { %v11751_v49 = vmul.f32 1.442695, %v11750_v62 }
 0xd8a   :  { %v11761_v3 = vpop.xlane.xlu0 %11760 }
 0xd8b   :  { %v11762_v40 = vsub.f32 %v11739_v52, %v11761_v3 }
 0xd8d   :  { %v11763_v63 = vsel %vm21069_vm3, %v11762_v40, -inf }
 0xd8e   :  { %v11764_v18 = vmul.f32 1.442695, %v11763_v63 }
 0xd90   :  { %14508 = vpow2.f32 %v11764_v18 }
 0xd91   :  { %14510 = vpow2.f32 %v11751_v49 }
 0xd9a   :  { %v14509_v36 = vpop.eup %14508 }
 0xd9b   :  { %11766 = vadd.xlane.f32.xlu0 %v14509_v36  ;;  %v14511_v35 = vpop.eup %14510 }
 0xd9c   :  { %v11754_v59 = vadd.f32 1.0, %v14511_v35 }
 0xd9e   :  { %14512 = vrcp.f32 %v11754_v59 }
 0xda8   :  { %v14513_v57 = vpop.eup %14512 }
 0xda9   :  { %v11757_v20 = vmul.f32 %v14513_v57, %v14511_v35 }
 0xdab   :  { %v11758_v53 = vsel %vm11753_vm5, %v14513_v57, %v11757_v20 }
 0xe28   :  { %v11767_v61 = vpop.xlane.xlu0 %11766 }
 0xe29   :  { %14514 = vrcp.f32 %v11767_v61 }
 0xe33   :  { %v14515_v39 = vpop.eup %14514 }
 0xe34   :  { %v11769_v37 = vmul.f32 %v14515_v39, %v14509_v36 }
 0xe36   :  { %v11771_v51 = vsel %vm21069_vm3, %v11769_v37, %v11739_v52 }
 0xe37   :  { %v11772_v29 = vsel %vm11770_vm4, %v11758_v53, %v11771_v51 }
 0xe38   :  { %11773 = vst [vmem:[%s21088_s6] sm:$0xff] %v11772_v29 }

</bundles_post_ra>
